<compile_context>
chip_gen: v7x
topology: tpu7x:2x2x1
jax: 0.10.0
libtpu: 0.0.40
codegen_flags: <defaults>
</compile_context>

<pallas_src>
import functools

import numpy as np
import jax
import jax.numpy as jnp
from jax import lax
from jax.experimental import pallas as pl
from jax.experimental.pallas import tpu as pltpu


def _round_up(x, m):
    return (x + m - 1) // m * m


def _phase_taps(K, s, p):
    """Polyphase tap table.  For output index o = q*s + r the contributing kernel
    taps are k ≡ (r + p) (mod s) and the input index read is q + d with
    d = (r + p - k) // s.  Returns, per residue r, the sorted list of offsets d."""
    out = []
    for r in range(s):
        ds_ = sorted((r + p - k) // s for k in range(K) if (r + p - k) % s == 0)
        out.append(ds_)
    return out


# ---------------------------------------------------------------------------
# kernels
# ---------------------------------------------------------------------------

def _conv_phase(x_ref, w_ref, lhs_ref, *, ph, dh_list, dw_list, q0, TQ, Wq,
                Cin_p, pad_top, pad_left, Dt):
    """One polyphase sub-convolution of the current row tile.

    Assembles the tap-folded lhs (TQ*Wq, Dt*Dt*Cin_p) in a VMEM scratch
    (im2col-in-VMEM) and issues a single MXU matmul whose contraction covers all
    taps*Cin at once.  The matmul is computed in A.B^T form so the result is
    already channel-major: (Cp, TQ*Wq) f32, with the spatial axis on lanes.
    """
    R = TQ * Wq
    for a, dh in enumerate(dh_list):
        row0 = q0 + (dh + pad_top)            # row shift: major dim -> cheap slice
        for b, dw in enumerate(dw_list):
            # column shift: small static sublane offset
            win = x_ref[0, pl.ds(row0, TQ), pl.ds(dw + pad_left, Wq), :]
            c0 = (a * Dt + b) * Cin_p
            lhs_ref[:, c0:c0 + Cin_p] = win.reshape(R, Cin_p)
    # (Cp, depth) x (R, depth)^T -> (Cp, R), f32 accumulation on the MXU.
    return lax.dot_general(
        w_ref[ph], lhs_ref[...],
        dimension_numbers=(((1,), (1,)), ((), ())),
        preferred_element_type=jnp.float32)


def _stats_kernel(x_ref, w_ref, stats_ref, lhs_ref, *, stride, dh_lists,
                  dw_lists, TQ, Wq, Cin_p, Cp, pad_top, pad_left, Dt,
                  Ho, Wo, needs_mask):
    """Pass 1: per-(image, row-tile) channel sums / sums-of-squares of the pre-BN
    conv, accumulated across phases in values and stored once."""
    q0 = pl.program_id(1) * TQ
    if TQ % 8 == 0:
        q0 = pl.multiple_of(q0, 8)
    R = TQ * Wq
    if needs_mask:
        ridx = lax.broadcasted_iota(jnp.int32, (1, R), 1)
        qh = q0 + ridx // Wq
        qw = ridx % Wq
    ssum = jnp.zeros((Cp, 1), jnp.float32)
    ssq = jnp.zeros((Cp, 1), jnp.float32)
    for rh in range(stride):
        for rw in range(stride):
            ph = rh * stride + rw
            y = _conv_phase(x_ref, w_ref, lhs_ref, ph=ph,
                            dh_list=dh_lists[rh], dw_list=dw_lists[rw],
                            q0=q0, TQ=TQ, Wq=Wq, Cin_p=Cin_p,
                            pad_top=pad_top, pad_left=pad_left, Dt=Dt)
            if needs_mask:
                # drop padded rows / ragged-phase columns from the BN moments
                valid = ((qh * stride + rh) < Ho) & ((qw * stride + rw) < Wo)
                y = jnp.where(valid, y, 0.0)
            ssum = ssum + jnp.sum(y, axis=1, keepdims=True)
            ssq = ssq + jnp.sum(y * y, axis=1, keepdims=True)
    stats_ref[0, 0, :, 0:1] = ssum
    stats_ref[0, 0, :, 1:2] = ssq


def _apply_kernel(x_ref, w_ref, scale_ref, shift_ref, o_ref, lhs_ref, *,
                  stride, dh_lists, dw_lists, TQ, Wq, Cin_p, C8, pad_top,
                  pad_left, Dt):
    """Pass 2: recompute the (single-matmul) conv tile, apply the folded BatchNorm
    scale/shift + ReLU, store only the real channels in bf16, spatial on lanes."""
    q0 = pl.program_id(1) * TQ
    if TQ % 8 == 0:
        q0 = pl.multiple_of(q0, 8)
    for rh in range(stride):
        for rw in range(stride):
            ph = rh * stride + rw
            y = _conv_phase(x_ref, w_ref, lhs_ref, ph=ph,
                            dh_list=dh_lists[rh], dw_list=dw_lists[rw],
                            q0=q0, TQ=TQ, Wq=Wq, Cin_p=Cin_p,
                            pad_top=pad_top, pad_left=pad_left, Dt=Dt)
            z = jnp.maximum(y[:C8, :] * scale_ref[...] + shift_ref[...], 0.0)
            o_ref[0, ph, 0] = z.astype(o_ref.dtype)


# ---------------------------------------------------------------------------
# wrapper
# ---------------------------------------------------------------------------

def upsample_forward(x_nchw, weight, gamma, beta, *, stride, padding, eps=1e-5):
    """UpSample forward: ConvTranspose2d(K, stride, padding, bias=False) ->
    BatchNorm2d (training-mode statistics) -> ReLU.
    `weight` has the PyTorch ConvTranspose2d layout (Cin, Cout, K, K)."""
    N, Cin, Hi, Wi = x_nchw.shape
    Cout, K = weight.shape[1], weight.shape[2]
    s, p = stride, padding
    Ho = (Hi - 1) * s - 2 * p + K
    Wo = (Wi - 1) * s - 2 * p + K
    assert Ho > 0 and Wo > 0
    assert 1 <= s <= K, "polyphase decomposition assumes stride <= kernel size"

    # ---- static polyphase tap tables ----
    dh_real = _phase_taps(K, s, p)
    dw_real = _phase_taps(K, s, p)                    # square kernel -> same table
    Dt = max(len(l) for l in dh_real)                 # taps per phase per dim (= ceil(K/s))
    dh_pad = [l + [l[0]] * (Dt - len(l)) for l in dh_real]   # padded taps keep zero weights
    dw_pad = [l + [l[0]] * (Dt - len(l)) for l in dw_real]
    dmin_h = min(min(l) for l in dh_pad); dmax_h = max(max(l) for l in dh_pad)
    dmin_w = min(min(l) for l in dw_pad); dmax_w = max(max(l) for l in dw_pad)
    pad_top, pad_left = max(0, -dmin_h), max(0, -dmin_w)

    Hq, Wq = -(-Ho // s), -(-Wo // s)                 # quotient-grid extents
    PH = s * s
    Cin_p = _round_up(Cin, 8)
    Cp = _round_up(Cout, 128)                          # MXU/lane-padded matmul width
    C8 = _round_up(Cout, 8)                            # channels actually stored
    depth = Dt * Dt * Cin_p                            # folded contraction depth

    # ---- row tiling: cdiv grid + masking (no divisibility requirement) ----
    TQ = max(1, min(Hq, 1024 // max(1, Wq)))
    # keep the per-tile working set small; the resident input plane is the dominant
    # term and is covered by the explicit vmem limit below.
    while TQ > 1 and TQ * Wq * (PH * C8 * 2 + depth * 2 + Cp * 4) > 8 * 1024 * 1024:
        TQ = -(-TQ // 2)
    T = -(-Hq // TQ)
    R = TQ * Wq
    needs_mask = (T * TQ != Hq) or (Ho % s != 0) or (Wo % s != 0)

    # ---- input plane: NCHW -> NHWC, zero-pad so every tap window is in bounds, bf16.
    Hx_needed = T * TQ + dmax_h + pad_top
    Wx_needed = Wq + dmax_w + pad_left
    pad_bot = max(0, Hx_needed - (pad_top + Hi))
    pad_right = max(0, Wx_needed - (pad_left + Wi))
    x = jnp.transpose(x_nchw, (0, 2, 3, 1))
    xp = jnp.pad(x, ((0, 0), (pad_top, pad_bot), (pad_left, pad_right),
                     (0, Cin_p - Cin))).astype(jnp.bfloat16)
    _, Hx, Wx, _ = xp.shape

    # ---- per-phase tap-folded weights, (Cp, depth) layout for the A.B^T matmul ----
    wt = jnp.zeros((PH, Dt, Dt, Cin_p, Cp), jnp.float32)
    for rh in range(s):
        for rw in range(s):
            ph = rh * s + rw
            for a, dh in enumerate(dh_real[rh]):
                kh = rh + p - s * dh
                for b, dw in enumerate(dw_real[rw]):
                    kw = rw + p - s * dw
                    wt = wt.at[ph, a, b, :Cin, :Cout].set(
                        weight[:, :, kh, kw].astype(jnp.float32))
    w_t = jnp.transpose(wt.reshape(PH, depth, Cp), (0, 2, 1)).astype(jnp.bfloat16)

    grid = (N, T)
    # bias the megacore split to the batch axis when N > 1 so each core only
    # fetches the planes of its own images.
    dims = ("parallel", "parallel" if N == 1 else "arbitrary")
    cparams = pltpu.CompilerParams(dimension_semantics=dims,
                                   vmem_limit_bytes=48 * 1024 * 1024)

    # TODO(synk): for large Hi*Wi replace the whole-plane spec with a halo'd
    # manual-DMA row-band fetch (memory_space=pl.ANY + make_async_copy).
    x_spec = pl.BlockSpec((1, Hx, Wx, Cin_p), lambda n, t: (n, 0, 0, 0))
    w_spec = pl.BlockSpec((PH, Cp, depth), lambda n, t: (0, 0, 0))
    lhs_scratch = pltpu.VMEM((R, depth), jnp.bfloat16)

    conv_flops = 2 * N * T * PH * R * depth * Cp
    in_bytes = xp.size * 2 + w_t.size * 2
    common = dict(stride=s, dh_lists=dh_pad, dw_lists=dw_pad, TQ=TQ, Wq=Wq,
                  Cin_p=Cin_p, pad_top=pad_top, pad_left=pad_left, Dt=Dt)

    # ---- pass 1: exact per-tile channel moments of the pre-BN conv ----
    stats = pl.pallas_call(
        functools.partial(_stats_kernel, Cp=Cp, Ho=Ho, Wo=Wo,
                          needs_mask=needs_mask, **common),
        out_shape=jax.ShapeDtypeStruct((N, T, Cp, 2), jnp.float32),
        grid_spec=pltpu.PrefetchScalarGridSpec(
            num_scalar_prefetch=0, grid=grid,
            in_specs=[x_spec, w_spec],
            out_specs=pl.BlockSpec((1, 1, Cp, 2), lambda n, t: (n, t, 0, 0)),
            scratch_shapes=[lhs_scratch]),
        compiler_params=cparams,
        cost_estimate=pl.CostEstimate(flops=conv_flops, transcendentals=0,
                                      bytes_accessed=in_bytes + N * T * Cp * 8),
    )(xp, w_t)

    # ---- tiny global reduction; fold gamma/beta into one per-channel scale/shift ----
    # TODO(synk): switch to Welford-style tile moments if N*Ho*Wo becomes very large;
    # the single-pass E[y^2]-E[y]^2 form is fine at these scales.
    M = N * Ho * Wo
    ssum = jnp.sum(stats[..., 0], axis=(0, 1))[:Cout]
    ssq = jnp.sum(stats[..., 1], axis=(0, 1))[:Cout]
    mean = ssum / M
    var = jnp.maximum(ssq / M - mean * mean, 0.0)      # biased, as PyTorch training BN
    scale = gamma.astype(jnp.float32) * lax.rsqrt(var + eps)
    shift = beta.astype(jnp.float32) - mean * scale
    scale = jnp.pad(scale, (0, C8 - Cout)).reshape(C8, 1)
    shift = jnp.pad(shift, (0, C8 - Cout)).reshape(C8, 1)
    vec_spec = pl.BlockSpec((C8, 1), lambda n, t: (0, 0))

    # ---- pass 2: recompute the conv, apply BN + ReLU, channel-compact bf16 store ----
    ker = pl.pallas_call(
        functools.partial(_apply_kernel, C8=C8, **common),
        out_shape=jax.ShapeDtypeStruct((N, PH, T, C8, R), jnp.bfloat16),
        grid_spec=pltpu.PrefetchScalarGridSpec(
            num_scalar_prefetch=0, grid=grid,
            in_specs=[x_spec, w_spec, vec_spec, vec_spec],
            out_specs=pl.BlockSpec((1, PH, 1, C8, R), lambda n, t: (n, 0, t, 0, 0)),
            scratch_shapes=[lhs_scratch]),
        compiler_params=cparams,
        cost_estimate=pl.CostEstimate(flops=conv_flops, transcendentals=0,
                                      bytes_accessed=in_bytes + N * PH * T * C8 * R * 2),
    )(xp, w_t, scale, shift)

    # ---- un-shuffle the polyphase layout back to NCHW (cheap layout glue on the
    #      compact bf16 tensor) and crop the tiling / phase padding ----
    out = ker.reshape(N, s, s, T, C8, TQ, Wq)
    out = jnp.transpose(out, (0, 4, 3, 5, 1, 6, 2))    # (N, C8, T, TQ, s, Wq, s)
    out = out.reshape(N, C8, T * TQ * s, Wq * s)
    return out[:, :Cout, :Ho, :Wo].astype(jnp.float32)


def upsample_ref(x_nchw, weight, gamma, beta, *, stride, padding, eps=1e-5):
    """Pure-JAX reference for the PyTorch forward (training-mode BatchNorm)."""
    K = weight.shape[2]
    s, p = stride, padding
    w_conv = jnp.flip(jnp.transpose(weight, (1, 0, 2, 3)), axis=(2, 3))  # (Cout, Cin, K, K)
    y = lax.conv_general_dilated(
        x_nchw, w_conv, window_strides=(1, 1),
        padding=[(K - 1 - p, K - 1 - p)] * 2,
        lhs_dilation=(s, s),
        dimension_numbers=('NCHW', 'OIHW', 'NCHW'),
        precision=lax.Precision.HIGHEST)
    mean = jnp.mean(y, axis=(0, 2, 3), keepdims=True)
    var = jnp.mean(jnp.square(y - mean), axis=(0, 2, 3), keepdims=True)
    out = (y - mean) * lax.rsqrt(var + eps) * gamma.reshape(1, -1, 1, 1) \
        + beta.reshape(1, -1, 1, 1)
    return jnp.maximum(out, 0.0)


if __name__ == "__main__":
    # UpSample(ch_in=4, ch_out=8, stride=2, padding=1) on x of shape (2, 4, 16, 16)
    N, Cin, Cout, H, W = 2, 4, 8, 16, 16
    K, stride, padding = 4, 2, 1

    key = jax.random.PRNGKey(0)
    k1, k2, k3, k4 = jax.random.split(key, 4)
    x = jax.random.normal(k1, (N, Cin, H, W), jnp.float32)
    # ConvTranspose2d weight (Cin, Cout, K, K); BatchNorm gamma/beta (Cout,)
    weight = 0.1 * jax.random.normal(k2, (Cin, Cout, K, K), jnp.float32)
    gamma = 1.0 + 0.1 * jax.random.normal(k3, (Cout,), jnp.float32)
    beta = 0.1 * jax.random.normal(k4, (Cout,), jnp.float32)

    out = upsample_forward(x, weight, gamma, beta, stride=stride, padding=padding)
    out = jax.block_until_ready(out)

    Ho = (H - 1) * stride - 2 * padding + K
    Wo = (W - 1) * stride - 2 * padding + K
    assert out.shape == (N, Cout, Ho, Wo), out.shape

    ref = upsample_ref(x, weight, gamma, beta, stride=stride, padding=padding)
    # bf16 matmul inputs / bf16 writeback (f32 accumulation) -> loose tolerance.
    np.testing.assert_allclose(np.asarray(out), np.asarray(ref), atol=2e-2, rtol=2e-2)

    print("KERNEL_OK")
</pallas_src>

<mosaic_0001>
module attributes {stable_mosaic.version = 11 : i64} {
  func.func @_stats_kernel(%arg0: i32, %arg1: i32, %arg2: memref<1x18x18x8xbf16, #tpu.memory_space<vmem>>, %arg3: memref<4x128x32xbf16, #tpu.memory_space<vmem>>, %arg4: memref<1x1x128x2xf32, #tpu.memory_space<vmem>>, %arg5: memref<256x32xbf16, #tpu.memory_space<vmem>>) attributes {dimension_semantics = [#tpu.dimension_semantics<parallel>, #tpu.dimension_semantics<arbitrary>], iteration_bounds = array<i64: 2, 1>, scalar_prefetch = 0 : i64, scratch_operands = 1 : i64, tpu.core_type = #tpu.core_type<tc>, window_params = [{transform_indices = @transform_0, window_bounds = array<i64: 1, 18, 18, 8>}, {pipeline_mode = #tpu.pipeline_mode<synchronous>, transform_indices = @transform_1, window_bounds = array<i64: 4, 128, 32>}, {transform_indices = @transform_2, window_bounds = array<i64: 1, 1, 128, 2>}]} {
    %c16_i32 = arith.constant 16 : i32
    %0 = arith.muli %arg1, %c16_i32 : i32
    %1 = tpu.assume_multiple %0, 8 : i32
    %cst = arith.constant 0.000000e+00 : f32
    %2 = vector.broadcast %cst : f32 to vector<128x1xf32>
    %cst_0 = arith.constant 0.000000e+00 : f32
    %3 = vector.broadcast %cst_0 : f32 to vector<128x1xf32>
    %c0_i32 = arith.constant 0 : i32
    %4 = arith.addi %1, %c0_i32 : i32
    %c0 = arith.constant 0 : index
    %5 = arith.index_cast %4 : i32 to index
    %c0_1 = arith.constant 0 : index
    %c0_2 = arith.constant 0 : index
    %6 = vector.load %arg2[%c0, %5, %c0_1, %c0_2] : memref<1x18x18x8xbf16, #tpu.memory_space<vmem>>, vector<1x16x16x8xbf16>
    %7 = vector.shape_cast %6 : vector<1x16x16x8xbf16> to vector<16x16x8xbf16>
    %8 = vector.shape_cast %7 : vector<16x16x8xbf16> to vector<256x8xbf16>
    %c0_3 = arith.constant 0 : index
    %c0_4 = arith.constant 0 : index
    %9 = vector.load %arg5[%c0_3, %c0_4] : memref<256x32xbf16, #tpu.memory_space<vmem>>, vector<256x8xbf16>
    tpu.vector_store %arg5[%c0_3, %c0_4], %8 {strides = array<i32>} : memref<256x32xbf16, #tpu.memory_space<vmem>>, vector<256x8xbf16>,
    %c0_5 = arith.constant 0 : index
    %10 = arith.index_cast %4 : i32 to index
    %c1 = arith.constant 1 : index
    %c0_6 = arith.constant 0 : index
    %11 = vector.load %arg2[%c0_5, %10, %c1, %c0_6] : memref<1x18x18x8xbf16, #tpu.memory_space<vmem>>, vector<1x16x16x8xbf16>
    %12 = vector.shape_cast %11 : vector<1x16x16x8xbf16> to vector<16x16x8xbf16>
    %13 = vector.shape_cast %12 : vector<16x16x8xbf16> to vector<256x8xbf16>
    %c0_7 = arith.constant 0 : index
    %c8 = arith.constant 8 : index
    %14 = vector.load %arg5[%c0_7, %c8] : memref<256x32xbf16, #tpu.memory_space<vmem>>, vector<256x8xbf16>
    tpu.vector_store %arg5[%c0_7, %c8], %13 {strides = array<i32>} : memref<256x32xbf16, #tpu.memory_space<vmem>>, vector<256x8xbf16>,
    %c1_i32 = arith.constant 1 : i32
    %15 = arith.addi %1, %c1_i32 : i32
    %c0_8 = arith.constant 0 : index
    %16 = arith.index_cast %15 : i32 to index
    %c0_9 = arith.constant 0 : index
    %c0_10 = arith.constant 0 : index
    %17 = vector.load %arg2[%c0_8, %16, %c0_9, %c0_10] : memref<1x18x18x8xbf16, #tpu.memory_space<vmem>>, vector<1x16x16x8xbf16>
    %18 = vector.shape_cast %17 : vector<1x16x16x8xbf16> to vector<16x16x8xbf16>
    %19 = vector.shape_cast %18 : vector<16x16x8xbf16> to vector<256x8xbf16>
    %c0_11 = arith.constant 0 : index
    %c16 = arith.constant 16 : index
    %20 = vector.load %arg5[%c0_11, %c16] : memref<256x32xbf16, #tpu.memory_space<vmem>>, vector<256x8xbf16>
    tpu.vector_store %arg5[%c0_11, %c16], %19 {strides = array<i32>} : memref<256x32xbf16, #tpu.memory_space<vmem>>, vector<256x8xbf16>,
    %c0_12 = arith.constant 0 : index
    %21 = arith.index_cast %15 : i32 to index
    %c1_13 = arith.constant 1 : index
    %c0_14 = arith.constant 0 : index
    %22 = vector.load %arg2[%c0_12, %21, %c1_13, %c0_14] : memref<1x18x18x8xbf16, #tpu.memory_space<vmem>>, vector<1x16x16x8xbf16>
    %23 = vector.shape_cast %22 : vector<1x16x16x8xbf16> to vector<16x16x8xbf16>
    %24 = vector.shape_cast %23 : vector<16x16x8xbf16> to vector<256x8xbf16>
    %c0_15 = arith.constant 0 : index
    %c24 = arith.constant 24 : index
    %25 = vector.load %arg5[%c0_15, %c24] : memref<256x32xbf16, #tpu.memory_space<vmem>>, vector<256x8xbf16>
    tpu.vector_store %arg5[%c0_15, %c24], %24 {strides = array<i32>} : memref<256x32xbf16, #tpu.memory_space<vmem>>, vector<256x8xbf16>,
    %c0_16 = arith.constant 0 : index
    %c0_17 = arith.constant 0 : index
    %c0_18 = arith.constant 0 : index
    %26 = vector.load %arg3[%c0_16, %c0_17, %c0_18] : memref<4x128x32xbf16, #tpu.memory_space<vmem>>, vector<1x128x32xbf16>
    %27 = vector.shape_cast %26 : vector<1x128x32xbf16> to vector<128x32xbf16>
    %c0_19 = arith.constant 0 : index
    %c0_20 = arith.constant 0 : index
    %28 = vector.load %arg5[%c0_19, %c0_20] : memref<256x32xbf16, #tpu.memory_space<vmem>>, vector<256x32xbf16>
    %cst_21 = arith.constant dense<0.000000e+00> : vector<128x256xf32>
    %29 = tpu.matmul %27, %28, %cst_21 {dimension_numbers = #tpu.dot_dimension_numbers<[1], [1], [0], [0], [0, 0, 1, 0], [], []>} : vector<128x32xbf16>, vector<256x32xbf16>, vector<128x256xf32> -> vector<128x256xf32>
    %cst_22 = arith.constant dense<0.000000e+00> : vector<128xf32>
    %30 = vector.multi_reduction <add>, %29, %cst_22 [1] : vector<128x256xf32> to vector<128xf32>
    %31 = vector.shape_cast %30 : vector<128xf32> to vector<128x1xf32>
    %32 = arith.addf %2, %31 : vector<128x1xf32>
    %33 = arith.mulf %29, %29 : vector<128x256xf32>
    %cst_23 = arith.constant dense<0.000000e+00> : vector<128xf32>
    %34 = vector.multi_reduction <add>, %33, %cst_23 [1] : vector<128x256xf32> to vector<128xf32>
    %35 = vector.shape_cast %34 : vector<128xf32> to vector<128x1xf32>
    %36 = arith.addf %3, %35 : vector<128x1xf32>
    %c0_i32_24 = arith.constant 0 : i32
    %37 = arith.addi %1, %c0_i32_24 : i32
    %c0_25 = arith.constant 0 : index
    %38 = arith.index_cast %37 : i32 to index
    %c1_26 = arith.constant 1 : index
    %c0_27 = arith.constant 0 : index
    %39 = vector.load %arg2[%c0_25, %38, %c1_26, %c0_27] : memref<1x18x18x8xbf16, #tpu.memory_space<vmem>>, vector<1x16x16x8xbf16>
    %40 = vector.shape_cast %39 : vector<1x16x16x8xbf16> to vector<16x16x8xbf16>
    %41 = vector.shape_cast %40 : vector<16x16x8xbf16> to vector<256x8xbf16>
    %c0_28 = arith.constant 0 : index
    %c0_29 = arith.constant 0 : index
    %42 = vector.load %arg5[%c0_28, %c0_29] : memref<256x32xbf16, #tpu.memory_space<vmem>>, vector<256x8xbf16>
    tpu.vector_store %arg5[%c0_28, %c0_29], %41 {strides = array<i32>} : memref<256x32xbf16, #tpu.memory_space<vmem>>, vector<256x8xbf16>,
    %c0_30 = arith.constant 0 : index
    %43 = arith.index_cast %37 : i32 to index
    %c2 = arith.constant 2 : index
    %c0_31 = arith.constant 0 : index
    %44 = vector.load %arg2[%c0_30, %43, %c2, %c0_31] : memref<1x18x18x8xbf16, #tpu.memory_space<vmem>>, vector<1x16x16x8xbf16>
    %45 = vector.shape_cast %44 : vector<1x16x16x8xbf16> to vector<16x16x8xbf16>
    %46 = vector.shape_cast %45 : vector<16x16x8xbf16> to vector<256x8xbf16>
    %c0_32 = arith.constant 0 : index
    %c8_33 = arith.constant 8 : index
    %47 = vector.load %arg5[%c0_32, %c8_33] : memref<256x32xbf16, #tpu.memory_space<vmem>>, vector<256x8xbf16>
    tpu.vector_store %arg5[%c0_32, %c8_33], %46 {strides = array<i32>} : memref<256x32xbf16, #tpu.memory_space<vmem>>, vector<256x8xbf16>,
    %c1_i32_34 = arith.constant 1 : i32
    %48 = arith.addi %1, %c1_i32_34 : i32
    %c0_35 = arith.constant 0 : index
    %49 = arith.index_cast %48 : i32 to index
    %c1_36 = arith.constant 1 : index
    %c0_37 = arith.constant 0 : index
    %50 = vector.load %arg2[%c0_35, %49, %c1_36, %c0_37] : memref<1x18x18x8xbf16, #tpu.memory_space<vmem>>, vector<1x16x16x8xbf16>
    %51 = vector.shape_cast %50 : vector<1x16x16x8xbf16> to vector<16x16x8xbf16>
    %52 = vector.shape_cast %51 : vector<16x16x8xbf16> to vector<256x8xbf16>
    %c0_38 = arith.constant 0 : index
    %c16_39 = arith.constant 16 : index
    %53 = vector.load %arg5[%c0_38, %c16_39] : memref<256x32xbf16, #tpu.memory_space<vmem>>, vector<256x8xbf16>
    tpu.vector_store %arg5[%c0_38, %c16_39], %52 {strides = array<i32>} : memref<256x32xbf16, #tpu.memory_space<vmem>>, vector<256x8xbf16>,
    %c0_40 = arith.constant 0 : index
    %54 = arith.index_cast %48 : i32 to index
    %c2_41 = arith.constant 2 : index
    %c0_42 = arith.constant 0 : index
    %55 = vector.load %arg2[%c0_40, %54, %c2_41, %c0_42] : memref<1x18x18x8xbf16, #tpu.memory_space<vmem>>, vector<1x16x16x8xbf16>
    %56 = vector.shape_cast %55 : vector<1x16x16x8xbf16> to vector<16x16x8xbf16>
    %57 = vector.shape_cast %56 : vector<16x16x8xbf16> to vector<256x8xbf16>
    %c0_43 = arith.constant 0 : index
    %c24_44 = arith.constant 24 : index
    %58 = vector.load %arg5[%c0_43, %c24_44] : memref<256x32xbf16, #tpu.memory_space<vmem>>, vector<256x8xbf16>
    tpu.vector_store %arg5[%c0_43, %c24_44], %57 {strides = array<i32>} : memref<256x32xbf16, #tpu.memory_space<vmem>>, vector<256x8xbf16>,
    %c1_45 = arith.constant 1 : index
    %c0_46 = arith.constant 0 : index
    %c0_47 = arith.constant 0 : index
    %59 = vector.load %arg3[%c1_45, %c0_46, %c0_47] : memref<4x128x32xbf16, #tpu.memory_space<vmem>>, vector<1x128x32xbf16>
    %60 = vector.shape_cast %59 : vector<1x128x32xbf16> to vector<128x32xbf16>
    %c0_48 = arith.constant 0 : index
    %c0_49 = arith.constant 0 : index
    %61 = vector.load %arg5[%c0_48, %c0_49] : memref<256x32xbf16, #tpu.memory_space<vmem>>, vector<256x32xbf16>
    %cst_50 = arith.constant dense<0.000000e+00> : vector<128x256xf32>
    %62 = tpu.matmul %60, %61, %cst_50 {dimension_numbers = #tpu.dot_dimension_numbers<[1], [1], [0], [0], [0, 0, 1, 0], [], []>} : vector<128x32xbf16>, vector<256x32xbf16>, vector<128x256xf32> -> vector<128x256xf32>
    %cst_51 = arith.constant dense<0.000000e+00> : vector<128xf32>
    %63 = vector.multi_reduction <add>, %62, %cst_51 [1] : vector<128x256xf32> to vector<128xf32>
    %64 = vector.shape_cast %63 : vector<128xf32> to vector<128x1xf32>
    %65 = arith.addf %32, %64 : vector<128x1xf32>
    %66 = arith.mulf %62, %62 : vector<128x256xf32>
    %cst_52 = arith.constant dense<0.000000e+00> : vector<128xf32>
    %67 = vector.multi_reduction <add>, %66, %cst_52 [1] : vector<128x256xf32> to vector<128xf32>
    %68 = vector.shape_cast %67 : vector<128xf32> to vector<128x1xf32>
    %69 = arith.addf %36, %68 : vector<128x1xf32>
    %c1_i32_53 = arith.constant 1 : i32
    %70 = arith.addi %1, %c1_i32_53 : i32
    %c0_54 = arith.constant 0 : index
    %71 = arith.index_cast %70 : i32 to index
    %c0_55 = arith.constant 0 : index
    %c0_56 = arith.constant 0 : index
    %72 = vector.load %arg2[%c0_54, %71, %c0_55, %c0_56] : memref<1x18x18x8xbf16, #tpu.memory_space<vmem>>, vector<1x16x16x8xbf16>
    %73 = vector.shape_cast %72 : vector<1x16x16x8xbf16> to vector<16x16x8xbf16>
    %74 = vector.shape_cast %73 : vector<16x16x8xbf16> to vector<256x8xbf16>
    %c0_57 = arith.constant 0 : index
    %c0_58 = arith.constant 0 : index
    %75 = vector.load %arg5[%c0_57, %c0_58] : memref<256x32xbf16, #tpu.memory_space<vmem>>, vector<256x8xbf16>
    tpu.vector_store %arg5[%c0_57, %c0_58], %74 {strides = array<i32>} : memref<256x32xbf16, #tpu.memory_space<vmem>>, vector<256x8xbf16>,
    %c0_59 = arith.constant 0 : index
    %76 = arith.index_cast %70 : i32 to index
    %c1_60 = arith.constant 1 : index
    %c0_61 = arith.constant 0 : index
    %77 = vector.load %arg2[%c0_59, %76, %c1_60, %c0_61] : memref<1x18x18x8xbf16, #tpu.memory_space<vmem>>, vector<1x16x16x8xbf16>
    %78 = vector.shape_cast %77 : vector<1x16x16x8xbf16> to vector<16x16x8xbf16>
    %79 = vector.shape_cast %78 : vector<16x16x8xbf16> to vector<256x8xbf16>
    %c0_62 = arith.constant 0 : index
    %c8_63 = arith.constant 8 : index
    %80 = vector.load %arg5[%c0_62, %c8_63] : memref<256x32xbf16, #tpu.memory_space<vmem>>, vector<256x8xbf16>
    tpu.vector_store %arg5[%c0_62, %c8_63], %79 {strides = array<i32>} : memref<256x32xbf16, #tpu.memory_space<vmem>>, vector<256x8xbf16>,
    %c2_i32 = arith.constant 2 : i32
    %81 = arith.addi %1, %c2_i32 : i32
    %c0_64 = arith.constant 0 : index
    %82 = arith.index_cast %81 : i32 to index
    %c0_65 = arith.constant 0 : index
    %c0_66 = arith.constant 0 : index
    %83 = vector.load %arg2[%c0_64, %82, %c0_65, %c0_66] : memref<1x18x18x8xbf16, #tpu.memory_space<vmem>>, vector<1x16x16x8xbf16>
    %84 = vector.shape_cast %83 : vector<1x16x16x8xbf16> to vector<16x16x8xbf16>
    %85 = vector.shape_cast %84 : vector<16x16x8xbf16> to vector<256x8xbf16>
    %c0_67 = arith.constant 0 : index
    %c16_68 = arith.constant 16 : index
    %86 = vector.load %arg5[%c0_67, %c16_68] : memref<256x32xbf16, #tpu.memory_space<vmem>>, vector<256x8xbf16>
    tpu.vector_store %arg5[%c0_67, %c16_68], %85 {strides = array<i32>} : memref<256x32xbf16, #tpu.memory_space<vmem>>, vector<256x8xbf16>,
    %c0_69 = arith.constant 0 : index
    %87 = arith.index_cast %81 : i32 to index
    %c1_70 = arith.constant 1 : index
    %c0_71 = arith.constant 0 : index
    %88 = vector.load %arg2[%c0_69, %87, %c1_70, %c0_71] : memref<1x18x18x8xbf16, #tpu.memory_space<vmem>>, vector<1x16x16x8xbf16>
    %89 = vector.shape_cast %88 : vector<1x16x16x8xbf16> to vector<16x16x8xbf16>
    %90 = vector.shape_cast %89 : vector<16x16x8xbf16> to vector<256x8xbf16>
    %c0_72 = arith.constant 0 : index
    %c24_73 = arith.constant 24 : index
    %91 = vector.load %arg5[%c0_72, %c24_73] : memref<256x32xbf16, #tpu.memory_space<vmem>>, vector<256x8xbf16>
    tpu.vector_store %arg5[%c0_72, %c24_73], %90 {strides = array<i32>} : memref<256x32xbf16, #tpu.memory_space<vmem>>, vector<256x8xbf16>,
    %c2_74 = arith.constant 2 : index
    %c0_75 = arith.constant 0 : index
    %c0_76 = arith.constant 0 : index
    %92 = vector.load %arg3[%c2_74, %c0_75, %c0_76] : memref<4x128x32xbf16, #tpu.memory_space<vmem>>, vector<1x128x32xbf16>
    %93 = vector.shape_cast %92 : vector<1x128x32xbf16> to vector<128x32xbf16>
    %c0_77 = arith.constant 0 : index
    %c0_78 = arith.constant 0 : index
    %94 = vector.load %arg5[%c0_77, %c0_78] : memref<256x32xbf16, #tpu.memory_space<vmem>>, vector<256x32xbf16>
    %cst_79 = arith.constant dense<0.000000e+00> : vector<128x256xf32>
    %95 = tpu.matmul %93, %94, %cst_79 {dimension_numbers = #tpu.dot_dimension_numbers<[1], [1], [0], [0], [0, 0, 1, 0], [], []>} : vector<128x32xbf16>, vector<256x32xbf16>, vector<128x256xf32> -> vector<128x256xf32>
    %cst_80 = arith.constant dense<0.000000e+00> : vector<128xf32>
    %96 = vector.multi_reduction <add>, %95, %cst_80 [1] : vector<128x256xf32> to vector<128xf32>
    %97 = vector.shape_cast %96 : vector<128xf32> to vector<128x1xf32>
    %98 = arith.addf %65, %97 : vector<128x1xf32>
    %99 = arith.mulf %95, %95 : vector<128x256xf32>
    %cst_81 = arith.constant dense<0.000000e+00> : vector<128xf32>
    %100 = vector.multi_reduction <add>, %99, %cst_81 [1] : vector<128x256xf32> to vector<128xf32>
    %101 = vector.shape_cast %100 : vector<128xf32> to vector<128x1xf32>
    %102 = arith.addf %69, %101 : vector<128x1xf32>
    %c1_i32_82 = arith.constant 1 : i32
    %103 = arith.addi %1, %c1_i32_82 : i32
    %c0_83 = arith.constant 0 : index
    %104 = arith.index_cast %103 : i32 to index
    %c1_84 = arith.constant 1 : index
    %c0_85 = arith.constant 0 : index
    %105 = vector.load %arg2[%c0_83, %104, %c1_84, %c0_85] : memref<1x18x18x8xbf16, #tpu.memory_space<vmem>>, vector<1x16x16x8xbf16>
    %106 = vector.shape_cast %105 : vector<1x16x16x8xbf16> to vector<16x16x8xbf16>
    %107 = vector.shape_cast %106 : vector<16x16x8xbf16> to vector<256x8xbf16>
    %c0_86 = arith.constant 0 : index
    %c0_87 = arith.constant 0 : index
    %108 = vector.load %arg5[%c0_86, %c0_87] : memref<256x32xbf16, #tpu.memory_space<vmem>>, vector<256x8xbf16>
    tpu.vector_store %arg5[%c0_86, %c0_87], %107 {strides = array<i32>} : memref<256x32xbf16, #tpu.memory_space<vmem>>, vector<256x8xbf16>,
    %c0_88 = arith.constant 0 : index
    %109 = arith.index_cast %103 : i32 to index
    %c2_89 = arith.constant 2 : index
    %c0_90 = arith.constant 0 : index
    %110 = vector.load %arg2[%c0_88, %109, %c2_89, %c0_90] : memref<1x18x18x8xbf16, #tpu.memory_space<vmem>>, vector<1x16x16x8xbf16>
    %111 = vector.shape_cast %110 : vector<1x16x16x8xbf16> to vector<16x16x8xbf16>
    %112 = vector.shape_cast %111 : vector<16x16x8xbf16> to vector<256x8xbf16>
    %c0_91 = arith.constant 0 : index
    %c8_92 = arith.constant 8 : index
    %113 = vector.load %arg5[%c0_91, %c8_92] : memref<256x32xbf16, #tpu.memory_space<vmem>>, vector<256x8xbf16>
    tpu.vector_store %arg5[%c0_91, %c8_92], %112 {strides = array<i32>} : memref<256x32xbf16, #tpu.memory_space<vmem>>, vector<256x8xbf16>,
    %c2_i32_93 = arith.constant 2 : i32
    %114 = arith.addi %1, %c2_i32_93 : i32
    %c0_94 = arith.constant 0 : index
    %115 = arith.index_cast %114 : i32 to index
    %c1_95 = arith.constant 1 : index
    %c0_96 = arith.constant 0 : index
    %116 = vector.load %arg2[%c0_94, %115, %c1_95, %c0_96] : memref<1x18x18x8xbf16, #tpu.memory_space<vmem>>, vector<1x16x16x8xbf16>
    %117 = vector.shape_cast %116 : vector<1x16x16x8xbf16> to vector<16x16x8xbf16>
    %118 = vector.shape_cast %117 : vector<16x16x8xbf16> to vector<256x8xbf16>
    %c0_97 = arith.constant 0 : index
    %c16_98 = arith.constant 16 : index
    %119 = vector.load %arg5[%c0_97, %c16_98] : memref<256x32xbf16, #tpu.memory_space<vmem>>, vector<256x8xbf16>
    tpu.vector_store %arg5[%c0_97, %c16_98], %118 {strides = array<i32>} : memref<256x32xbf16, #tpu.memory_space<vmem>>, vector<256x8xbf16>,
    %c0_99 = arith.constant 0 : index
    %120 = arith.index_cast %114 : i32 to index
    %c2_100 = arith.constant 2 : index
    %c0_101 = arith.constant 0 : index
    %121 = vector.load %arg2[%c0_99, %120, %c2_100, %c0_101] : memref<1x18x18x8xbf16, #tpu.memory_space<vmem>>, vector<1x16x16x8xbf16>
    %122 = vector.shape_cast %121 : vector<1x16x16x8xbf16> to vector<16x16x8xbf16>
    %123 = vector.shape_cast %122 : vector<16x16x8xbf16> to vector<256x8xbf16>
    %c0_102 = arith.constant 0 : index
    %c24_103 = arith.constant 24 : index
    %124 = vector.load %arg5[%c0_102, %c24_103] : memref<256x32xbf16, #tpu.memory_space<vmem>>, vector<256x8xbf16>
    tpu.vector_store %arg5[%c0_102, %c24_103], %123 {strides = array<i32>} : memref<256x32xbf16, #tpu.memory_space<vmem>>, vector<256x8xbf16>,
    %c3 = arith.constant 3 : index
    %c0_104 = arith.constant 0 : index
    %c0_105 = arith.constant 0 : index
    %125 = vector.load %arg3[%c3, %c0_104, %c0_105] : memref<4x128x32xbf16, #tpu.memory_space<vmem>>, vector<1x128x32xbf16>
    %126 = vector.shape_cast %125 : vector<1x128x32xbf16> to vector<128x32xbf16>
    %c0_106 = arith.constant 0 : index
    %c0_107 = arith.constant 0 : index
    %127 = vector.load %arg5[%c0_106, %c0_107] : memref<256x32xbf16, #tpu.memory_space<vmem>>, vector<256x32xbf16>
    %cst_108 = arith.constant dense<0.000000e+00> : vector<128x256xf32>
    %128 = tpu.matmul %126, %127, %cst_108 {dimension_numbers = #tpu.dot_dimension_numbers<[1], [1], [0], [0], [0, 0, 1, 0], [], []>} : vector<128x32xbf16>, vector<256x32xbf16>, vector<128x256xf32> -> vector<128x256xf32>
    %cst_109 = arith.constant dense<0.000000e+00> : vector<128xf32>
    %129 = vector.multi_reduction <add>, %128, %cst_109 [1] : vector<128x256xf32> to vector<128xf32>
    %130 = vector.shape_cast %129 : vector<128xf32> to vector<128x1xf32>
    %131 = arith.addf %98, %130 : vector<128x1xf32>
    %132 = arith.mulf %128, %128 : vector<128x256xf32>
    %cst_110 = arith.constant dense<0.000000e+00> : vector<128xf32>
    %133 = vector.multi_reduction <add>, %132, %cst_110 [1] : vector<128x256xf32> to vector<128xf32>
    %134 = vector.shape_cast %133 : vector<128xf32> to vector<128x1xf32>
    %135 = arith.addf %102, %134 : vector<128x1xf32>
    %c0_111 = arith.constant 0 : index
    %c0_112 = arith.constant 0 : index
    %c0_113 = arith.constant 0 : index
    %c0_114 = arith.constant 0 : index
    %136 = vector.load %arg4[%c0_111, %c0_112, %c0_113, %c0_114] : memref<1x1x128x2xf32, #tpu.memory_space<vmem>>, vector<1x1x128x1xf32>
    %137 = vector.shape_cast %136 : vector<1x1x128x1xf32> to vector<128x1xf32>
    %138 = vector.shape_cast %131 : vector<128x1xf32> to vector<1x1x128x1xf32>
    tpu.vector_store %arg4[%c0_111, %c0_112, %c0_113, %c0_114], %138 {strides = array<i32>} : memref<1x1x128x2xf32, #tpu.memory_space<vmem>>, vector<1x1x128x1xf32>,
    %c0_115 = arith.constant 0 : index
    %c0_116 = arith.constant 0 : index
    %c0_117 = arith.constant 0 : index
    %c1_118 = arith.constant 1 : index
    %139 = vector.load %arg4[%c0_115, %c0_116, %c0_117, %c1_118] : memref<1x1x128x2xf32, #tpu.memory_space<vmem>>, vector<1x1x128x1xf32>
    %140 = vector.shape_cast %139 : vector<1x1x128x1xf32> to vector<128x1xf32>
    %141 = vector.shape_cast %135 : vector<128x1xf32> to vector<1x1x128x1xf32>
    tpu.vector_store %arg4[%c0_115, %c0_116, %c0_117, %c1_118], %141 {strides = array<i32>} : memref<1x1x128x2xf32, #tpu.memory_space<vmem>>, vector<1x1x128x1xf32>,
    return
  }
  func.func @transform_0(%arg0: i32, %arg1: i32) -> (i32, i32, i32, i32) {
    %c0_i32 = arith.constant 0 : i32
    %c0_i32_0 = arith.constant 0 : i32
    %c0_i32_1 = arith.constant 0 : i32
    %c0_i32_2 = arith.constant 0 : i32
    return %arg0, %c0_i32, %c0_i32_0, %c0_i32_1 : i32, i32, i32, i32
  }
  func.func @transform_1(%arg0: i32, %arg1: i32) -> (i32, i32, i32) {
    %c0_i32 = arith.constant 0 : i32
    %c0_i32_0 = arith.constant 0 : i32
    %c0_i32_1 = arith.constant 0 : i32
    %c0_i32_2 = arith.constant 0 : i32
    return %c0_i32, %c0_i32_0, %c0_i32_1 : i32, i32, i32
  }
  func.func @transform_2(%arg0: i32, %arg1: i32) -> (i32, i32, i32, i32) {
    %c0_i32 = arith.constant 0 : i32
    %c0_i32_0 = arith.constant 0 : i32
    %c0_i32_1 = arith.constant 0 : i32
    return %arg0, %arg1, %c0_i32, %c0_i32_0 : i32, i32, i32, i32
  }
}

</mosaic_0001>

<bundles_post_ra>
// kernel: tpu_custom_call.1
= control target key start
LH: loop header
LB: loop body
LE: loop exit
PB: predicated region body
PF: predicated region fallthrough
CT: control target
= control target key end

     0   :  { %s9496_s9 = smov 0   ;;  %s9498_s10 = smov 0   ;;  %s12638_s0 = inlined_call_operand.vmem [shape: bf16[2,18,18,8], index: 0, kind: input, shape index: {}]   ;;  %s12639_s1 = inlined_call_operand.vmem [shape: bf16[4,128,32], index: 1, kind: input, shape index: {}]   ;;  %s12640_s2 = inlined_call_operand.vmem [shape: f32[2,1,128,2], index: 2, kind: output, shape index: {}]  }
   0x1   :  { %s9500_s11 = smov 0  }
   0x2 LB: > { %s24_s12 = sadd.s32 1, %s9472_s10  ;;  %p8200_p0 = scmp.ge.s32.totalorder %s9476_s11, 1  ;;  %s9476_s11 = sphi %s9500_s11, %s12_s11   ;;  %s9472_s10 = sphi %s9498_s10, %s12674_s10   ;;  %s9468_s9 = sphi %s9496_s9, %s12673_s9  }
   0x3   : > { %p26_p1 = scmp.ge.s32.totalorder %s24_s12, 2  ;;  %p126_p2 = scmp.lt.s32.totalorder %s9476_s11, 3 }
   0x5   : > { %s12676_s12 = smov (%p26_p1, %s24_s12), 0  ;;  %p127_p3 = pnand %p8200_p0, %p126_p2 }
   0x7   : > { %130 = sbr.rel (%p127_p3) target bundleno = 1407 (0x57f), region = 28 }
   0xe   : > { %p152_p4 = scmp.lt.s32.totalorder %s9468_s9, 1  ;;  %vm364_vm0 = vsmask.f32 3328  ;;  %vm365_vm1 = vsmask.f32 7440  ;;  %s9478_s17 = smov 8  }
   0xf   : > { %vm9532_vm2 = vmor %vm364_vm0, %vm365_vm1  ;;  %s9479_s18 = smov 16   ;;  %s9480_s19 = smov 24   ;;  %vm2616_vm3 = vcmask 1042432   ;;  %vm2617_vm4 = vcmask 1046532   ;;  %vm299_vm6 = vcmask 64512   ;;  %vm847_vm7 = vcmask 130112  }
  0x10   : > { %s12678_s9 = smov (!%p152_p4, %s9468_s9), 1  ;;  %vm9822_vm5 = vmor %vm2616_vm3, %vm2617_vm4  ;;  %vm1028_vm8 = vcmask 195712   ;;  %vm1573_vm9 = vcmask 261312   ;;  %vm1662_vm10 = vcmask 261120   ;;  %vm8069_vm11 = vcmask 7168  }
  0x11   : > { %s9327_s13 = smul.u32 216, %s12678_s9  ;;  %s9166_s25 = sshll.u32 %s12678_s9, 7  ;;  %vm8086_vm12 = vcmask 15368  }
  0x12   : > { %s12528_s28 = scalar_lea.vmem %s12640_s2, %s9166_s25 }
  0x13   : > { %s9520_s16 = scalar_lea.vmem %s12638_s0, %s9327_s13 }
  0x14   : > { %v322_v0 = vld [vmem:[%s9520_s16 + $0x18] sm:$0xf]  ;;  %v323_v1 = vld [vmem:[%s9520_s16 + $0x1c] sm:$0xf]  ;;  %v324_v2 = vld [vmem:[%s9520_s16 + $0x20] sm:$0x1] }
  0x15   : > { %v416_v3 = vshrl.u32 %v322_v0, 16  ;;  %v419_v4 = vshll.u32 %v322_v0, 16  ;;  %v425_v5 = vshll.u32 %v323_v1, 16  ;;  %v429_v6 = vshrl.u32 %v323_v1, 16  ;;  %v316_v7 = vld [vmem:[%s9520_s16] sm:$0xf] }
  0x16   : > { %v435_v8 = vshll.u32 %v324_v2, 16  ;;  %v317_v9 = vld [vmem:[%s9520_s16 + $0x4] sm:$0xf]  ;;  %v318_v10 = vld [vmem:[%s9520_s16 + $0x8] sm:$0x1]  ;;  %v368_v11 = vshrl.u32 %v316_v7, 16 }
  0x17   : > { %v418_v12 = vrot.slane %v416_v3, 4  ;;  %v421_v13 = vrot.slane %v419_v4, 5  ;;  %v427_v14 = vrot.slane %v425_v5, 5  ;;  %v431_v15 = vrot.slane %v429_v6, 4  ;;  %v325_v16 = vld [vmem:[%s9520_s16 + $0x24] sm:$0xf] }
  0x18   : > { %v437_v17 = vrot.slane %v435_v8, 5  ;;  %v370_v18 = vrot.slane %v368_v11, 4  ;;  %v371_v19 = vshll.u32 %v316_v7, 16  ;;  %v377_v20 = vshll.u32 %v317_v9, 16  ;;  %v326_v25 = vld [vmem:[%s9520_s16 + $0x28] sm:$0xf] }
  0x19   : > { %v422_v21 = vor.u32 %v421_v13, %v418_v12  ;;  %v432_v22 = vor.u32 %v431_v15, %v427_v14  ;;  %v381_v23 = vshrl.u32 %v317_v9, 16  ;;  %v387_v24 = vshll.u32 %v318_v10, 16  ;;  %v327_v35 = vld [vmem:[%s9520_s16 + $0x2c] sm:$0x1]  ;;  %v320_v45 = vld [vmem:[%s9520_s16 + $0x10] sm:$0xf] }
  0x1a   : > { %v373_v27 = vrot.slane %v371_v19, 5  ;;  %v379_v28 = vrot.slane %v377_v20, 5  ;;  %v440_v29 = vshrl.u32 %v325_v16, 16  ;;  %v443_v30 = vshll.u32 %v325_v16, 16  ;;  %v319_v40 = vld [vmem:[%s9520_s16 + $0xc] sm:$0xf] }
  0x1b   : > { %v423_v31 = vrot.slane %v422_v21, 4  ;;  %v433_v32 = vrot.slane %v432_v22, 4  ;;  %v383_v33 = vrot.slane %v381_v23, 4  ;;  %v389_v34 = vrot.slane %v387_v24, 5  ;;  %v321_v53 = vld [vmem:[%s9520_s16 + $0x14] sm:$0x1] }
  0x1c   : > { %v374_v36 = vor.u32 %v373_v27, %v370_v18  ;;  %v442_v37 = vrot.slane %v440_v29, 4  ;;  %v445_v38 = vrot.slane %v443_v30, 5  ;;  %v449_v39 = vshll.u32 %v326_v25, 16  ;;  %v331_v59 = vld [vmem:[%s9520_s16 + $0x3c] sm:$0xf] }
  0x1d   : > { %v428_v41 = vsel %vm9532_vm2, %v423_v31, %v427_v14  ;;  %v438_v42 = vsel %vm9532_vm2, %v433_v32, %v437_v17  ;;  %v384_v43 = vor.u32 %v383_v33, %v379_v28  ;;  %v453_v44 = vshrl.u32 %v326_v25, 16  ;;  %v332_v0 = vld [vmem:[%s9520_s16 + $0x40] sm:$0xf]  ;;  %v333_v8 = vld [vmem:[%s9520_s16 + $0x44] sm:$0x1] }
  0x1e   : > { %v8222_v46 = vcombine.low %v428_v41, %v438_v42  ;;  %v375_v47 = vrot.slane %v374_v36, 4  ;;  %v446_v48 = vor.u32 %v445_v38, %v442_v37  ;;  %v451_v49 = vrot.slane %v449_v39, 5  ;;  %v328_v14 = vld [vmem:[%s9520_s16 + $0x30] sm:$0xf]  ;;  %v329_v19 = vld [vmem:[%s9520_s16 + $0x34] sm:$0xf] }
  0x1f   : > { %v385_v50 = vrot.slane %v384_v43, 4  ;;  %v455_v51 = vrot.slane %v453_v44, 4  ;;  %v459_v52 = vshll.u32 %v327_v35, 16  ;;  %v392_v54 = vshrl.u32 %v319_v40, 16  ;;  %v330_v31 = vld [vmem:[%s9520_s16 + $0x38] sm:$0x1] }
  0x20   : > { %803 = vrot.lane.b32.xlu1 %v8222_v46, %s9478_s17  ;;  %v380_v55 = vsel %vm9532_vm2, %v375_v47, %v379_v28  ;;  %v447_v56 = vrot.slane %v446_v48, 4  ;;  %v395_v57 = vshll.u32 %v319_v40, 16  ;;  %v401_v58 = vshll.u32 %v320_v45, 16  ;;  %v338_v46 = vld [vmem:[%s9520_s16 + $0x58] sm:$0xf] }
  0x21   : > { %v390_v60 = vsel %vm9532_vm2, %v385_v50, %v389_v34  ;;  %v456_v61 = vor.u32 %v455_v51, %v451_v49  ;;  %v461_v62 = vrot.slane %v459_v52, 5  ;;  %v394_v63 = vrot.slane %v392_v54, 4  ;;  %v337_v34 = vld [vmem:[%s9520_s16 + $0x54] sm:$0xf]  ;;  %v339_v52 = vld [vmem:[%s9520_s16 + $0x5c] sm:$0x1] }
  0x22   : > { %v8220_v1 = vcombine.low %v380_v55, %v390_v60  ;;  %v452_v2 = vsel %vm9532_vm2, %v447_v56, %v451_v49  ;;  %v397_v3 = vrot.slane %v395_v57, 5  ;;  %v403_v4 = vrot.slane %v401_v58, 5 }
  0x23   : > { %v457_v5 = vrot.slane %v456_v61, 4  ;;  %v405_v6 = vshrl.u32 %v320_v45, 16  ;;  %v411_v7 = vshll.u32 %v321_v53, 16  ;;  %v488_v9 = vshrl.u32 %v331_v59, 16  ;;  %v334_v53 = vld [vmem:[%s9520_s16 + $0x48] sm:$0xf] }
  0x24   : > { %799 = vrot.lane.b32.xlu0 %v8220_v1, %s9478_s17  ;;  %v398_v10 = vor.u32 %v397_v3, %v394_v63  ;;  %v491_v11 = vshll.u32 %v331_v59, 16  ;;  %v497_v12 = vshll.u32 %v332_v0, 16  ;;  %v501_v13 = vshrl.u32 %v332_v0, 16  ;;  %v335_v1 = vld [vmem:[%s9520_s16 + $0x4c] sm:$0xf] }
  0x25   : > { %v462_v15 = vsel %vm9532_vm2, %v457_v5, %v461_v62  ;;  %v407_v16 = vrot.slane %v405_v6, 4  ;;  %v413_v17 = vrot.slane %v411_v7, 5  ;;  %v490_v18 = vrot.slane %v488_v9, 4  ;;  %v336_v6 = vld [vmem:[%s9520_s16 + $0x50] sm:$0x1] }
  0x26   : > { %v8223_v20 = vcombine.low %v452_v2, %v462_v15  ;;  %v399_v21 = vrot.slane %v398_v10, 4  ;;  %v493_v22 = vrot.slane %v491_v11, 5  ;;  %v499_v23 = vrot.slane %v497_v12, 5  ;;  %v343_v12 = vld [vmem:[%s9520_s16 + $0x6c] sm:$0xf] }
  0x27   : > { %v408_v24 = vor.u32 %v407_v16, %v403_v4  ;;  %v503_v25 = vrot.slane %v501_v13, 4  ;;  %v507_v27 = vshll.u32 %v333_v8, 16  ;;  %v464_v28 = vshrl.u32 %v328_v14, 16 }
  0x28   : > { %805 = vrot.lane.b32.xlu1 %v8223_v20, %s9478_s17  ;;  %v404_v29 = vsel %vm9532_vm2, %v399_v21, %v403_v4  ;;  %v494_v30 = vor.u32 %v493_v22, %v490_v18  ;;  %v467_v32 = vshll.u32 %v328_v14, 16  ;;  %v473_v33 = vshll.u32 %v329_v19, 16  ;;  %v344_v21 = vld [vmem:[%s9520_s16 + $0x70] sm:$0xf] }
  0x29   : > { %v409_v35 = vrot.slane %v408_v24, 4  ;;  %v504_v36 = vor.u32 %v503_v25, %v499_v23  ;;  %v509_v37 = vrot.slane %v507_v27, 5  ;;  %v466_v38 = vrot.slane %v464_v28, 4  ;;  %v345_v25 = vld [vmem:[%s9520_s16 + $0x74] sm:$0x1] }
  0x2a   : > { %v495_v39 = vrot.slane %v494_v30, 4  ;;  %v469_v40 = vrot.slane %v467_v32, 5  ;;  %v475_v41 = vrot.slane %v473_v33, 5  ;;  %v477_v42 = vshrl.u32 %v329_v19, 16  ;;  %v340_v32 = vld [vmem:[%s9520_s16 + $0x60] sm:$0xf] }
  0x2b   : > { %v414_v43 = vsel %vm9532_vm2, %v409_v35, %v413_v17  ;;  %v505_v44 = vrot.slane %v504_v36, 4  ;;  %v483_v45 = vshll.u32 %v330_v31, 16  ;;  %v536_v47 = vshrl.u32 %v337_v34, 16 }
  0x2c   : > { %v8221_v48 = vcombine.low %v404_v29, %v414_v43  ;;  %v500_v49 = vsel %vm9532_vm2, %v495_v39, %v499_v23  ;;  %v470_v50 = vor.u32 %v469_v40, %v466_v38  ;;  %v479_v51 = vrot.slane %v477_v42, 4  ;;  %v342_v42 = vld [vmem:[%s9520_s16 + $0x68] sm:$0x1] }
  0x2d   : > { %v510_v54 = vsel %vm9532_vm2, %v505_v44, %v509_v37  ;;  %v485_v55 = vrot.slane %v483_v45, 5  ;;  %v538_v56 = vrot.slane %v536_v47, 4  ;;  %v539_v57 = vshll.u32 %v337_v34, 16  ;;  %v341_v37 = vld [vmem:[%s9520_s16 + $0x64] sm:$0xf] }
  0x2e   : > { %801 = vrot.lane.b32.xlu0 %v8221_v48, %s9478_s17  ;;  %v8225_v58 = vcombine.low %v500_v49, %v510_v54  ;;  %v471_v59 = vrot.slane %v470_v50, 4  ;;  %v480_v60 = vor.u32 %v479_v51, %v475_v41  ;;  %v545_v61 = vshll.u32 %v338_v46, 16  ;;  %v349_v47 = vld [vmem:[%s9520_s16 + $0x84] sm:$0xf] }
  0x2f   : > { %v541_v62 = vrot.slane %v539_v57, 5  ;;  %v549_v63 = vshrl.u32 %v338_v46, 16  ;;  %v555_v0 = vshll.u32 %v339_v52, 16  ;;  %v512_v2 = vshrl.u32 %v334_v53, 16  ;;  %v350_v52 = vld [vmem:[%s9520_s16 + $0x88] sm:$0xf] }
  0x30   : > { %809 = vrot.lane.b32.xlu1 %v8225_v58, %s9478_s17  ;;  %v476_v3 = vsel %vm9532_vm2, %v471_v59, %v475_v41  ;;  %v481_v4 = vrot.slane %v480_v60, 4  ;;  %v547_v5 = vrot.slane %v545_v61, 5  ;;  %v515_v7 = vshll.u32 %v334_v53, 16 }
  0x31   : > { %v542_v8 = vor.u32 %v541_v62, %v538_v56  ;;  %v551_v9 = vrot.slane %v549_v63, 4  ;;  %v557_v10 = vrot.slane %v555_v0, 5  ;;  %v514_v11 = vrot.slane %v512_v2, 4  ;;  %v346_v2 = vld [vmem:[%s9520_s16 + $0x78] sm:$0xf] }
  0x32   : > { %v486_v13 = vsel %vm9532_vm2, %v481_v4, %v485_v55  ;;  %v517_v14 = vrot.slane %v515_v7, 5  ;;  %v521_v15 = vshll.u32 %v335_v1, 16  ;;  %v525_v16 = vshrl.u32 %v335_v1, 16  ;;  %v351_v1 = vld [vmem:[%s9520_s16 + $0x8c] sm:$0x1] }
  0x33   : > { %v8224_v17 = vcombine.low %v476_v3, %v486_v13  ;;  %v543_v18 = vrot.slane %v542_v8, 4  ;;  %v552_v19 = vor.u32 %v551_v9, %v547_v5  ;;  %v531_v20 = vshll.u32 %v336_v6, 16  ;;  %v347_v7 = vld [vmem:[%s9520_s16 + $0x7c] sm:$0xf] }
  0x34   : > { %v518_v22 = vor.u32 %v517_v14, %v514_v11  ;;  %v523_v23 = vrot.slane %v521_v15, 5  ;;  %v527_v24 = vrot.slane %v525_v16, 4  ;;  %v584_v27 = vshrl.u32 %v343_v12, 16 }
  0x35   : > { %807 = vrot.lane.b32.xlu0 %v8224_v17, %s9478_s17  ;;  %v548_v28 = vsel %vm9532_vm2, %v543_v18, %v547_v5  ;;  %v553_v29 = vrot.slane %v552_v19, 4  ;;  %v533_v30 = vrot.slane %v531_v20, 5  ;;  %v587_v31 = vshll.u32 %v343_v12, 16  ;;  %v348_v20 = vld [vmem:[%s9520_s16 + $0x80] sm:$0x1] }
  0x36   : > { %v519_v33 = vrot.slane %v518_v22, 4  ;;  %v528_v34 = vor.u32 %v527_v24, %v523_v23  ;;  %v586_v35 = vrot.slane %v584_v27, 4  ;;  %v593_v36 = vshll.u32 %v344_v21, 16  ;;  %v356_v27 = vld [vmem:[%s9520_s16 + $0xa0] sm:$0xf] }
  0x37   : > { %v558_v38 = vsel %vm9532_vm2, %v553_v29, %v557_v10  ;;  %v589_v39 = vrot.slane %v587_v31, 5  ;;  %v597_v40 = vshrl.u32 %v344_v21, 16  ;;  %v603_v41 = vshll.u32 %v345_v25, 16  ;;  %v355_v21 = vld [vmem:[%s9520_s16 + $0x9c] sm:$0xf] }
  0x38   : > { %v8227_v43 = vcombine.low %v548_v28, %v558_v38  ;;  %v524_v44 = vsel %vm9532_vm2, %v519_v33, %v523_v23  ;;  %v529_v45 = vrot.slane %v528_v34, 4  ;;  %v595_v46 = vrot.slane %v593_v36, 5 }
  0x39   : > { %v590_v48 = vor.u32 %v589_v39, %v586_v35  ;;  %v599_v49 = vrot.slane %v597_v40, 4  ;;  %v605_v50 = vrot.slane %v603_v41, 5  ;;  %v560_v51 = vshrl.u32 %v340_v32, 16  ;;  %v357_v40 = vld [vmem:[%s9520_s16 + $0xa4] sm:$0x1] }
  0x3a   : > { %813 = vrot.lane.b32.xlu1 %v8227_v43, %s9478_s17  ;;  %v534_v53 = vsel %vm9532_vm2, %v529_v45, %v533_v30  ;;  %v563_v54 = vshll.u32 %v340_v32, 16  ;;  %v569_v55 = vshll.u32 %v341_v37, 16  ;;  %v573_v56 = vshrl.u32 %v341_v37, 16  ;;  %v352_v41 = vld [vmem:[%s9520_s16 + $0x90] sm:$0xf] }
  0x3b   : > { %v8226_v57 = vcombine.low %v524_v44, %v534_v53  ;;  %v591_v58 = vrot.slane %v590_v48, 4  ;;  %v600_v59 = vor.u32 %v599_v49, %v595_v46  ;;  %v562_v60 = vrot.slane %v560_v51, 4 }
  0x3c   : > { %v565_v61 = vrot.slane %v563_v54, 5  ;;  %v571_v62 = vrot.slane %v569_v55, 5  ;;  %v575_v63 = vrot.slane %v573_v56, 4  ;;  %v579_v0 = vshll.u32 %v342_v42, 16 }
  0x3d   : > { %811 = vrot.lane.b32.xlu0 %v8226_v57, %s9478_s17  ;;  %v596_v3 = vsel %vm9532_vm2, %v591_v58, %v595_v46  ;;  %v601_v4 = vrot.slane %v600_v59, 4  ;;  %v632_v5 = vshrl.u32 %v349_v47, 16  ;;  %v635_v6 = vshll.u32 %v349_v47, 16  ;;  %v354_v59 = vld [vmem:[%s9520_s16 + $0x98] sm:$0x1] }
  0x3e   : > { %v566_v8 = vor.u32 %v565_v61, %v562_v60  ;;  %v576_v9 = vor.u32 %v575_v63, %v571_v62  ;;  %v581_v10 = vrot.slane %v579_v0, 5  ;;  %v641_v11 = vshll.u32 %v350_v52, 16  ;;  %v361_v0 = vld [vmem:[%s9520_s16 + $0xb4] sm:$0xf] }
  0x3f   : > { %v606_v12 = vsel %vm9532_vm2, %v601_v4, %v605_v50  ;;  %v634_v13 = vrot.slane %v632_v5, 4  ;;  %v637_v14 = vrot.slane %v635_v6, 5  ;;  %v645_v15 = vshrl.u32 %v350_v52, 16  ;;  %v353_v50 = vld [vmem:[%s9520_s16 + $0x94] sm:$0xf] }
  0x40   : > { %v8229_v16 = vcombine.low %v596_v3, %v606_v12  ;;  %v567_v17 = vrot.slane %v566_v8, 4  ;;  %v577_v18 = vrot.slane %v576_v9, 4  ;;  %v643_v19 = vrot.slane %v641_v11, 5  ;;  %v362_v5 = vld [vmem:[%s9520_s16 + $0xb8] sm:$0xf] }
  0x41   : > { %v638_v22 = vor.u32 %v637_v14, %v634_v13  ;;  %v647_v23 = vrot.slane %v645_v15, 4  ;;  %v651_v24 = vshll.u32 %v351_v1, 16  ;;  %v608_v25 = vshrl.u32 %v346_v2, 16  ;;  %v363_v14 = vld [vmem:[%s9520_s16 + $0xbc] sm:$0x1] }
  0x42   : > { %817 = vrot.lane.b32.xlu1 %v8229_v16, %s9478_s17  ;;  %v572_v28 = vsel %vm9532_vm2, %v567_v17, %v571_v62  ;;  %v582_v29 = vsel %vm9532_vm2, %v577_v18, %v581_v10  ;;  %v611_v30 = vshll.u32 %v346_v2, 16  ;;  %v617_v31 = vshll.u32 %v347_v7, 16 }
  0x43   : > { %v8228_v32 = vcombine.low %v572_v28, %v582_v29  ;;  %v639_v33 = vrot.slane %v638_v22, 4  ;;  %v648_v34 = vor.u32 %v647_v23, %v643_v19  ;;  %v653_v35 = vrot.slane %v651_v24, 5 }
  0x44   : > { %v610_v36 = vrot.slane %v608_v25, 4  ;;  %v613_v37 = vrot.slane %v611_v30, 5  ;;  %v619_v38 = vrot.slane %v617_v31, 5  ;;  %v621_v39 = vshrl.u32 %v347_v7, 16 }
  0x45   : > { %815 = vrot.lane.b32.xlu0 %v8228_v32, %s9478_s17  ;;  %v644_v42 = vsel %vm9532_vm2, %v639_v33, %v643_v19  ;;  %v649_v43 = vrot.slane %v648_v34, 4  ;;  %v627_v44 = vshll.u32 %v348_v20, 16  ;;  %v680_v45 = vshrl.u32 %v355_v21, 16  ;;  %v358_v19 = vld [vmem:[%s9520_s16 + $0xa8] sm:$0xf] }
  0x46   : > { %v614_v46 = vor.u32 %v613_v37, %v610_v36  ;;  %v623_v47 = vrot.slane %v621_v39, 4  ;;  %v683_v48 = vshll.u32 %v355_v21, 16  ;;  %v689_v49 = vshll.u32 %v356_v27, 16  ;;  %v359_v33 = vld [vmem:[%s9520_s16 + $0xac] sm:$0xf] }
  0x47   : > { %v654_v51 = vsel %vm9532_vm2, %v649_v43, %v653_v35  ;;  %v629_v52 = vrot.slane %v627_v44, 5  ;;  %v682_v53 = vrot.slane %v680_v45, 4  ;;  %v693_v54 = vshrl.u32 %v356_v27, 16 }
  0x48   : > { %v8231_v55 = vcombine.low %v644_v42, %v654_v51  ;;  %v615_v56 = vrot.slane %v614_v46, 4  ;;  %v624_v57 = vor.u32 %v623_v47, %v619_v38  ;;  %v685_v58 = vrot.slane %v683_v48, 5  ;;  %v8287_v47 = vld [vmem:[%s9520_s16 + $0x18] sm:$0xf] }
  0x49   : > { %v691_v60 = vrot.slane %v689_v49, 5  ;;  %v695_v61 = vrot.slane %v693_v54, 4  ;;  %v699_v62 = vshll.u32 %v357_v40, 16  ;;  %v656_v63 = vshrl.u32 %v352_v41, 16  ;;  %v360_v40 = vld [vmem:[%s9520_s16 + $0xb0] sm:$0x1] }
  0x4a   : > { %821 = vrot.lane.b32.xlu1 %v8231_v55, %s9478_s17  ;;  %v620_v1 = vsel %vm9532_vm2, %v615_v56, %v619_v38  ;;  %v625_v2 = vrot.slane %v624_v57, 4  ;;  %v686_v3 = vor.u32 %v685_v58, %v682_v53  ;;  %v659_v4 = vshll.u32 %v352_v41, 16 }
  0x4b   : > { %v696_v6 = vor.u32 %v695_v61, %v691_v60  ;;  %v701_v7 = vrot.slane %v699_v62, 5  ;;  %v658_v8 = vrot.slane %v656_v63, 4  ;;  %v665_v9 = vshll.u32 %v353_v50, 16  ;;  %v8289_v63 = vld [vmem:[%s9520_s16 + $0x20] sm:$0x1] }
  0x4c   : > { %v630_v10 = vsel %vm9532_vm2, %v625_v2, %v629_v52  ;;  %v687_v11 = vrot.slane %v686_v3, 4  ;;  %v661_v12 = vrot.slane %v659_v4, 5  ;;  %v669_v13 = vshrl.u32 %v353_v50, 16  ;;  %v8288_v52 = vld [vmem:[%s9520_s16 + $0x1c] sm:$0xf] }
  0x4d   : > { %v8230_v15 = vcombine.low %v620_v1, %v630_v10  ;;  %v697_v16 = vrot.slane %v696_v6, 4  ;;  %v667_v17 = vrot.slane %v665_v9, 5  ;;  %v675_v18 = vshll.u32 %v354_v59, 16  ;;  %v8284_v6 = vld [vmem:[%s9520_s16 + $0xc] sm:$0xf] }
  0x4e   : > { %v692_v20 = vsel %vm9532_vm2, %v687_v11, %v691_v60  ;;  %v662_v21 = vor.u32 %v661_v12, %v658_v8  ;;  %v671_v22 = vrot.slane %v669_v13, 4  ;;  %v728_v23 = vshrl.u32 %v361_v0, 16  ;;  %v8285_v11 = vld [vmem:[%s9520_s16 + $0x10] sm:$0xf] }
  0x4f   : > { %819 = vrot.lane.b32.xlu0 %v8230_v15, %s9478_s17  ;;  %v702_v24 = vsel %vm9532_vm2, %v697_v16, %v701_v7  ;;  %v677_v25 = vrot.slane %v675_v18, 5  ;;  %v731_v27 = vshll.u32 %v361_v0, 16  ;;  %v737_v28 = vshll.u32 %v362_v5, 16  ;;  %v8286_v18 = vld [vmem:[%s9520_s16 + $0x14] sm:$0x1] }
  0x50   : > { %v8233_v29 = vcombine.low %v692_v20, %v702_v24  ;;  %v663_v30 = vrot.slane %v662_v21, 4  ;;  %v672_v31 = vor.u32 %v671_v22, %v667_v17  ;;  %v730_v32 = vrot.slane %v728_v23, 4  ;;  %v9355_v22 = vld [vmem:[%s9520_s16 + $0x18] sm:$0xff]  }
  0x51   : > { %v733_v34 = vrot.slane %v731_v27, 5  ;;  %v739_v35 = vrot.slane %v737_v28, 5  ;;  %v741_v36 = vshrl.u32 %v362_v5, 16  ;;  %v747_v37 = vshll.u32 %v363_v14, 16  ;;  %v8293_v27 = vld [vmem:[%s9520_s16 + $0x30] sm:$0xf] }
  0x52   : > { %825 = vrot.lane.b32.xlu1 %v8233_v29, %s9478_s17  ;;  %v668_v38 = vsel %vm9532_vm2, %v663_v30, %v667_v17  ;;  %v673_v39 = vrot.slane %v672_v31, 4  ;;  %v704_v41 = vshrl.u32 %v358_v19, 16  ;;  %v707_v42 = vshll.u32 %v358_v19, 16 }
  0x53   : > { %v734_v43 = vor.u32 %v733_v34, %v730_v32  ;;  %v743_v44 = vrot.slane %v741_v36, 4  ;;  %v749_v45 = vrot.slane %v747_v37, 5  ;;  %v713_v46 = vshll.u32 %v359_v33, 16  ;;  %v8294_v32 = vld [vmem:[%s9520_s16 + $0x34] sm:$0xf]  ;;  %v9356_v37 = vld [vmem:[%s9520_s16 + $0xc] sm:$0xff]  }
  0x54   : > { %v678_v48 = vsel %vm9532_vm2, %v673_v39, %v677_v25  ;;  %v706_v49 = vrot.slane %v704_v41, 4  ;;  %v709_v50 = vrot.slane %v707_v42, 5  ;;  %v717_v51 = vshrl.u32 %v359_v33, 16 }
  0x55   : > { %v8232_v53 = vcombine.low %v668_v38, %v678_v48  ;;  %v735_v54 = vrot.slane %v734_v43, 4  ;;  %v744_v55 = vor.u32 %v743_v44, %v739_v35  ;;  %v715_v56 = vrot.slane %v713_v46, 5  ;;  %v9357_v38 = vld [vmem:[%s9520_s16 + $0x30] sm:$0xff]   ;;  %v8295_v46 = vld [vmem:[%s9520_s16 + $0x38] sm:$0x1] }
  0x56   : > { %v710_v57 = vor.u32 %v709_v50, %v706_v49  ;;  %v719_v58 = vrot.slane %v717_v51, 4  ;;  %v723_v59 = vshll.u32 %v360_v40, 16  ;;  %v1118_v60 = vshrl.u32 %v8287_v47, 16  ;;  %v8290_v48 = vld [vmem:[%s9520_s16 + $0x24] sm:$0xf] }
  0x57   : > { %823 = vrot.lane.b32.xlu0 %v8232_v53, %s9478_s17  ;;  %v740_v61 = vsel %vm9532_vm2, %v735_v54, %v739_v35  ;;  %v745_v62 = vrot.slane %v744_v55, 4  ;;  %v1121_v0 = vshll.u32 %v8287_v47, 16  ;;  %v1127_v1 = vshll.u32 %v8288_v52, 16  ;;  %v8291_v53 = vld [vmem:[%s9520_s16 + $0x28] sm:$0xf] }
  0x58   : > { %v711_v2 = vrot.slane %v710_v57, 4  ;;  %v720_v3 = vor.u32 %v719_v58, %v715_v56  ;;  %v725_v4 = vrot.slane %v723_v59, 5  ;;  %v1120_v5 = vrot.slane %v1118_v60, 4  ;;  %v9358_v58 = vld [vmem:[%s9520_s16 + $0x24] sm:$0xff]  }
  0x59   : > { %v750_v7 = vsel %vm9532_vm2, %v745_v62, %v749_v45  ;;  %v1123_v8 = vrot.slane %v1121_v0, 5  ;;  %v1129_v9 = vrot.slane %v1127_v1, 5  ;;  %v1131_v10 = vshrl.u32 %v8288_v52, 16  ;;  %v9359_v59 = vld [vmem:[%s9520_s16 + $0x48] sm:$0xff]  }
  0x5a   : > { %v8235_v12 = vcombine.low %v740_v61, %v750_v7  ;;  %v716_v13 = vsel %vm9532_vm2, %v711_v2, %v715_v56  ;;  %v721_v14 = vrot.slane %v720_v3, 4  ;;  %v1137_v15 = vshll.u32 %v8289_v63, 16  ;;  %v8292_v2 = vld [vmem:[%s9520_s16 + $0x2c] sm:$0x1] }
  0x5b   : > { %v1124_v16 = vor.u32 %v1123_v8, %v1120_v5  ;;  %v1133_v17 = vrot.slane %v1131_v10, 4  ;;  %v1094_v19 = vshrl.u32 %v8284_v6, 16  ;;  %v1097_v20 = vshll.u32 %v8284_v6, 16  ;;  %v8299_v5 = vld [vmem:[%s9520_s16 + $0x48] sm:$0xf] }
  0x5c   : > { %829 = vrot.lane.b32.xlu1 %v8235_v12, %s9478_s17  ;;  %v726_v21 = vsel %vm9532_vm2, %v721_v14, %v725_v4  ;;  %v1139_v23 = vrot.slane %v1137_v15, 5  ;;  %v1103_v24 = vshll.u32 %v8285_v11, 16  ;;  %v1107_v25 = vshrl.u32 %v8285_v11, 16  ;;  %v8300_v10 = vld [vmem:[%s9520_s16 + $0x4c] sm:$0xf]  ;;  %v9360_v15 = vld [vmem:[%s9520_s16 + $0x3c] sm:$0xff]  }
  0x5d   : > { %v8234_v28 = vcombine.low %v716_v13, %v726_v21  ;;  %v1125_v29 = vrot.slane %v1124_v16, 4  ;;  %v1134_v30 = vor.u32 %v1133_v17, %v1129_v9  ;;  %v1096_v31 = vrot.slane %v1094_v19, 4  ;;  %v8301_v19 = vld [vmem:[%s9520_s16 + $0x50] sm:$0x1]  ;;  %v9361_v21 = vld [vmem:[%s9520_s16 + $0x60] sm:$0xff]  }
  0x5e   : > { %v1099_v33 = vrot.slane %v1097_v20, 5  ;;  %v1105_v34 = vrot.slane %v1103_v24, 5  ;;  %v1109_v35 = vrot.slane %v1107_v25, 4  ;;  %v1113_v36 = vshll.u32 %v8286_v18, 16 }
  0x5f   : > { %827 = vrot.lane.b32.xlu0 %v8234_v28, %s9478_s17  ;;  %v1130_v39 = vsel %vm9532_vm2, %v1125_v29, %v1129_v9  ;;  %v1135_v40 = vrot.slane %v1134_v30, 4  ;;  %v1166_v41 = vshrl.u32 %v8293_v27, 16  ;;  %v1169_v42 = vshll.u32 %v8293_v27, 16  ;;  %v8296_v27 = vld [vmem:[%s9520_s16 + $0x3c] sm:$0xf] }
  0x60   : > { %982 = vrot.lane.b32.xlu1 %v9355_v22, %s9479_s18  ;;  %v1100_v43 = vor.u32 %v1099_v33, %v1096_v31  ;;  %v1110_v44 = vor.u32 %v1109_v35, %v1105_v34  ;;  %v1115_v45 = vrot.slane %v1113_v36, 5  ;;  %v1175_v47 = vshll.u32 %v8294_v32, 16  ;;  %v8297_v36 = vld [vmem:[%s9520_s16 + $0x40] sm:$0xf] }
  0x61   : > { %v1140_v49 = vsel %vm9532_vm2, %v1135_v40, %v1139_v23  ;;  %v1168_v50 = vrot.slane %v1166_v41, 4  ;;  %v1171_v51 = vrot.slane %v1169_v42, 5  ;;  %v1179_v52 = vshrl.u32 %v8294_v32, 16  ;;  %v9363_v42 = vld [vmem:[%s9520_s16 + $0x78] sm:$0xff]  }
  0x62   : > { %v9675_v54 = vcombine.low %v1130_v39, %v1140_v49  ;;  %v1101_v55 = vrot.slane %v1100_v43, 4  ;;  %v1111_v56 = vrot.slane %v1110_v44, 4  ;;  %v1177_v57 = vrot.slane %v1175_v47, 5 }
  0x63   : > { %980 = vrot.lane.b32.xlu0 %v9356_v37, %s9479_s18  ;;  %v1172_v60 = vor.u32 %v1171_v51, %v1168_v50  ;;  %v1181_v61 = vrot.slane %v1179_v52, 4  ;;  %v1185_v62 = vshll.u32 %v8295_v46, 16  ;;  %v1142_v63 = vshrl.u32 %v8290_v48, 16  ;;  %v9362_v37 = vld [vmem:[%s9520_s16 + $0x54] sm:$0xff]   ;;  %v8298_v46 = vld [vmem:[%s9520_s16 + $0x44] sm:$0x1] }
  0x64   : > { %986 = vrot.lane.b32.xlu1 %v9357_v38, %s9479_s18  ;;  %v1106_v0 = vsel %vm9532_vm2, %v1101_v55, %v1105_v34  ;;  %v1116_v1 = vsel %vm9532_vm2, %v1111_v56, %v1115_v45  ;;  %v1145_v3 = vshll.u32 %v8290_v48, 16  ;;  %v1151_v4 = vshll.u32 %v8291_v53, 16  ;;  %v8305_v52 = vld [vmem:[%s9520_s16 + $0x60] sm:$0xf] }
  0x65   : > { %v9687_v6 = vcombine.low %v1106_v0, %v1116_v1  ;;  %v1173_v7 = vrot.slane %v1172_v60, 4  ;;  %v1182_v8 = vor.u32 %v1181_v61, %v1177_v57  ;;  %v1187_v9 = vrot.slane %v1185_v62, 5  ;;  %v9365_v0 = vld [vmem:[%s9520_s16 + $0x90] sm:$0xff]  }
  0x66   : > { %v1144_v11 = vrot.slane %v1142_v63, 4  ;;  %v1147_v12 = vrot.slane %v1145_v3, 5  ;;  %v1153_v13 = vrot.slane %v1151_v4, 5  ;;  %v1155_v14 = vshrl.u32 %v8291_v53, 16  ;;  %v8307_v4 = vld [vmem:[%s9520_s16 + $0x68] sm:$0x1] }
  0x67   : > { %984 = vrot.lane.b32.xlu0 %v9358_v58, %s9479_s18  ;;  %v1178_v16 = vsel %vm9532_vm2, %v1173_v7, %v1177_v57  ;;  %v1183_v17 = vrot.slane %v1182_v8, 4  ;;  %v1161_v18 = vshll.u32 %v8292_v2, 16  ;;  %v1214_v20 = vshrl.u32 %v8299_v5, 16  ;;  %v8306_v58 = vld [vmem:[%s9520_s16 + $0x64] sm:$0xf] }
  0x68   : > { %990 = vrot.lane.b32.xlu1 %v9359_v59, %s9479_s18  ;;  %v1148_v22 = vor.u32 %v1147_v12, %v1144_v11  ;;  %v1157_v23 = vrot.slane %v1155_v14, 4  ;;  %v1217_v24 = vshll.u32 %v8299_v5, 16  ;;  %v1223_v25 = vshll.u32 %v8300_v10, 16  ;;  %v9364_v59 = vld [vmem:[%s9520_s16 + $0x6c] sm:$0xff]   ;;  %v8302_v11 = vld [vmem:[%s9520_s16 + $0x54] sm:$0xf] }
  0x69   : > { %v1188_v28 = vsel %vm9532_vm2, %v1183_v17, %v1187_v9  ;;  %v1163_v29 = vrot.slane %v1161_v18, 5  ;;  %v1216_v30 = vrot.slane %v1214_v20, 4  ;;  %v1227_v31 = vshrl.u32 %v8300_v10, 16  ;;  %v9366_v17 = vld [vmem:[%s9520_s16 + $0x84] sm:$0xff]  }
  0x6a   : > { %v9700_v32 = vcombine.low %v1178_v16, %v1188_v28  ;;  %v1149_v33 = vrot.slane %v1148_v22, 4  ;;  %v1158_v34 = vor.u32 %v1157_v23, %v1153_v13  ;;  %v1219_v35 = vrot.slane %v1217_v24, 5  ;;  %v8303_v16 = vld [vmem:[%s9520_s16 + $0x58] sm:$0xf]  ;;  %v9367_v22 = vld [vmem:[%s9520_s16 + $0xa8] sm:$0xff]  }
  0x6b   : > { %988 = vrot.lane.b32.xlu0 %v9360_v15, %s9479_s18  ;;  %v1225_v38 = vrot.slane %v1223_v25, 5  ;;  %v1229_v39 = vrot.slane %v1227_v31, 4  ;;  %v1233_v40 = vshll.u32 %v8301_v19, 16  ;;  %v1190_v41 = vshrl.u32 %v8296_v27, 16  ;;  %v8304_v25 = vld [vmem:[%s9520_s16 + $0x5c] sm:$0x1] }
  0x6c   : > { %994 = vrot.lane.b32.xlu1 %v9361_v21, %s9479_s18  ;;  %v1154_v43 = vsel %vm9532_vm2, %v1149_v33, %v1153_v13  ;;  %v1159_v44 = vrot.slane %v1158_v34, 4  ;;  %v1220_v45 = vor.u32 %v1219_v35, %v1216_v30  ;;  %v1193_v47 = vshll.u32 %v8296_v27, 16  ;;  %v8311_v34 = vld [vmem:[%s9520_s16 + $0x78] sm:$0xf] }
  0x6d   : > { %v1230_v48 = vor.u32 %v1229_v39, %v1225_v38  ;;  %v1235_v49 = vrot.slane %v1233_v40, 5  ;;  %v1192_v50 = vrot.slane %v1190_v41, 4  ;;  %v1199_v51 = vshll.u32 %v8297_v36, 16  ;;  %v8312_v39 = vld [vmem:[%s9520_s16 + $0x7c] sm:$0xf] }
  0x6e   : > { %v1164_v53 = vsel %vm9532_vm2, %v1159_v44, %v1163_v29  ;;  %v1221_v55 = vrot.slane %v1220_v45, 4  ;;  %v1195_v56 = vrot.slane %v1193_v47, 5  ;;  %v1203_v57 = vshrl.u32 %v8297_v36, 16  ;;  %v9368_v40 = vld [vmem:[%s9520_s16 + $0x9c] sm:$0xff]  }
  0x6f   : > { %992 = vrot.lane.b32.xlu0 %v9362_v37, %s9479_s18  ;;  %v9716_v60 = vcombine.low %v1154_v43, %v1164_v53  ;;  %v1231_v61 = vrot.slane %v1230_v48, 4  ;;  %v1201_v62 = vrot.slane %v1199_v51, 5  ;;  %v1209_v63 = vshll.u32 %v8298_v46, 16  ;;  %v9369_v45 = vld [vmem:[%s9520_s16 + $0xc0] sm:$0xff]  }
  0x70   : > { %998 = vrot.lane.b32.xlu1 %v9363_v42, %s9479_s18  ;;  %v1226_v1 = vsel %vm9532_vm2, %v1221_v55, %v1225_v38  ;;  %v1196_v2 = vor.u32 %v1195_v56, %v1192_v50  ;;  %v1205_v3 = vrot.slane %v1203_v57, 4  ;;  %v1262_v5 = vshrl.u32 %v8305_v52, 16 }
  0x71   : > { %v1236_v7 = vsel %vm9532_vm2, %v1231_v61, %v1235_v49  ;;  %v1211_v8 = vrot.slane %v1209_v63, 5  ;;  %v1265_v9 = vshll.u32 %v8305_v52, 16  ;;  %v1271_v10 = vshll.u32 %v8306_v58, 16  ;;  %v8313_v52 = vld [vmem:[%s9520_s16 + $0x80] sm:$0x1] }
  0x72   : > { %v9726_v12 = vcombine.low %v1226_v1, %v1236_v7  ;;  %v1197_v13 = vrot.slane %v1196_v2, 4  ;;  %v1206_v14 = vor.u32 %v1205_v3, %v1201_v62  ;;  %v1264_v15 = vrot.slane %v1262_v5, 4  ;;  %v8308_v61 = vld [vmem:[%s9520_s16 + $0x6c] sm:$0xf]  ;;  %v8309_v3 = vld [vmem:[%s9520_s16 + $0x70] sm:$0xf] }
  0x73   : > { %996 = vrot.lane.b32.xlu0 %v9364_v59, %s9479_s18  ;;  %v1267_v18 = vrot.slane %v1265_v9, 5  ;;  %v1273_v19 = vrot.slane %v1271_v10, 5  ;;  %v1275_v20 = vshrl.u32 %v8306_v58, 16  ;;  %v1281_v21 = vshll.u32 %v8307_v4, 16 }
  0x74   : > { %1002 = vrot.lane.b32.xlu1 %v9365_v0, %s9479_s18  ;;  %v1202_v23 = vsel %vm9532_vm2, %v1197_v13, %v1201_v62  ;;  %v1207_v24 = vrot.slane %v1206_v14, 4  ;;  %v1238_v27 = vshrl.u32 %v8302_v11, 16  ;;  %v1241_v28 = vshll.u32 %v8302_v11, 16  ;;  %v9370_v62 = vld [vmem:[%s9520_s16 + $0xb4] sm:$0xff]  }
  0x75   : > { %v1268_v29 = vor.u32 %v1267_v18, %v1264_v15  ;;  %v1277_v30 = vrot.slane %v1275_v20, 4  ;;  %v1283_v31 = vrot.slane %v1281_v21, 5  ;;  %v1247_v33 = vshll.u32 %v8303_v16, 16  ;;  %v8310_v11 = vld [vmem:[%s9520_s16 + $0x74] sm:$0x1] }
  0x76   : > { %v1212_v35 = vsel %vm9532_vm2, %v1207_v24, %v1211_v8  ;;  %v1240_v36 = vrot.slane %v1238_v27, 4  ;;  %v1243_v37 = vrot.slane %v1241_v28, 5  ;;  %v1251_v38 = vshrl.u32 %v8303_v16, 16  ;;  %v8318_v24 = vld [vmem:[%s9520_s16 + $0x94] sm:$0xf] }
  0x77   : > { %1000 = vrot.lane.b32.xlu0 %v9366_v17, %s9479_s18  ;;  %v9742_v41 = vcombine.low %v1202_v23, %v1212_v35  ;;  %v1269_v42 = vrot.slane %v1268_v29, 4  ;;  %v1278_v43 = vor.u32 %v1277_v30, %v1273_v19  ;;  %v1249_v44 = vrot.slane %v1247_v33, 5 }
  0x78   : > { %1006 = vrot.lane.b32.xlu1 %v9367_v22, %s9479_s18  ;;  %v1244_v46 = vor.u32 %v1243_v37, %v1240_v36  ;;  %v1253_v47 = vrot.slane %v1251_v38, 4  ;;  %v1257_v48 = vshll.u32 %v8304_v25, 16  ;;  %v1310_v49 = vshrl.u32 %v8311_v34, 16  ;;  %v8319_v38 = vld [vmem:[%s9520_s16 + $0x98] sm:$0x1] }
  0x79   : > { %v1274_v50 = vsel %vm9532_vm2, %v1269_v42, %v1273_v19  ;;  %v1279_v51 = vrot.slane %v1278_v43, 4  ;;  %v1313_v53 = vshll.u32 %v8311_v34, 16  ;;  %v1319_v55 = vshll.u32 %v8312_v39, 16  ;;  %v8317_v19 = vld [vmem:[%s9520_s16 + $0x90] sm:$0xf] }
  0x7a   : > { %v1245_v56 = vrot.slane %v1244_v46, 4  ;;  %v1254_v57 = vor.u32 %v1253_v47, %v1249_v44  ;;  %v1259_v58 = vrot.slane %v1257_v48, 5  ;;  %v1312_v59 = vrot.slane %v1310_v49, 4 }
  0x7b   : > { %1004 = vrot.lane.b32.xlu0 %v9368_v40, %s9479_s18  ;;  %v1284_v63 = vsel %vm9532_vm2, %v1279_v51, %v1283_v31  ;;  %v1315_v0 = vrot.slane %v1313_v53, 5  ;;  %v1321_v1 = vrot.slane %v1319_v55, 5  ;;  %v1323_v2 = vshrl.u32 %v8312_v39, 16  ;;  %v8323_v40 = vld [vmem:[%s9520_s16 + $0xa8] sm:$0xf] }
  0x7c   : > { %1010 = vrot.lane.b32.xlu1 %v9369_v45, %s9479_s18  ;;  %v9756_v4 = vcombine.low %v1274_v50, %v1284_v63  ;;  %v1250_v5 = vsel %vm9532_vm2, %v1245_v56, %v1249_v44  ;;  %v1255_v7 = vrot.slane %v1254_v57, 4  ;;  %v1329_v8 = vshll.u32 %v8313_v52, 16  ;;  %v8324_v45 = vld [vmem:[%s9520_s16 + $0xac] sm:$0xf]  ;;  %v8325_v56 = vld [vmem:[%s9520_s16 + $0xb0] sm:$0x1] }
  0x7d   : > { %v1316_v9 = vor.u32 %v1315_v0, %v1312_v59  ;;  %v1325_v10 = vrot.slane %v1323_v2, 4  ;;  %v1286_v13 = vshrl.u32 %v8308_v61, 16  ;;  %v1289_v14 = vshll.u32 %v8308_v61, 16  ;;  %v8330_v0 = vld [vmem:[%s9520_s16 + $0xc4] sm:$0xf] }
  0x7e   : > { %v1260_v15 = vsel %vm9532_vm2, %v1255_v7, %v1259_v58  ;;  %v1331_v16 = vrot.slane %v1329_v8, 5  ;;  %v1295_v17 = vshll.u32 %v8309_v3, 16  ;;  %v1299_v18 = vshrl.u32 %v8309_v3, 16  ;;  %v8329_v58 = vld [vmem:[%s9520_s16 + $0xc0] sm:$0xf] }
  0x7f   : > { %1008 = vrot.lane.b32.xlu0 %v9370_v62, %s9479_s18  ;;  %v9765_v20 = vcombine.low %v1250_v5, %v1260_v15  ;;  %v1317_v21 = vrot.slane %v1316_v9, 4  ;;  %v1326_v22 = vor.u32 %v1325_v10, %v1321_v1  ;;  %v1288_v23 = vrot.slane %v1286_v13, 4  ;;  %v8331_v7 = vld [vmem:[%s9520_s16 + $0xc8] sm:$0x1]  ;;  %v8314_v8 = vld [vmem:[%s9520_s16 + $0x84] sm:$0xf] }
  0x80   : > { %1527 = vrot.lane.b32.xlu1 %v9675_v54, %s9480_s19  ;;  %v1291_v25 = vrot.slane %v1289_v14, 5  ;;  %v1297_v27 = vrot.slane %v1295_v17, 5  ;;  %v1301_v28 = vrot.slane %v1299_v18, 4  ;;  %v1305_v29 = vshll.u32 %v8310_v11, 16 }
  0x81   : > { %v1322_v30 = vsel %vm9532_vm2, %v1317_v21, %v1321_v1  ;;  %v1327_v31 = vrot.slane %v1326_v22, 4  ;;  %v1358_v33 = vshrl.u32 %v8317_v19, 16  ;;  %v1361_v34 = vshll.u32 %v8317_v19, 16 }
  0x82   : > { %v1292_v35 = vor.u32 %v1291_v25, %v1288_v23  ;;  %v1302_v36 = vor.u32 %v1301_v28, %v1297_v27  ;;  %v1307_v37 = vrot.slane %v1305_v29, 5  ;;  %v1367_v39 = vshll.u32 %v8318_v24, 16  ;;  %v8315_v25 = vld [vmem:[%s9520_s16 + $0x88] sm:$0xf] }
  0x83   : > { %1525 = vrot.lane.b32.xlu0 %v9687_v6, %s9480_s19  ;;  %v1332_v54 = vsel %vm9532_vm2, %v1327_v31, %v1331_v16  ;;  %v1360_v42 = vrot.slane %v1358_v33, 4  ;;  %v1363_v43 = vrot.slane %v1361_v34, 5  ;;  %v1371_v44 = vshrl.u32 %v8318_v24, 16  ;;  %v8316_v34 = vld [vmem:[%s9520_s16 + $0x8c] sm:$0x1] }
  0x84   : > { %1531 = vrot.lane.b32.xlu1 %v9700_v32, %s9480_s19  ;;  %v8341_v46 = vcombine.low %v1322_v30, %v1332_v54  ;;  %v1293_v47 = vrot.slane %v1292_v35, 4  ;;  %v1303_v48 = vrot.slane %v1302_v36, 4  ;;  %v1369_v49 = vrot.slane %v1367_v39, 5 }
  0x85   : > { %v1364_v50 = vor.u32 %v1363_v43, %v1360_v42  ;;  %v1373_v51 = vrot.slane %v1371_v44, 4  ;;  %v1377_v6 = vshll.u32 %v8319_v38, 16  ;;  %v1406_v52 = vshrl.u32 %v8323_v40, 16 }
  0x86   : > { %v1298_v53 = vsel %vm9532_vm2, %v1293_v47, %v1297_v27  ;;  %v1308_v55 = vsel %vm9532_vm2, %v1303_v48, %v1307_v37  ;;  %v1409_v57 = vshll.u32 %v8323_v40, 16  ;;  %v1415_v32 = vshll.u32 %v8324_v45, 16  ;;  %v2521_v40 = vld [vmem:[%s9520_s16 + $0x4] sm:$0xf]  ;;  %v8320_v47 = vld [vmem:[%s9520_s16 + $0x9c] sm:$0xf] }
  0x87   : > { %1529 = vrot.lane.b32.xlu0 %v9716_v60, %s9480_s19  ;;  %v8340_v59 = vcombine.low %v1298_v53, %v1308_v55  ;;  %v1365_v61 = vrot.slane %v1364_v50, 4  ;;  %v1374_v62 = vor.u32 %v1373_v51, %v1369_v49  ;;  %v1379_v63 = vrot.slane %v1377_v6, 5 }
  0x88   : > { %1535 = vrot.lane.b32.xlu1 %v9726_v12, %s9480_s19  ;;  %v1408_v1 = vrot.slane %v1406_v52, 4  ;;  %v1411_v2 = vrot.slane %v1409_v57, 5  ;;  %v1417_v3 = vrot.slane %v1415_v32, 5  ;;  %v1419_v5 = vshrl.u32 %v8324_v45, 16  ;;  %v2522_v45 = vld [vmem:[%s9520_s16 + $0x8] sm:$0x1] }
  0x89   : > { %v1370_v9 = vsel %vm9532_vm2, %v1365_v61, %v1369_v49  ;;  %v1375_v10 = vrot.slane %v1374_v62, 4  ;;  %v1425_v11 = vshll.u32 %v8325_v56, 16  ;;  %v1454_v60 = vshrl.u32 %v8329_v58, 16 }
  0x8a   : > { %v1412_v13 = vor.u32 %v1411_v2, %v1408_v1  ;;  %v1421_v14 = vrot.slane %v1419_v5, 4  ;;  %v1457_v15 = vshll.u32 %v8329_v58, 16  ;;  %v1463_v16 = vshll.u32 %v8330_v0, 16  ;;  %v8413_v5 = vld [vmem:[%s9520_s16 + $0x10] sm:$0xf] }
  0x8b   : > { %1533 = vrot.lane.b32.xlu0 %v9742_v41, %s9480_s19  ;;  %v1380_v12 = vsel %vm9532_vm2, %v1375_v10, %v1379_v63  ;;  %v1427_v17 = vrot.slane %v1425_v11, 5  ;;  %v1456_v18 = vrot.slane %v1454_v60, 4  ;;  %v1467_v19 = vshrl.u32 %v8330_v0, 16  ;;  %v8322_v63 = vld [vmem:[%s9520_s16 + $0xa4] sm:$0x1] }
  0x8c   : > { %1539 = vrot.lane.b32.xlu1 %v9756_v4, %s9480_s19  ;;  %v8343_v21 = vcombine.low %v1370_v9, %v1380_v12  ;;  %v1413_v22 = vrot.slane %v1412_v13, 4  ;;  %v1422_v23 = vor.u32 %v1421_v14, %v1417_v3  ;;  %v1459_v24 = vrot.slane %v1457_v15, 5  ;;  %v2520_v4 = vld [vmem:[%s9520_s16] sm:$0xe]  ;;  %v8414_v11 = vld [vmem:[%s9520_s16 + $0x14] sm:$0x1] }
  0x8d   : > { %v1465_v27 = vrot.slane %v1463_v16, 5  ;;  %v1469_v28 = vrot.slane %v1467_v19, 4  ;;  %v1473_v41 = vshll.u32 %v8331_v7, 16  ;;  %v1334_v29 = vshrl.u32 %v8314_v8, 16 }
  0x8e   : > { %v1418_v30 = vsel %vm9532_vm2, %v1413_v22, %v1417_v3  ;;  %v1423_v31 = vrot.slane %v1422_v23, 4  ;;  %v1460_v33 = vor.u32 %v1459_v24, %v1456_v18  ;;  %v1337_v35 = vshll.u32 %v8314_v8, 16  ;;  %v8326_v24 = vld [vmem:[%s9520_s16 + $0xb4] sm:$0xf] }
  0x8f   : > { %1537 = vrot.lane.b32.xlu0 %v9765_v20, %s9480_s19  ;;  %v1470_v36 = vor.u32 %v1469_v28, %v1465_v27  ;;  %v1475_v37 = vrot.slane %v1473_v41, 5  ;;  %v1336_v38 = vrot.slane %v1334_v29, 4  ;;  %v1343_v39 = vshll.u32 %v8315_v25, 16  ;;  %v8327_v29 = vld [vmem:[%s9520_s16 + $0xb8] sm:$0xf] }
  0x90   : > { %1543 = vrot.lane.b32.xlu1 %v8341_v46, %s9480_s19  ;;  %v1428_v54 = vsel %vm9532_vm2, %v1423_v31, %v1427_v17  ;;  %v1461_v42 = vrot.slane %v1460_v33, 4  ;;  %v1339_v43 = vrot.slane %v1337_v35, 5  ;;  %v1347_v44 = vshrl.u32 %v8315_v25, 16  ;;  %v8321_v46 = vld [vmem:[%s9520_s16 + $0xa0] sm:$0xf] }
  0x91   : > { %v8345_v48 = vcombine.low %v1418_v30, %v1428_v54  ;;  %v1471_v49 = vrot.slane %v1470_v36, 4  ;;  %v1345_v50 = vrot.slane %v1343_v39, 5  ;;  %v1353_v20 = vshll.u32 %v8316_v34, 16  ;;  %v8328_v35 = vld [vmem:[%s9520_s16 + $0xbc] sm:$0x1] }
  0x92   : > { %v1466_v51 = vsel %vm9532_vm2, %v1461_v42, %v1465_v27  ;;  %v1340_v6 = vor.u32 %v1339_v43, %v1336_v38  ;;  %v1349_v52 = vrot.slane %v1347_v44, 4  ;;  %v8380_v56 = vrot.slane %v2520_v4, 9  ;;  %v8436_v39 = vld [vmem:[%s9520_s16 + $0x6c] sm:$0xf] }
  0x93   : > { %1541 = vrot.lane.b32.xlu0 %v8340_v59, %s9480_s19  ;;  %v1476_v53 = vsel %vm9532_vm2, %v1471_v49, %v1475_v37  ;;  %v1355_v55 = vrot.slane %v1353_v20, 5  ;;  %v2621_v62 = vrot.slane %v2521_v40, 5  ;;  %v8412_v59 = vld [vmem:[%s9520_s16 + $0xc] sm:$0xf]  ;;  %v2624_v0 = vrot.slane %v2522_v45, 5  ;;  %v9845_v40 = vpop.permute.xlu1 %803 }
  0x94   : > { %1547 = vrot.lane.b32.xlu1 %v8343_v21, %s9480_s19  ;;  %v8347_v57 = vcombine.low %v1466_v51, %v1476_v53  ;;  %v1341_v32 = vrot.slane %v1340_v6, 4  ;;  %v1350_v58 = vor.u32 %v1349_v52, %v1345_v50  ;;  %v1382_v1 = vshrl.u32 %v8320_v47, 16  ;;  %v8437_v45 = vld [vmem:[%s9520_s16 + $0x70] sm:$0xf] }
  0x95   : > { %v1385_v2 = vshll.u32 %v8320_v47, 16  ;;  %v1391_v3 = vshll.u32 %v8321_v46, 16  ;;  %v2622_v9 = vsel %vm9822_vm5, %v8380_v56, %v2621_v62  ;;  %v2623_v10 = vrot.slane %v2621_v62, 4 }
  0x96   : > { %v1346_v7 = vsel %vm9532_vm2, %v1341_v32, %v1345_v50  ;;  %v1351_v8 = vrot.slane %v1350_v58, 4  ;;  %v1384_v60 = vrot.slane %v1382_v1, 4  ;;  %v1395_v15 = vshrl.u32 %v8321_v46, 16  ;;  %v9850_v47 = vpop.permute.xlu0 %799  ;;  %v8438_v32 = vld [vmem:[%s9520_s16 + $0x74] sm:$0x1] }
  0x97   : > { %v1387_v13 = vrot.slane %v1385_v2, 5  ;;  %v1393_v14 = vrot.slane %v1391_v3, 5  ;;  %v2625_v12 = vsel %vm9822_vm5, %v2623_v10, %v2624_v0  ;;  %v1401_v17 = vshll.u32 %v8322_v63, 16  ;;  %v2544_v58 = vld [vmem:[%s9520_s16 + $0x60] sm:$0xe] }
  0x98   : > { %1551 = vrot.lane.b32.xlu1 %v8345_v48, %s9480_s19  ;;  %v1356_v16 = vsel %vm9532_vm2, %v1351_v8, %v1355_v55  ;;  %v2892_v18 = vshrl.u32 %v8412_v59, 16  ;;  %v8396_v21 = vcombine.low %v2622_v9, %v2625_v12  ;;  %v1397_v23 = vrot.slane %v1395_v15, 4  ;;  %v2545_v1 = vld [vmem:[%s9520_s16 + $0x64] sm:$0xf]  ;;  %v9862_v8 = vld [vmem:[%s9520_s16 + $0x68] sm:$0x1] }
  0x99   : > { %v8342_v19 = vcombine.low %v1346_v7, %v1356_v16  ;;  %v1388_v22 = vor.u32 %v1387_v13, %v1384_v60  ;;  %v1403_v25 = vrot.slane %v1401_v17, 5  ;;  %v2895_v28 = vshll.u32 %v8412_v59, 16  ;;  %v8501_v15 = vld [vmem:[%s9520_s16 + $0x70] sm:$0xf] }
  0x9a   : > { %v2894_v27 = vrot.slane %v2892_v18, 4  ;;  %v2901_v41 = vshll.u32 %v8413_v5, 16  ;;  %v1398_v31 = vor.u32 %v1397_v23, %v1393_v14  ;;  %v2905_v33 = vshrl.u32 %v8413_v5, 16  ;;  %v9864_v9 = vpop.permute.xlu1 %805 }
  0x9b   : > { %1545 = vrot.lane.b32.xlu0 %v8342_v19, %s9480_s19  ;;  %v1389_v30 = vrot.slane %v1388_v22, 4  ;;  %v2911_v34 = vshll.u32 %v8414_v11, 16  ;;  %v2897_v4 = vrot.slane %v2895_v28, 5  ;;  %v1430_v37 = vshrl.u32 %v8326_v24, 16  ;;  %v8477_v28 = vld [vmem:[%s9520_s16 + $0x10] sm:$0xf] }
  0x9c   : > { %1555 = vrot.lane.b32.xlu1 %v8347_v57, %s9480_s19  ;;  %v2903_v36 = vrot.slane %v2901_v41, 5  ;;  %v1433_v38 = vshll.u32 %v8326_v24, 16  ;;  %v1399_v42 = vrot.slane %v1398_v31, 4  ;;  %v2907_v43 = vrot.slane %v2905_v33, 4 }
  0x9d   : > { %v1394_v54 = vsel %vm9532_vm2, %v1389_v30, %v1393_v14  ;;  %v2913_v44 = vrot.slane %v2911_v34, 5  ;;  %v2898_v48 = vor.u32 %v2897_v4, %v2894_v27  ;;  %v1432_v49 = vrot.slane %v1430_v37, 4  ;;  %v8500_v14 = vld [vmem:[%s9520_s16 + $0x6c] sm:$0xe] }
  0x9e   : > { %v1435_v50 = vrot.slane %v1433_v38, 5  ;;  %v1439_v20 = vshll.u32 %v8327_v29, 16  ;;  %v1404_v51 = vsel %vm9532_vm2, %v1399_v42, %v1403_v25  ;;  %v2908_v6 = vor.u32 %v2907_v43, %v2903_v36  ;;  %v8476_v27 = vld [vmem:[%s9520_s16 + $0xc] sm:$0xe]  ;;  %v2548_v43 = vld [vmem:[%s9520_s16 + $0x70] sm:$0xf] }
  0x9f   : > { %v1443_v52 = vshrl.u32 %v8327_v29, 16  ;;  %v1449_v46 = vshll.u32 %v8328_v35, 16  ;;  %v8344_v53 = vcombine.low %v1394_v54, %v1404_v51  ;;  %v2899_v55 = vrot.slane %v2898_v48, 4  ;;  %v2547_v42 = vld [vmem:[%s9520_s16 + $0x6c] sm:$0xe] }
  0xa0   : > { %2779 = vrot.lane.b32.xlu1 %v8396_v21, %s9478_s17  ;;  %v1436_v56 = vor.u32 %v1435_v50, %v1432_v49  ;;  %v1441_v57 = vrot.slane %v1439_v20, 5  ;;  %v2909_v62 = vrot.slane %v2908_v6, 4  ;;  %v3084_v0 = vshrl.u32 %v8436_v39, 16  ;;  %v9870_v16 = vpop.permute.xlu0 %801  ;;  %v8502_v21 = vld [vmem:[%s9520_s16 + $0x74] sm:$0x1]  ;;  %v9371_v6 = vld [vmem:[%s9520_s16 + $0x18] sm:$0xff]  }
  0xa1   : > { %v1445_v63 = vrot.slane %v1443_v52, 4  ;;  %v1451_v59 = vrot.slane %v1449_v46, 5  ;;  %1549 = vrot.lane.b32.xlu0 %v8344_v53, %s9480_s19  ;;  %v2904_v2 = vsel %vm9532_vm2, %v2899_v55, %v2903_v36  ;;  %v3087_v5 = vshll.u32 %v8436_v39, 16  ;;  %v8478_v36 = vld [vmem:[%s9520_s16 + $0x14] sm:$0x1]  ;;  %v9372_v52 = vld [vmem:[%s9520_s16] sm:$0xff]  }
  0xa2   : > { %v1437_v3 = vrot.slane %v1436_v56, 4  ;;  %v3093_v7 = vshll.u32 %v8437_v45, 16  ;;  %v2914_v10 = vsel %vm9532_vm2, %v2909_v62, %v2913_v44  ;;  %v3086_v60 = vrot.slane %v3084_v0, 4  ;;  %v9887_v44 = vld [vmem:[%s9520_s16 + $0x74] sm:$0x1]  ;;  %v9373_v46 = vld [vmem:[%s9520_s16 + $0x24] sm:$0xff]  }
  0xa3   : > { %v1446_v11 = vor.u32 %v1445_v63, %v1441_v57  ;;  %v3097_v13 = vshrl.u32 %v8437_v45, 16  ;;  %v8460_v12 = vcombine.low %v2904_v2, %v2914_v10  ;;  %v3089_v18 = vrot.slane %v3087_v5, 5  ;;  %v9889_v45 = vpop.permute.xlu1 %809  ;;  %v9896_v51 = vld [vmem:[%s9520_s16 + $0xc] sm:$0xe]  ;;  %v9375_v55 = vld [vmem:[%s9520_s16 + $0x3c] sm:$0xff]   ;;  %v9384_v2 = vld [vmem:[%s9520_s16 + $0x90] sm:$0xff]  }
  0xa4   : > { %v1442_v17 = vsel %vm9532_vm2, %v1437_v3, %v1441_v57  ;;  %v3095_v19 = vrot.slane %v3093_v7, 5  ;;  %v3103_v24 = vshll.u32 %v8438_v32, 16  ;;  %v8388_v25 = vrot.slane %v2544_v58, 9  ;;  %v9374_v53 = vld [vmem:[%s9520_s16 + $0xc] sm:$0xff]   ;;  %v9377_v32 = vld [vmem:[%s9520_s16 + $0x54] sm:$0xff]   ;;  %v9380_v63 = vld [vmem:[%s9520_s16 + $0x60] sm:$0xff]  }
  0xa5   : > { %v1447_v22 = vrot.slane %v1446_v11, 4  ;;  %v3099_v23 = vrot.slane %v3097_v13, 4  ;;  %3323 = vrot.lane.b32.xlu1 %v8460_v12, %s9479_s18  ;;  %v3090_v41 = vor.u32 %v3089_v18, %v3086_v60  ;;  %v2677_v29 = vrot.slane %v2545_v1, 5  ;;  %v9376_v57 = vld [vmem:[%s9520_s16 + $0x30] sm:$0xff]   ;;  %v9378_v58 = vld [vmem:[%s9520_s16 + $0x48] sm:$0xff]   ;;  %v9382_v0 = vld [vmem:[%s9520_s16 + $0x78] sm:$0xff]  }
  0xa6   : > { %v2680_v30 = vrot.slane %v9862_v8, 5  ;;  %v8532_v31 = vrot.slane %v8500_v14, 9  ;;  %v3105_v35 = vrot.slane %v3103_v24, 5  ;;  %v3541_v4 = vrot.slane %v8501_v15, 5  ;;  %v9379_v62 = vld [vmem:[%s9520_s16 + $0x6c] sm:$0xff]   ;;  %v9383_v1 = vld [vmem:[%s9520_s16 + $0x9c] sm:$0xff]  }
  0xa7   : > { %v1452_v33 = vsel %vm9532_vm2, %v1447_v22, %v1451_v59  ;;  %v3100_v34 = vor.u32 %v3099_v23, %v3095_v19  ;;  %v3091_v38 = vrot.slane %v3090_v41, 4  ;;  %v2678_v39 = vsel %vm9822_vm5, %v8388_v25, %v2677_v29  ;;  %v9903_v56 = vpop.permute.xlu0 %807  ;;  %v9381_v59 = vld [vmem:[%s9520_s16 + $0x84] sm:$0xff]   ;;  %v9385_v3 = vld [vmem:[%s9520_s16 + $0xb4] sm:$0xff]   ;;  %v2524_v11 = vld [vmem:[%s9520_s16 + $0x10] sm:$0xf]  ;;  %302 = vst.msk [vmem:[#allocation2 + $0x10] sm:$0xff] %vm299_vm6, %v9371_v6 }
  0xa8   : > { %v8346_v37 = vcombine.low %v1442_v17, %v1452_v33  ;;  %v2679_v54 = vrot.slane %v2677_v29, 4  ;;  %v9893_v49 = vsel %vm9822_vm5, %v8532_v31, %v3541_v4  ;;  %v3543_v50 = vrot.slane %v3541_v4, 4  ;;  %v9922_v60 = vld [vmem:[%s9520_s16 + $0x14] sm:$0x1]  ;;  %v9929_v17 = vld [vmem:[%s9520_s16 + $0x78] sm:$0xf] }
  0xa9   : > { %v3101_v48 = vrot.slane %v3100_v34, 4  ;;  %v3544_v20 = vrot.slane %v8502_v21, 5  ;;  %v3096_v5 = vsel %vm9532_vm2, %v3091_v38, %v3095_v19  ;;  %v8524_v8 = vrot.slane %v8476_v27, 9  ;;  %v9386_v18 = vld [vmem:[%s9520_s16 + $0xa8] sm:$0xff]   ;;  %v8440_v41 = vld [vmem:[%s9520_s16 + $0x7c] sm:$0xf] }
  0xaa   : > { %1553 = vrot.lane.b32.xlu0 %v8346_v37, %s9480_s19  ;;  %v2681_v7 = vsel %vm9822_vm5, %v2679_v54, %v2680_v30  ;;  %v3485_v10 = vrot.slane %v8477_v28, 5  ;;  %v3488_v12 = vrot.slane %v8478_v36, 5  ;;  %v8389_v24 = vrot.slane %v2547_v42, 9  ;;  %v8441_v33 = vld [vmem:[%s9520_s16 + $0x80] sm:$0x1]  ;;  %300 = vst.msk [vmem:[#allocation2] sm:$0xff] %vm299_vm6, %v9372_v52 }
  0xab   : > { %v3106_v13 = vsel %vm9532_vm2, %v3101_v48, %v3105_v35  ;;  %v8404_v14 = vcombine.low %v2678_v39, %v2681_v7  ;;  %v3545_v15 = vsel %vm9822_vm5, %v3543_v50, %v3544_v20  ;;  %v2684_v25 = vrot.slane %v2548_v43, 5  ;;  %v9951_v37 = vld [vmem:[%s9520_s16 + $0x18] sm:$0xf]  ;;  %v9954_v38 = vld [vmem:[%s9520_s16 + $0x1c] sm:$0xf]  ;;  %303 = vst.msk [vmem:[#allocation2 + $0x18] sm:$0xff] %vm299_vm6, %v9373_v46 }
  0xac   : > { %v8468_v19 = vcombine.low %v3096_v5, %v3106_v13  ;;  %v8548_v21 = vcombine.low %v9893_v49, %v3545_v15  ;;  %v3486_v22 = vsel %vm9822_vm5, %v8524_v8, %v3485_v10  ;;  %v3487_v23 = vrot.slane %v3485_v10, 4  ;;  %v814_v34 = vpop.permute.xlu1 %813  ;;  %301 = vst.msk [vmem:[#allocation2 + $0x8] sm:$0xff] %vm299_vm6, %v9374_v53  ;;  %305 = vst.msk [vmem:[#allocation2 + $0x28] sm:$0xff] %vm299_vm6, %v9375_v55  ;;  %v8417_v48 = vld [vmem:[%s9520_s16 + $0x20] sm:$0x1] }
  0xad   : > { %v2687_v27 = vrot.slane %v9887_v44, 5  ;;  %v8381_v28 = vrot.slane %v9896_v51, 9  ;;  %v2628_v30 = vrot.slane %v2524_v11, 5  ;;  %v2631_v31 = vrot.slane %v9922_v60, 5  ;;  %304 = vst.msk [vmem:[#allocation2 + $0x20] sm:$0xff] %vm299_vm6, %v9376_v57  ;;  %307 = vst.msk [vmem:[#allocation2 + $0x38] sm:$0xff] %vm299_vm6, %v9377_v32 }
  0xae   : > { %3339 = vrot.lane.b32.xlu1 %v8468_v19, %s9479_s18  ;;  %2795 = vrot.lane.b32.xlu0 %v8404_v14, %s9478_s17  ;;  %v3489_v29 = vsel %vm9822_vm5, %v3487_v23, %v3488_v12  ;;  %v9946_v4 = vsel %vm9822_vm5, %v8389_v24, %v2684_v25  ;;  %v2686_v36 = vrot.slane %v2684_v25, 4  ;;  %306 = vst.msk [vmem:[#allocation2 + $0x30] sm:$0xff] %vm299_vm6, %v9378_v58  ;;  %309 = vst.msk [vmem:[#allocation2 + $0x48] sm:$0xff] %vm299_vm6, %v9379_v62  ;;  %v8504_v6 = vld [vmem:[%s9520_s16 + $0x7c] sm:$0xf] }
  0xaf   : > { %v8540_v35 = vcombine.low %v3486_v22, %v3489_v29  ;;  %v812_v39 = vpop.permute.xlu0 %811  ;;  %308 = vst.msk [vmem:[#allocation2 + $0x40] sm:$0xff] %vm299_vm6, %v9380_v63  ;;  %311 = vst.msk [vmem:[#allocation2 + $0x58] sm:$0xff] %vm299_vm6, %v9381_v59  ;;  %v2629_v54 = vsel %vm9822_vm5, %v8381_v28, %v2628_v30  ;;  %v2630_v42 = vrot.slane %v2628_v30, 4  ;;  %v3108_v43 = vshrl.u32 %v9929_v17, 16  ;;  %v8479_v57 = vld [vmem:[%s9520_s16 + $0x18] sm:$0xe] }
  0xb0   : > { %310 = vst.msk [vmem:[#allocation2 + $0x50] sm:$0xff] %vm299_vm6, %v9382_v0  ;;  %313 = vst.msk [vmem:[#allocation2 + $0x68] sm:$0xff] %vm299_vm6, %v9383_v1  ;;  %v3111_v44 = vshll.u32 %v9929_v17, 16  ;;  %v3127_v49 = vshll.u32 %v8441_v33, 16  ;;  %v2916_v58 = vshrl.u32 %v9951_v37, 16  ;;  %v2919_v62 = vshll.u32 %v9951_v37, 16 }
  0xb1   : > { %312 = vst.msk [vmem:[#allocation2 + $0x60] sm:$0xff] %vm299_vm6, %v9384_v2  ;;  %315 = vst.msk [vmem:[#allocation2 + $0x78] sm:$0xff] %vm299_vm6, %v9385_v3  ;;  %v2632_v50 = vsel %vm9822_vm5, %v2630_v42, %v2631_v31  ;;  %v3110_v20 = vrot.slane %v3108_v43, 4  ;;  %v2925_v63 = vshll.u32 %v9954_v38, 16  ;;  %v2929_v1 = vshrl.u32 %v9954_v38, 16 }
  0xb2   : > { %314 = vst.msk [vmem:[#allocation2 + $0x70] sm:$0xff] %vm299_vm6, %v9386_v18  ;;  %3659 = vrot.lane.b32.xlu1 %v8548_v21, %s9480_s19  ;;  %3643 = vrot.lane.b32.xlu0 %v8540_v35, %s9480_s19  ;;  %v3113_v51 = vrot.slane %v3111_v44, 5  ;;  %v8397_v52 = vcombine.low %v2629_v54, %v2632_v50  ;;  %v3129_v55 = vrot.slane %v3127_v49, 5  ;;  %v2935_v2 = vshll.u32 %v8417_v48, 16  ;;  %v8480_v5 = vld [vmem:[%s9520_s16 + $0x1c] sm:$0xf] }
  0xb3   : > { %850 = vst.msk [vmem:[#allocation2 + $0x10] sm:$0xff] %vm847_vm7, %v9845_v40  ;;  %848 = vst.msk [vmem:[#allocation2] sm:$0xff] %vm847_vm7, %v9850_v47  ;;  %v2688_v40 = vsel %vm9822_vm5, %v2686_v36, %v2687_v27  ;;  %v3117_v47 = vshll.u32 %v8440_v41, 16  ;;  %v2918_v8 = vrot.slane %v2916_v58, 4  ;;  %v2921_v10 = vrot.slane %v2919_v62, 5 }
  0xb4   : > { %851 = vst.msk [vmem:[#allocation2 + $0x18] sm:$0xff] %vm847_vm7, %v9864_v9  ;;  %849 = vst.msk [vmem:[#allocation2 + $0x8] sm:$0xff] %vm847_vm7, %v9870_v16  ;;  %v3121_v9 = vshrl.u32 %v8440_v41, 16  ;;  %v8503_v16 = vld [vmem:[%s9520_s16 + $0x78] sm:$0xe]  ;;  %v3114_v32 = vor.u32 %v3113_v51, %v3110_v20  ;;  %v818_v59 = vpop.permute.xlu1 %817  ;;  %v2927_v11 = vrot.slane %v2925_v63, 5 }
  0xb5   : > { %853 = vst.msk [vmem:[#allocation2 + $0x28] sm:$0xff] %vm847_vm7, %v9889_v45  ;;  %852 = vst.msk [vmem:[#allocation2 + $0x20] sm:$0xff] %vm847_vm7, %v9903_v56  ;;  %v8405_v45 = vcombine.low %v9946_v4, %v2688_v40  ;;  %v3119_v46 = vrot.slane %v3117_v47, 5  ;;  %v8505_v56 = vld [vmem:[%s9520_s16 + $0x80] sm:$0x1]  ;;  %v8533_v3 = vrot.slane %v8503_v16, 9  ;;  %v2922_v21 = vor.u32 %v2921_v10, %v2918_v8 }
  0xb6   : > { %855 = vst.msk [vmem:[#allocation2 + $0x38] sm:$0xff] %vm847_vm7, %v814_v34  ;;  %854 = vst.msk [vmem:[#allocation2 + $0x30] sm:$0xff] %vm847_vm7, %v812_v39  ;;  %v3123_v53 = vrot.slane %v3121_v9, 4  ;;  %2781 = vrot.lane.b32.xlu0 %v8397_v52, %s9478_s17  ;;  %v3115_v7 = vrot.slane %v3114_v32, 4  ;;  %v8481_v60 = vld [vmem:[%s9520_s16 + $0x20] sm:$0x1] }
  0xb7   : > { %857 = vst.msk [vmem:[#allocation2 + $0x48] sm:$0xff] %vm847_vm7, %v818_v59  ;;  %2797 = vrot.lane.b32.xlu1 %v8405_v45, %s9478_s17  ;;  %v2931_v14 = vrot.slane %v2929_v1, 4  ;;  %v2937_v15 = vrot.slane %v2935_v2, 5  ;;  %v3548_v12 = vrot.slane %v8504_v6, 5  ;;  %v2550_v17 = vld [vmem:[%s9520_s16 + $0x78] sm:$0xe]  ;;  %v816_v18 = vpop.permute.xlu0 %815 }
  0xb8   : > { %v3124_v0 = vor.u32 %v3123_v53, %v3119_v46  ;;  %v3120_v19 = vsel %vm9532_vm2, %v3115_v7, %v3119_v46  ;;  %v3551_v22 = vrot.slane %v8505_v56, 5  ;;  %v8525_v23 = vrot.slane %v8479_v57, 9  ;;  %v2551_v24 = vld [vmem:[%s9520_s16 + $0x7c] sm:$0xf]  ;;  %v2552_v25 = vld [vmem:[%s9520_s16 + $0x80] sm:$0x1] }
  0xb9   : > { %856 = vst.msk [vmem:[#allocation2 + $0x40] sm:$0xff] %vm847_vm7, %v816_v18  ;;  %v2932_v28 = vor.u32 %v2931_v14, %v2927_v11  ;;  %v3549_v41 = vsel %vm9822_vm5, %v8533_v3, %v3548_v12  ;;  %v3550_v29 = vrot.slane %v3548_v12, 4  ;;  %v2526_v30 = vld [vmem:[%s9520_s16 + $0x18] sm:$0xe]  ;;  %v2527_v31 = vld [vmem:[%s9520_s16 + $0x1c] sm:$0xf] }
  0xba   : > { %v3125_v13 = vrot.slane %v3124_v0, 4  ;;  %v2923_v34 = vrot.slane %v2922_v21, 4  ;;  %v3492_v35 = vrot.slane %v8480_v5, 5  ;;  %v3495_v4 = vrot.slane %v8481_v60, 5  ;;  %v2528_v36 = vld [vmem:[%s9520_s16 + $0x20] sm:$0x1] }
  0xbb   : > { %v2933_v37 = vrot.slane %v2932_v28, 4  ;;  %v3552_v38 = vsel %vm9822_vm5, %v3550_v29, %v3551_v22  ;;  %v8390_v39 = vrot.slane %v2550_v17, 9  ;;  %v2691_v54 = vrot.slane %v2551_v24, 5  ;;  %v8442_v40 = vld [vmem:[%s9520_s16 + $0x84] sm:$0xf] }
  0xbc   : > { %v3130_v27 = vsel %vm9532_vm2, %v3125_v13, %v3129_v55  ;;  %v2928_v42 = vsel %vm9532_vm2, %v2923_v34, %v2927_v11  ;;  %v8549_v43 = vcombine.low %v3549_v41, %v3552_v38  ;;  %v3493_v44 = vsel %vm9822_vm5, %v8525_v23, %v3492_v35  ;;  %v822_v47 = vpop.permute.xlu1 %821  ;;  %v8443_v52 = vld [vmem:[%s9520_s16 + $0x88] sm:$0xf]  ;;  %v8444_v46 = vld [vmem:[%s9520_s16 + $0x8c] sm:$0x1]  ;;  %v8418_v32 = vld [vmem:[%s9520_s16 + $0x24] sm:$0xf] }
  0xbd   : > { %v8469_v33 = vcombine.low %v3120_v19, %v3130_v27  ;;  %v3494_v48 = vrot.slane %v3492_v35, 4  ;;  %v2938_v9 = vsel %vm9532_vm2, %v2933_v37, %v2937_v15  ;;  %v2692_v49 = vsel %vm9822_vm5, %v8390_v39, %v2691_v54  ;;  %859 = vst.msk [vmem:[#allocation2 + $0x58] sm:$0xff] %vm847_vm7, %v822_v47  ;;  %v8419_v0 = vld [vmem:[%s9520_s16 + $0x28] sm:$0xf]  ;;  %v8420_v7 = vld [vmem:[%s9520_s16 + $0x2c] sm:$0x1] }
  0xbe   : > { %v2693_v16 = vrot.slane %v2691_v54, 4  ;;  %v2694_v45 = vrot.slane %v2552_v25, 5  ;;  %v8461_v50 = vcombine.low %v2928_v42, %v2938_v9  ;;  %v8382_v51 = vrot.slane %v2526_v30, 9  ;;  %v8506_v14 = vld [vmem:[%s9520_s16 + $0x84] sm:$0xe] }
  0xbf   : > { %3341 = vrot.lane.b32.xlu1 %v8469_v33, %s9479_s18  ;;  %v3496_v20 = vsel %vm9822_vm5, %v3494_v48, %v3495_v4  ;;  %v2635_v6 = vrot.slane %v2527_v31, 5  ;;  %v2638_v56 = vrot.slane %v2528_v36, 5  ;;  %v3132_v57 = vshrl.u32 %v8442_v40, 16  ;;  %v8507_v19 = vld [vmem:[%s9520_s16 + $0x88] sm:$0xf] }
  0xc0   : > { %v8541_v53 = vcombine.low %v3493_v44, %v3496_v20  ;;  %v2695_v55 = vsel %vm9822_vm5, %v2693_v16, %v2694_v45  ;;  %3325 = vrot.lane.b32.xlu0 %v8461_v50, %s9479_s18  ;;  %v3135_v59 = vshll.u32 %v8442_v40, 16  ;;  %v3141_v2 = vshll.u32 %v8443_v52, 16  ;;  %v8508_v25 = vld [vmem:[%s9520_s16 + $0x8c] sm:$0x1]  ;;  %v8482_v31 = vld [vmem:[%s9520_s16 + $0x24] sm:$0xe] }
  0xc1   : > { %v8406_v58 = vcombine.low %v2692_v49, %v2695_v55  ;;  %v2636_v62 = vsel %vm9822_vm5, %v8382_v51, %v2635_v6  ;;  %v2637_v63 = vrot.slane %v2635_v6, 4  ;;  %v3134_v1 = vrot.slane %v3132_v57, 4  ;;  %v820_v8 = vpop.permute.xlu0 %819  ;;  %v8483_v36 = vld [vmem:[%s9520_s16 + $0x28] sm:$0xf]  ;;  %v8484_v42 = vld [vmem:[%s9520_s16 + $0x2c] sm:$0x1] }
  0xc2   : > { %v3145_v3 = vshrl.u32 %v8443_v52, 16  ;;  %v3151_v5 = vshll.u32 %v8444_v46, 16  ;;  %v3137_v11 = vrot.slane %v3135_v59, 5  ;;  %v2940_v60 = vshrl.u32 %v8418_v32, 16  ;;  %858 = vst.msk [vmem:[#allocation2 + $0x50] sm:$0xff] %vm847_vm7, %v820_v8 }
  0xc3   : > { %3661 = vrot.lane.b32.xlu1 %v8549_v43, %s9480_s19  ;;  %v2639_v10 = vsel %vm9822_vm5, %v2637_v63, %v2638_v56  ;;  %v2943_v13 = vshll.u32 %v8418_v32, 16  ;;  %v3143_v12 = vrot.slane %v3141_v2, 5  ;;  %v2949_v24 = vshll.u32 %v8419_v0, 16  ;;  %v2553_v47 = vld [vmem:[%s9520_s16 + $0x84] sm:$0xe] }
  0xc4   : > { %v8398_v15 = vcombine.low %v2636_v62, %v2639_v10  ;;  %v3147_v17 = vrot.slane %v3145_v3, 4  ;;  %v3153_v18 = vrot.slane %v3151_v5, 5  ;;  %3645 = vrot.lane.b32.xlu0 %v8541_v53, %s9480_s19  ;;  %v3138_v21 = vor.u32 %v3137_v11, %v3134_v1  ;;  %v826_v27 = vpop.permute.xlu1 %825  ;;  %v2554_v9 = vld [vmem:[%s9520_s16 + $0x88] sm:$0xf]  ;;  %v2555_v20 = vld [vmem:[%s9520_s16 + $0x8c] sm:$0x1] }
  0xc5   : > { %v2942_v22 = vrot.slane %v2940_v60, 4  ;;  %v2945_v23 = vrot.slane %v2943_v13, 5  ;;  %v2953_v41 = vshrl.u32 %v8419_v0, 16  ;;  %v2959_v29 = vshll.u32 %v8420_v7, 16  ;;  %861 = vst.msk [vmem:[#allocation2 + $0x68] sm:$0xff] %vm847_vm7, %v826_v27 }
  0xc6   : > { %v3148_v28 = vor.u32 %v3147_v17, %v3143_v12  ;;  %v8534_v30 = vrot.slane %v8506_v14, 9  ;;  %v3139_v33 = vrot.slane %v3138_v21, 4  ;;  %v2951_v35 = vrot.slane %v2949_v24, 5  ;;  %v2529_v51 = vld [vmem:[%s9520_s16 + $0x24] sm:$0xe] }
  0xc7   : > { %2799 = vrot.lane.b32.xlu1 %v8406_v58, %s9478_s17  ;;  %v2946_v34 = vor.u32 %v2945_v23, %v2942_v22  ;;  %v3555_v4 = vrot.slane %v8507_v19, 5  ;;  %v2955_v38 = vrot.slane %v2953_v41, 4  ;;  %v2961_v39 = vrot.slane %v2959_v29, 5  ;;  %v2530_v56 = vld [vmem:[%s9520_s16 + $0x28] sm:$0xf] }
  0xc8   : > { %v3149_v37 = vrot.slane %v3148_v28, 4  ;;  %v3558_v54 = vrot.slane %v8508_v25, 5  ;;  %2783 = vrot.lane.b32.xlu0 %v8398_v15, %s9478_s17  ;;  %v3144_v43 = vsel %vm9532_vm2, %v3139_v33, %v3143_v12  ;;  %v8526_v45 = vrot.slane %v8482_v31, 9  ;;  %v2531_v57 = vld [vmem:[%s9520_s16 + $0x2c] sm:$0x1] }
  0xc9   : > { %v2947_v44 = vrot.slane %v2946_v34, 4  ;;  %v3556_v48 = vsel %vm9822_vm5, %v8534_v30, %v3555_v4  ;;  %v3557_v40 = vrot.slane %v3555_v4, 4  ;;  %v2956_v16 = vor.u32 %v2955_v38, %v2951_v35  ;;  %v824_v6 = vpop.permute.xlu0 %823  ;;  %v8445_v3 = vld [vmem:[%s9520_s16 + $0x90] sm:$0xf]  ;;  %v8446_v11 = vld [vmem:[%s9520_s16 + $0x94] sm:$0xf] }
  0xca   : > { %v3154_v49 = vsel %vm9532_vm2, %v3149_v37, %v3153_v18  ;;  %v3499_v50 = vrot.slane %v8483_v36, 5  ;;  %v3502_v55 = vrot.slane %v8484_v42, 5  ;;  %860 = vst.msk [vmem:[#allocation2 + $0x60] sm:$0xff] %vm847_vm7, %v824_v6  ;;  %v8391_v59 = vrot.slane %v2553_v47, 9  ;;  %v8447_v60 = vld [vmem:[%s9520_s16 + $0x98] sm:$0x1] }
  0xcb   : > { %v8470_v52 = vcombine.low %v3144_v43, %v3154_v49  ;;  %v2952_v46 = vsel %vm9532_vm2, %v2947_v44, %v2951_v35  ;;  %v3559_v53 = vsel %vm9822_vm5, %v3557_v40, %v3558_v54  ;;  %v2957_v32 = vrot.slane %v2956_v16, 4  ;;  %v8421_v23 = vld [vmem:[%s9520_s16 + $0x30] sm:$0xf]  ;;  %v8422_v41 = vld [vmem:[%s9520_s16 + $0x34] sm:$0xf] }
  0xcc   : > { %v8550_v58 = vcombine.low %v3556_v48, %v3559_v53  ;;  %v3500_v62 = vsel %vm9822_vm5, %v8526_v45, %v3499_v50  ;;  %v3501_v63 = vrot.slane %v3499_v50, 4  ;;  %v2698_v0 = vrot.slane %v2554_v9, 5  ;;  %v8423_v34 = vld [vmem:[%s9520_s16 + $0x38] sm:$0x1]  ;;  %v8509_v4 = vld [vmem:[%s9520_s16 + $0x90] sm:$0xe] }
  0xcd   : > { %3343 = vrot.lane.b32.xlu1 %v8470_v52, %s9479_s18  ;;  %v2701_v1 = vrot.slane %v2555_v20, 5  ;;  %v8383_v2 = vrot.slane %v2529_v51, 9  ;;  %v2962_v5 = vsel %vm9532_vm2, %v2957_v32, %v2961_v39  ;;  %v2642_v8 = vrot.slane %v2530_v56, 5  ;;  %v8510_v54 = vld [vmem:[%s9520_s16 + $0x94] sm:$0xf] }
  0xce   : > { %v3503_v7 = vsel %vm9822_vm5, %v3501_v63, %v3502_v55  ;;  %v2645_v10 = vrot.slane %v2531_v57, 5  ;;  %v8462_v13 = vcombine.low %v2952_v46, %v2962_v5  ;;  %v2699_v15 = vsel %vm9822_vm5, %v8391_v59, %v2698_v0  ;;  %v830_v17 = vpop.permute.xlu1 %829  ;;  %v8511_v47 = vld [vmem:[%s9520_s16 + $0x98] sm:$0x1]  ;;  %v8485_v50 = vld [vmem:[%s9520_s16 + $0x30] sm:$0xe] }
  0xcf   : > { %v8542_v14 = vcombine.low %v3500_v62, %v3503_v7  ;;  %v2700_v12 = vrot.slane %v2698_v0, 4  ;;  %v2643_v18 = vsel %vm9822_vm5, %v8383_v2, %v2642_v8  ;;  %v2644_v19 = vrot.slane %v2642_v8, 4  ;;  %863 = vst.msk [vmem:[#allocation2 + $0x78] sm:$0xff] %vm847_vm7, %v830_v17  ;;  %v8486_v46 = vld [vmem:[%s9520_s16 + $0x34] sm:$0xf] }
  0xd0   : > { %v3156_v21 = vshrl.u32 %v8445_v3, 16  ;;  %v3159_v22 = vshll.u32 %v8445_v3, 16  ;;  %3327 = vrot.lane.b32.xlu0 %v8462_v13, %s9479_s18  ;;  %v3165_v25 = vshll.u32 %v8446_v11, 16  ;;  %v3169_v27 = vshrl.u32 %v8446_v11, 16  ;;  %v2556_v2 = vld [vmem:[%s9520_s16 + $0x90] sm:$0xe] }
  0xd1   : > { %3663 = vrot.lane.b32.xlu1 %v8550_v58, %s9480_s19  ;;  %v2702_v24 = vsel %vm9822_vm5, %v2700_v12, %v2701_v1  ;;  %v3175_v28 = vshll.u32 %v8447_v60, 16  ;;  %v2646_v30 = vsel %vm9822_vm5, %v2644_v19, %v2645_v10  ;;  %v828_v35 = vpop.permute.xlu0 %827  ;;  %v2964_v44 = vshrl.u32 %v8421_v23, 16  ;;  %v8487_v58 = vld [vmem:[%s9520_s16 + $0x38] sm:$0x1]  ;;  %v2557_v3 = vld [vmem:[%s9520_s16 + $0x94] sm:$0xf] }
  0xd2   : > { %v8407_v29 = vcombine.low %v2699_v15, %v2702_v24  ;;  %v3158_v31 = vrot.slane %v3156_v21, 4  ;;  %v3161_v33 = vrot.slane %v3159_v22, 5  ;;  %v8399_v36 = vcombine.low %v2643_v18, %v2646_v30  ;;  %862 = vst.msk [vmem:[#allocation2 + $0x70] sm:$0xff] %vm847_vm7, %v828_v35  ;;  %v983_v42 = vpop.permute.xlu1 %982  ;;  %v2558_v11 = vld [vmem:[%s9520_s16 + $0x98] sm:$0x1] }
  0xd3   : > { %v3167_v37 = vrot.slane %v3165_v25, 5  ;;  %v3171_v38 = vrot.slane %v3169_v27, 4  ;;  %v3177_v39 = vrot.slane %v3175_v28, 5  ;;  %v2967_v48 = vshll.u32 %v8421_v23, 16  ;;  %v2532_v60 = vld [vmem:[%s9520_s16 + $0x30] sm:$0xe] }
  0xd4   : > { %v3162_v43 = vor.u32 %v3161_v33, %v3158_v31  ;;  %v2973_v40 = vshll.u32 %v8422_v41, 16  ;;  %3647 = vrot.lane.b32.xlu0 %v8542_v14, %s9480_s19  ;;  %v2977_v49 = vshrl.u32 %v8422_v41, 16  ;;  %v2983_v16 = vshll.u32 %v8423_v34, 16  ;;  %v2533_v17 = vld [vmem:[%s9520_s16 + $0x34] sm:$0xf]  ;;  %1030 = vst.msk [vmem:[#allocation2 + $0x8] sm:$0xff] %vm1028_vm8, %v983_v42 }
  0xd5   : > { %2801 = vrot.lane.b32.xlu1 %v8407_v29, %s9478_s17  ;;  %v3172_v9 = vor.u32 %v3171_v38, %v3167_v37  ;;  %v8535_v45 = vrot.slane %v8509_v4, 9  ;;  %v2966_v51 = vrot.slane %v2964_v44, 4  ;;  %v2969_v6 = vrot.slane %v2967_v48, 5  ;;  %v981_v53 = vpop.permute.xlu0 %980  ;;  %v2534_v23 = vld [vmem:[%s9520_s16 + $0x38] sm:$0x1] }
  0xd6   : > { %v3163_v20 = vrot.slane %v3162_v43, 4  ;;  %v2975_v52 = vrot.slane %v2973_v40, 5  ;;  %v2979_v56 = vrot.slane %v2977_v49, 4  ;;  %v2985_v57 = vrot.slane %v2983_v16, 5  ;;  %v987_v62 = vpop.permute.xlu1 %986  ;;  %1029 = vst.msk [vmem:[#allocation2] sm:$0xff] %vm1028_vm8, %v981_v53 }
  0xd7   : > { %v3173_v55 = vrot.slane %v3172_v9, 4  ;;  %v3562_v32 = vrot.slane %v8510_v54, 5  ;;  %v2970_v59 = vor.u32 %v2969_v6, %v2966_v51  ;;  %v3565_v0 = vrot.slane %v8511_v47, 5  ;;  %1032 = vst.msk [vmem:[#allocation2 + $0x18] sm:$0xff] %vm1028_vm8, %v987_v62  ;;  %v8448_v29 = vld [vmem:[%s9520_s16 + $0x9c] sm:$0xf] }
  0xd8   : > { %v3168_v63 = vsel %vm9532_vm2, %v3163_v20, %v3167_v37  ;;  %v8527_v1 = vrot.slane %v8485_v50, 9  ;;  %2785 = vrot.lane.b32.xlu0 %v8399_v36, %s9478_s17  ;;  %v2980_v7 = vor.u32 %v2979_v56, %v2975_v52  ;;  %v3506_v15 = vrot.slane %v8486_v46, 5  ;;  %v8449_v35 = vld [vmem:[%s9520_s16 + $0xa0] sm:$0xf]  ;;  %v8424_v40 = vld [vmem:[%s9520_s16 + $0x3c] sm:$0xf] }
  0xd9   : > { %v3178_v5 = vsel %vm9532_vm2, %v3173_v55, %v3177_v39  ;;  %v3563_v8 = vsel %vm9822_vm5, %v8535_v45, %v3562_v32  ;;  %v3564_v10 = vrot.slane %v3562_v32, 4  ;;  %v2971_v14 = vrot.slane %v2970_v59, 4  ;;  %v985_v18 = vpop.permute.xlu0 %984  ;;  %v8450_v39 = vld [vmem:[%s9520_s16 + $0xa4] sm:$0x1]  ;;  %v8425_v50 = vld [vmem:[%s9520_s16 + $0x40] sm:$0xf] }
  0xda   : > { %v8471_v13 = vcombine.low %v3168_v63, %v3178_v5  ;;  %v3509_v12 = vrot.slane %v8487_v58, 5  ;;  %v2981_v19 = vrot.slane %v2980_v7, 4  ;;  %v8392_v22 = vrot.slane %v2556_v2, 9  ;;  %v991_v24 = vpop.permute.xlu1 %990  ;;  %1031 = vst.msk [vmem:[#allocation2 + $0x10] sm:$0xff] %vm1028_vm8, %v985_v18  ;;  %v8426_v46 = vld [vmem:[%s9520_s16 + $0x44] sm:$0x1] }
  0xdb   : > { %v3566_v21 = vsel %vm9822_vm5, %v3564_v10, %v3565_v0  ;;  %v2976_v25 = vsel %vm9532_vm2, %v2971_v14, %v2975_v52  ;;  %v3507_v28 = vsel %vm9822_vm5, %v8527_v1, %v3506_v15  ;;  %v3508_v41 = vrot.slane %v3506_v15, 4  ;;  %1034 = vst.msk [vmem:[#allocation2 + $0x28] sm:$0xff] %vm1028_vm8, %v991_v24  ;;  %v8512_v32 = vld [vmem:[%s9520_s16 + $0x9c] sm:$0xe]  ;;  %v8513_v58 = vld [vmem:[%s9520_s16 + $0xa0] sm:$0xf] }
  0xdc   : > { %3345 = vrot.lane.b32.xlu1 %v8471_v13, %s9479_s18  ;;  %v8551_v27 = vcombine.low %v3563_v8, %v3566_v21  ;;  %v2986_v30 = vsel %vm9532_vm2, %v2981_v19, %v2985_v57  ;;  %v2705_v31 = vrot.slane %v2557_v3, 5  ;;  %v2708_v33 = vrot.slane %v2558_v11, 5  ;;  %v8514_v2 = vld [vmem:[%s9520_s16 + $0xa4] sm:$0x1]  ;;  %v8488_v11 = vld [vmem:[%s9520_s16 + $0x3c] sm:$0xe] }
  0xdd   : > { %v8384_v34 = vrot.slane %v2532_v60, 9  ;;  %v8463_v4 = vcombine.low %v2976_v25, %v2986_v30  ;;  %v3510_v36 = vsel %vm9822_vm5, %v3508_v41, %v3509_v12  ;;  %v2649_v37 = vrot.slane %v2533_v17, 5  ;;  %v989_v54 = vpop.permute.xlu0 %988  ;;  %v8489_v12 = vld [vmem:[%s9520_s16 + $0x40] sm:$0xf]  ;;  %v2559_v41 = vld [vmem:[%s9520_s16 + $0x9c] sm:$0xe] }
  0xde   : > { %v2652_v38 = vrot.slane %v2534_v23, 5  ;;  %v8543_v42 = vcombine.low %v3507_v28, %v3510_v36  ;;  %v2706_v43 = vsel %vm9822_vm5, %v8392_v22, %v2705_v31  ;;  %v2707_v44 = vrot.slane %v2705_v31, 4  ;;  %1033 = vst.msk [vmem:[#allocation2 + $0x20] sm:$0xff] %vm1028_vm8, %v989_v54  ;;  %v995_v47 = vpop.permute.xlu1 %994  ;;  %v8490_v22 = vld [vmem:[%s9520_s16 + $0x44] sm:$0x1] }
  0xdf   : > { %v3180_v48 = vshrl.u32 %v8448_v29, 16  ;;  %3329 = vrot.lane.b32.xlu0 %v8463_v4, %s9479_s18  ;;  %v2650_v9 = vsel %vm9822_vm5, %v8384_v34, %v2649_v37  ;;  %v2651_v49 = vrot.slane %v2649_v37, 4  ;;  %v3183_v16 = vshll.u32 %v8448_v29, 16  ;;  %1036 = vst.msk [vmem:[#allocation2 + $0x38] sm:$0xff] %vm1028_vm8, %v995_v47  ;;  %v2561_v4 = vld [vmem:[%s9520_s16 + $0xa4] sm:$0x1] }
  0xe0   : > { %3665 = vrot.lane.b32.xlu1 %v8551_v27, %s9480_s19  ;;  %v3189_v45 = vshll.u32 %v8449_v35, 16  ;;  %v2709_v20 = vsel %vm9822_vm5, %v2707_v44, %v2708_v33  ;;  %v3193_v6 = vshrl.u32 %v8449_v35, 16  ;;  %v3199_v52 = vshll.u32 %v8450_v39, 16  ;;  %v2560_v35 = vld [vmem:[%s9520_s16 + $0xa0] sm:$0xf] }
  0xe1   : > { %v3182_v51 = vrot.slane %v3180_v48, 4  ;;  %v8408_v53 = vcombine.low %v2706_v43, %v2709_v20  ;;  %v2653_v55 = vsel %vm9822_vm5, %v2651_v49, %v2652_v38  ;;  %v3185_v56 = vrot.slane %v3183_v16, 5  ;;  %v993_v62 = vpop.permute.xlu0 %992  ;;  %v2535_v54 = vld [vmem:[%s9520_s16 + $0x3c] sm:$0xe]  ;;  %v2537_v47 = vld [vmem:[%s9520_s16 + $0x44] sm:$0x1] }
  0xe2   : > { %v3191_v57 = vrot.slane %v3189_v45, 5  ;;  %v8400_v63 = vcombine.low %v2650_v9, %v2653_v55  ;;  %v3195_v59 = vrot.slane %v3193_v6, 4  ;;  %v3201_v0 = vrot.slane %v3199_v52, 5  ;;  %1035 = vst.msk [vmem:[#allocation2 + $0x30] sm:$0xff] %vm1028_vm8, %v993_v62  ;;  %v999_v3 = vpop.permute.xlu1 %998  ;;  %v8451_v9 = vld [vmem:[%s9520_s16 + $0xa8] sm:$0xf] }
  0xe3   : > { %v2988_v1 = vshrl.u32 %v8424_v40, 16  ;;  %3649 = vrot.lane.b32.xlu0 %v8543_v42, %s9480_s19  ;;  %v3186_v5 = vor.u32 %v3185_v56, %v3182_v51  ;;  %v2991_v7 = vshll.u32 %v8424_v40, 16  ;;  %v2997_v8 = vshll.u32 %v8425_v50, 16  ;;  %1038 = vst.msk [vmem:[#allocation2 + $0x48] sm:$0xff] %vm1028_vm8, %v999_v3  ;;  %v2536_v42 = vld [vmem:[%s9520_s16 + $0x40] sm:$0xf] }
  0xe4   : > { %2803 = vrot.lane.b32.xlu1 %v8408_v53, %s9478_s17  ;;  %v3001_v10 = vshrl.u32 %v8425_v50, 16  ;;  %v3196_v60 = vor.u32 %v3195_v59, %v3191_v57  ;;  %v3007_v14 = vshll.u32 %v8426_v46, 16  ;;  %v8536_v15 = vrot.slane %v8512_v32, 9  ;;  %v8452_v51 = vld [vmem:[%s9520_s16 + $0xac] sm:$0xf] }
  0xe5   : > { %v2990_v13 = vrot.slane %v2988_v1, 4  ;;  %v3187_v17 = vrot.slane %v3186_v5, 4  ;;  %v2993_v18 = vrot.slane %v2991_v7, 5  ;;  %v2999_v19 = vrot.slane %v2997_v8, 5  ;;  %v997_v23 = vpop.permute.xlu0 %996  ;;  %v8453_v1 = vld [vmem:[%s9520_s16 + $0xb0] sm:$0x1] }
  0xe6   : > { %v3003_v21 = vrot.slane %v3001_v10, 4  ;;  %v3197_v24 = vrot.slane %v3196_v60, 4  ;;  %v3009_v25 = vrot.slane %v3007_v14, 5  ;;  %v3569_v27 = vrot.slane %v8513_v58, 5  ;;  %1037 = vst.msk [vmem:[#allocation2 + $0x40] sm:$0xff] %vm1028_vm8, %v997_v23  ;;  %v1003_v29 = vpop.permute.xlu1 %1002 }
  0xe7   : > { %v3572_v28 = vrot.slane %v8514_v2, 5  ;;  %2787 = vrot.lane.b32.xlu0 %v8400_v63, %s9478_s17  ;;  %v3192_v30 = vsel %vm9532_vm2, %v3187_v17, %v3191_v57  ;;  %v2994_v31 = vor.u32 %v2993_v18, %v2990_v13  ;;  %v8528_v34 = vrot.slane %v8488_v11, 9  ;;  %1040 = vst.msk [vmem:[#allocation2 + $0x58] sm:$0xff] %vm1028_vm8, %v1003_v29  ;;  %v8427_v10 = vld [vmem:[%s9520_s16 + $0x48] sm:$0xf] }
  0xe8   : > { %v3004_v33 = vor.u32 %v3003_v21, %v2999_v19  ;;  %v3202_v36 = vsel %vm9532_vm2, %v3197_v24, %v3201_v0  ;;  %v3570_v37 = vsel %vm9822_vm5, %v8536_v15, %v3569_v27  ;;  %v3571_v38 = vrot.slane %v3569_v27, 4 }
  0xe9   : > { %v3513_v39 = vrot.slane %v8489_v12, 5  ;;  %v8472_v43 = vcombine.low %v3192_v30, %v3202_v36  ;;  %v2995_v44 = vrot.slane %v2994_v31, 4  ;;  %v3516_v40 = vrot.slane %v8490_v22, 5  ;;  %v1001_v49 = vpop.permute.xlu0 %1000  ;;  %v8428_v12 = vld [vmem:[%s9520_s16 + $0x4c] sm:$0xf] }
  0xea   : > { %v3005_v48 = vrot.slane %v3004_v33, 4  ;;  %v3573_v16 = vsel %vm9822_vm5, %v3571_v38, %v3572_v28  ;;  %v8393_v20 = vrot.slane %v2559_v41, 9  ;;  %1039 = vst.msk [vmem:[#allocation2 + $0x50] sm:$0xff] %vm1028_vm8, %v1001_v49  ;;  %v1007_v6 = vpop.permute.xlu1 %1006  ;;  %v2712_v55 = vrot.slane %v2560_v35, 5  ;;  %v8429_v22 = vld [vmem:[%s9520_s16 + $0x50] sm:$0x1] }
  0xeb   : > { %v3514_v45 = vsel %vm9822_vm5, %v8528_v34, %v3513_v39  ;;  %v3515_v50 = vrot.slane %v3513_v39, 4  ;;  %3347 = vrot.lane.b32.xlu1 %v8472_v43, %s9479_s18  ;;  %v3000_v52 = vsel %vm9532_vm2, %v2995_v44, %v2999_v19  ;;  %v8552_v53 = vcombine.low %v3570_v37, %v3573_v16  ;;  %1042 = vst.msk [vmem:[#allocation2 + $0x68] sm:$0xff] %vm1028_vm8, %v1007_v6  ;;  %v8515_v28 = vld [vmem:[%s9520_s16 + $0xa8] sm:$0xe]  ;;  %v8516_v34 = vld [vmem:[%s9520_s16 + $0xac] sm:$0xf] }
  0xec   : > { %v3010_v46 = vsel %vm9532_vm2, %v3005_v48, %v3009_v25  ;;  %v2715_v32 = vrot.slane %v2561_v4, 5  ;;  %v8385_v58 = vrot.slane %v2535_v54, 9  ;;  %v2713_v63 = vsel %vm9822_vm5, %v8393_v20, %v2712_v55  ;;  %v8517_v35 = vld [vmem:[%s9520_s16 + $0xb0] sm:$0x1]  ;;  %v8491_v54 = vld [vmem:[%s9520_s16 + $0x48] sm:$0xe] }
  0xed   : > { %v8464_v56 = vcombine.low %v3000_v52, %v3010_v46  ;;  %v3517_v57 = vsel %vm9822_vm5, %v3515_v50, %v3516_v40  ;;  %v2714_v59 = vrot.slane %v2712_v55, 4  ;;  %v2656_v0 = vrot.slane %v2536_v42, 5  ;;  %v1005_v2 = vpop.permute.xlu0 %1004  ;;  %v8492_v40 = vld [vmem:[%s9520_s16 + $0x4c] sm:$0xf]  ;;  %v2562_v46 = vld [vmem:[%s9520_s16 + $0xa8] sm:$0xe] }
  0xee   : > { %v8544_v62 = vcombine.low %v3514_v45, %v3517_v57  ;;  %v2659_v3 = vrot.slane %v2537_v47, 5  ;;  %v3204_v5 = vshrl.u32 %v8451_v9, 16  ;;  %v3207_v7 = vshll.u32 %v8451_v9, 16  ;;  %1041 = vst.msk [vmem:[#allocation2 + $0x60] sm:$0xff] %vm1028_vm8, %v1005_v2  ;;  %v1011_v11 = vpop.permute.xlu1 %1010  ;;  %v8493_v45 = vld [vmem:[%s9520_s16 + $0x50] sm:$0x1] }
  0xef   : > { %3331 = vrot.lane.b32.xlu0 %v8464_v56, %s9479_s18  ;;  %v3213_v8 = vshll.u32 %v8452_v51, 16  ;;  %3667 = vrot.lane.b32.xlu1 %v8552_v53, %s9480_s19  ;;  %v2716_v60 = vsel %vm9822_vm5, %v2714_v59, %v2715_v32  ;;  %v2657_v13 = vsel %vm9822_vm5, %v8385_v58, %v2656_v0  ;;  %v2658_v14 = vrot.slane %v2656_v0, 4  ;;  %1044 = vst.msk [vmem:[#allocation2 + $0x78] sm:$0xff] %vm1028_vm8, %v1011_v11  ;;  %v2563_v53 = vld [vmem:[%s9520_s16 + $0xac] sm:$0xf] }
  0xf0   : > { %v3217_v15 = vshrl.u32 %v8452_v51, 16  ;;  %v8409_v17 = vcombine.low %v2713_v63, %v2716_v60  ;;  %v3206_v18 = vrot.slane %v3204_v5, 4  ;;  %v3209_v19 = vrot.slane %v3207_v7, 5  ;;  %v2538_v63 = vld [vmem:[%s9520_s16 + $0x48] sm:$0xe] }
  0xf1   : > { %v3215_v21 = vrot.slane %v3213_v8, 5  ;;  %v2660_v23 = vsel %vm9822_vm5, %v2658_v14, %v2659_v3  ;;  %v3223_v25 = vshll.u32 %v8453_v1, 16  ;;  %v3012_v27 = vshrl.u32 %v8427_v10, 16  ;;  %v1009_v41 = vpop.permute.xlu0 %1008  ;;  %v2539_v3 = vld [vmem:[%s9520_s16 + $0x4c] sm:$0xf] }
  0xf2   : > { %v3219_v24 = vrot.slane %v3217_v15, 4  ;;  %v8401_v29 = vcombine.low %v2657_v13, %v2660_v23  ;;  %v3210_v30 = vor.u32 %v3209_v19, %v3206_v18  ;;  %v3015_v31 = vshll.u32 %v8427_v10, 16  ;;  %1043 = vst.msk [vmem:[#allocation2 + $0x70] sm:$0xff] %vm1028_vm8, %v1009_v41  ;;  %v10219_v4 = vpop.permute.xlu1 %1527  ;;  %v2540_v11 = vld [vmem:[%s9520_s16 + $0x50] sm:$0x1] }
  0xf3   : > { %3651 = vrot.lane.b32.xlu0 %v8544_v62, %s9480_s19  ;;  %v3021_v33 = vshll.u32 %v8428_v12, 16  ;;  %2805 = vrot.lane.b32.xlu1 %v8409_v17, %s9478_s17  ;;  %v3225_v37 = vrot.slane %v3223_v25, 5  ;;  %v3014_v38 = vrot.slane %v3012_v27, 4  ;;  %v3025_v39 = vshrl.u32 %v8428_v12, 16  ;;  %v2564_v62 = vld [vmem:[%s9520_s16 + $0xb0] sm:$0x1] }
  0xf4   : > { %v3220_v36 = vor.u32 %v3219_v24, %v3215_v21  ;;  %v3211_v42 = vrot.slane %v3210_v30, 4  ;;  %v3017_v43 = vrot.slane %v3015_v31, 5  ;;  %v3031_v48 = vshll.u32 %v8429_v22, 16  ;;  %v8454_v17 = vld [vmem:[%s9520_s16 + $0xb4] sm:$0xf]  ;;  %1575 = vst.msk [vmem:[#allocation2 + $0x8] sm:$0xff] %vm1573_vm9, %v10219_v4 }
  0xf5   : > { %v3023_v44 = vrot.slane %v3021_v33, 5  ;;  %v3027_v9 = vrot.slane %v3025_v39, 4  ;;  %v8537_v49 = vrot.slane %v8515_v28, 9  ;;  %v3576_v16 = vrot.slane %v8516_v34, 5  ;;  %v10225_v50 = vpop.permute.xlu0 %1525  ;;  %v8455_v24 = vld [vmem:[%s9520_s16 + $0xb8] sm:$0xf] }
  0xf6   : > { %v3221_v47 = vrot.slane %v3220_v36, 4  ;;  %v3216_v20 = vsel %vm9532_vm2, %v3211_v42, %v3215_v21  ;;  %v3018_v51 = vor.u32 %v3017_v43, %v3014_v38  ;;  %v3033_v6 = vrot.slane %v3031_v48, 5  ;;  %v10232_v55 = vpop.permute.xlu1 %1531  ;;  %v8431_v42 = vld [vmem:[%s9520_s16 + $0x58] sm:$0xf]  ;;  %1574 = vst.msk [vmem:[#allocation2] sm:$0xff] %vm1573_vm9, %v10225_v50 }
  0xf7   : > { %2789 = vrot.lane.b32.xlu0 %v8401_v29, %s9478_s17  ;;  %v3579_v52 = vrot.slane %v8517_v35, 5  ;;  %v3028_v57 = vor.u32 %v3027_v9, %v3023_v44  ;;  %v3577_v32 = vsel %vm9822_vm5, %v8537_v49, %v3576_v16  ;;  %v3578_v58 = vrot.slane %v3576_v16, 4  ;;  %v8456_v29 = vld [vmem:[%s9520_s16 + $0xbc] sm:$0x1]  ;;  %v8430_v35 = vld [vmem:[%s9520_s16 + $0x54] sm:$0xf] }
  0xf8   : > { %v3226_v56 = vsel %vm9532_vm2, %v3221_v47, %v3225_v37  ;;  %v3019_v0 = vrot.slane %v3018_v51, 4  ;;  %v8529_v1 = vrot.slane %v8491_v54, 9  ;;  %v3520_v2 = vrot.slane %v8492_v40, 5  ;;  %v8432_v9 = vld [vmem:[%s9520_s16 + $0x5c] sm:$0x1]  ;;  %1577 = vst.msk [vmem:[#allocation2 + $0x18] sm:$0xff] %vm1573_vm9, %v10232_v55 }
  0xf9   : > { %v8473_v59 = vcombine.low %v3216_v20, %v3226_v56  ;;  %v3029_v5 = vrot.slane %v3028_v57, 4  ;;  %v3580_v7 = vsel %vm9822_vm5, %v3578_v58, %v3579_v52  ;;  %v3523_v8 = vrot.slane %v8493_v45, 5  ;;  %v10244_v60 = vpop.permute.xlu0 %1529  ;;  %v8518_v51 = vld [vmem:[%s9520_s16 + $0xb4] sm:$0xe]  ;;  %v8520_v57 = vld [vmem:[%s9520_s16 + $0xbc] sm:$0x1] }
  0xfa   : > { %v8394_v10 = vrot.slane %v2562_v46, 9  ;;  %v3024_v13 = vsel %vm9532_vm2, %v3019_v0, %v3023_v44  ;;  %v8553_v14 = vcombine.low %v3577_v32, %v3580_v7  ;;  %v3521_v15 = vsel %vm9822_vm5, %v8529_v1, %v3520_v2  ;;  %v10252_v18 = vpop.permute.xlu1 %1535  ;;  %v8494_v0 = vld [vmem:[%s9520_s16 + $0x54] sm:$0xe]  ;;  %v8495_v7 = vld [vmem:[%s9520_s16 + $0x58] sm:$0xf]  ;;  %1576 = vst.msk [vmem:[#allocation2 + $0x10] sm:$0xff] %vm1573_vm9, %v10244_v60 }
  0xfb   : > { %3349 = vrot.lane.b32.xlu1 %v8473_v59, %s9479_s18  ;;  %v3522_v12 = vrot.slane %v3520_v2, 4  ;;  %v3034_v19 = vsel %vm9532_vm2, %v3029_v5, %v3033_v6  ;;  %v2719_v21 = vrot.slane %v2563_v53, 5  ;;  %v2722_v22 = vrot.slane %v2564_v62, 5  ;;  %v8519_v6 = vld [vmem:[%s9520_s16 + $0xb8] sm:$0xf]  ;;  %1579 = vst.msk [vmem:[#allocation2 + $0x28] sm:$0xff] %vm1573_vm9, %v10252_v18 }
  0xfc   : > { %v8386_v23 = vrot.slane %v2538_v63, 9  ;;  %v8465_v25 = vcombine.low %v3024_v13, %v3034_v19  ;;  %v2663_v28 = vrot.slane %v2539_v3, 5  ;;  %v2666_v41 = vrot.slane %v2540_v11, 5 }
  0xfd   : > { %v3524_v27 = vsel %vm9822_vm5, %v3522_v12, %v3523_v8  ;;  %v2720_v31 = vsel %vm9822_vm5, %v8394_v10, %v2719_v21  ;;  %v2721_v33 = vrot.slane %v2719_v21, 4  ;;  %v3228_v34 = vshrl.u32 %v8454_v17, 16  ;;  %v1534_v36 = vpop.permute.xlu0 %1533 }
  0xfe   : > { %v8545_v30 = vcombine.low %v3521_v15, %v3524_v27  ;;  %3333 = vrot.lane.b32.xlu0 %v8465_v25, %s9479_s18  ;;  %v2664_v37 = vsel %vm9822_vm5, %v8386_v23, %v2663_v28  ;;  %v2665_v38 = vrot.slane %v2663_v28, 4  ;;  %v3231_v39 = vshll.u32 %v8454_v17, 16  ;;  %v1540_v43 = vpop.permute.xlu1 %1539  ;;  %v8660_v15 = vld [vmem:[%s9520_s16 + $0x6c] sm:$0xf]  ;;  %1578 = vst.msk [vmem:[#allocation2 + $0x20] sm:$0xff] %vm1573_vm9, %v1534_v36 }
  0xff   : > { %3669 = vrot.lane.b32.xlu1 %v8553_v14, %s9480_s19  ;;  %v3237_v54 = vshll.u32 %v8455_v24, 16  ;;  %v2723_v44 = vsel %vm9822_vm5, %v2721_v33, %v2722_v22  ;;  %v3230_v48 = vrot.slane %v3228_v34, 4  ;;  %v3241_v40 = vshrl.u32 %v8455_v24, 16  ;;  %v8496_v14 = vld [vmem:[%s9520_s16 + $0x5c] sm:$0x1]  ;;  %1581 = vst.msk [vmem:[#allocation2 + $0x38] sm:$0xff] %vm1573_vm9, %v1540_v43 }
 0x100   : > { %v3247_v47 = vshll.u32 %v8456_v29, 16  ;;  %v8410_v49 = vcombine.low %v2720_v31, %v2723_v44  ;;  %v2667_v16 = vsel %vm9822_vm5, %v2665_v38, %v2666_v41  ;;  %v3233_v45 = vrot.slane %v3231_v39, 5  ;;  %v8661_v28 = vld [vmem:[%s9520_s16 + $0x70] sm:$0xf]  ;;  %v8662_v33 = vld [vmem:[%s9520_s16 + $0x74] sm:$0x1] }
 0x101   : > { %v3239_v20 = vrot.slane %v3237_v54, 5  ;;  %v8402_v52 = vcombine.low %v2664_v37, %v2667_v16  ;;  %v3243_v46 = vrot.slane %v3241_v40, 4  ;;  %v3036_v56 = vshrl.u32 %v8430_v35, 16  ;;  %v1538_v32 = vpop.permute.xlu0 %1537  ;;  %v8636_v38 = vld [vmem:[%s9520_s16 + $0xc] sm:$0xf] }
 0x102   : > { %v3249_v53 = vrot.slane %v3247_v47, 5  ;;  %3653 = vrot.lane.b32.xlu0 %v8545_v30, %s9480_s19  ;;  %v3234_v58 = vor.u32 %v3233_v45, %v3230_v48  ;;  %v3039_v62 = vshll.u32 %v8430_v35, 16  ;;  %v3045_v63 = vshll.u32 %v8431_v42, 16  ;;  %v1544_v1 = vpop.permute.xlu1 %1543  ;;  %1580 = vst.msk [vmem:[#allocation2 + $0x30] sm:$0xff] %vm1573_vm9, %v1538_v32  ;;  %v8637_v44 = vld [vmem:[%s9520_s16 + $0x10] sm:$0xf] }
 0x103   : > { %2807 = vrot.lane.b32.xlu1 %v8410_v49, %s9478_s17  ;;  %v3049_v59 = vshrl.u32 %v8431_v42, 16  ;;  %v3244_v2 = vor.u32 %v3243_v46, %v3239_v20  ;;  %v3038_v3 = vrot.slane %v3036_v56, 4  ;;  %v3055_v5 = vshll.u32 %v8432_v9, 16  ;;  %1583 = vst.msk [vmem:[#allocation2 + $0x48] sm:$0xff] %vm1573_vm9, %v1544_v1  ;;  %v8638_v46 = vld [vmem:[%s9520_s16 + $0x14] sm:$0x1] }
 0x104   : > { %v3235_v8 = vrot.slane %v3234_v58, 4  ;;  %v3041_v10 = vrot.slane %v3039_v62, 5  ;;  %v3047_v11 = vrot.slane %v3045_v63, 5  ;;  %v8538_v12 = vrot.slane %v8518_v51, 9 }
 0x105   : > { %v3051_v13 = vrot.slane %v3049_v59, 4  ;;  %v3245_v4 = vrot.slane %v3244_v2, 4  ;;  %v3057_v50 = vrot.slane %v3055_v5, 5  ;;  %v3583_v55 = vrot.slane %v8519_v6, 5  ;;  %v1542_v17 = vpop.permute.xlu0 %1541 }
 0x106   : > { %2791 = vrot.lane.b32.xlu0 %v8402_v52, %s9478_s17  ;;  %v3240_v60 = vsel %vm9532_vm2, %v3235_v8, %v3239_v20  ;;  %v3042_v18 = vor.u32 %v3041_v10, %v3038_v3  ;;  %v3586_v21 = vrot.slane %v8520_v57, 5  ;;  %1582 = vst.msk [vmem:[#allocation2 + $0x40] sm:$0xff] %vm1573_vm9, %v1542_v17  ;;  %v1548_v22 = vpop.permute.xlu1 %1547  ;;  %v8530_v27 = vrot.slane %v8494_v0, 9  ;;  %v8772_v57 = vld [vmem:[%s9520_s16 + $0x78] sm:$0xf] }
 0x107   : > { %v3052_v19 = vor.u32 %v3051_v13, %v3047_v11  ;;  %v3250_v23 = vsel %vm9532_vm2, %v3245_v4, %v3249_v53  ;;  %v3584_v24 = vsel %vm9822_vm5, %v8538_v12, %v3583_v55  ;;  %v3585_v25 = vrot.slane %v3583_v55, 4  ;;  %1585 = vst.msk [vmem:[#allocation2 + $0x58] sm:$0xff] %vm1573_vm9, %v1548_v22  ;;  %v8773_v0 = vld [vmem:[%s9520_s16 + $0x7c] sm:$0xf]  ;;  %v8774_v4 = vld [vmem:[%s9520_s16 + $0x80] sm:$0x1] }
 0x108   : > { %v8474_v41 = vcombine.low %v3240_v60, %v3250_v23  ;;  %v3043_v29 = vrot.slane %v3042_v18, 4  ;;  %v3527_v31 = vrot.slane %v8495_v7, 5  ;;  %v3530_v35 = vrot.slane %v8496_v14, 5  ;;  %v8748_v55 = vld [vmem:[%s9520_s16 + $0x18] sm:$0xf] }
 0x109   : > { %v3053_v30 = vrot.slane %v3052_v19, 4  ;;  %v3587_v34 = vsel %vm9822_vm5, %v3585_v25, %v3586_v21  ;;  %v4510_v36 = vshrl.u32 %v8660_v15, 16  ;;  %v4513_v37 = vshll.u32 %v8660_v15, 16 }
 0x10a   : > { %3351 = vrot.lane.b32.xlu1 %v8474_v41, %s9479_s18  ;;  %v3048_v39 = vsel %vm9532_vm2, %v3043_v29, %v3047_v11  ;;  %v8554_v42 = vcombine.low %v3584_v24, %v3587_v34  ;;  %v3528_v43 = vsel %vm9822_vm5, %v8530_v27, %v3527_v31  ;;  %v1552_v48 = vpop.permute.xlu1 %1551  ;;  %v3529_v47 = vrot.slane %v3527_v31, 4  ;;  %v8749_v41 = vld [vmem:[%s9520_s16 + $0x1c] sm:$0xf]  ;;  %v8750_v29 = vld [vmem:[%s9520_s16 + $0x20] sm:$0x1] }
 0x10b   : > { %v3058_v54 = vsel %vm9532_vm2, %v3053_v30, %v3057_v50  ;;  %v4512_v9 = vrot.slane %v4510_v36, 4  ;;  %v4515_v49 = vrot.slane %v4513_v37, 5  ;;  %1587 = vst.msk [vmem:[#allocation2 + $0x68] sm:$0xff] %vm1573_vm9, %v1552_v48  ;;  %v4519_v16 = vshll.u32 %v8661_v28, 16  ;;  %v2567_v48 = vld [vmem:[%s9520_s16 + $0xbc] sm:$0x1] }
 0x10c   : > { %v8466_v40 = vcombine.low %v3048_v39, %v3058_v54  ;;  %v4523_v45 = vshrl.u32 %v8661_v28, 16  ;;  %v4529_v20 = vshll.u32 %v8662_v33, 16  ;;  %v4318_v51 = vshrl.u32 %v8636_v38, 16  ;;  %v2566_v39 = vld [vmem:[%s9520_s16 + $0xb8] sm:$0xf] }
 0x10d   : > { %v3531_v6 = vsel %vm9822_vm5, %v3529_v47, %v3530_v35  ;;  %v4516_v52 = vor.u32 %v4515_v49, %v4512_v9  ;;  %v4321_v53 = vshll.u32 %v8636_v38, 16  ;;  %v4327_v56 = vshll.u32 %v8637_v44, 16  ;;  %v1546_v32 = vpop.permute.xlu0 %1545  ;;  %v2565_v38 = vld [vmem:[%s9520_s16 + $0xb4] sm:$0xe] }
 0x10e   : > { %3335 = vrot.lane.b32.xlu0 %v8466_v40, %s9479_s18  ;;  %3671 = vrot.lane.b32.xlu1 %v8554_v42, %s9480_s19  ;;  %v8546_v58 = vcombine.low %v3528_v43, %v3531_v6  ;;  %v4521_v62 = vrot.slane %v4519_v16, 5  ;;  %v4525_v63 = vrot.slane %v4523_v45, 4  ;;  %v4531_v59 = vrot.slane %v4529_v20, 5  ;;  %v1556_v1 = vpop.permute.xlu1 %1555  ;;  %1584 = vst.msk [vmem:[#allocation2 + $0x50] sm:$0xff] %vm1573_vm9, %v1546_v32  ;;  %v9387_v40 = vld [vmem:[%s9520_s16 + $0x78] sm:$0xff]  }
 0x10f   : > { %v4517_v2 = vrot.slane %v4516_v52, 4  ;;  %v4320_v3 = vrot.slane %v4318_v51, 4  ;;  %v4323_v5 = vrot.slane %v4321_v53, 5  ;;  %v4329_v7 = vrot.slane %v4327_v56, 5  ;;  %1589 = vst.msk [vmem:[#allocation2 + $0x78] sm:$0xff] %vm1573_vm9, %v1556_v1 }
 0x110   : > { %v4526_v8 = vor.u32 %v4525_v63, %v4521_v62  ;;  %v4331_v10 = vshrl.u32 %v8637_v44, 16  ;;  %v4337_v11 = vshll.u32 %v8638_v46, 16  ;;  %v5234_v13 = vshrl.u32 %v8772_v57, 16  ;;  %v2541_v45 = vld [vmem:[%s9520_s16 + $0x54] sm:$0xe] }
 0x111   : > { %v4522_v14 = vsel %vm9532_vm2, %v4517_v2, %v4521_v62  ;;  %v4324_v15 = vor.u32 %v4323_v5, %v4320_v3  ;;  %v5237_v50 = vshll.u32 %v8772_v57, 16  ;;  %v5243_v12 = vshll.u32 %v8773_v0, 16  ;;  %v2542_v46 = vld [vmem:[%s9520_s16 + $0x58] sm:$0xf] }
 0x112   : > { %3655 = vrot.lane.b32.xlu0 %v8546_v58, %s9480_s19  ;;  %v4527_v17 = vrot.slane %v4526_v8, 4  ;;  %v4333_v60 = vrot.slane %v4331_v10, 4  ;;  %v4339_v18 = vrot.slane %v4337_v11, 5  ;;  %v5236_v19 = vrot.slane %v5234_v13, 4  ;;  %v10337_v31 = vpop.permute.xlu1 %2779  ;;  %v9388_v2 = vld [vmem:[%s9520_s16 + $0x18] sm:$0xff]  }
 0x113   : > { %v4325_v21 = vrot.slane %v4324_v15, 4  ;;  %v5239_v22 = vrot.slane %v5237_v50, 5  ;;  %v5245_v23 = vrot.slane %v5243_v12, 5  ;;  %v5247_v24 = vshrl.u32 %v8773_v0, 16  ;;  %v1550_v33 = vpop.permute.xlu0 %1549  ;;  %v2543_v0 = vld [vmem:[%s9520_s16 + $0x5c] sm:$0x1] }
 0x114   : > { %v4532_v25 = vsel %vm9532_vm2, %v4527_v17, %v4531_v59  ;;  %v4334_v27 = vor.u32 %v4333_v60, %v4329_v7  ;;  %v5253_v28 = vshll.u32 %v8774_v4, 16  ;;  %v5042_v30 = vshrl.u32 %v8748_v55, 16  ;;  %1586 = vst.msk [vmem:[#allocation2 + $0x60] sm:$0xff] %vm1573_vm9, %v1550_v33  ;;  %v8457_v10 = vld [vmem:[%s9520_s16 + $0xc0] sm:$0xf] }
 0x115   : > { %v8692_v34 = vcombine.low %v4522_v14, %v4532_v25  ;;  %v4330_v35 = vsel %vm9532_vm2, %v4325_v21, %v4329_v7  ;;  %v5240_v36 = vor.u32 %v5239_v22, %v5236_v19  ;;  %v5249_v37 = vrot.slane %v5247_v24, 4  ;;  %v8458_v4 = vld [vmem:[%s9520_s16 + $0xc4] sm:$0xf]  ;;  %v8459_v21 = vld [vmem:[%s9520_s16 + $0xc8] sm:$0x1] }
 0x116   : > { %v4335_v54 = vrot.slane %v4334_v27, 4  ;;  %v5255_v42 = vrot.slane %v5253_v28, 5  ;;  %v5044_v43 = vrot.slane %v5042_v30, 4  ;;  %v5045_v44 = vshll.u32 %v8748_v55, 16 }
 0x117   : > { %4765 = vrot.lane.b32.xlu1 %v8692_v34, %s9478_s17  ;;  %v5241_v47 = vrot.slane %v5240_v36, 4  ;;  %v5250_v9 = vor.u32 %v5249_v37, %v5245_v23  ;;  %v5051_v49 = vshll.u32 %v8749_v41, 16  ;;  %v5055_v16 = vshrl.u32 %v8749_v41, 16  ;;  %v10354_v1 = vpop.permute.xlu1 %3323  ;;  %v8433_v41 = vld [vmem:[%s9520_s16 + $0x60] sm:$0xf] }
 0x118   : > { %v4340_v20 = vsel %vm9532_vm2, %v4335_v54, %v4339_v18  ;;  %v5047_v51 = vrot.slane %v5045_v44, 5  ;;  %v5061_v6 = vshll.u32 %v8750_v29, 16  ;;  %v8395_v52 = vrot.slane %v2565_v38, 9  ;;  %v8434_v29 = vld [vmem:[%s9520_s16 + $0x64] sm:$0xf] }
 0x119   : > { %v8684_v53 = vcombine.low %v4330_v35, %v4340_v20  ;;  %v5246_v56 = vsel %vm9532_vm2, %v5241_v47, %v5245_v23  ;;  %v5251_v57 = vrot.slane %v5250_v9, 4  ;;  %v5053_v32 = vrot.slane %v5051_v49, 5  ;;  %v8435_v36 = vld [vmem:[%s9520_s16 + $0x68] sm:$0x1]  ;;  %v8521_v44 = vld [vmem:[%s9520_s16 + $0xc0] sm:$0xe] }
 0x11a   : > { %v5048_v58 = vor.u32 %v5047_v51, %v5044_v43  ;;  %v5057_v62 = vrot.slane %v5055_v16, 4  ;;  %v5063_v63 = vrot.slane %v5061_v6, 5  ;;  %v2726_v59 = vrot.slane %v2566_v39, 5  ;;  %v8522_v49 = vld [vmem:[%s9520_s16 + $0xc4] sm:$0xf] }
 0x11b   : > { %4749 = vrot.lane.b32.xlu0 %v8684_v53, %s9478_s17  ;;  %4945 = vrot.lane.b32.xlu1 %v9387_v40, %s9479_s18  ;;  %v5256_v3 = vsel %vm9532_vm2, %v5251_v57, %v5255_v42  ;;  %v2729_v5 = vrot.slane %v2567_v48, 5  ;;  %v8387_v7 = vrot.slane %v2541_v45, 9  ;;  %v2670_v8 = vrot.slane %v2542_v46, 5  ;;  %v1614_v6 = vld [vmem:[#allocation2 + $0x40] sm:$0xff] }
 0x11c   : > { %v8804_v11 = vcombine.low %v5246_v56, %v5256_v3  ;;  %v5049_v13 = vrot.slane %v5048_v58, 4  ;;  %v5058_v14 = vor.u32 %v5057_v62, %v5053_v32  ;;  %v2727_v15 = vsel %vm9822_vm5, %v8395_v52, %v2726_v59  ;;  %v1554_v50 = vpop.permute.xlu0 %1553  ;;  %v8523_v52 = vld [vmem:[%s9520_s16 + $0xc8] sm:$0x1]  ;;  %v8498_v58 = vld [vmem:[%s9520_s16 + $0x64] sm:$0xf]  ;;  %9295 = vmatprep.subr.msk.bf16.mxu0 %vm1662_vm10, %v1614_v6 }
 0x11d   : > { %v2728_v12 = vrot.slane %v2726_v59, 4  ;;  %v2671_v55 = vsel %vm9822_vm5, %v8387_v7, %v2670_v8  ;;  %v2672_v17 = vrot.slane %v2670_v8, 4  ;;  %v2673_v60 = vrot.slane %v2543_v0, 5  ;;  %1588 = vst.msk [vmem:[#allocation2 + $0x70] sm:$0xff] %vm1573_vm9, %v1554_v50  ;;  %v8499_v62 = vld [vmem:[%s9520_s16 + $0x68] sm:$0x1] }
 0x11e   : > { %v5054_v18 = vsel %vm9532_vm2, %v5049_v13, %v5053_v32  ;;  %v5059_v19 = vrot.slane %v5058_v14, 4  ;;  %v3252_v22 = vshrl.u32 %v8457_v10, 16  ;;  %v3255_v23 = vshll.u32 %v8457_v10, 16  ;;  %v8497_v32 = vld [vmem:[%s9520_s16 + $0x60] sm:$0xe] }
 0x11f   : > { %4929 = vrot.lane.b32.xlu0 %v9388_v2, %s9479_s18  ;;  %5489 = vrot.lane.b32.xlu1 %v8804_v11, %s9480_s19  ;;  %v2730_v24 = vsel %vm9822_vm5, %v2728_v12, %v2729_v5  ;;  %v2674_v25 = vsel %vm9822_vm5, %v2672_v17, %v2673_v60  ;;  %v3261_v27 = vshll.u32 %v8458_v4, 16  ;;  %v3265_v28 = vshrl.u32 %v8458_v4, 16  ;;  %v1606_v4 = vld [vmem:[#allocation2] sm:$0xff]  ;;  %v8663_v50 = vld [vmem:[%s9520_s16 + $0x78] sm:$0xf] }
 0x120   : > { %v5064_v30 = vsel %vm9532_vm2, %v5059_v19, %v5063_v63  ;;  %v8411_v33 = vcombine.low %v2727_v15, %v2730_v24  ;;  %v8403_v34 = vcombine.low %v2671_v55, %v2674_v25  ;;  %v3254_v35 = vrot.slane %v3252_v22, 4  ;;  %v10382_v37 = vpop.permute.xlu1 %3339  ;;  %v10384_v38 = vpop.permute.xlu0 %2795  ;;  %v1615_v25 = vld [vmem:[#allocation2 + $0x48] sm:$0xff] }
 0x121   : > { %v8796_v39 = vcombine.low %v5054_v18, %v5064_v30  ;;  %v3257_v54 = vrot.slane %v3255_v23, 5  ;;  %v3263_v42 = vrot.slane %v3261_v27, 5  ;;  %v3267_v43 = vrot.slane %v3265_v28, 4  ;;  %v8664_v18 = vld [vmem:[%s9520_s16 + $0x7c] sm:$0xf] }
 0x122   : > { %v3271_v48 = vshll.u32 %v8459_v21, 16  ;;  %v3060_v40 = vshrl.u32 %v8433_v41, 16  ;;  %v3063_v47 = vshll.u32 %v8433_v41, 16  ;;  %v3069_v9 = vshll.u32 %v8434_v29, 16 }
 0x123   : > { %5473 = vrot.lane.b32.xlu0 %v8796_v39, %s9480_s19  ;;  %2809 = vrot.lane.b32.xlu1 %v8411_v33, %s9478_s17  ;;  %v3258_v16 = vor.u32 %v3257_v54, %v3254_v35  ;;  %v3268_v45 = vor.u32 %v3267_v43, %v3263_v42  ;;  %v3073_v20 = vshrl.u32 %v8434_v29, 16  ;;  %v3079_v51 = vshll.u32 %v8435_v36, 16  ;;  %v8665_v29 = vld [vmem:[%s9520_s16 + $0x80] sm:$0x1]  ;;  %v8639_v33 = vld [vmem:[%s9520_s16 + $0x18] sm:$0xf] }
 0x124   : > { %v3273_v46 = vrot.slane %v3271_v48, 5  ;;  %v3062_v53 = vrot.slane %v3060_v40, 4  ;;  %v3065_v56 = vrot.slane %v3063_v47, 5  ;;  %v3071_v57 = vrot.slane %v3069_v9, 5  ;;  %v10394_v63 = vpop.permute.xlu1 %3659  ;;  %v10396_v10 = vpop.permute.xlu0 %3643  ;;  %v8640_v48 = vld [vmem:[%s9520_s16 + $0x1c] sm:$0xf] }
 0x125   : > { %v3259_v59 = vrot.slane %v3258_v16, 4  ;;  %v3269_v0 = vrot.slane %v3268_v45, 4  ;;  %v3075_v2 = vrot.slane %v3073_v20, 4  ;;  %v3081_v3 = vrot.slane %v3079_v51, 5  ;;  %v8641_v16 = vld [vmem:[%s9520_s16 + $0x20] sm:$0x1] }
 0x126   : > { %v3066_v5 = vor.u32 %v3065_v56, %v3062_v53  ;;  %v8539_v7 = vrot.slane %v8521_v44, 9  ;;  %v3590_v8 = vrot.slane %v8522_v49, 5  ;;  %v3593_v15 = vrot.slane %v8523_v52, 5 }
 0x127   : > { %2793 = vrot.lane.b32.xlu0 %v8403_v34, %s9478_s17  ;;  %v3264_v11 = vsel %vm9532_vm2, %v3259_v59, %v3263_v42  ;;  %v3274_v13 = vsel %vm9532_vm2, %v3269_v0, %v3273_v46  ;;  %v3076_v14 = vor.u32 %v3075_v2, %v3071_v57  ;;  %v8531_v22 = vrot.slane %v8497_v32, 9  ;;  %v2008_v46 = vld [vmem:[%s9520_s16] sm:$0xf] }
 0x128   : > { %v8475_v12 = vcombine.low %v3264_v11, %v3274_v13  ;;  %v3067_v55 = vrot.slane %v3066_v5, 4  ;;  %v3591_v17 = vsel %vm9822_vm5, %v8539_v7, %v3590_v8  ;;  %v3592_v60 = vrot.slane %v3590_v8, 4  ;;  %v10424_v40 = vpop.permute.xlu0 %2781  ;;  %v9395_v13 = vld [vmem:[%s12639_s1] sm:$0xff]  }
 0x129   : > { %v10408_v19 = vpop.permute.xlu1 %2797  ;;  %v3077_v21 = vrot.slane %v3076_v14, 4  ;;  %v3534_v23 = vrot.slane %v8498_v58, 5  ;;  %v3537_v24 = vrot.slane %v8499_v62, 5  ;;  %v1688_v41 = vsel %vm1662_vm10, %v1606_v4, 0  ;;  %9183 = vmatprep.mubr.msk.bf16.mxu0 %vm1662_vm10, %v9395_v13 }
 0x12a   : > { %3353 = vrot.lane.b32.xlu1 %v8475_v12, %s9479_s18  ;;  %v3072_v27 = vsel %vm9532_vm2, %v3067_v55, %v3071_v57  ;;  %v3594_v28 = vsel %vm9822_vm5, %v3592_v60, %v3593_v15  ;;  %v4534_v30 = vshrl.u32 %v8663_v50, 16  ;;  %9168 = vmatpush3.bf16.xpose.msra.mxu0 %v1688_v41  ;;  %v4537_v43 = vshll.u32 %v8663_v50, 16  ;;  %v2010_v12 = vld [vmem:[%s9520_s16 + $0x8] sm:$0x1]  ;;  %v8775_v41 = vld [vmem:[%s9520_s16 + $0x84] sm:$0xf] }
 0x12b   : > { %v3082_v34 = vsel %vm9532_vm2, %v3077_v21, %v3081_v3  ;;  %v8555_v35 = vcombine.low %v3591_v17, %v3594_v28  ;;  %v3535_v36 = vsel %vm9822_vm5, %v8531_v22, %v3534_v23  ;;  %v3536_v39 = vrot.slane %v3534_v23, 4  ;;  %9296 = vmatprep.subr.msk.bf16.mxu0 %vm1662_vm10, %v1615_v25  ;;  %v2009_v3 = vld [vmem:[%s9520_s16 + $0x4] sm:$0xf]  ;;  %v1607_v28 = vld [vmem:[#allocation2 + $0x8] sm:$0xff] }
 0x12c   : > { %v8467_v54 = vcombine.low %v3072_v27, %v3082_v34  ;;  %v4536_v42 = vrot.slane %v4534_v30, 4  ;;  %v4543_v44 = vshll.u32 %v8664_v18, 16  ;;  %v4547_v9 = vshrl.u32 %v8664_v18, 16 }
 0x12d   : > { %v3538_v47 = vsel %vm9822_vm5, %v3536_v39, %v3537_v24  ;;  %v4553_v49 = vshll.u32 %v8665_v29, 16  ;;  %v4342_v45 = vshrl.u32 %v8639_v33, 16  ;;  %v4539_v51 = vrot.slane %v4537_v43, 5  ;;  %v9389_v43 = vld [vmem:[%s9520_s16 + $0x84] sm:$0xff]  }
 0x12e   : > { %3337 = vrot.lane.b32.xlu0 %v8467_v54, %s9479_s18  ;;  %3673 = vrot.lane.b32.xlu1 %v8555_v35, %s9480_s19  ;;  %v8547_v20 = vcombine.low %v3535_v36, %v3538_v47  ;;  %v4545_v6 = vrot.slane %v4543_v44, 5  ;;  %v4345_v52 = vshll.u32 %v8639_v33, 16  ;;  %v4549_v56 = vrot.slane %v4547_v9, 4  ;;  %v8776_v35 = vld [vmem:[%s9520_s16 + $0x88] sm:$0xf]  ;;  %v1616_v44 = vld [vmem:[#allocation2 + $0x50] sm:$0xff] }
 0x12f   : > { %v4555_v57 = vrot.slane %v4553_v49, 5  ;;  %v4344_v32 = vrot.slane %v4342_v45, 4  ;;  %v4351_v58 = vshll.u32 %v8640_v48, 16  ;;  %v4540_v62 = vor.u32 %v4539_v51, %v4536_v42 }
 0x130   : > { %v4347_v59 = vrot.slane %v4345_v52, 5  ;;  %v4355_v0 = vshrl.u32 %v8640_v48, 16  ;;  %v4361_v2 = vshll.u32 %v8641_v16, 16  ;;  %v4550_v5 = vor.u32 %v4549_v56, %v4545_v6  ;;  %v8777_v16 = vld [vmem:[%s9520_s16 + $0x8c] sm:$0x1] }
 0x131   : > { %v10432_v53 = vpop.permute.xlu1 %3341  ;;  %v4353_v7 = vrot.slane %v4351_v58, 5  ;;  %v2057_v8 = vshrl.u32 %v2008_v46, 16  ;;  %v2060_v11 = vshll.u32 %v2008_v46, 16  ;;  %v4541_v14 = vrot.slane %v4540_v62, 4  ;;  %v8751_v46 = vld [vmem:[%s9520_s16 + $0x24] sm:$0xf] }
 0x132   : > { %3657 = vrot.lane.b32.xlu0 %v8547_v20, %s9480_s19  ;;  %v4348_v15 = vor.u32 %v4347_v59, %v4344_v32  ;;  %v4357_v4 = vrot.slane %v4355_v0, 4  ;;  %v4363_v50 = vrot.slane %v4361_v2, 5  ;;  %v10440_v55 = vpop.permute.xlu0 %3325  ;;  %v4551_v60 = vrot.slane %v4550_v5, 4  ;;  %v8752_v56 = vld [vmem:[%s9520_s16 + $0x28] sm:$0xf] }
 0x133   : > { %v2059_v18 = vrot.slane %v2057_v8, 4  ;;  %v2062_v21 = vrot.slane %v2060_v11, 5  ;;  %v2066_v22 = vshll.u32 %v2009_v3, 16  ;;  %v4546_v23 = vsel %vm9532_vm2, %v4541_v14, %v4545_v6  ;;  %v9390_v2 = vld [vmem:[%s9520_s16 + $0x24] sm:$0xff]   ;;  %v8753_v11 = vld [vmem:[%s9520_s16 + $0x2c] sm:$0x1] }
 0x134   : > { %v4349_v24 = vrot.slane %v4348_v15, 4  ;;  %v4358_v25 = vor.u32 %v4357_v4, %v4353_v7  ;;  %v2070_v27 = vshrl.u32 %v2009_v3, 16  ;;  %v4556_v29 = vsel %vm9532_vm2, %v4551_v60, %v4555_v57 }
 0x135   : > { %v10442_v17 = vpop.permute.xlu1 %3661  ;;  %v2063_v30 = vor.u32 %v2062_v21, %v2059_v18  ;;  %v2068_v33 = vrot.slane %v2066_v22, 5  ;;  %v2076_v34 = vshll.u32 %v2010_v12, 16  ;;  %v8693_v36 = vcombine.low %v4546_v23, %v4556_v29  ;;  %v2032_v18 = vld [vmem:[%s9520_s16 + $0x60] sm:$0xf] }
 0x136   : > { %v4354_v39 = vsel %vm9532_vm2, %v4349_v24, %v4353_v7  ;;  %v4359_v54 = vrot.slane %v4358_v25, 4  ;;  %v2072_v42 = vrot.slane %v2070_v27, 4  ;;  %v10454_v48 = vpop.permute.xlu0 %3645  ;;  %v1691_v49 = vsel %vm1662_vm10, %v1607_v28, 0  ;;  %v2033_v27 = vld [vmem:[%s9520_s16 + $0x64] sm:$0xf] }
 0x137   : > { %v2064_v47 = vrot.slane %v2063_v30, 4  ;;  %v2078_v9 = vrot.slane %v2076_v34, 5  ;;  %v5258_v45 = vshrl.u32 %v8775_v41, 16  ;;  %4767 = vrot.lane.b32.xlu1 %v8693_v36, %s9478_s17  ;;  %9170 = vmatpush3.bf16.xpose.msra.mxu0 %v1691_v49  ;;  %v5261_v6 = vshll.u32 %v8775_v41, 16  ;;  %v8933_v49 = vld [vmem:[%s9520_s16 + $0x70] sm:$0xf] }
 0x138   : > { %v4364_v20 = vsel %vm9532_vm2, %v4359_v54, %v4363_v50  ;;  %v2073_v51 = vor.u32 %v2072_v42, %v2068_v33  ;;  %v5267_v52 = vshll.u32 %v8776_v35, 16  ;;  %v5271_v59 = vshrl.u32 %v8776_v35, 16  ;;  %9297 = vmatprep.subr.msk.bf16.mxu0 %vm1662_vm10, %v1616_v44  ;;  %v8932_v42 = vld [vmem:[%s9520_s16 + $0x6c] sm:$0xe] }
 0x139   : > { %v10463_v57 = vpop.permute.xlu1 %2799  ;;  %v8685_v32 = vcombine.low %v4354_v39, %v4364_v20  ;;  %v2069_v58 = vsel %vm9532_vm2, %v2064_v47, %v2068_v33  ;;  %v5260_v62 = vrot.slane %v5258_v45, 4  ;;  %v5263_v3 = vrot.slane %v5261_v6, 5  ;;  %v2034_v33 = vld [vmem:[%s9520_s16 + $0x68] sm:$0x1]  ;;  %v8908_v6 = vld [vmem:[%s9520_s16 + $0xc] sm:$0xe] }
 0x13a   : > { %v2074_v0 = vrot.slane %v2073_v51, 4  ;;  %v5269_v5 = vrot.slane %v5267_v52, 5  ;;  %v5277_v7 = vshll.u32 %v8777_v16, 16  ;;  %v5273_v8 = vrot.slane %v5271_v59, 4  ;;  %v10475_v21 = vpop.permute.xlu0 %2783  ;;  %v8934_v16 = vld [vmem:[%s9520_s16 + $0x74] sm:$0x1] }
 0x13b   : > { %4751 = vrot.lane.b32.xlu0 %v8685_v32, %s9478_s17  ;;  %v5066_v13 = vshrl.u32 %v8751_v46, 16  ;;  %v5069_v14 = vshll.u32 %v8751_v46, 16  ;;  %v5075_v15 = vshll.u32 %v8752_v56, 16  ;;  %4947 = vrot.lane.b32.xlu1 %v9389_v43, %s9479_s18  ;;  %v5264_v50 = vor.u32 %v5263_v3, %v5260_v62 }
 0x13c   : > { %v2079_v4 = vsel %vm9532_vm2, %v2074_v0, %v2078_v9  ;;  %v5279_v12 = vrot.slane %v5277_v7, 5  ;;  %v5079_v60 = vshrl.u32 %v8752_v56, 16  ;;  %v5274_v23 = vor.u32 %v5273_v8, %v5269_v5  ;;  %v9012_v7 = vld [vmem:[%s9520_s16 + $0x78] sm:$0xf] }
 0x13d   : > { %v8364_v22 = vcombine.low %v2069_v58, %v2079_v4  ;;  %v5068_v24 = vrot.slane %v5066_v13, 4  ;;  %v5071_v25 = vrot.slane %v5069_v14, 5  ;;  %v5265_v28 = vrot.slane %v5264_v50, 4  ;;  %v8909_v58 = vld [vmem:[%s9520_s16 + $0x10] sm:$0xf] }
 0x13e   : > { %v5077_v41 = vrot.slane %v5075_v15, 5  ;;  %v5081_v29 = vrot.slane %v5079_v60, 4  ;;  %v5085_v30 = vshll.u32 %v8753_v11, 16  ;;  %v5275_v35 = vrot.slane %v5274_v23, 4  ;;  %v1608_v14 = vld [vmem:[#allocation2 + $0x10] sm:$0xff] }
 0x13f   : > { %v10479_v34 = vpop.permute.xlu1 %3343  ;;  %2504 = vst.msk [vmem:[#allocation2] sm:$0xff] %vm299_vm6, %v8364_v22  ;;  %4931 = vrot.lane.b32.xlu0 %v9390_v2, %s9479_s18  ;;  %v5072_v36 = vor.u32 %v5071_v25, %v5068_v24  ;;  %v2249_v39 = vshrl.u32 %v2032_v18, 16  ;;  %v2252_v54 = vshll.u32 %v2032_v18, 16  ;;  %v5270_v43 = vsel %vm9532_vm2, %v5265_v28, %v5269_v5  ;;  %v8910_v5 = vld [vmem:[%s9520_s16 + $0x14] sm:$0x1]  ;;  %v1617_v22 = vld [vmem:[#allocation2 + $0x58] sm:$0xff] }
 0x140   : > { %2827 = vst.msk [vmem:[#allocation2] sm:$0xff] %vm847_vm7, %v10337_v31  ;;  %v5082_v44 = vor.u32 %v5081_v29, %v5077_v41  ;;  %v5087_v47 = vrot.slane %v5085_v30, 5  ;;  %v2258_v9 = vshll.u32 %v2033_v27, 16  ;;  %v5280_v45 = vsel %vm9532_vm2, %v5275_v35, %v5279_v12  ;;  %v9013_v15 = vld [vmem:[%s9520_s16 + $0x7c] sm:$0xf] }
 0x141   : > { %3371 = vst.msk [vmem:[#allocation2] sm:$0xff] %vm1028_vm8, %v10354_v1  ;;  %v5073_v20 = vrot.slane %v5072_v36, 4  ;;  %v2251_v51 = vrot.slane %v2249_v39, 4  ;;  %v2254_v31 = vrot.slane %v2252_v54, 5  ;;  %v8805_v52 = vcombine.low %v5270_v43, %v5280_v45  ;;  %v9014_v18 = vld [vmem:[%s9520_s16 + $0x80] sm:$0x1] }
 0x142   : > { %v5083_v46 = vrot.slane %v5082_v44, 4  ;;  %v2260_v56 = vrot.slane %v2258_v9, 5  ;;  %v2262_v32 = vshrl.u32 %v2033_v27, 16  ;;  %3691 = vst.msk [vmem:[#allocation2] sm:$0xff] %vm1573_vm9, %v10396_v10  ;;  %v10498_v62 = vpop.permute.xlu0 %3327  ;;  %v2268_v2 = vshll.u32 %v2034_v33, 16 }
 0x143   : > { %v10500_v1 = vpop.permute.xlu1 %3663  ;;  %v5078_v59 = vsel %vm9532_vm2, %v5073_v20, %v5077_v41  ;;  %v2255_v0 = vor.u32 %v2254_v31, %v2251_v51  ;;  %v8964_v3 = vrot.slane %v8932_v42, 9  ;;  %5491 = vrot.lane.b32.xlu1 %v8805_v52, %s9480_s19  ;;  %v6621_v10 = vrot.slane %v8933_v49, 5  ;;  %v8988_v49 = vld [vmem:[%s9520_s16 + $0x18] sm:$0xf]  ;;  %v8989_v31 = vld [vmem:[%s9520_s16 + $0x1c] sm:$0xf] }
 0x144   : > { %v5088_v8 = vsel %vm9532_vm2, %v5083_v46, %v5087_v47  ;;  %v2264_v11 = vrot.slane %v2262_v32, 4  ;;  %v6624_v13 = vrot.slane %v8934_v16, 5  ;;  %v2270_v12 = vrot.slane %v2268_v2, 5 }
 0x145   : > { %v8797_v4 = vcombine.low %v5078_v59, %v5088_v8  ;;  %v2256_v50 = vrot.slane %v2255_v0, 4  ;;  %v8956_v60 = vrot.slane %v8908_v6, 9  ;;  %v6622_v24 = vsel %vm9822_vm5, %v8964_v3, %v6621_v10  ;;  %v8990_v6 = vld [vmem:[%s9520_s16 + $0x20] sm:$0x1] }
 0x146   : > { %v2265_v23 = vor.u32 %v2264_v11, %v2260_v56  ;;  %v6623_v25 = vrot.slane %v6621_v10, 4  ;;  %v6565_v27 = vrot.slane %v8909_v58, 5  ;;  %v10513_v28 = vpop.permute.xlu0 %3647  ;;  %v6568_v29 = vrot.slane %v8910_v5, 5  ;;  %v2035_v58 = vld [vmem:[%s9520_s16 + $0x6c] sm:$0xf] }
 0x147   : > { %5475 = vrot.lane.b32.xlu0 %v8797_v4, %s9480_s19  ;;  %v2261_v41 = vsel %vm9532_vm2, %v2256_v50, %v2260_v56  ;;  %v1694_v30 = vsel %vm1662_vm10, %v1608_v14, 0  ;;  %v7028_v33 = vshrl.u32 %v9012_v7, 16  ;;  %v10519_v35 = vpop.permute.xlu1 %2801  ;;  %v7031_v47 = vshll.u32 %v9012_v7, 16  ;;  %v2036_v50 = vld [vmem:[%s9520_s16 + $0x70] sm:$0xf] }
 0x148   : > { %v2266_v36 = vrot.slane %v2265_v23, 4  ;;  %v6625_v39 = vsel %vm9822_vm5, %v6623_v25, %v6624_v13  ;;  %v6566_v54 = vsel %vm9822_vm5, %v8956_v60, %v6565_v27  ;;  %v6567_v42 = vrot.slane %v6565_v27, 4  ;;  %9172 = vmatpush3.bf16.xpose.msra.mxu0 %v1694_v30 }
 0x149   : > { %v8980_v43 = vcombine.low %v6622_v24, %v6625_v39  ;;  %v7030_v44 = vrot.slane %v7028_v33, 4  ;;  %v7037_v9 = vshll.u32 %v9013_v15, 16  ;;  %9298 = vmatprep.subr.msk.bf16.mxu0 %vm1662_vm10, %v1617_v22  ;;  %v7041_v20 = vshrl.u32 %v9013_v15, 16  ;;  %v2037_v24 = vld [vmem:[%s9520_s16 + $0x74] sm:$0x1] }
 0x14a   : > { %v2271_v16 = vsel %vm9532_vm2, %v2266_v36, %v2270_v12  ;;  %v6569_v45 = vsel %vm9822_vm5, %v6567_v42, %v6568_v29  ;;  %v7047_v51 = vshll.u32 %v9014_v18, 16  ;;  %v7033_v56 = vrot.slane %v7031_v47, 5  ;;  %v10535_v59 = vpop.permute.xlu0 %2785  ;;  %v2012_v47 = vld [vmem:[%s9520_s16 + $0x10] sm:$0xf] }
 0x14b   : > { %v8372_v52 = vcombine.low %v2261_v41, %v2271_v16  ;;  %6739 = vrot.lane.b32.xlu1 %v8980_v43, %s9478_s17  ;;  %v8972_v46 = vcombine.low %v6566_v54, %v6569_v45  ;;  %v7039_v32 = vrot.slane %v7037_v9, 5  ;;  %v7043_v0 = vrot.slane %v7041_v20, 4 }
 0x14c   : > { %v7049_v2 = vrot.slane %v7047_v51, 5  ;;  %v6836_v3 = vshrl.u32 %v8988_v49, 16  ;;  %v6839_v5 = vshll.u32 %v8988_v49, 16  ;;  %v7034_v7 = vor.u32 %v7033_v56, %v7030_v44 }
 0x14d   : > { %2512 = vst.msk [vmem:[#allocation2 + $0x40] sm:$0xff] %vm299_vm6, %v8372_v52  ;;  %6723 = vrot.lane.b32.xlu0 %v8972_v46, %s9478_s17  ;;  %v6845_v8 = vshll.u32 %v8989_v31, 16  ;;  %v6849_v11 = vshrl.u32 %v8989_v31, 16  ;;  %v6855_v10 = vshll.u32 %v8990_v6, 16  ;;  %v7044_v14 = vor.u32 %v7043_v0, %v7039_v32  ;;  %v2013_v6 = vld [vmem:[%s9520_s16 + $0x14] sm:$0x1] }
 0x14e   : > { %v10539_v13 = vpop.permute.xlu1 %3345  ;;  %2835 = vst.msk [vmem:[#allocation2 + $0x40] sm:$0xff] %vm847_vm7, %v10384_v38  ;;  %v6838_v15 = vrot.slane %v6836_v3, 4  ;;  %v6841_v4 = vrot.slane %v6839_v5, 5  ;;  %v2273_v12 = vshrl.u32 %v2035_v58, 16  ;;  %v7035_v60 = vrot.slane %v7034_v7, 4 }
 0x14f   : > { %3379 = vst.msk [vmem:[#allocation2 + $0x40] sm:$0xff] %vm1028_vm8, %v10382_v37  ;;  %v6847_v18 = vrot.slane %v6845_v8, 5  ;;  %v6851_v22 = vrot.slane %v6849_v11, 4  ;;  %v6857_v23 = vrot.slane %v6855_v10, 5  ;;  %v7045_v25 = vrot.slane %v7044_v14, 4 }
 0x150   : > { %3699 = vst.msk [vmem:[#allocation2 + $0x40] sm:$0xff] %vm1573_vm9, %v10394_v63  ;;  %v6842_v38 = vor.u32 %v6841_v4, %v6838_v15  ;;  %v2275_v27 = vrot.slane %v2273_v12, 4  ;;  %v2276_v41 = vshll.u32 %v2035_v58, 16  ;;  %v7040_v29 = vsel %vm9532_vm2, %v7035_v60, %v7039_v32  ;;  %v2011_v37 = vld [vmem:[%s9520_s16 + $0xc] sm:$0xf] }
 0x151   : > { %v6852_v30 = vor.u32 %v6851_v22, %v6847_v18  ;;  %v2282_v33 = vshll.u32 %v2036_v50, 16  ;;  %v2286_v36 = vshrl.u32 %v2036_v50, 16  ;;  %v10552_v39 = vpop.permute.xlu0 %3329  ;;  %v7050_v63 = vsel %vm9532_vm2, %v7045_v25, %v7049_v2  ;;  %v9076_v46 = vld [vmem:[%s9520_s16 + $0x78] sm:$0xe]  ;;  %v9077_v2 = vld [vmem:[%s9520_s16 + $0x7c] sm:$0xf] }
 0x152   : > { %v10554_v54 = vpop.permute.xlu1 %3665  ;;  %v6843_v42 = vrot.slane %v6842_v38, 4  ;;  %v2278_v43 = vrot.slane %v2276_v41, 5  ;;  %v2292_v44 = vshll.u32 %v2037_v24, 16  ;;  %v9044_v9 = vcombine.low %v7040_v29, %v7050_v63  ;;  %v9078_v3 = vld [vmem:[%s9520_s16 + $0x80] sm:$0x1] }
 0x153   : > { %v6853_v49 = vrot.slane %v6852_v30, 4  ;;  %v2284_v16 = vrot.slane %v2282_v33, 5  ;;  %v2288_v45 = vrot.slane %v2286_v36, 4  ;;  %v2081_v52 = vshrl.u32 %v2011_v37, 16  ;;  %v9052_v14 = vld [vmem:[%s9520_s16 + $0x18] sm:$0xe] }
 0x154   : > { %v6848_v20 = vsel %vm9532_vm2, %v6843_v42, %v6847_v18  ;;  %v2279_v51 = vor.u32 %v2278_v43, %v2275_v27  ;;  %v2294_v31 = vrot.slane %v2292_v44, 5  ;;  %7283 = vrot.lane.b32.xlu1 %v9044_v9, %s9479_s18  ;;  %v2084_v58 = vshll.u32 %v2011_v37, 16  ;;  %v9053_v60 = vld [vmem:[%s9520_s16 + $0x1c] sm:$0xf]  ;;  %v9054_v38 = vld [vmem:[%s9520_s16 + $0x20] sm:$0x1] }
 0x155   : > { %v6858_v56 = vsel %vm9532_vm2, %v6853_v49, %v6857_v23  ;;  %v2289_v32 = vor.u32 %v2288_v45, %v2284_v16  ;;  %v2090_v0 = vshll.u32 %v2012_v47, 16  ;;  %v10568_v5 = vpop.permute.xlu0 %3649  ;;  %v2083_v11 = vrot.slane %v2081_v52, 4  ;;  %v1609_v33 = vld [vmem:[#allocation2 + $0x18] sm:$0xff]  ;;  %v8666_v36 = vld [vmem:[%s9520_s16 + $0x84] sm:$0xf] }
 0x156   : > { %v9036_v7 = vcombine.low %v6848_v20, %v6858_v56  ;;  %v2280_v8 = vrot.slane %v2279_v51, 4  ;;  %v2094_v10 = vshrl.u32 %v2012_v47, 16  ;;  %v2086_v4 = vrot.slane %v2084_v58, 5  ;;  %v10572_v18 = vpop.permute.xlu1 %2803  ;;  %v1618_v44 = vld [vmem:[#allocation2 + $0x60] sm:$0xff]  ;;  %v8667_v20 = vld [vmem:[%s9520_s16 + $0x88] sm:$0xf] }
 0x157   : > { %v2290_v15 = vrot.slane %v2289_v32, 4  ;;  %v2092_v50 = vrot.slane %v2090_v0, 5  ;;  %v2100_v12 = vshll.u32 %v2013_v6, 16  ;;  %v9108_v24 = vrot.slane %v9076_v46, 9  ;;  %v8668_v52 = vld [vmem:[%s9520_s16 + $0x8c] sm:$0x1] }
 0x158   : > { %7267 = vrot.lane.b32.xlu0 %v9036_v7, %s9479_s18  ;;  %v2285_v22 = vsel %vm9532_vm2, %v2280_v8, %v2284_v16  ;;  %v2096_v23 = vrot.slane %v2094_v10, 4  ;;  %v7485_v25 = vrot.slane %v9077_v2, 5  ;;  %v2087_v41 = vor.u32 %v2086_v4, %v2083_v11  ;;  %v8642_v2 = vld [vmem:[%s9520_s16 + $0x24] sm:$0xf]  ;;  %v8643_v10 = vld [vmem:[%s9520_s16 + $0x28] sm:$0xf] }
 0x159   : > { %v2295_v27 = vsel %vm9532_vm2, %v2290_v15, %v2294_v31  ;;  %v2102_v29 = vrot.slane %v2100_v12, 5  ;;  %v7488_v30 = vrot.slane %v9078_v3, 5  ;;  %v10583_v47 = vpop.permute.xlu0 %2787  ;;  %v9100_v49 = vrot.slane %v9052_v14, 9  ;;  %v8644_v12 = vld [vmem:[%s9520_s16 + $0x2c] sm:$0x1] }
 0x15a   : > { %v8373_v37 = vcombine.low %v2285_v22, %v2295_v27  ;;  %v2097_v63 = vor.u32 %v2096_v23, %v2092_v50  ;;  %v7486_v42 = vsel %vm9822_vm5, %v9108_v24, %v7485_v25  ;;  %v7487_v43 = vrot.slane %v7485_v25, 4  ;;  %v1610_v24 = vld [vmem:[#allocation2 + $0x20] sm:$0xff] }
 0x15b   : > { %v2088_v9 = vrot.slane %v2087_v41, 4  ;;  %v7429_v16 = vrot.slane %v9053_v60, 5  ;;  %v7432_v45 = vrot.slane %v9054_v38, 5  ;;  %v1697_v6 = vsel %vm1662_vm10, %v1609_v33, 0 }
 0x15c   : > { %2513 = vst.msk [vmem:[#allocation2 + $0x48] sm:$0xff] %vm299_vm6, %v8373_v37  ;;  %v2098_v51 = vrot.slane %v2097_v63, 4  ;;  %v7489_v31 = vsel %vm9822_vm5, %v7487_v43, %v7488_v30  ;;  %v4558_v46 = vshrl.u32 %v8666_v36, 16  ;;  %9174 = vmatpush3.bf16.xpose.msra.mxu0 %v1697_v6  ;;  %v4561_v8 = vshll.u32 %v8666_v36, 16  ;;  %v2038_v30 = vld [vmem:[%s9520_s16 + $0x78] sm:$0xf] }
 0x15d   : > { %2836 = vst.msk [vmem:[#allocation2 + $0x48] sm:$0xff] %vm847_vm7, %v10408_v19  ;;  %v2093_v56 = vsel %vm9532_vm2, %v2088_v9, %v2092_v50  ;;  %v9124_v32 = vcombine.low %v7486_v42, %v7489_v31  ;;  %v7430_v58 = vsel %vm9822_vm5, %v9100_v49, %v7429_v16  ;;  %v7431_v0 = vrot.slane %v7429_v16, 4  ;;  %v10598_v3 = vpop.permute.xlu1 %3347  ;;  %9299 = vmatprep.subr.msk.bf16.mxu0 %vm1662_vm10, %v1618_v44  ;;  %v2039_v42 = vld [vmem:[%s9520_s16 + $0x7c] sm:$0xf]  ;;  %v1619_v16 = vld [vmem:[#allocation2 + $0x68] sm:$0xff] }
 0x15e   : > { %v2103_v7 = vsel %vm9532_vm2, %v2098_v51, %v2102_v29  ;;  %3380 = vst.msk [vmem:[#allocation2 + $0x48] sm:$0xff] %vm1028_vm8, %v10432_v53  ;;  %v4560_v19 = vrot.slane %v4558_v46, 4  ;;  %v4567_v11 = vshll.u32 %v8667_v20, 16  ;;  %v4571_v4 = vshrl.u32 %v8667_v20, 16 }
 0x15f   : > { %v8365_v14 = vcombine.low %v2093_v56, %v2103_v7  ;;  %7603 = vrot.lane.b32.xlu1 %v9124_v32, %s9480_s19  ;;  %v7433_v15 = vsel %vm9822_vm5, %v7431_v0, %v7432_v45  ;;  %v4577_v50 = vshll.u32 %v8668_v52, 16  ;;  %3700 = vst.msk [vmem:[#allocation2 + $0x48] sm:$0xff] %vm1573_vm9, %v10442_v17  ;;  %v4563_v60 = vrot.slane %v4561_v8, 5  ;;  %v2014_v7 = vld [vmem:[%s9520_s16 + $0x18] sm:$0xf] }
 0x160   : > { %v9116_v53 = vcombine.low %v7430_v58, %v7433_v15  ;;  %v4569_v22 = vrot.slane %v4567_v11, 5  ;;  %v4366_v23 = vshrl.u32 %v8642_v2, 16  ;;  %v4573_v38 = vrot.slane %v4571_v4, 4  ;;  %v2016_v15 = vld [vmem:[%s9520_s16 + $0x20] sm:$0x1] }
 0x161   : > { %v10612_v25 = vpop.permute.xlu0 %3331  ;;  %2505 = vst.msk [vmem:[#allocation2 + $0x8] sm:$0xff] %vm299_vm6, %v8365_v14  ;;  %v4579_v27 = vrot.slane %v4577_v50, 5  ;;  %v4369_v41 = vshll.u32 %v8642_v2, 16  ;;  %v4375_v29 = vshll.u32 %v8643_v10, 16  ;;  %v10616_v33 = vpop.permute.xlu1 %3667  ;;  %v4564_v17 = vor.u32 %v4563_v60, %v4560_v19  ;;  %v2015_v19 = vld [vmem:[%s9520_s16 + $0x1c] sm:$0xf] }
 0x162   : > { %2828 = vst.msk [vmem:[#allocation2 + $0x8] sm:$0xff] %vm847_vm7, %v10424_v40  ;;  %7587 = vrot.lane.b32.xlu0 %v9116_v53, %s9480_s19  ;;  %v4368_v36 = vrot.slane %v4366_v23, 4  ;;  %v4379_v37 = vshrl.u32 %v8643_v10, 16  ;;  %v4385_v63 = vshll.u32 %v8644_v12, 16  ;;  %v4574_v43 = vor.u32 %v4573_v38, %v4569_v22 }
 0x163   : > { %3372 = vst.msk [vmem:[#allocation2 + $0x8] sm:$0xff] %vm1028_vm8, %v10440_v55  ;;  %v4371_v44 = vrot.slane %v4369_v41, 5  ;;  %v4377_v9 = vrot.slane %v4375_v29, 5  ;;  %v1700_v49 = vsel %vm1662_vm10, %v1610_v24, 0  ;;  %v4565_v45 = vrot.slane %v4564_v17, 4 }
 0x164   : > { %v4381_v40 = vrot.slane %v4379_v37, 4  ;;  %v4387_v20 = vrot.slane %v4385_v63, 5  ;;  %3692 = vst.msk [vmem:[#allocation2 + $0x8] sm:$0xff] %vm1573_vm9, %v10454_v48  ;;  %v2297_v51 = vshrl.u32 %v2038_v30, 16  ;;  %v4575_v6 = vrot.slane %v4574_v43, 4  ;;  %9176 = vmatpush3.bf16.xpose.msra.mxu0 %v1700_v49 }
 0x165   : > { %v10627_v31 = vpop.permute.xlu0 %3651  ;;  %v4372_v52 = vor.u32 %v4371_v44, %v4368_v36  ;;  %v2040_v55 = vld [vmem:[%s9520_s16 + $0x80] sm:$0x1]  ;;  %v2300_v46 = vshll.u32 %v2038_v30, 16  ;;  %v2306_v56 = vshll.u32 %v2039_v42, 16  ;;  %v4570_v32 = vsel %vm9532_vm2, %v4565_v45, %v4569_v22  ;;  %9300 = vmatprep.subr.msk.bf16.mxu0 %vm1662_vm10, %v1619_v16  ;;  %v10635_v48 = vpop.permute.xlu1 %2805  ;;  %v8778_v17 = vld [vmem:[%s9520_s16 + $0x90] sm:$0xf] }
 0x166   : > { %v4382_v58 = vor.u32 %v4381_v40, %v4377_v9  ;;  %v2299_v0 = vrot.slane %v2297_v51, 4  ;;  %v2310_v2 = vshrl.u32 %v2039_v42, 16  ;;  %v4580_v8 = vsel %vm9532_vm2, %v4575_v6, %v4579_v27  ;;  %v9391_v27 = vld [vmem:[%s9520_s16 + $0x90] sm:$0xff]  }
 0x167   : > { %v4373_v11 = vrot.slane %v4372_v52, 4  ;;  %v2302_v10 = vrot.slane %v2300_v46, 5  ;;  %v2308_v14 = vrot.slane %v2306_v56, 5  ;;  %v8694_v4 = vcombine.low %v4570_v32, %v4580_v8  ;;  %v8779_v44 = vld [vmem:[%s9520_s16 + $0x94] sm:$0xf] }
 0x168   : > { %v4383_v50 = vrot.slane %v4382_v58, 4  ;;  %v2312_v12 = vrot.slane %v2310_v2, 4  ;;  %v2316_v53 = vshll.u32 %v2040_v55, 16  ;;  %v2105_v23 = vshrl.u32 %v2014_v7, 16  ;;  %v8780_v52 = vld [vmem:[%s9520_s16 + $0x98] sm:$0x1] }
 0x169   : > { %v4378_v60 = vsel %vm9532_vm2, %v4373_v11, %v4377_v9  ;;  %v2303_v22 = vor.u32 %v2302_v10, %v2299_v0  ;;  %v2108_v24 = vshll.u32 %v2014_v7, 16  ;;  %4769 = vrot.lane.b32.xlu1 %v8694_v4, %s9478_s17  ;;  %v2114_v30 = vshll.u32 %v2015_v19, 16  ;;  %v10647_v36 = vpop.permute.xlu0 %2789  ;;  %v8754_v2 = vld [vmem:[%s9520_s16 + $0x30] sm:$0xf]  ;;  %v3732_v7 = vld [vmem:[#allocation2 + $0x40] sm:$0xff] }
 0x16a   : > { %v4388_v38 = vsel %vm9532_vm2, %v4383_v50, %v4387_v20  ;;  %v2313_v41 = vor.u32 %v2312_v12, %v2308_v14  ;;  %v2318_v29 = vrot.slane %v2316_v53, 5  ;;  %v2107_v42 = vrot.slane %v2105_v23, 4  ;;  %v9392_v20 = vld [vmem:[%s9520_s16 + $0x30] sm:$0xff]   ;;  %9303 = vmatprep.subr.msk.bf16.mxu1 %vm1662_vm10, %v3732_v7 }
 0x16b   : > { %v8686_v37 = vcombine.low %v4378_v60, %v4388_v38  ;;  %v2304_v63 = vrot.slane %v2303_v22, 4  ;;  %v2110_v43 = vrot.slane %v2108_v24, 5  ;;  %v2116_v49 = vrot.slane %v2114_v30, 5  ;;  %v8756_v24 = vld [vmem:[%s9520_s16 + $0x38] sm:$0x1] }
 0x16c   : > { %v2314_v9 = vrot.slane %v2313_v41, 4  ;;  %v2118_v16 = vshrl.u32 %v2015_v19, 16  ;;  %v2124_v45 = vshll.u32 %v2016_v15, 16  ;;  %v5282_v55 = vshrl.u32 %v8778_v17, 16  ;;  %v9401_v15 = vld [vmem:[%s9520_s16 + $0x6c] sm:$0xff]  }
 0x16d   : > { %v10650_v40 = vpop.permute.xlu1 %3349  ;;  %4753 = vrot.lane.b32.xlu0 %v8686_v37, %s9478_s17  ;;  %v2309_v51 = vsel %vm9532_vm2, %v2304_v63, %v2308_v14  ;;  %v2111_v6 = vor.u32 %v2110_v43, %v2107_v42  ;;  %v5285_v46 = vshll.u32 %v8778_v17, 16  ;;  %4949 = vrot.lane.b32.xlu1 %v9391_v27, %s9479_s18  ;;  %v5291_v0 = vshll.u32 %v8779_v44, 16  ;;  %v8755_v14 = vld [vmem:[%s9520_s16 + $0x34] sm:$0xf]  ;;  %4261 = vst.msk [vmem:[#allocation2 + $0x40] sm:$0xff] %vm299_vm6, %v9401_v15 }
 0x16e   : > { %v2319_v56 = vsel %vm9532_vm2, %v2314_v9, %v2318_v29  ;;  %v2120_v32 = vrot.slane %v2118_v16, 4  ;;  %v2126_v58 = vrot.slane %v2124_v45, 5  ;;  %v5284_v11 = vrot.slane %v5282_v55, 4  ;;  %v8935_v63 = vld [vmem:[%s9520_s16 + $0x78] sm:$0xe] }
 0x16f   : > { %v8374_v19 = vcombine.low %v2309_v51, %v2319_v56  ;;  %v2112_v8 = vrot.slane %v2111_v6, 4  ;;  %v5287_v10 = vrot.slane %v5285_v46, 5  ;;  %v5293_v50 = vrot.slane %v5291_v0, 5  ;;  %v8937_v51 = vld [vmem:[%s9520_s16 + $0x80] sm:$0x1] }
 0x170   : > { %v2121_v4 = vor.u32 %v2120_v32, %v2116_v49  ;;  %v5295_v12 = vshrl.u32 %v8779_v44, 16  ;;  %v5301_v53 = vshll.u32 %v8780_v52, 16  ;;  %v10664_v60 = vpop.permute.xlu0 %3333  ;;  %v5090_v38 = vshrl.u32 %v8754_v2, 16  ;;  %v8911_v6 = vld [vmem:[%s9520_s16 + $0x18] sm:$0xe] }
 0x171   : > { %4933 = vrot.lane.b32.xlu0 %v9392_v20, %s9479_s18  ;;  %2514 = vst.msk [vmem:[#allocation2 + $0x50] sm:$0xff] %vm299_vm6, %v8374_v19  ;;  %v2117_v22 = vsel %vm9532_vm2, %v2112_v8, %v2116_v49  ;;  %v5288_v23 = vor.u32 %v5287_v10, %v5284_v11  ;;  %v5093_v27 = vshll.u32 %v8754_v2, 16  ;;  %v10671_v41 = vpop.permute.xlu1 %3669  ;;  %v5099_v37 = vshll.u32 %v8755_v14, 16  ;;  %v8936_v49 = vld [vmem:[%s9520_s16 + $0x7c] sm:$0xf]  ;;  %v9402_v2 = vld [vmem:[%s9520_s16 + $0xc] sm:$0xff]  }
 0x172   : > { %2837 = vst.msk [vmem:[#allocation2 + $0x50] sm:$0xff] %vm847_vm7, %v10463_v57  ;;  %v2122_v29 = vrot.slane %v2121_v4, 4  ;;  %v5297_v30 = vrot.slane %v5295_v12, 4  ;;  %v5303_v17 = vrot.slane %v5301_v53, 5  ;;  %v5092_v43 = vrot.slane %v5090_v38, 4  ;;  %v10693_v11 = vld [vmem:[#allocation2] sm:$0xff] }
 0x173   : > { %v5289_v42 = vrot.slane %v5288_v23, 4  ;;  %v5095_v44 = vrot.slane %v5093_v27, 5  ;;  %v5103_v9 = vshrl.u32 %v8755_v14, 16  ;;  %3381 = vst.msk [vmem:[#allocation2 + $0x50] sm:$0xff] %vm1028_vm8, %v10479_v34  ;;  %v5101_v45 = vrot.slane %v5099_v37, 5  ;;  %v1611_v4 = vld [vmem:[#allocation2 + $0x28] sm:$0xff] }
 0x174   : > { %v2127_v57 = vsel %vm9532_vm2, %v2122_v29, %v2126_v58  ;;  %v5298_v16 = vor.u32 %v5297_v30, %v5293_v50  ;;  %v5109_v20 = vshll.u32 %v8756_v24, 16  ;;  %3701 = vst.msk [vmem:[#allocation2 + $0x50] sm:$0xff] %vm1573_vm9, %v10500_v1  ;;  %v8912_v34 = vld [vmem:[%s9520_s16 + $0x1c] sm:$0xf]  ;;  %v8913_v32 = vld [vmem:[%s9520_s16 + $0x20] sm:$0x1]  ;;  %v10690_v0 = vpop.permute.xlu0 %3653 }
 0x175   : > { %v8366_v52 = vcombine.low %v2117_v22, %v2127_v57  ;;  %v5294_v55 = vsel %vm9532_vm2, %v5289_v42, %v5293_v50  ;;  %v5096_v46 = vor.u32 %v5095_v44, %v5092_v43  ;;  %v5105_v56 = vrot.slane %v5103_v9, 4  ;;  %v10696_v50 = vpop.permute.xlu1 %2807  ;;  %4253 = vst.msk [vmem:[#allocation2] sm:$0xff] %vm299_vm6, %v9402_v2  ;;  %v9015_v24 = vld [vmem:[%s9520_s16 + $0x84] sm:$0xf]  ;;  %v1620_v38 = vld [vmem:[#allocation2 + $0x70] sm:$0xff] }
 0x176   : > { %v5299_v58 = vrot.slane %v5298_v16, 4  ;;  %v5111_v7 = vrot.slane %v5109_v20, 5  ;;  %v8965_v19 = vrot.slane %v8935_v63, 9  ;;  %v6628_v8 = vrot.slane %v8936_v49, 5  ;;  %v9016_v37 = vld [vmem:[%s9520_s16 + $0x88] sm:$0xf] }
 0x177   : > { %2506 = vst.msk [vmem:[#allocation2 + $0x10] sm:$0xff] %vm299_vm6, %v8366_v52  ;;  %v5097_v1 = vrot.slane %v5096_v46, 4  ;;  %v5106_v10 = vor.u32 %v5105_v56, %v5101_v45  ;;  %v6631_v14 = vrot.slane %v8937_v51, 5  ;;  %v8957_v15 = vrot.slane %v8911_v6, 9  ;;  %v9017_v63 = vld [vmem:[%s9520_s16 + $0x8c] sm:$0x1] }
 0x178   : > { %2829 = vst.msk [vmem:[#allocation2 + $0x10] sm:$0xff] %vm847_vm7, %v10475_v21  ;;  %v5304_v12 = vsel %vm9532_vm2, %v5299_v58, %v5303_v17  ;;  %v6629_v53 = vsel %vm9822_vm5, %v8965_v19, %v6628_v8  ;;  %v6630_v22 = vrot.slane %v6628_v8, 4  ;;  %v6572_v23 = vrot.slane %v8912_v34, 5  ;;  %v8991_v9 = vld [vmem:[%s9520_s16 + $0x24] sm:$0xf] }
 0x179   : > { %v8806_v27 = vcombine.low %v5294_v55, %v5304_v12  ;;  %v5102_v29 = vsel %vm9532_vm2, %v5097_v1, %v5101_v45  ;;  %v5107_v30 = vrot.slane %v5106_v10, 4  ;;  %3373 = vst.msk [vmem:[#allocation2 + $0x10] sm:$0xff] %vm1028_vm8, %v10498_v62  ;;  %v6575_v21 = vrot.slane %v8913_v32, 5  ;;  %v10723_v45 = vpop.permute.xlu0 %2791  ;;  %v8992_v52 = vld [vmem:[%s9520_s16 + $0x28] sm:$0xf] }
 0x17a   : > { %v6632_v17 = vsel %vm9822_vm5, %v6630_v22, %v6631_v14  ;;  %v6573_v42 = vsel %vm9822_vm5, %v8957_v15, %v6572_v23  ;;  %v6574_v43 = vrot.slane %v6572_v23, 4  ;;  %v1703_v44 = vsel %vm1662_vm10, %v1611_v4, 0  ;;  %3693 = vst.msk [vmem:[#allocation2 + $0x10] sm:$0xff] %vm1573_vm9, %v10513_v28  ;;  %v8993_v32 = vld [vmem:[%s9520_s16 + $0x2c] sm:$0x1] }
 0x17b   : > { %5493 = vrot.lane.b32.xlu1 %v8806_v27, %s9480_s19  ;;  %v5112_v62 = vsel %vm9532_vm2, %v5107_v30, %v5111_v7  ;;  %v8981_v49 = vcombine.low %v6629_v53, %v6632_v17  ;;  %9178 = vmatpush3.bf16.xpose.msra.mxu0 %v1703_v44  ;;  %v7052_v57 = vshrl.u32 %v9015_v24, 16  ;;  %v7055_v16 = vshll.u32 %v9015_v24, 16  ;;  %v2041_v1 = vld [vmem:[%s9520_s16 + $0x84] sm:$0xf]  ;;  %v2042_v24 = vld [vmem:[%s9520_s16 + $0x88] sm:$0xf] }
 0x17c   : > { %v8798_v20 = vcombine.low %v5102_v29, %v5112_v62  ;;  %v6576_v51 = vsel %vm9822_vm5, %v6574_v43, %v6575_v21  ;;  %v7061_v6 = vshll.u32 %v9016_v37, 16  ;;  %v7065_v28 = vshrl.u32 %v9016_v37, 16  ;;  %9301 = vmatprep.subr.msk.bf16.mxu0 %vm1662_vm10, %v1620_v38  ;;  %v10730_v2 = vpop.permute.xlu1 %3351 }
 0x17d   : > { %v8973_v55 = vcombine.low %v6573_v42, %v6576_v51  ;;  %v7054_v46 = vrot.slane %v7052_v57, 4  ;;  %v7057_v56 = vrot.slane %v7055_v16, 5  ;;  %v7071_v34 = vshll.u32 %v9017_v63, 16  ;;  %v2043_v42 = vld [vmem:[%s9520_s16 + $0x8c] sm:$0x1] }
 0x17e   : > { %5477 = vrot.lane.b32.xlu0 %v8798_v20, %s9480_s19  ;;  %v7063_v58 = vrot.slane %v7061_v6, 5  ;;  %v7067_v7 = vrot.slane %v7065_v28, 4  ;;  %v6860_v19 = vshrl.u32 %v8991_v9, 16  ;;  %v6863_v8 = vshll.u32 %v8991_v9, 16  ;;  %v2017_v57 = vld [vmem:[%s9520_s16 + $0x24] sm:$0xf] }
 0x17f   : > { %6741 = vrot.lane.b32.xlu1 %v8981_v49, %s9478_s17  ;;  %v7058_v10 = vor.u32 %v7057_v56, %v7054_v46  ;;  %v7073_v14 = vrot.slane %v7071_v34, 5  ;;  %v6869_v15 = vshll.u32 %v8992_v52, 16  ;;  %v6873_v4 = vshrl.u32 %v8992_v52, 16  ;;  %v2018_v16 = vld [vmem:[%s9520_s16 + $0x28] sm:$0xf] }
 0x180   : > { %v7068_v12 = vor.u32 %v7067_v7, %v7063_v58  ;;  %v6862_v53 = vrot.slane %v6860_v19, 4  ;;  %v6865_v22 = vrot.slane %v6863_v8, 5  ;;  %v6879_v23 = vshll.u32 %v8993_v32, 16  ;;  %v10736_v21 = vpop.permute.xlu0 %3335  ;;  %v10744_v20 = vpop.permute.xlu1 %3671  ;;  %v9080_v7 = vld [vmem:[%s9520_s16 + $0x88] sm:$0xf] }
 0x181   : > { %v7059_v38 = vrot.slane %v7058_v10, 4  ;;  %v6871_v27 = vrot.slane %v6869_v15, 5  ;;  %v6875_v29 = vrot.slane %v6873_v4, 4  ;;  %v2321_v30 = vshrl.u32 %v2041_v1, 16  ;;  %v9081_v15 = vld [vmem:[%s9520_s16 + $0x8c] sm:$0x1] }
 0x182   : > { %6725 = vrot.lane.b32.xlu0 %v8973_v55, %s9478_s17  ;;  %v7069_v37 = vrot.slane %v7068_v12, 4  ;;  %v6866_v63 = vor.u32 %v6865_v22, %v6862_v53  ;;  %v6881_v17 = vrot.slane %v6879_v23, 5  ;;  %v2324_v43 = vshll.u32 %v2041_v1, 16  ;;  %v2019_v55 = vld [vmem:[%s9520_s16 + $0x2c] sm:$0x1] }
 0x183   : > { %v7064_v44 = vsel %vm9532_vm2, %v7059_v38, %v7063_v58  ;;  %v6876_v9 = vor.u32 %v6875_v29, %v6871_v27  ;;  %v2323_v62 = vrot.slane %v2321_v30, 4  ;;  %v2330_v49 = vshll.u32 %v2042_v24, 16  ;;  %v9079_v58 = vld [vmem:[%s9520_s16 + $0x84] sm:$0xe] }
 0x184   : > { %v7074_v51 = vsel %vm9532_vm2, %v7069_v37, %v7073_v14  ;;  %v6867_v6 = vrot.slane %v6866_v63, 4  ;;  %v2326_v28 = vrot.slane %v2324_v43, 5  ;;  %v2334_v52 = vshrl.u32 %v2042_v24, 16  ;;  %v9055_v22 = vld [vmem:[%s9520_s16 + $0x24] sm:$0xe]  ;;  %v10758_v23 = vpop.permute.xlu0 %3655 }
 0x185   : > { %v9045_v46 = vcombine.low %v7064_v44, %v7074_v51  ;;  %v6877_v56 = vrot.slane %v6876_v9, 4  ;;  %v2332_v34 = vrot.slane %v2330_v49, 5  ;;  %v2340_v32 = vshll.u32 %v2043_v42, 16  ;;  %v9056_v43 = vld [vmem:[%s9520_s16 + $0x28] sm:$0xf] }
 0x186   : > { %v6872_v19 = vsel %vm9532_vm2, %v6867_v6, %v6871_v27  ;;  %v2327_v8 = vor.u32 %v2326_v28, %v2323_v62  ;;  %v2336_v1 = vrot.slane %v2334_v52, 4  ;;  %v2129_v10 = vshrl.u32 %v2017_v57, 16  ;;  %v1612_v52 = vld [vmem:[#allocation2 + $0x30] sm:$0xff] }
 0x187   : > { %7285 = vrot.lane.b32.xlu1 %v9045_v46, %s9479_s18  ;;  %v6882_v14 = vsel %vm9532_vm2, %v6877_v56, %v6881_v17  ;;  %v2342_v4 = vrot.slane %v2340_v32, 5  ;;  %v2132_v12 = vshll.u32 %v2017_v57, 16  ;;  %v2138_v53 = vshll.u32 %v2018_v16, 16  ;;  %v9057_v57 = vld [vmem:[%s9520_s16 + $0x2c] sm:$0x1] }
 0x188   : > { %v9037_v24 = vcombine.low %v6872_v19, %v6882_v14  ;;  %v2328_v38 = vrot.slane %v2327_v8, 4  ;;  %v2337_v27 = vor.u32 %v2336_v1, %v2332_v34  ;;  %v2131_v29 = vrot.slane %v2129_v10, 4  ;;  %v8670_v10 = vld [vmem:[%s9520_s16 + $0x94] sm:$0xf]  ;;  %v8671_v14 = vld [vmem:[%s9520_s16 + $0x98] sm:$0x1] }
 0x189   : > { %v2134_v30 = vrot.slane %v2132_v12, 5  ;;  %v2140_v37 = vrot.slane %v2138_v53, 5  ;;  %v2142_v63 = vshrl.u32 %v2018_v16, 16  ;;  %v2148_v42 = vshll.u32 %v2019_v55, 16  ;;  %v4766_v44 = vpop.permute.xlu1 %4765  ;;  %v8669_v55 = vld [vmem:[%s9520_s16 + $0x90] sm:$0xf] }
 0x18a   : > { %7269 = vrot.lane.b32.xlu0 %v9037_v24, %s9479_s18  ;;  %v2333_v17 = vsel %vm9532_vm2, %v2328_v38, %v2332_v34  ;;  %v2338_v9 = vrot.slane %v2337_v27, 4  ;;  %v9109_v62 = vrot.slane %v9079_v58, 9  ;;  %v7492_v49 = vrot.slane %v9080_v7, 5  ;;  %4805 = vst.msk [vmem:[#allocation2 + $0x40] sm:$0xff] %vm847_vm7, %v4766_v44  ;;  %v1621_v58 = vld [vmem:[#allocation2 + $0x78] sm:$0xff] }
 0x18b   : > { %v2135_v51 = vor.u32 %v2134_v30, %v2131_v29  ;;  %v2144_v6 = vrot.slane %v2142_v63, 4  ;;  %v2150_v16 = vrot.slane %v2148_v42, 5  ;;  %v7495_v28 = vrot.slane %v9081_v15, 5  ;;  %v8645_v27 = vld [vmem:[%s9520_s16 + $0x30] sm:$0xf] }
 0x18c   : > { %v2343_v46 = vsel %vm9532_vm2, %v2338_v9, %v2342_v4  ;;  %v7493_v56 = vsel %vm9822_vm5, %v9109_v62, %v7492_v49  ;;  %v7494_v34 = vrot.slane %v7492_v49, 4  ;;  %v9101_v32 = vrot.slane %v9055_v22, 9  ;;  %v8646_v49 = vld [vmem:[%s9520_s16 + $0x34] sm:$0xf] }
 0x18d   : > { %v8375_v7 = vcombine.low %v2333_v17, %v2343_v46  ;;  %v2136_v19 = vrot.slane %v2135_v51, 4  ;;  %v2145_v8 = vor.u32 %v2144_v6, %v2140_v37  ;;  %v7436_v1 = vrot.slane %v9056_v43, 5  ;;  %v4750_v12 = vpop.permute.xlu0 %4749  ;;  %v4946_v15 = vpop.permute.xlu1 %4945 }
 0x18e   : > { %v7496_v53 = vsel %vm9822_vm5, %v7494_v34, %v7495_v28  ;;  %v7439_v24 = vrot.slane %v9057_v57, 5  ;;  %v1706_v4 = vsel %vm1662_vm10, %v1612_v52, 0  ;;  %v4582_v38 = vshrl.u32 %v8669_v55, 16  ;;  %4797 = vst.msk [vmem:[#allocation2] sm:$0xff] %vm847_vm7, %v4750_v12  ;;  %v1613_v57 = vld [vmem:[#allocation2 + $0x38] sm:$0xff] }
 0x18f   : > { %4985 = vst.msk [vmem:[#allocation2 + $0x40] sm:$0xff] %vm1028_vm8, %v4946_v15  ;;  %v2141_v22 = vsel %vm9532_vm2, %v2136_v19, %v2140_v37  ;;  %v2146_v29 = vrot.slane %v2145_v8, 4  ;;  %v9125_v30 = vcombine.low %v7493_v56, %v7496_v53  ;;  %v7437_v63 = vsel %vm9822_vm5, %v9101_v32, %v7436_v1  ;;  %9180 = vmatpush3.bf16.xpose.msra.mxu0 %v1706_v4  ;;  %v2044_v56 = vld [vmem:[%s9520_s16 + $0x90] sm:$0xf]  ;;  %v2045_v12 = vld [vmem:[%s9520_s16 + $0x94] sm:$0xf] }
 0x190   : > { %2515 = vst.msk [vmem:[#allocation2 + $0x58] sm:$0xff] %vm299_vm6, %v8375_v7  ;;  %v7438_v42 = vrot.slane %v7436_v1, 4  ;;  %v4584_v43 = vrot.slane %v4582_v38, 4  ;;  %v4585_v44 = vshll.u32 %v8669_v55, 16  ;;  %v4591_v17 = vshll.u32 %v8670_v10, 16  ;;  %9302 = vmatprep.subr.msk.bf16.mxu0 %vm1662_vm10, %v1621_v58 }
 0x191   : > { %2838 = vst.msk [vmem:[#allocation2 + $0x58] sm:$0xff] %vm847_vm7, %v10519_v35  ;;  %v2151_v37 = vsel %vm9532_vm2, %v2146_v29, %v2150_v16  ;;  %7605 = vrot.lane.b32.xlu1 %v9125_v30, %s9480_s19  ;;  %v4595_v9 = vshrl.u32 %v8670_v10, 16  ;;  %v4601_v62 = vshll.u32 %v8671_v14, 16  ;;  %v4390_v35 = vshrl.u32 %v8645_v27, 16  ;;  %v4930_v51 = vpop.permute.xlu0 %4929  ;;  %v5490_v6 = vpop.permute.xlu1 %5489  ;;  %v8647_v16 = vld [vmem:[%s9520_s16 + $0x38] sm:$0x1] }
 0x192   : > { %3382 = vst.msk [vmem:[#allocation2 + $0x58] sm:$0xff] %vm1028_vm8, %v10539_v13  ;;  %v8367_v28 = vcombine.low %v2141_v22, %v2151_v37  ;;  %v7440_v52 = vsel %vm9822_vm5, %v7438_v42, %v7439_v24  ;;  %v4587_v55 = vrot.slane %v4585_v44, 5  ;;  %v4593_v46 = vrot.slane %v4591_v17, 5  ;;  %4977 = vst.msk [vmem:[#allocation2] sm:$0xff] %vm1028_vm8, %v4930_v51  ;;  %v2020_v17 = vld [vmem:[%s9520_s16 + $0x30] sm:$0xf] }
 0x193   : > { %3702 = vst.msk [vmem:[#allocation2 + $0x58] sm:$0xff] %vm1573_vm9, %v10554_v54  ;;  %5529 = vst.msk [vmem:[#allocation2 + $0x40] sm:$0xff] %vm1573_vm9, %v5490_v6  ;;  %v9117_v13 = vcombine.low %v7437_v63, %v7440_v52  ;;  %v4597_v34 = vrot.slane %v4595_v9, 4  ;;  %v4603_v32 = vrot.slane %v4601_v62, 5  ;;  %v4392_v58 = vrot.slane %v4390_v35, 4  ;;  %v9408_v62 = vld [vmem:[%s9520_s16 + $0x78] sm:$0xff]  }
 0x194   : > { %2507 = vst.msk [vmem:[#allocation2 + $0x18] sm:$0xff] %vm299_vm6, %v8367_v28  ;;  %v4588_v7 = vor.u32 %v4587_v55, %v4584_v43  ;;  %v4393_v19 = vshll.u32 %v8645_v27, 16  ;;  %v4399_v8 = vshll.u32 %v8646_v49, 16  ;;  %v4403_v1 = vshrl.u32 %v8646_v49, 16  ;;  %v2021_v37 = vld [vmem:[%s9520_s16 + $0x34] sm:$0xf] }
 0x195   : > { %2830 = vst.msk [vmem:[#allocation2 + $0x18] sm:$0xff] %vm847_vm7, %v10535_v59  ;;  %7589 = vrot.lane.b32.xlu0 %v9117_v13, %s9480_s19  ;;  %v4598_v54 = vor.u32 %v4597_v34, %v4593_v46  ;;  %v4409_v10 = vshll.u32 %v8647_v16, 16  ;;  %v1709_v14 = vsel %vm1662_vm10, %v1613_v57, 0  ;;  %v2345_v15 = vshrl.u32 %v2044_v56, 16  ;;  %v5474_v53 = vpop.permute.xlu0 %5473  ;;  %v2046_v59 = vld [vmem:[%s9520_s16 + $0x98] sm:$0x1]  ;;  %v10817_v9 = vpop.permute.xlu1 %2809 }
 0x196   : > { %3374 = vst.msk [vmem:[#allocation2 + $0x18] sm:$0xff] %vm1028_vm8, %v10552_v39  ;;  %v4589_v24 = vrot.slane %v4588_v7, 4  ;;  %v4395_v4 = vrot.slane %v4393_v19, 5  ;;  %v4401_v38 = vrot.slane %v4399_v8, 5  ;;  %v4405_v27 = vrot.slane %v4403_v1, 4  ;;  %v10823_v6 = vld [vmem:[#allocation2 + $0x48] sm:$0xff] }
 0x197   : > { %5521 = vst.msk [vmem:[#allocation2] sm:$0xff] %vm1573_vm9, %v5474_v53  ;;  %v4599_v22 = vrot.slane %v4598_v54, 4  ;;  %v4411_v29 = vrot.slane %v4409_v10, 5  ;;  %3694 = vst.msk [vmem:[#allocation2 + $0x18] sm:$0xff] %vm1573_vm9, %v10568_v5  ;;  %9182 = vmatpush3.bf16.xpose.msra.mxu0 %v1709_v14  ;;  %v2347_v30 = vrot.slane %v2345_v15, 4  ;;  %v2348_v39 = vshll.u32 %v2044_v56, 16 }
 0x198   : > { %v4594_v63 = vsel %vm9532_vm2, %v4589_v24, %v4593_v46  ;;  %v4396_v42 = vor.u32 %v4395_v4, %v4392_v58  ;;  %v4406_v43 = vor.u32 %v4405_v27, %v4401_v38  ;;  %v2354_v44 = vshll.u32 %v2045_v12, 16  ;;  %v2022_v51 = vld [vmem:[%s9520_s16 + $0x38] sm:$0x1]  ;;  %v9393_v16 = vld [vmem:[%s9520_s16 + $0x9c] sm:$0xff]   ;;  %v10828_v34 = vld [vmem:[#allocation2 + $0x8] sm:$0xff]  ;;  %4262 = vst.msk [vmem:[#allocation2 + $0x48] sm:$0xff] %vm299_vm6, %v9408_v62 }
 0x199   : > { %v4604_v5 = vsel %vm9532_vm2, %v4599_v22, %v4603_v32  ;;  %v2350_v49 = vrot.slane %v2348_v39, 5  ;;  %v2358_v35 = vshrl.u32 %v2045_v12, 16  ;;  %v2364_v57 = vshll.u32 %v2046_v59, 16  ;;  %v9409_v28 = vld [vmem:[%s9520_s16 + $0x18] sm:$0xff]   ;;  %v8782_v8 = vld [vmem:[%s9520_s16 + $0xa0] sm:$0xf]  ;;  %v10837_v54 = vpop.permute.xlu0 %2793 }
 0x19a   : > { %v8695_v52 = vcombine.low %v4594_v63, %v4604_v5  ;;  %v4397_v55 = vrot.slane %v4396_v42, 4  ;;  %v4407_v46 = vrot.slane %v4406_v43, 4  ;;  %v2356_v56 = vrot.slane %v2354_v44, 5  ;;  %v8781_v13 = vld [vmem:[%s9520_s16 + $0x9c] sm:$0xf]  ;;  %v10835_v1 = vld [vmem:[%s12639_s1 + $0x8] sm:$0xff]  }
 0x19b   : > { %v2351_v58 = vor.u32 %v2350_v49, %v2347_v30  ;;  %v2360_v32 = vrot.slane %v2358_v35, 4  ;;  %v2366_v7 = vrot.slane %v2364_v57, 5  ;;  %v2153_v19 = vshrl.u32 %v2020_v17, 16  ;;  %4254 = vst.msk [vmem:[#allocation2 + $0x8] sm:$0xff] %vm299_vm6, %v9409_v28  ;;  %v9451_v63 = vld [vmem:[%s12639_s1] sm:$0xff]  }
 0x19c   : > { %4771 = vrot.lane.b32.xlu1 %v8695_v52, %s9478_s17  ;;  %v4402_v10 = vsel %vm9532_vm2, %v4397_v55, %v4401_v38  ;;  %v4412_v14 = vsel %vm9532_vm2, %v4407_v46, %v4411_v29  ;;  %v2156_v12 = vshll.u32 %v2020_v17, 16  ;;  %v2162_v15 = vshll.u32 %v2021_v37, 16  ;;  %v10849_v38 = vpop.permute.xlu1 %3353  ;;  %v9394_v29 = vld [vmem:[%s9520_s16 + $0x3c] sm:$0xff]   ;;  %v8783_v44 = vld [vmem:[%s9520_s16 + $0xa4] sm:$0x1] }
 0x19d   : > { %v8687_v53 = vcombine.low %v4402_v10, %v4412_v14  ;;  %v2352_v24 = vrot.slane %v2351_v58, 4  ;;  %v2361_v4 = vor.u32 %v2360_v32, %v2356_v56  ;;  %v2155_v27 = vrot.slane %v2153_v19, 4  ;;  %v8757_v57 = vld [vmem:[%s9520_s16 + $0x3c] sm:$0xf]  ;;  %v8758_v46 = vld [vmem:[%s9520_s16 + $0x40] sm:$0xf] }
 0x19e   : > { %v2158_v59 = vrot.slane %v2156_v12, 5  ;;  %v2164_v22 = vrot.slane %v2162_v15, 5  ;;  %v2166_v30 = vshrl.u32 %v2021_v37, 16  ;;  %v2172_v39 = vshll.u32 %v2022_v51, 16  ;;  %9184 = vmatmul.mubr.msk.bf16.vlgmr.msra.gmra.mrb[0].mxu0 %vm1662_vm10, %v9451_v63  ;;  %v8759_v19 = vld [vmem:[%s9520_s16 + $0x44] sm:$0x1] }
 0x19f   : > { %4755 = vrot.lane.b32.xlu0 %v8687_v53, %s9478_s17  ;;  %v2357_v42 = vsel %vm9532_vm2, %v2352_v24, %v2356_v56  ;;  %v2362_v43 = vrot.slane %v2361_v4, 4  ;;  %v5306_v17 = vshrl.u32 %v8781_v13, 16  ;;  %v5309_v37 = vshll.u32 %v8781_v13, 16  ;;  %9185 = vmatprep.mubr.msk.bf16.mxu0 %vm1662_vm10, %v10835_v1  ;;  %v8938_v15 = vld [vmem:[%s9520_s16 + $0x84] sm:$0xe] }
 0x1a0   : > { %4951 = vrot.lane.b32.xlu1 %v9393_v16, %s9479_s18  ;;  %v2159_v62 = vor.u32 %v2158_v59, %v2155_v27  ;;  %v2168_v5 = vrot.slane %v2166_v30, 4  ;;  %v2174_v49 = vrot.slane %v2172_v39, 5  ;;  %v5315_v35 = vshll.u32 %v8782_v8, 16  ;;  %v10863_v56 = vpop.permute.xlu0 %3337  ;;  %v8939_v53 = vld [vmem:[%s9520_s16 + $0x88] sm:$0xf]  ;;  %v10877_v30 = vpop.permute.xlu1 %3673 }
 0x1a1   : > { %v2367_v51 = vsel %vm9532_vm2, %v2362_v43, %v2366_v7  ;;  %v5308_v28 = vrot.slane %v5306_v17, 4  ;;  %v5311_v52 = vrot.slane %v5309_v37, 5  ;;  %v5319_v55 = vshrl.u32 %v8782_v8, 16  ;;  %v10872_v8 = vld [vmem:[%s12639_s1 + $0x10] sm:$0xff]   ;;  %v8940_v43 = vld [vmem:[%s9520_s16 + $0x8c] sm:$0x1] }
 0x1a2   : > { %v8376_v13 = vcombine.low %v2357_v42, %v2367_v51  ;;  %v2160_v58 = vrot.slane %v2159_v62, 4  ;;  %v2169_v16 = vor.u32 %v2168_v5, %v2164_v22  ;;  %v5317_v32 = vrot.slane %v5315_v35, 5  ;;  %v8914_v62 = vld [vmem:[%s9520_s16 + $0x24] sm:$0xe]  ;;  %v8915_v51 = vld [vmem:[%s9520_s16 + $0x28] sm:$0xf] }
 0x1a3   : > { %4935 = vrot.lane.b32.xlu0 %v9394_v29, %s9479_s18  ;;  %v5312_v10 = vor.u32 %v5311_v52, %v5308_v28  ;;  %v5321_v14 = vrot.slane %v5319_v55, 4  ;;  %v5325_v12 = vshll.u32 %v8783_v44, 16  ;;  %v5114_v7 = vshrl.u32 %v8757_v57, 16 }
 0x1a4   : > { %2516 = vst.msk [vmem:[#allocation2 + $0x60] sm:$0xff] %vm299_vm6, %v8376_v13  ;;  %v2165_v24 = vsel %vm9532_vm2, %v2160_v58, %v2164_v22  ;;  %v2170_v4 = vrot.slane %v2169_v16, 4  ;;  %v5117_v27 = vshll.u32 %v8757_v57, 16  ;;  %v5123_v59 = vshll.u32 %v8758_v46, 16  ;;  %v5562_v13 = vld [vmem:[#allocation2 + $0x40] sm:$0xff] }
 0x1a5   : > { %2839 = vst.msk [vmem:[#allocation2 + $0x60] sm:$0xff] %vm847_vm7, %v10572_v18  ;;  %v5313_v39 = vrot.slane %v5312_v10, 4  ;;  %v5322_v63 = vor.u32 %v5321_v14, %v5317_v32  ;;  %v5327_v29 = vrot.slane %v5325_v12, 5  ;;  %v5116_v42 = vrot.slane %v5114_v7, 4  ;;  %9311 = vmatprep.subr.msk.bf16.mxu0 %vm1662_vm10, %v5562_v13 }
 0x1a6   : > { %v2175_v44 = vsel %vm9532_vm2, %v2170_v4, %v2174_v49  ;;  %v5119_v22 = vrot.slane %v5117_v27, 5  ;;  %v5125_v17 = vrot.slane %v5123_v59, 5  ;;  %v5127_v37 = vshrl.u32 %v8758_v46, 16  ;;  %3383 = vst.msk [vmem:[#allocation2 + $0x60] sm:$0xff] %vm1028_vm8, %v10598_v3  ;;  %9186 = vmatmul.mubr.msk.bf16.gmra.mrb[4].mxu0 %vm1662_vm10, %v10835_v1  ;;  %v8916_v49 = vld [vmem:[%s9520_s16 + $0x2c] sm:$0x1]  ;;  %v10897_v3 = vpop.permute.xlu0 %3657 }
 0x1a7   : > { %v8368_v18 = vcombine.low %v2165_v24, %v2175_v44  ;;  %v5318_v5 = vsel %vm9532_vm2, %v5313_v39, %v5317_v32  ;;  %v5323_v35 = vrot.slane %v5322_v63, 4  ;;  %v5133_v57 = vshll.u32 %v8759_v19, 16  ;;  %3703 = vst.msk [vmem:[#allocation2 + $0x60] sm:$0xff] %vm1573_vm9, %v10616_v33  ;;  %9187 = vmatprep.mubr.msk.bf16.mxu0 %vm1662_vm10, %v10872_v8  ;;  %v9018_v46 = vld [vmem:[%s9520_s16 + $0x90] sm:$0xf] }
 0x1a8   : > { %v5120_v28 = vor.u32 %v5119_v22, %v5116_v42  ;;  %v5129_v52 = vrot.slane %v5127_v37, 4  ;;  %v8966_v1 = vrot.slane %v8938_v15, 9  ;;  %v6635_v55 = vrot.slane %v8939_v53, 5  ;;  %v9019_v19 = vld [vmem:[%s9520_s16 + $0x94] sm:$0xf]  ;;  %v10913_v53 = vld [vmem:[%s12639_s1 + $0x18] sm:$0xff]  }
 0x1a9   : > { %2508 = vst.msk [vmem:[#allocation2 + $0x20] sm:$0xff] %vm299_vm6, %v8368_v18  ;;  %v5328_v58 = vsel %vm9532_vm2, %v5323_v35, %v5327_v29  ;;  %v5135_v16 = vrot.slane %v5133_v57, 5  ;;  %v6638_v32 = vrot.slane %v8940_v43, 5  ;;  %v8958_v33 = vrot.slane %v8914_v62, 9  ;;  %v9020_v15 = vld [vmem:[%s9520_s16 + $0x98] sm:$0x1]  ;;  %v4768_v24 = vpop.permute.xlu1 %4767 }
 0x1aa   : > { %2831 = vst.msk [vmem:[#allocation2 + $0x20] sm:$0xff] %vm847_vm7, %v10583_v47  ;;  %v8807_v10 = vcombine.low %v5318_v5, %v5328_v58  ;;  %v5121_v14 = vrot.slane %v5120_v28, 4  ;;  %v5130_v12 = vor.u32 %v5129_v52, %v5125_v17  ;;  %v6636_v7 = vsel %vm9822_vm5, %v8966_v1, %v6635_v55  ;;  %4806 = vst.msk [vmem:[#allocation2 + $0x48] sm:$0xff] %vm847_vm7, %v4768_v24  ;;  %v8994_v37 = vld [vmem:[%s9520_s16 + $0x30] sm:$0xf] }
 0x1ab   : > { %3375 = vst.msk [vmem:[#allocation2 + $0x20] sm:$0xff] %vm1028_vm8, %v10612_v25  ;;  %v6637_v4 = vrot.slane %v6635_v55, 4  ;;  %v6579_v27 = vrot.slane %v8915_v51, 5  ;;  %v6582_v47 = vrot.slane %v8916_v49, 5  ;;  %v7076_v59 = vshrl.u32 %v9018_v46, 16 }
 0x1ac   : > { %5495 = vrot.lane.b32.xlu1 %v8807_v10, %s9480_s19  ;;  %v5126_v39 = vsel %vm9532_vm2, %v5121_v14, %v5125_v17  ;;  %v5131_v63 = vrot.slane %v5130_v12, 4  ;;  %3695 = vst.msk [vmem:[#allocation2 + $0x20] sm:$0xff] %vm1573_vm9, %v10627_v31  ;;  %v7079_v29 = vshll.u32 %v9018_v46, 16  ;;  %v7085_v42 = vshll.u32 %v9019_v19, 16  ;;  %v8995_v31 = vld [vmem:[%s9520_s16 + $0x34] sm:$0xf] }
 0x1ad   : > { %v6639_v25 = vsel %vm9822_vm5, %v6637_v4, %v6638_v32  ;;  %v6580_v43 = vsel %vm9822_vm5, %v8958_v33, %v6579_v27  ;;  %v6581_v44 = vrot.slane %v6579_v27, 4  ;;  %v7078_v22 = vrot.slane %v7076_v59, 4  ;;  %v4752_v62 = vpop.permute.xlu0 %4751  ;;  %v4948_v57 = vpop.permute.xlu1 %4947  ;;  %v8996_v1 = vld [vmem:[%s9520_s16 + $0x38] sm:$0x1]  ;;  %v2047_v58 = vld [vmem:[%s9520_s16 + $0x9c] sm:$0xf] }
 0x1ae   : > { %v5136_v17 = vsel %vm9532_vm2, %v5131_v63, %v5135_v16  ;;  %v8982_v18 = vcombine.low %v6636_v7, %v6639_v25  ;;  %v7081_v5 = vrot.slane %v7079_v29, 5  ;;  %v7087_v35 = vrot.slane %v7085_v42, 5  ;;  %9188 = vmatmul.mubr.msk.bf16.gmra.mrb[8].mxu0 %vm1662_vm10, %v10872_v8  ;;  %4798 = vst.msk [vmem:[#allocation2 + $0x8] sm:$0xff] %vm847_vm7, %v4752_v62  ;;  %v2048_v24 = vld [vmem:[%s9520_s16 + $0xa0] sm:$0xf] }
 0x1af   : > { %v8799_v51 = vcombine.low %v5126_v39, %v5136_v17  ;;  %v6583_v49 = vsel %vm9822_vm5, %v6581_v44, %v6582_v47  ;;  %v7089_v28 = vshrl.u32 %v9019_v19, 16  ;;  %v7095_v52 = vshll.u32 %v9020_v15, 16  ;;  %9189 = vmatprep.mubr.msk.bf16.mxu0 %vm1662_vm10, %v10913_v53  ;;  %4986 = vst.msk [vmem:[#allocation2 + $0x48] sm:$0xff] %vm1028_vm8, %v4948_v57  ;;  %v2049_v59 = vld [vmem:[%s9520_s16 + $0xa4] sm:$0x1] }
 0x1b0   : > { %6743 = vrot.lane.b32.xlu1 %v8982_v18, %s9478_s17  ;;  %v8974_v55 = vcombine.low %v6580_v43, %v6583_v49  ;;  %v7082_v8 = vor.u32 %v7081_v5, %v7078_v22  ;;  %v6884_v46 = vshrl.u32 %v8994_v37, 16  ;;  %v6887_v13 = vshll.u32 %v8994_v37, 16  ;;  %v10949_v63 = vld [vmem:[%s12639_s1 + $0x20] sm:$0xff]   ;;  %v2023_v44 = vld [vmem:[%s9520_s16 + $0x3c] sm:$0xf] }
 0x1b1   : > { %5479 = vrot.lane.b32.xlu0 %v8799_v51, %s9480_s19  ;;  %v7091_v16 = vrot.slane %v7089_v28, 4  ;;  %v7097_v32 = vrot.slane %v7095_v52, 5  ;;  %v6893_v33 = vshll.u32 %v8995_v31, 16  ;;  %v6897_v19 = vshrl.u32 %v8995_v31, 16  ;;  %v4932_v10 = vpop.permute.xlu0 %4931  ;;  %v2024_v51 = vld [vmem:[%s9520_s16 + $0x40] sm:$0xf] }
 0x1b2   : > { %v7083_v14 = vrot.slane %v7082_v8, 4  ;;  %v6886_v12 = vrot.slane %v6884_v46, 4  ;;  %v6889_v7 = vrot.slane %v6887_v13, 5  ;;  %v6903_v15 = vshll.u32 %v8996_v1, 16  ;;  %4978 = vst.msk [vmem:[#allocation2 + $0x8] sm:$0xff] %vm1028_vm8, %v4932_v10 }
 0x1b3   : > { %v7092_v4 = vor.u32 %v7091_v16, %v7087_v35  ;;  %v6895_v27 = vrot.slane %v6893_v33, 5  ;;  %v6899_v47 = vrot.slane %v6897_v19, 4  ;;  %v2369_v39 = vshrl.u32 %v2047_v58, 16  ;;  %v2025_v1 = vld [vmem:[%s9520_s16 + $0x44] sm:$0x1] }
 0x1b4   : > { %v7088_v29 = vsel %vm9532_vm2, %v7083_v14, %v7087_v35  ;;  %v6890_v42 = vor.u32 %v6889_v7, %v6886_v12  ;;  %v6905_v25 = vrot.slane %v6903_v15, 5  ;;  %v2372_v43 = vshll.u32 %v2047_v58, 16  ;;  %v9082_v58 = vld [vmem:[%s9520_s16 + $0x90] sm:$0xe]  ;;  %v9083_v16 = vld [vmem:[%s9520_s16 + $0x94] sm:$0xf] }
 0x1b5   : > { %6727 = vrot.lane.b32.xlu0 %v8974_v55, %s9478_s17  ;;  %v7093_v22 = vrot.slane %v7092_v4, 4  ;;  %v6900_v37 = vor.u32 %v6899_v47, %v6895_v27  ;;  %v2371_v62 = vrot.slane %v2369_v39, 4  ;;  %v2378_v17 = vshll.u32 %v2048_v24, 16  ;;  %v5492_v35 = vpop.permute.xlu1 %5491  ;;  %v9084_v14 = vld [vmem:[%s9520_s16 + $0x98] sm:$0x1] }
 0x1b6   : > { %v6891_v18 = vrot.slane %v6890_v42, 4  ;;  %v2374_v5 = vrot.slane %v2372_v43, 5  ;;  %v2382_v31 = vshrl.u32 %v2048_v24, 16  ;;  %v2388_v57 = vshll.u32 %v2049_v59, 16  ;;  %9190 = vmatmul.mubr.msk.bf16.gmra.mrb[12].mxu0 %vm1662_vm10, %v10913_v53  ;;  %5530 = vst.msk [vmem:[#allocation2 + $0x48] sm:$0xff] %vm1573_vm9, %v5492_v35  ;;  %v10979_v43 = vld [vmem:[%s12639_s1 + $0x28] sm:$0xff]  }
 0x1b7   : > { %v7098_v49 = vsel %vm9532_vm2, %v7093_v22, %v7097_v32  ;;  %v6901_v28 = vrot.slane %v6900_v37, 4  ;;  %v2380_v52 = vrot.slane %v2378_v17, 5  ;;  %v2177_v55 = vshrl.u32 %v2023_v44, 16  ;;  %9191 = vmatprep.mubr.msk.bf16.mxu0 %vm1662_vm10, %v10949_v63  ;;  %v9059_v47 = vld [vmem:[%s9520_s16 + $0x34] sm:$0xf] }
 0x1b8   : > { %v9046_v8 = vcombine.low %v7088_v29, %v7098_v49  ;;  %v6896_v46 = vsel %vm9532_vm2, %v6891_v18, %v6895_v27  ;;  %v2375_v53 = vor.u32 %v2374_v5, %v2371_v62  ;;  %v2384_v13 = vrot.slane %v2382_v31, 4  ;;  %v9058_v27 = vld [vmem:[%s9520_s16 + $0x30] sm:$0xe]  ;;  %v8672_v17 = vld [vmem:[%s9520_s16 + $0x9c] sm:$0xf] }
 0x1b9   : > { %v6906_v32 = vsel %vm9532_vm2, %v6901_v28, %v6905_v25  ;;  %v2390_v33 = vrot.slane %v2388_v57, 5  ;;  %v2179_v19 = vrot.slane %v2177_v55, 4  ;;  %v2180_v10 = vshll.u32 %v2023_v44, 16  ;;  %v5476_v12 = vpop.permute.xlu0 %5475  ;;  %v9060_v25 = vld [vmem:[%s9520_s16 + $0x38] sm:$0x1] }
 0x1ba   : > { %7287 = vrot.lane.b32.xlu1 %v9046_v8, %s9479_s18  ;;  %v9038_v7 = vcombine.low %v6896_v46, %v6906_v32  ;;  %v2376_v15 = vrot.slane %v2375_v53, 4  ;;  %v2385_v24 = vor.u32 %v2384_v13, %v2380_v52  ;;  %v2186_v4 = vshll.u32 %v2024_v51, 16  ;;  %5522 = vst.msk [vmem:[#allocation2 + $0x8] sm:$0xff] %vm1573_vm9, %v5476_v12  ;;  %v8674_v55 = vld [vmem:[%s9520_s16 + $0xa4] sm:$0x1] }
 0x1bb   : > { %v2182_v59 = vrot.slane %v2180_v10, 5  ;;  %v2190_v39 = vshrl.u32 %v2024_v51, 16  ;;  %v2196_v29 = vshll.u32 %v2025_v1, 16  ;;  %v9110_v42 = vrot.slane %v9082_v58, 9  ;;  %v8673_v51 = vld [vmem:[%s9520_s16 + $0xa0] sm:$0xf] }
 0x1bc   : > { %7271 = vrot.lane.b32.xlu0 %v9038_v7, %s9479_s18  ;;  %v2381_v44 = vsel %vm9532_vm2, %v2376_v15, %v2380_v52  ;;  %v2386_v22 = vrot.slane %v2385_v24, 4  ;;  %v2188_v37 = vrot.slane %v2186_v4, 5  ;;  %v7499_v62 = vrot.slane %v9083_v16, 5  ;;  %v10992_v8 = vld [vmem:[%s9520_s16 + $0x3c] sm:$0xf]  ;;  %v9413_v12 = vld [vmem:[%s9520_s16 + $0x84] sm:$0xff]  }
 0x1bd   : > { %v2183_v18 = vor.u32 %v2182_v59, %v2179_v19  ;;  %v2192_v5 = vrot.slane %v2190_v39, 4  ;;  %v2198_v31 = vrot.slane %v2196_v29, 5  ;;  %v7502_v57 = vrot.slane %v9084_v14, 5  ;;  %v9414_v7 = vld [vmem:[%s9520_s16 + $0x24] sm:$0xff]   ;;  %v11011_v59 = vld [vmem:[#allocation2 + $0x10] sm:$0xff] }
 0x1be   : > { %v2391_v35 = vsel %vm9532_vm2, %v2386_v22, %v2390_v33  ;;  %v7500_v49 = vsel %vm9822_vm5, %v9110_v42, %v7499_v62  ;;  %v7501_v28 = vrot.slane %v7499_v62, 4  ;;  %v9102_v1 = vrot.slane %v9058_v27, 9  ;;  %9192 = vmatmul.mubr.msk.bf16.gmra.mrb[16].mxu0 %vm1662_vm10, %v10949_v63  ;;  %v8649_v42 = vld [vmem:[%s9520_s16 + $0x40] sm:$0xf]  ;;  %4255 = vst.msk [vmem:[#allocation2 + $0x10] sm:$0xff] %vm299_vm6, %v9414_v7 }
 0x1bf   : > { %v8377_v52 = vcombine.low %v2381_v44, %v2391_v35  ;;  %v2184_v46 = vrot.slane %v2183_v18, 4  ;;  %v2193_v53 = vor.u32 %v2192_v5, %v2188_v37  ;;  %v7443_v13 = vrot.slane %v9059_v47, 5  ;;  %9193 = vmatprep.mubr.msk.bf16.mxu0 %vm1662_vm10, %v10979_v43  ;;  %v11009_v47 = vld [vmem:[#allocation2 + $0x50] sm:$0xff]  ;;  %v2050_v18 = vld [vmem:[%s9520_s16 + $0xa8] sm:$0xf] }
 0x1c0   : > { %v7503_v58 = vsel %vm9822_vm5, %v7501_v28, %v7502_v57  ;;  %v7446_v16 = vrot.slane %v9060_v25, 5  ;;  %v4606_v32 = vshrl.u32 %v8672_v17, 16  ;;  %v4609_v33 = vshll.u32 %v8672_v17, 16  ;;  %v11023_v44 = vld [vmem:[%s12639_s1 + $0x30] sm:$0xff]   ;;  %4263 = vst.msk [vmem:[#allocation2 + $0x50] sm:$0xff] %vm299_vm6, %v9413_v12 }
 0x1c1   : > { %2517 = vst.msk [vmem:[#allocation2 + $0x68] sm:$0xff] %vm299_vm6, %v8377_v52  ;;  %v2189_v19 = vsel %vm9532_vm2, %v2184_v46, %v2188_v37  ;;  %v2194_v63 = vrot.slane %v2193_v53, 4  ;;  %v9126_v10 = vcombine.low %v7500_v49, %v7503_v58  ;;  %v7444_v14 = vsel %vm9822_vm5, %v9102_v1, %v7443_v13  ;;  %v8650_v17 = vld [vmem:[%s9520_s16 + $0x44] sm:$0x1]  ;;  %v2052_v46 = vld [vmem:[%s9520_s16 + $0xb0] sm:$0x1] }
 0x1c2   : > { %2840 = vst.msk [vmem:[#allocation2 + $0x68] sm:$0xff] %vm847_vm7, %v10635_v48  ;;  %v7445_v15 = vrot.slane %v7443_v13, 4  ;;  %v4608_v24 = vrot.slane %v4606_v32, 4  ;;  %v4611_v4 = vrot.slane %v4609_v33, 5  ;;  %v4615_v27 = vshll.u32 %v8673_v51, 16 }
 0x1c3   : > { %v2199_v39 = vsel %vm9532_vm2, %v2194_v63, %v2198_v31  ;;  %7607 = vrot.lane.b32.xlu1 %v9126_v10, %s9480_s19  ;;  %3384 = vst.msk [vmem:[#allocation2 + $0x68] sm:$0xff] %vm1028_vm8, %v10650_v40  ;;  %v4619_v29 = vshrl.u32 %v8673_v51, 16  ;;  %v4625_v48 = vshll.u32 %v8674_v55, 16  ;;  %v4414_v25 = vshrl.u32 %v10992_v8, 16  ;;  %v2051_v55 = vld [vmem:[%s9520_s16 + $0xac] sm:$0xf] }
 0x1c4   : > { %v8369_v22 = vcombine.low %v2189_v19, %v2199_v39  ;;  %v7447_v37 = vsel %vm9822_vm5, %v7445_v15, %v7446_v16  ;;  %v4612_v40 = vor.u32 %v4611_v4, %v4608_v24  ;;  %v4617_v62 = vrot.slane %v4615_v27, 5  ;;  %3704 = vst.msk [vmem:[#allocation2 + $0x68] sm:$0xff] %vm1573_vm9, %v10671_v41  ;;  %v2026_v16 = vld [vmem:[%s9520_s16 + $0x48] sm:$0xf]  ;;  %v2027_v7 = vld [vmem:[%s9520_s16 + $0x4c] sm:$0xf]  ;;  %v11052_v15 = vpop.permute.xlu1 %6739 }
 0x1c5   : > { %v9118_v5 = vcombine.low %v7444_v14, %v7447_v37  ;;  %v4621_v31 = vrot.slane %v4619_v29, 4  ;;  %v4627_v57 = vrot.slane %v4625_v48, 5  ;;  %v4416_v51 = vrot.slane %v4414_v25, 4  ;;  %v2028_v39 = vld [vmem:[%s9520_s16 + $0x50] sm:$0x1]  ;;  %v9397_v37 = vld [vmem:[%s9520_s16 + $0xa8] sm:$0xff]  }
 0x1c6   : > { %2509 = vst.msk [vmem:[#allocation2 + $0x28] sm:$0xff] %vm299_vm6, %v8369_v22  ;;  %v4613_v35 = vrot.slane %v4612_v40, 4  ;;  %v4417_v49 = vshll.u32 %v10992_v8, 16  ;;  %v4423_v28 = vshll.u32 %v8649_v42, 16  ;;  %v4427_v1 = vshrl.u32 %v8649_v42, 16  ;;  %9194 = vmatmul.mubr.msk.bf16.gmra.mrb[20].mxu0 %vm1662_vm10, %v10979_v43 }
 0x1c7   : > { %2832 = vst.msk [vmem:[#allocation2 + $0x28] sm:$0xff] %vm847_vm7, %v10647_v36  ;;  %7591 = vrot.lane.b32.xlu0 %v9118_v5, %s9480_s19  ;;  %v4622_v41 = vor.u32 %v4621_v31, %v4617_v62  ;;  %v4433_v52 = vshll.u32 %v8650_v17, 16  ;;  %v2393_v53 = vshrl.u32 %v2050_v18, 16  ;;  %v2396_v13 = vshll.u32 %v2050_v18, 16  ;;  %9195 = vmatprep.mubr.msk.bf16.mxu0 %vm1662_vm10, %v11023_v44  ;;  %v8784_v48 = vld [vmem:[%s9520_s16 + $0xa8] sm:$0xf] }
 0x1c8   : > { %3376 = vst.msk [vmem:[#allocation2 + $0x28] sm:$0xff] %vm1028_vm8, %v10664_v60  ;;  %v4618_v43 = vsel %vm9532_vm2, %v4613_v35, %v4617_v62  ;;  %v4419_v8 = vrot.slane %v4417_v49, 5  ;;  %v4425_v58 = vrot.slane %v4423_v28, 5  ;;  %v4429_v36 = vrot.slane %v4427_v1, 4  ;;  %v8785_v31 = vld [vmem:[%s9520_s16 + $0xac] sm:$0xf] }
 0x1c9   : > { %v4623_v32 = vrot.slane %v4622_v41, 4  ;;  %v4435_v33 = vrot.slane %v4433_v52, 5  ;;  %3696 = vst.msk [vmem:[#allocation2 + $0x28] sm:$0xff] %vm1573_vm9, %v10690_v0  ;;  %v2395_v19 = vrot.slane %v2393_v53, 4  ;;  %v2398_v63 = vrot.slane %v2396_v13, 5  ;;  %v11061_v0 = vld [vmem:[%s12639_s1 + $0x38] sm:$0xff]  }
 0x1ca   : > { %v4420_v10 = vor.u32 %v4419_v8, %v4416_v51  ;;  %v4430_v14 = vor.u32 %v4429_v36, %v4425_v58  ;;  %v2402_v60 = vshll.u32 %v2051_v55, 16  ;;  %v2406_v12 = vshrl.u32 %v2051_v55, 16 }
 0x1cb   : > { %v4628_v24 = vsel %vm9532_vm2, %v4623_v32, %v4627_v57  ;;  %v2399_v4 = vor.u32 %v2398_v63, %v2395_v19  ;;  %v2412_v27 = vshll.u32 %v2052_v46, 16  ;;  %v2201_v29 = vshrl.u32 %v2026_v16, 16  ;;  %v11065_v57 = vpop.permute.xlu0 %6723  ;;  %v9398_v46 = vld [vmem:[%s9520_s16 + $0x48] sm:$0xff]  }
 0x1cc   : > { %v8696_v42 = vcombine.low %v4618_v43, %v4628_v24  ;;  %v4421_v25 = vrot.slane %v4420_v10, 4  ;;  %v4431_v22 = vrot.slane %v4430_v14, 4  ;;  %v2404_v40 = vrot.slane %v2402_v60, 5  ;;  %v8760_v60 = vld [vmem:[%s9520_s16 + $0x48] sm:$0xf] }
 0x1cd   : > { %v2400_v62 = vrot.slane %v2399_v4, 4  ;;  %v2408_v17 = vrot.slane %v2406_v12, 4  ;;  %v2414_v18 = vrot.slane %v2412_v27, 5  ;;  %v2203_v5 = vrot.slane %v2201_v29, 4  ;;  %v8761_v27 = vld [vmem:[%s9520_s16 + $0x4c] sm:$0xf] }
 0x1ce   : > { %4773 = vrot.lane.b32.xlu1 %v8696_v42, %s9478_s17  ;;  %v4426_v51 = vsel %vm9532_vm2, %v4421_v25, %v4425_v58  ;;  %v4436_v35 = vsel %vm9532_vm2, %v4431_v22, %v4435_v33  ;;  %v2204_v49 = vshll.u32 %v2026_v16, 16  ;;  %v2210_v28 = vshll.u32 %v2027_v7, 16  ;;  %9196 = vmatmul.mubr.msk.bf16.gmra.mrb[24].mxu0 %vm1662_vm10, %v11023_v44  ;;  %v11079_v58 = vpop.permute.xlu1 %7283  ;;  %v8786_v16 = vld [vmem:[%s9520_s16 + $0xb0] sm:$0x1] }
 0x1cf   : > { %v8688_v1 = vcombine.low %v4426_v51, %v4436_v35  ;;  %v2405_v55 = vsel %vm9532_vm2, %v2400_v62, %v2404_v40  ;;  %v2409_v41 = vor.u32 %v2408_v17, %v2404_v40  ;;  %v2214_v52 = vshrl.u32 %v2027_v7, 16  ;;  %9197 = vmatprep.mubr.msk.bf16.mxu0 %vm1662_vm10, %v11061_v0  ;;  %v8762_v22 = vld [vmem:[%s9520_s16 + $0x50] sm:$0x1] }
 0x1d0   : > { %v2206_v53 = vrot.slane %v2204_v49, 5  ;;  %v2212_v13 = vrot.slane %v2210_v28, 5  ;;  %v2220_v43 = vshll.u32 %v2028_v39, 16  ;;  %v5330_v8 = vshrl.u32 %v8784_v48, 16  ;;  %v11088_v39 = vpop.permute.xlu0 %7267  ;;  %v8943_v28 = vld [vmem:[%s9520_s16 + $0x98] sm:$0x1] }
 0x1d1   : > { %4757 = vrot.lane.b32.xlu0 %v8688_v1, %s9478_s17  ;;  %v2410_v44 = vrot.slane %v2409_v41, 4  ;;  %v2216_v36 = vrot.slane %v2214_v52, 4  ;;  %v5333_v32 = vshll.u32 %v8784_v48, 16  ;;  %v5339_v33 = vshll.u32 %v8785_v31, 16  ;;  %v8917_v1 = vld [vmem:[%s9520_s16 + $0x30] sm:$0xe] }
 0x1d2   : > { %4953 = vrot.lane.b32.xlu1 %v9397_v37, %s9479_s18  ;;  %v2207_v19 = vor.u32 %v2206_v53, %v2203_v5  ;;  %v2222_v63 = vrot.slane %v2220_v43, 5  ;;  %v5332_v10 = vrot.slane %v5330_v8, 4  ;;  %v5343_v14 = vshrl.u32 %v8785_v31, 16  ;;  %v8941_v37 = vld [vmem:[%s9520_s16 + $0x90] sm:$0xe] }
 0x1d3   : > { %v2415_v12 = vsel %vm9532_vm2, %v2410_v44, %v2414_v18  ;;  %v2217_v7 = vor.u32 %v2216_v36, %v2212_v13  ;;  %v5335_v24 = vrot.slane %v5333_v32, 5  ;;  %v5341_v4 = vrot.slane %v5339_v33, 5  ;;  %v8942_v5 = vld [vmem:[%s9520_s16 + $0x94] sm:$0xf] }
 0x1d4   : > { %v8378_v29 = vcombine.low %v2405_v55, %v2415_v12  ;;  %v2208_v48 = vrot.slane %v2207_v19, 4  ;;  %v5345_v42 = vrot.slane %v5343_v14, 4  ;;  %v5349_v25 = vshll.u32 %v8786_v16, 16  ;;  %v11101_v55 = vpop.permute.xlu1 %7603  ;;  %v9021_v16 = vld [vmem:[%s9520_s16 + $0x9c] sm:$0xf] }
 0x1d5   : > { %4937 = vrot.lane.b32.xlu0 %v9398_v46, %s9479_s18  ;;  %v2218_v40 = vrot.slane %v2217_v7, 4  ;;  %v5336_v62 = vor.u32 %v5335_v24, %v5332_v10  ;;  %v5138_v17 = vshrl.u32 %v8760_v60, 16  ;;  %v5141_v18 = vshll.u32 %v8760_v60, 16  ;;  %v9022_v12 = vld [vmem:[%s9520_s16 + $0xa0] sm:$0xf] }
 0x1d6   : > { %2518 = vst.msk [vmem:[#allocation2 + $0x70] sm:$0xff] %vm299_vm6, %v8378_v29  ;;  %v2213_v31 = vsel %vm9532_vm2, %v2208_v48, %v2212_v13  ;;  %v5346_v51 = vor.u32 %v5345_v42, %v5341_v4  ;;  %v5351_v35 = vrot.slane %v5349_v25, 5  ;;  %v5147_v49 = vshll.u32 %v8761_v27, 16  ;;  %9198 = vmatmul.mubr.msk.bf16.gmra.mrb[28].mxu0 %vm1662_vm10, %v11061_v0  ;;  %v8918_v13 = vld [vmem:[%s9520_s16 + $0x34] sm:$0xf] }
 0x1d7   : > { %2841 = vst.msk [vmem:[#allocation2 + $0x70] sm:$0xff] %vm847_vm7, %v10696_v50  ;;  %v2223_v41 = vsel %vm9532_vm2, %v2218_v40, %v2222_v63  ;;  %v5337_v52 = vrot.slane %v5336_v62, 4  ;;  %v5140_v46 = vrot.slane %v5138_v17, 4  ;;  %v5143_v53 = vrot.slane %v5141_v18, 5  ;;  %v8919_v0 = vld [vmem:[%s9520_s16 + $0x38] sm:$0x1]  ;;  %v11116_v63 = vpop.permute.xlu0 %7587 }
 0x1d8   : > { %v8370_v43 = vcombine.low %v2213_v31, %v2223_v41  ;;  %v5347_v8 = vrot.slane %v5346_v51, 4  ;;  %v5149_v44 = vrot.slane %v5147_v49, 5  ;;  %v5151_v36 = vshrl.u32 %v8761_v27, 16  ;;  %3385 = vst.msk [vmem:[#allocation2 + $0x70] sm:$0xff] %vm1028_vm8, %v10730_v2  ;;  %v8997_v17 = vld [vmem:[%s9520_s16 + $0x3c] sm:$0xf] }
 0x1d9   : > { %v5342_v50 = vsel %vm9532_vm2, %v5337_v52, %v5341_v4  ;;  %v5144_v32 = vor.u32 %v5143_v53, %v5140_v46  ;;  %v5157_v33 = vshll.u32 %v8762_v22, 16  ;;  %v8967_v19 = vrot.slane %v8941_v37, 9  ;;  %3705 = vst.msk [vmem:[#allocation2 + $0x70] sm:$0xff] %vm1573_vm9, %v10744_v20  ;;  %v9023_v20 = vld [vmem:[%s9520_s16 + $0xa4] sm:$0x1] }
 0x1da   : > { %2510 = vst.msk [vmem:[#allocation2 + $0x30] sm:$0xff] %vm299_vm6, %v8370_v43  ;;  %v5352_v10 = vsel %vm9532_vm2, %v5347_v8, %v5351_v35  ;;  %v5153_v2 = vrot.slane %v5151_v36, 4  ;;  %v6642_v14 = vrot.slane %v8942_v5, 5  ;;  %v6645_v60 = vrot.slane %v8943_v28, 5  ;;  %v8998_v51 = vld [vmem:[%s9520_s16 + $0x40] sm:$0xf] }
 0x1db   : > { %2833 = vst.msk [vmem:[#allocation2 + $0x30] sm:$0xff] %vm847_vm7, %v10723_v45  ;;  %v8808_v7 = vcombine.low %v5342_v50, %v5352_v10  ;;  %v5145_v24 = vrot.slane %v5144_v32, 4  ;;  %v5159_v4 = vrot.slane %v5157_v33, 5  ;;  %v8959_v27 = vrot.slane %v8917_v1, 9  ;;  %v4770_v22 = vpop.permute.xlu1 %4769  ;;  %v9417_v41 = vld [vmem:[%s12639_s1 + $0x40] sm:$0xff]   ;;  %v9420_v10 = vld [vmem:[%s9520_s16 + $0x30] sm:$0xff]  }
 0x1dc   : > { %v5154_v29 = vor.u32 %v5153_v2, %v5149_v44  ;;  %3377 = vst.msk [vmem:[#allocation2 + $0x30] sm:$0xff] %vm1028_vm8, %v10736_v21  ;;  %v6643_v48 = vsel %vm9822_vm5, %v8967_v19, %v6642_v14  ;;  %v6644_v42 = vrot.slane %v6642_v14, 4  ;;  %v6586_v25 = vrot.slane %v8918_v13, 5  ;;  %v8999_v43 = vld [vmem:[%s9520_s16 + $0x44] sm:$0x1]  ;;  %v11154_v19 = vld [vmem:[#allocation2 + $0x58] sm:$0xff]  ;;  %9215 = vmatprep.mubr.msk.bf16.mxu1 %vm1662_vm10, %v9417_v41 }
 0x1dd   : > { %5497 = vrot.lane.b32.xlu1 %v8808_v7, %s9480_s19  ;;  %v5150_v45 = vsel %vm9532_vm2, %v5145_v24, %v5149_v44  ;;  %v6589_v37 = vrot.slane %v8919_v0, 5  ;;  %3697 = vst.msk [vmem:[#allocation2 + $0x30] sm:$0xff] %vm1573_vm9, %v10758_v23  ;;  %v7100_v40 = vshrl.u32 %v9021_v16, 16  ;;  %v7103_v62 = vshll.u32 %v9021_v16, 16  ;;  %v9419_v44 = vld [vmem:[%s9520_s16 + $0x90] sm:$0xff]   ;;  %v11160_v24 = vld [vmem:[#allocation2 + $0x18] sm:$0xff] }
 0x1de   : > { %4807 = vst.msk [vmem:[#allocation2 + $0x50] sm:$0xff] %vm847_vm7, %v4770_v22  ;;  %v5155_v21 = vrot.slane %v5154_v29, 4  ;;  %v6646_v18 = vsel %vm9822_vm5, %v6644_v42, %v6645_v60  ;;  %v6587_v5 = vsel %vm9822_vm5, %v8959_v27, %v6586_v25  ;;  %v6588_v31 = vrot.slane %v6586_v25, 4  ;;  %v9085_v32 = vld [vmem:[%s9520_s16 + $0x9c] sm:$0xe] }
 0x1df   : > { %v8983_v35 = vcombine.low %v6643_v48, %v6646_v18  ;;  %v7102_v49 = vrot.slane %v7100_v40, 4  ;;  %v7105_v28 = vrot.slane %v7103_v62, 5  ;;  %v7109_v23 = vshll.u32 %v9022_v12, 16  ;;  %v4754_v1 = vpop.permute.xlu0 %4753  ;;  %v4950_v8 = vpop.permute.xlu1 %4949  ;;  %v9086_v33 = vld [vmem:[%s9520_s16 + $0xa0] sm:$0xf]  ;;  %4264 = vst.msk [vmem:[#allocation2 + $0x58] sm:$0xff] %vm299_vm6, %v9419_v44 }
 0x1e0   : > { %v5160_v52 = vsel %vm9532_vm2, %v5155_v21, %v5159_v4  ;;  %v6590_v46 = vsel %vm9822_vm5, %v6588_v31, %v6589_v37  ;;  %v7113_v53 = vshrl.u32 %v9022_v12, 16  ;;  %v7119_v13 = vshll.u32 %v9023_v20, 16  ;;  %4799 = vst.msk [vmem:[#allocation2 + $0x10] sm:$0xff] %vm847_vm7, %v4754_v1  ;;  %v9087_v7 = vld [vmem:[%s9520_s16 + $0xa4] sm:$0x1] }
 0x1e1   : > { %v8800_v36 = vcombine.low %v5150_v45, %v5160_v52  ;;  %6745 = vrot.lane.b32.xlu1 %v8983_v35, %s9478_s17  ;;  %v8975_v0 = vcombine.low %v6587_v5, %v6590_v46  ;;  %v7106_v16 = vor.u32 %v7105_v28, %v7102_v49  ;;  %v7111_v50 = vrot.slane %v7109_v23, 5  ;;  %4987 = vst.msk [vmem:[#allocation2 + $0x50] sm:$0xff] %vm1028_vm8, %v4950_v8  ;;  %v9061_v48 = vld [vmem:[%s9520_s16 + $0x3c] sm:$0xe]  ;;  %v9062_v40 = vld [vmem:[%s9520_s16 + $0x40] sm:$0xf] }
 0x1e2   : > { %v7115_v2 = vrot.slane %v7113_v53, 4  ;;  %v7121_v14 = vrot.slane %v7119_v13, 5  ;;  %v6908_v60 = vshrl.u32 %v8997_v17, 16  ;;  %v6911_v12 = vshll.u32 %v8997_v17, 16  ;;  %4256 = vst.msk [vmem:[#allocation2 + $0x18] sm:$0xff] %vm299_vm6, %v9420_v10 }
 0x1e3   : > { %5481 = vrot.lane.b32.xlu0 %v8800_v36, %s9480_s19  ;;  %v7107_v4 = vrot.slane %v7106_v16, 4  ;;  %v6917_v27 = vshll.u32 %v8998_v51, 16  ;;  %v6921_v20 = vshrl.u32 %v8998_v51, 16  ;;  %v6927_v29 = vshll.u32 %v8999_v43, 16  ;;  %v4934_v42 = vpop.permute.xlu0 %4933  ;;  %v9063_v5 = vld [vmem:[%s9520_s16 + $0x44] sm:$0x1] }
 0x1e4   : > { %v7116_v25 = vor.u32 %v7115_v2, %v7111_v50  ;;  %v6910_v22 = vrot.slane %v6908_v60, 4  ;;  %v6913_v45 = vrot.slane %v6911_v12, 5  ;;  %v3805_v37 = vsel %vm1662_vm10, %v10693_v11, 0  ;;  %4979 = vst.msk [vmem:[#allocation2 + $0x10] sm:$0xff] %vm1028_vm8, %v4934_v42  ;;  %v8675_v31 = vld [vmem:[%s9520_s16 + $0xa8] sm:$0xf] }
 0x1e5   : > { %v7112_v62 = vsel %vm9532_vm2, %v7107_v4, %v7111_v50  ;;  %v6919_v17 = vrot.slane %v6917_v27, 5  ;;  %v6923_v21 = vrot.slane %v6921_v20, 4  ;;  %v6929_v18 = vrot.slane %v6927_v29, 5  ;;  %9200 = vmatpush3.bf16.xpose.msra.mxu1 %v3805_v37  ;;  %v8676_v23 = vld [vmem:[%s9520_s16 + $0xac] sm:$0xf]  ;;  %v11192_v60 = vld [vmem:[#allocation2 + $0x60] sm:$0xff] }
 0x1e6   : > { %v7117_v51 = vrot.slane %v7116_v25, 4  ;;  %v6914_v35 = vor.u32 %v6913_v45, %v6910_v22  ;;  %v9111_v49 = vrot.slane %v9085_v32, 9  ;;  %v7506_v28 = vrot.slane %v9086_v33, 5  ;;  %9304 = vmatprep.subr.msk.bf16.mxu1 %vm1662_vm10, %v10823_v6  ;;  %v8677_v8 = vld [vmem:[%s9520_s16 + $0xb0] sm:$0x1]  ;;  %v9424_v12 = vld [vmem:[%s9520_s16 + $0x9c] sm:$0xff]  }
 0x1e7   : > { %6729 = vrot.lane.b32.xlu0 %v8975_v0, %s9478_s17  ;;  %v6924_v11 = vor.u32 %v6923_v21, %v6919_v17  ;;  %v7509_v1 = vrot.slane %v9087_v7, 5  ;;  %v9103_v41 = vrot.slane %v9061_v48, 9  ;;  %v7450_v52 = vrot.slane %v9062_v40, 5  ;;  %v8651_v16 = vld [vmem:[%s9520_s16 + $0x48] sm:$0xf]  ;;  %4265 = vst.msk [vmem:[#allocation2 + $0x60] sm:$0xff] %vm299_vm6, %v9424_v12 }
 0x1e8   : > { %v7122_v46 = vsel %vm9532_vm2, %v7117_v51, %v7121_v14  ;;  %v6915_v53 = vrot.slane %v6914_v35, 4  ;;  %v7507_v13 = vsel %vm9822_vm5, %v9111_v49, %v7506_v28  ;;  %v7508_v43 = vrot.slane %v7506_v28, 4  ;;  %v8652_v50 = vld [vmem:[%s9520_s16 + $0x4c] sm:$0xf]  ;;  %v8653_v14 = vld [vmem:[%s9520_s16 + $0x50] sm:$0x1] }
 0x1e9   : > { %v9047_v44 = vcombine.low %v7112_v62, %v7122_v46  ;;  %v6925_v6 = vrot.slane %v6924_v11, 4  ;;  %v7451_v36 = vsel %vm9822_vm5, %v9103_v41, %v7450_v52  ;;  %v7452_v0 = vrot.slane %v7450_v52, 4  ;;  %v9425_v22 = vld [vmem:[%s9520_s16 + $0x3c] sm:$0xff]   ;;  %v2054_v49 = vld [vmem:[%s9520_s16 + $0xb8] sm:$0xf] }
 0x1ea   : > { %v6920_v32 = vsel %vm9532_vm2, %v6915_v53, %v6919_v17  ;;  %v7510_v33 = vsel %vm9822_vm5, %v7508_v43, %v7509_v1  ;;  %v7453_v10 = vrot.slane %v9063_v5, 5  ;;  %v4630_v2 = vshrl.u32 %v8675_v31, 16  ;;  %v2053_v17 = vld [vmem:[%s9520_s16 + $0xb4] sm:$0xf]  ;;  %v11203_v21 = vld [vmem:[#allocation2 + $0x20] sm:$0xff] }
 0x1eb   : > { %7289 = vrot.lane.b32.xlu1 %v9047_v44, %s9479_s18  ;;  %v6930_v7 = vsel %vm9532_vm2, %v6925_v6, %v6929_v18  ;;  %v9127_v4 = vcombine.low %v7507_v13, %v7510_v33  ;;  %v4633_v27 = vshll.u32 %v8675_v31, 16  ;;  %v4639_v20 = vshll.u32 %v8676_v23, 16  ;;  %4257 = vst.msk [vmem:[#allocation2 + $0x20] sm:$0xff] %vm299_vm6, %v9425_v22 }
 0x1ec   : > { %v9039_v29 = vcombine.low %v6920_v32, %v6930_v7  ;;  %v7454_v48 = vsel %vm9822_vm5, %v7452_v0, %v7453_v10  ;;  %v4632_v42 = vrot.slane %v4630_v2, 4  ;;  %v4643_v25 = vshrl.u32 %v8676_v23, 16  ;;  %v2029_v0 = vld [vmem:[%s9520_s16 + $0x54] sm:$0xf]  ;;  %v2030_v10 = vld [vmem:[%s9520_s16 + $0x58] sm:$0xf] }
 0x1ed   : > { %v9119_v45 = vcombine.low %v7451_v36, %v7454_v48  ;;  %v4635_v37 = vrot.slane %v4633_v27, 5  ;;  %v4641_v40 = vrot.slane %v4639_v20, 5  ;;  %v4649_v62 = vshll.u32 %v8677_v8, 16  ;;  %v5494_v18 = vpop.permute.xlu1 %5493  ;;  %v2055_v36 = vld [vmem:[%s9520_s16 + $0xbc] sm:$0x1] }
 0x1ee   : > { %7273 = vrot.lane.b32.xlu0 %v9039_v29, %s9479_s18  ;;  %v4645_v5 = vrot.slane %v4643_v25, 4  ;;  %v4438_v31 = vshrl.u32 %v8651_v16, 16  ;;  %v4441_v51 = vshll.u32 %v8651_v16, 16  ;;  %v4447_v35 = vshll.u32 %v8652_v50, 16  ;;  %5531 = vst.msk [vmem:[#allocation2 + $0x50] sm:$0xff] %vm1573_vm9, %v5494_v18 }
 0x1ef   : > { %7609 = vrot.lane.b32.xlu1 %v9127_v4, %s9480_s19  ;;  %v4636_v28 = vor.u32 %v4635_v37, %v4632_v42  ;;  %v4651_v23 = vrot.slane %v4649_v62, 5  ;;  %v4451_v11 = vshrl.u32 %v8652_v50, 16  ;;  %v4457_v1 = vshll.u32 %v8653_v14, 16  ;;  %v2031_v18 = vld [vmem:[%s9520_s16 + $0x5c] sm:$0x1] }
 0x1f0   : > { %v4646_v41 = vor.u32 %v4645_v5, %v4641_v40  ;;  %v4440_v52 = vrot.slane %v4438_v31, 4  ;;  %v4443_v46 = vrot.slane %v4441_v51, 5  ;;  %v4449_v53 = vrot.slane %v4447_v35, 5  ;;  %v5478_v13 = vpop.permute.xlu0 %5477  ;;  %v8787_v51 = vld [vmem:[%s9520_s16 + $0xb4] sm:$0xf] }
 0x1f1   : > { %v4637_v43 = vrot.slane %v4636_v28, 4  ;;  %v4453_v8 = vrot.slane %v4451_v11, 4  ;;  %v4459_v44 = vrot.slane %v4457_v1, 5  ;;  %v3808_v6 = vsel %vm1662_vm10, %v10828_v34, 0  ;;  %5523 = vst.msk [vmem:[#allocation2 + $0x10] sm:$0xff] %vm1573_vm9, %v5478_v13 }
 0x1f2   : > { %7593 = vrot.lane.b32.xlu0 %v9119_v45, %s9480_s19  ;;  %v4647_v16 = vrot.slane %v4646_v41, 4  ;;  %v4444_v50 = vor.u32 %v4443_v46, %v4440_v52  ;;  %9202 = vmatpush3.bf16.xpose.msra.mxu1 %v3808_v6  ;;  %v2417_v32 = vshrl.u32 %v2053_v17, 16  ;;  %v2420_v33 = vshll.u32 %v2053_v17, 16  ;;  %v9404_v45 = vld [vmem:[%s9520_s16 + $0xb4] sm:$0xff]  }
 0x1f3   : > { %v4642_v2 = vsel %vm9532_vm2, %v4637_v43, %v4641_v40  ;;  %v4454_v14 = vor.u32 %v4453_v8, %v4449_v53  ;;  %v2426_v12 = vshll.u32 %v2054_v49, 16  ;;  %v2430_v7 = vshrl.u32 %v2054_v49, 16  ;;  %9305 = vmatprep.subr.msk.bf16.mxu1 %vm1662_vm10, %v11009_v47  ;;  %v8788_v11 = vld [vmem:[%s9520_s16 + $0xb8] sm:$0xf]  ;;  %v8763_v13 = vld [vmem:[%s9520_s16 + $0x54] sm:$0xf] }
 0x1f4   : > { %v4652_v34 = vsel %vm9532_vm2, %v4647_v16, %v4651_v23  ;;  %v4445_v4 = vrot.slane %v4444_v50, 4  ;;  %v2419_v27 = vrot.slane %v2417_v32, 4  ;;  %v2422_v20 = vrot.slane %v2420_v33, 5  ;;  %v9405_v43 = vld [vmem:[%s9520_s16 + $0x54] sm:$0xff]  }
 0x1f5   : > { %v8697_v29 = vcombine.low %v4642_v2, %v4652_v34  ;;  %v4455_v48 = vrot.slane %v4454_v14, 4  ;;  %v2428_v42 = vrot.slane %v2426_v12, 5  ;;  %v2432_v25 = vrot.slane %v2430_v7, 4  ;;  %v11242_v7 = vpop.permute.xlu1 %6741 }
 0x1f6   : > { %v4450_v22 = vsel %vm9532_vm2, %v4445_v4, %v4449_v53  ;;  %v2423_v37 = vor.u32 %v2422_v20, %v2419_v27  ;;  %v2436_v40 = vshll.u32 %v2055_v36, 16  ;;  %v2225_v47 = vshrl.u32 %v2029_v0, 16  ;;  %v8789_v53 = vld [vmem:[%s9520_s16 + $0xbc] sm:$0x1] }
 0x1f7   : > { %4775 = vrot.lane.b32.xlu1 %v8697_v29, %s9478_s17  ;;  %v4460_v62 = vsel %vm9532_vm2, %v4455_v48, %v4459_v44  ;;  %v2433_v17 = vor.u32 %v2432_v25, %v2428_v42  ;;  %v2228_v5 = vshll.u32 %v2029_v0, 16  ;;  %v2234_v31 = vshll.u32 %v2030_v10, 16  ;;  %v8764_v0 = vld [vmem:[%s9520_s16 + $0x58] sm:$0xf]  ;;  %v8765_v29 = vld [vmem:[%s9520_s16 + $0x5c] sm:$0x1] }
 0x1f8   : > { %v8689_v35 = vcombine.low %v4450_v22, %v4460_v62  ;;  %v2424_v49 = vrot.slane %v2423_v37, 4  ;;  %v2438_v28 = vrot.slane %v2436_v40, 5  ;;  %v2227_v23 = vrot.slane %v2225_v47, 4  ;;  %v11248_v37 = vld [vmem:[#allocation2 + $0x68] sm:$0xff] }
 0x1f9   : > { %v2434_v1 = vrot.slane %v2433_v17, 4  ;;  %v2230_v41 = vrot.slane %v2228_v5, 5  ;;  %v2236_v52 = vrot.slane %v2234_v31, 5  ;;  %v2238_v46 = vshrl.u32 %v2030_v10, 16  ;;  %v9429_v40 = vld [vmem:[%s9520_s16 + $0xa8] sm:$0xff]  }
 0x1fa   : > { %4759 = vrot.lane.b32.xlu0 %v8689_v35, %s9478_s17  ;;  %v2429_v8 = vsel %vm9532_vm2, %v2424_v49, %v2428_v42  ;;  %v2244_v44 = vshll.u32 %v2031_v18, 16  ;;  %v5354_v6 = vshrl.u32 %v8787_v51, 16  ;;  %v5357_v36 = vshll.u32 %v8787_v51, 16  ;;  %v9430_v47 = vld [vmem:[%s9520_s16 + $0x48] sm:$0xff]   ;;  %v8945_v31 = vld [vmem:[%s9520_s16 + $0xa0] sm:$0xf]  ;;  %v11260_v49 = vpop.permute.xlu0 %6725 }
 0x1fb   : > { %4955 = vrot.lane.b32.xlu1 %v9404_v45, %s9479_s18  ;;  %v2439_v16 = vsel %vm9532_vm2, %v2434_v1, %v2438_v28  ;;  %v2231_v50 = vor.u32 %v2230_v41, %v2227_v23  ;;  %v2240_v32 = vrot.slane %v2238_v46, 4  ;;  %v5363_v33 = vshll.u32 %v8788_v11, 16  ;;  %v8944_v45 = vld [vmem:[%s9520_s16 + $0x9c] sm:$0xe]  ;;  %v8946_v51 = vld [vmem:[%s9520_s16 + $0xa4] sm:$0x1] }
 0x1fc   : > { %v8379_v10 = vcombine.low %v2429_v8, %v2439_v16  ;;  %v2246_v2 = vrot.slane %v2244_v44, 5  ;;  %v5356_v14 = vrot.slane %v5354_v6, 4  ;;  %v5359_v12 = vrot.slane %v5357_v36, 5  ;;  %v11258_v35 = vld [vmem:[#allocation2 + $0x28] sm:$0xff]  ;;  %v8921_v41 = vld [vmem:[%s9520_s16 + $0x40] sm:$0xf]  ;;  %v11275_v36 = vpop.permute.xlu1 %7285 }
 0x1fd   : > { %v2232_v34 = vrot.slane %v2231_v50, 4  ;;  %v2241_v4 = vor.u32 %v2240_v32, %v2236_v52  ;;  %v5365_v27 = vrot.slane %v5363_v33, 5  ;;  %v5367_v20 = vshrl.u32 %v8788_v11, 16  ;;  %4266 = vst.msk [vmem:[#allocation2 + $0x68] sm:$0xff] %vm299_vm6, %v9429_v40  ;;  %4258 = vst.msk [vmem:[#allocation2 + $0x28] sm:$0xff] %vm299_vm6, %v9430_v47 }
 0x1fe   : > { %4939 = vrot.lane.b32.xlu0 %v9405_v43, %s9479_s18  ;;  %2519 = vst.msk [vmem:[#allocation2 + $0x78] sm:$0xff] %vm299_vm6, %v8379_v10  ;;  %v5360_v48 = vor.u32 %v5359_v12, %v5356_v14  ;;  %v5373_v42 = vshll.u32 %v8789_v53, 16  ;;  %v5162_v25 = vshrl.u32 %v8763_v13, 16  ;;  %v5165_v22 = vshll.u32 %v8763_v13, 16  ;;  %v8922_v6 = vld [vmem:[%s9520_s16 + $0x44] sm:$0x1] }
 0x1ff   : > { %2842 = vst.msk [vmem:[#allocation2 + $0x78] sm:$0xff] %vm847_vm7, %v10817_v9  ;;  %v2237_v62 = vsel %vm9532_vm2, %v2232_v34, %v2236_v52  ;;  %v2242_v17 = vrot.slane %v2241_v4, 4  ;;  %v5369_v18 = vrot.slane %v5367_v20, 4  ;;  %v5171_v5 = vshll.u32 %v8764_v0, 16  ;;  %v8920_v9 = vld [vmem:[%s9520_s16 + $0x3c] sm:$0xe]  ;;  %v11288_v20 = vpop.permute.xlu0 %7269 }
 0x200   : > { %v5361_v28 = vrot.slane %v5360_v48, 4  ;;  %v5375_v23 = vrot.slane %v5373_v42, 5  ;;  %v5164_v11 = vrot.slane %v5162_v25, 4  ;;  %v5167_v1 = vrot.slane %v5165_v22, 5  ;;  %3386 = vst.msk [vmem:[#allocation2 + $0x78] sm:$0xff] %vm1028_vm8, %v10849_v38 }
 0x201   : > { %v2247_v52 = vsel %vm9532_vm2, %v2242_v17, %v2246_v2  ;;  %v5370_v46 = vor.u32 %v5369_v18, %v5365_v27  ;;  %v5173_v53 = vrot.slane %v5171_v5, 5  ;;  %v5175_v13 = vshrl.u32 %v8764_v0, 16  ;;  %3706 = vst.msk [vmem:[#allocation2 + $0x78] sm:$0xff] %vm1573_vm9, %v10877_v30  ;;  %v9026_v25 = vld [vmem:[%s9520_s16 + $0xb0] sm:$0x1] }
 0x202   : > { %v8371_v43 = vcombine.low %v2237_v62, %v2247_v52  ;;  %v5366_v8 = vsel %vm9532_vm2, %v5361_v28, %v5365_v27  ;;  %v5168_v38 = vor.u32 %v5167_v1, %v5164_v11  ;;  %v5181_v44 = vshll.u32 %v8765_v29, 16  ;;  %v9025_v27 = vld [vmem:[%s9520_s16 + $0xac] sm:$0xf]  ;;  %v9000_v22 = vld [vmem:[%s9520_s16 + $0x48] sm:$0xf] }
 0x203   : > { %v5371_v16 = vrot.slane %v5370_v46, 4  ;;  %v5177_v50 = vrot.slane %v5175_v13, 4  ;;  %v3811_v32 = vsel %vm1662_vm10, %v11011_v59, 0  ;;  %v8968_v0 = vrot.slane %v8944_v45, 9  ;;  %v9024_v59 = vld [vmem:[%s9520_s16 + $0xa8] sm:$0xf] }
 0x204   : > { %2511 = vst.msk [vmem:[#allocation2 + $0x38] sm:$0xff] %vm299_vm6, %v8371_v43  ;;  %v5169_v30 = vrot.slane %v5168_v38, 4  ;;  %v5183_v33 = vrot.slane %v5181_v44, 5  ;;  %9204 = vmatpush3.bf16.xpose.msra.mxu1 %v3811_v32  ;;  %v6649_v10 = vrot.slane %v8945_v31, 5  ;;  %v6652_v2 = vrot.slane %v8946_v51, 5  ;;  %v11307_v51 = vpop.permute.xlu1 %7605 }
 0x205   : > { %2834 = vst.msk [vmem:[#allocation2 + $0x38] sm:$0xff] %vm847_vm7, %v10837_v54  ;;  %v5376_v14 = vsel %vm9532_vm2, %v5371_v16, %v5375_v23  ;;  %v5178_v12 = vor.u32 %v5177_v50, %v5173_v53  ;;  %v8960_v34 = vrot.slane %v8920_v9, 9  ;;  %v6593_v4 = vrot.slane %v8921_v41, 5  ;;  %9306 = vmatprep.subr.msk.bf16.mxu1 %vm1662_vm10, %v11154_v19  ;;  %v9001_v62 = vld [vmem:[%s9520_s16 + $0x4c] sm:$0xf] }
 0x206   : > { %v8809_v29 = vcombine.low %v5366_v8, %v5376_v14  ;;  %v5174_v48 = vsel %vm9532_vm2, %v5169_v30, %v5173_v53  ;;  %3378 = vst.msk [vmem:[#allocation2 + $0x38] sm:$0xff] %vm1028_vm8, %v10863_v56  ;;  %v6650_v54 = vsel %vm9822_vm5, %v8968_v0, %v6649_v10  ;;  %v6651_v42 = vrot.slane %v6649_v10, 4  ;;  %v9002_v31 = vld [vmem:[%s9520_s16 + $0x50] sm:$0x1]  ;;  %v9088_v46 = vld [vmem:[%s9520_s16 + $0xa8] sm:$0xe] }
 0x207   : > { %v5179_v45 = vrot.slane %v5178_v12, 4  ;;  %v6594_v19 = vsel %vm9822_vm5, %v8960_v34, %v6593_v4  ;;  %v6595_v40 = vrot.slane %v6593_v4, 4  ;;  %v6596_v47 = vrot.slane %v8922_v6, 5  ;;  %3698 = vst.msk [vmem:[#allocation2 + $0x38] sm:$0xff] %vm1573_vm9, %v10897_v3  ;;  %v9089_v38 = vld [vmem:[%s9520_s16 + $0xac] sm:$0xf]  ;;  %v11315_v44 = vpop.permute.xlu0 %7589 }
 0x208   : > { %5499 = vrot.lane.b32.xlu1 %v8809_v29, %s9480_s19  ;;  %v6653_v56 = vsel %vm9822_vm5, %v6651_v42, %v6652_v2  ;;  %v7124_v17 = vshrl.u32 %v9024_v59, 16  ;;  %v7127_v18 = vshll.u32 %v9024_v59, 16  ;;  %v7133_v5 = vshll.u32 %v9025_v27, 16  ;;  %v9090_v0 = vld [vmem:[%s9520_s16 + $0xb0] sm:$0x1] }
 0x209   : > { %v5184_v28 = vsel %vm9532_vm2, %v5179_v45, %v5183_v33  ;;  %v8984_v23 = vcombine.low %v6650_v54, %v6653_v56  ;;  %v6597_v3 = vsel %vm9822_vm5, %v6595_v40, %v6596_v47  ;;  %v7137_v11 = vshrl.u32 %v9025_v27, 16  ;;  %v9064_v30 = vld [vmem:[%s9520_s16 + $0x48] sm:$0xe]  ;;  %v9065_v33 = vld [vmem:[%s9520_s16 + $0x4c] sm:$0xf]  ;;  %v11325_v45 = vld [vmem:[#allocation2 + $0x70] sm:$0xff] }
 0x20a   : > { %v8801_v1 = vcombine.low %v5174_v48, %v5184_v28  ;;  %v8976_v9 = vcombine.low %v6594_v19, %v6597_v3  ;;  %v7126_v41 = vrot.slane %v7124_v17, 4  ;;  %v7129_v52 = vrot.slane %v7127_v18, 5  ;;  %v9431_v48 = vld [vmem:[%s9520_s16 + $0xb4] sm:$0xff]   ;;  %v9066_v56 = vld [vmem:[%s9520_s16 + $0x50] sm:$0x1] }
 0x20b   : > { %v7135_v53 = vrot.slane %v7133_v5, 5  ;;  %v7139_v13 = vrot.slane %v7137_v11, 4  ;;  %v7143_v43 = vshll.u32 %v9026_v25, 16  ;;  %v6932_v8 = vshrl.u32 %v9000_v22, 16  ;;  %v8678_v17 = vld [vmem:[%s9520_s16 + $0xb4] sm:$0xf] }
 0x20c   : > { %5483 = vrot.lane.b32.xlu0 %v8801_v1, %s9480_s19  ;;  %6747 = vrot.lane.b32.xlu1 %v8984_v23, %s9478_s17  ;;  %v7130_v6 = vor.u32 %v7129_v52, %v7126_v41  ;;  %v6935_v16 = vshll.u32 %v9000_v22, 16  ;;  %v6941_v50 = vshll.u32 %v9001_v62, 16  ;;  %v6945_v32 = vshrl.u32 %v9001_v62, 16  ;;  %4267 = vst.msk [vmem:[#allocation2 + $0x70] sm:$0xff] %vm299_vm6, %v9431_v48  ;;  %v8679_v28 = vld [vmem:[%s9520_s16 + $0xb8] sm:$0xf] }
 0x20d   : > { %v7140_v10 = vor.u32 %v7139_v13, %v7135_v53  ;;  %v7145_v2 = vrot.slane %v7143_v43, 5  ;;  %v6934_v14 = vrot.slane %v6932_v8, 4  ;;  %v6951_v12 = vshll.u32 %v9002_v31, 16  ;;  %v8680_v41 = vld [vmem:[%s9520_s16 + $0xbc] sm:$0x1] }
 0x20e   : > { %v7131_v34 = vrot.slane %v7130_v6, 4  ;;  %v6937_v4 = vrot.slane %v6935_v16, 5  ;;  %v6943_v59 = vrot.slane %v6941_v50, 5  ;;  %v6947_v27 = vrot.slane %v6945_v32, 4  ;;  %v4772_v29 = vpop.permute.xlu1 %4771  ;;  %v8654_v52 = vld [vmem:[%s9520_s16 + $0x54] sm:$0xf] }
 0x20f   : > { %v7141_v54 = vrot.slane %v7140_v10, 4  ;;  %v6953_v42 = vrot.slane %v6951_v12, 5  ;;  %v3814_v25 = vsel %vm1662_vm10, %v11160_v24, 0  ;;  %v9112_v22 = vrot.slane %v9088_v46, 9  ;;  %4808 = vst.msk [vmem:[#allocation2 + $0x58] sm:$0xff] %vm847_vm7, %v4772_v29 }
 0x210   : > { %6731 = vrot.lane.b32.xlu0 %v8976_v9, %s9478_s17  ;;  %v7136_v19 = vsel %vm9532_vm2, %v7131_v34, %v7135_v53  ;;  %v6938_v40 = vor.u32 %v6937_v4, %v6934_v14  ;;  %v6948_v47 = vor.u32 %v6947_v27, %v6943_v59  ;;  %9206 = vmatpush3.bf16.xpose.msra.mxu1 %v3814_v25  ;;  %v7513_v62 = vrot.slane %v9089_v38, 5  ;;  %v11359_v27 = vld [vmem:[#allocation2 + $0x30] sm:$0xff] }
 0x211   : > { %v7146_v24 = vsel %vm9532_vm2, %v7141_v54, %v7145_v2  ;;  %v7516_v18 = vrot.slane %v9090_v0, 5  ;;  %v9104_v5 = vrot.slane %v9064_v30, 9  ;;  %v7457_v31 = vrot.slane %v9065_v33, 5  ;;  %9307 = vmatprep.subr.msk.bf16.mxu1 %vm1662_vm10, %v11192_v60  ;;  %v4756_v23 = vpop.permute.xlu0 %4755  ;;  %v8655_v60 = vld [vmem:[%s9520_s16 + $0x58] sm:$0xf] }
 0x212   : > { %v9048_v3 = vcombine.low %v7136_v19, %v7146_v24  ;;  %v6939_v11 = vrot.slane %v6938_v40, 4  ;;  %v6949_v1 = vrot.slane %v6948_v47, 4  ;;  %v7514_v9 = vsel %vm9822_vm5, %v9112_v22, %v7513_v62  ;;  %4800 = vst.msk [vmem:[#allocation2 + $0x18] sm:$0xff] %vm847_vm7, %v4756_v23  ;;  %v4952_v46 = vpop.permute.xlu1 %4951  ;;  %v9432_v2 = vld [vmem:[%s9520_s16 + $0x54] sm:$0xff]   ;;  %v8868_v47 = vld [vmem:[%s9520_s16 + $0x6c] sm:$0xf] }
 0x213   : > { %v7515_v53 = vrot.slane %v7513_v62, 4  ;;  %v7458_v13 = vsel %vm9822_vm5, %v9104_v5, %v7457_v31  ;;  %v7459_v43 = vrot.slane %v7457_v31, 4  ;;  %v7460_v8 = vrot.slane %v9066_v56, 5  ;;  %4988 = vst.msk [vmem:[#allocation2 + $0x58] sm:$0xff] %vm1028_vm8, %v4952_v46  ;;  %v8869_v23 = vld [vmem:[%s9520_s16 + $0x70] sm:$0xf] }
 0x214   : > { %7291 = vrot.lane.b32.xlu1 %v9048_v3, %s9479_s18  ;;  %v6944_v38 = vsel %vm9532_vm2, %v6939_v11, %v6943_v59  ;;  %v6954_v6 = vsel %vm9532_vm2, %v6949_v1, %v6953_v42  ;;  %v4654_v16 = vshrl.u32 %v8678_v17, 16  ;;  %v4657_v50 = vshll.u32 %v8678_v17, 16  ;;  %v8656_v59 = vld [vmem:[%s9520_s16 + $0x5c] sm:$0x1]  ;;  %4259 = vst.msk [vmem:[#allocation2 + $0x30] sm:$0xff] %vm299_vm6, %v9432_v2 }
 0x215   : > { %v9040_v32 = vcombine.low %v6944_v38, %v6954_v6  ;;  %v7517_v0 = vsel %vm9822_vm5, %v7515_v53, %v7516_v18  ;;  %v7461_v30 = vsel %vm9822_vm5, %v7459_v43, %v7460_v8  ;;  %v4663_v33 = vshll.u32 %v8679_v28, 16  ;;  %v4936_v10 = vpop.permute.xlu0 %4935  ;;  %v8844_v43 = vld [vmem:[%s9520_s16 + $0xc] sm:$0xf] }
 0x216   : > { %v9128_v14 = vcombine.low %v7514_v9, %v7517_v0  ;;  %v9120_v12 = vcombine.low %v7458_v13, %v7461_v30  ;;  %v4656_v34 = vrot.slane %v4654_v16, 4  ;;  %v4659_v4 = vrot.slane %v4657_v50, 5  ;;  %4980 = vst.msk [vmem:[#allocation2 + $0x18] sm:$0xff] %vm1028_vm8, %v4936_v10  ;;  %v8870_v9 = vld [vmem:[%s9520_s16 + $0x74] sm:$0x1] }
 0x217   : > { %7275 = vrot.lane.b32.xlu0 %v9040_v32, %s9479_s18  ;;  %v4665_v29 = vrot.slane %v4663_v33, 5  ;;  %v4667_v48 = vshrl.u32 %v8679_v28, 16  ;;  %v4673_v54 = vshll.u32 %v8680_v41, 16  ;;  %v4462_v42 = vshrl.u32 %v8654_v52, 16  ;;  %v8845_v16 = vld [vmem:[%s9520_s16 + $0x10] sm:$0xf] }
 0x218   : > { %7611 = vrot.lane.b32.xlu1 %v9128_v14, %s9480_s19  ;;  %v4660_v25 = vor.u32 %v4659_v4, %v4656_v34  ;;  %v4465_v22 = vshll.u32 %v8654_v52, 16  ;;  %v4471_v19 = vshll.u32 %v8655_v60, 16  ;;  %v4475_v40 = vshrl.u32 %v8655_v60, 16  ;;  %v8846_v30 = vld [vmem:[%s9520_s16 + $0x14] sm:$0x1] }
 0x219   : > { %v4669_v62 = vrot.slane %v4667_v48, 4  ;;  %v4675_v56 = vrot.slane %v4673_v54, 5  ;;  %v4464_v17 = vrot.slane %v4462_v42, 4  ;;  %v4481_v24 = vshll.u32 %v8656_v59, 16  ;;  %v8790_v34 = vld [vmem:[%s9520_s16 + $0xc0] sm:$0xf] }
 0x21a   : > { %v4661_v18 = vrot.slane %v4660_v25, 4  ;;  %v4467_v5 = vrot.slane %v4465_v22, 5  ;;  %v4473_v31 = vrot.slane %v4471_v19, 5  ;;  %v4477_v28 = vrot.slane %v4475_v40, 4  ;;  %v9412_v42 = vld [vmem:[%s9520_s16 + $0x60] sm:$0xff]  }
 0x21b   : > { %7595 = vrot.lane.b32.xlu0 %v9120_v12, %s9480_s19  ;;  %v4670_v3 = vor.u32 %v4669_v62, %v4665_v29  ;;  %v4483_v11 = vrot.slane %v4481_v24, 5  ;;  %v3817_v1 = vsel %vm1662_vm10, %v11203_v21, 0  ;;  %v6196_v41 = vshrl.u32 %v8868_v47, 16  ;;  %v8791_v40 = vld [vmem:[%s9520_s16 + $0xc4] sm:$0xf] }
 0x21c   : > { %v4666_v52 = vsel %vm9532_vm2, %v4661_v18, %v4665_v29  ;;  %v4468_v46 = vor.u32 %v4467_v5, %v4464_v17  ;;  %v4478_v53 = vor.u32 %v4477_v28, %v4473_v31  ;;  %9208 = vmatpush3.bf16.xpose.msra.mxu1 %v3817_v1  ;;  %v6199_v13 = vshll.u32 %v8868_v47, 16  ;;  %v9411_v29 = vld [vmem:[%s9520_s16 + $0xc0] sm:$0xff]   ;;  %v8792_v24 = vld [vmem:[%s9520_s16 + $0xc8] sm:$0x1] }
 0x21d   : > { %v4671_v8 = vrot.slane %v4670_v3, 4  ;;  %v6198_v60 = vrot.slane %v6196_v41, 4  ;;  %v6205_v38 = vshll.u32 %v8869_v23, 16  ;;  %v6209_v6 = vshrl.u32 %v8869_v23, 16  ;;  %9308 = vmatprep.subr.msk.bf16.mxu1 %vm1662_vm10, %v11248_v37  ;;  %v8766_v18 = vld [vmem:[%s9520_s16 + $0x60] sm:$0xf] }
 0x21e   : > { %v4469_v21 = vrot.slane %v4468_v46, 4  ;;  %v4479_v50 = vrot.slane %v4478_v53, 4  ;;  %v6201_v32 = vrot.slane %v6199_v13, 5  ;;  %v6215_v0 = vshll.u32 %v8870_v9, 16  ;;  %v5496_v33 = vpop.permute.xlu1 %5495 }
 0x21f   : > { %v4676_v10 = vsel %vm9532_vm2, %v4671_v8, %v4675_v56  ;;  %v6207_v2 = vrot.slane %v6205_v38, 5  ;;  %v6211_v14 = vrot.slane %v6209_v6, 4  ;;  %v6004_v12 = vshrl.u32 %v8844_v43, 16  ;;  %5532 = vst.msk [vmem:[#allocation2 + $0x58] sm:$0xff] %vm1573_vm9, %v5496_v33 }
 0x220   : > { %v8698_v4 = vcombine.low %v4666_v52, %v4676_v10  ;;  %v4474_v37 = vsel %vm9532_vm2, %v4469_v21, %v4473_v31  ;;  %v4484_v59 = vsel %vm9532_vm2, %v4479_v50, %v4483_v11  ;;  %v6202_v48 = vor.u32 %v6201_v32, %v6198_v60 }
 0x221   : > { %v8690_v54 = vcombine.low %v4474_v37, %v4484_v59  ;;  %v6212_v25 = vor.u32 %v6211_v14, %v6207_v2  ;;  %v6217_v22 = vrot.slane %v6215_v0, 5  ;;  %v6006_v19 = vrot.slane %v6004_v12, 4 }
 0x222   : > { %4777 = vrot.lane.b32.xlu1 %v8698_v4, %s9478_s17  ;;  %v6203_v47 = vrot.slane %v6202_v48, 4  ;;  %v6007_v62 = vshll.u32 %v8844_v43, 16  ;;  %v6013_v56 = vshll.u32 %v8845_v16, 16  ;;  %v6017_v17 = vshrl.u32 %v8845_v16, 16  ;;  %v8767_v43 = vld [vmem:[%s9520_s16 + $0x64] sm:$0xf] }
 0x223   : > { %4761 = vrot.lane.b32.xlu0 %v8690_v54, %s9478_s17  ;;  %v6213_v5 = vrot.slane %v6212_v25, 4  ;;  %v6023_v31 = vshll.u32 %v8846_v30, 16  ;;  %v5378_v28 = vshrl.u32 %v8790_v34, 16  ;;  %v5381_v23 = vshll.u32 %v8790_v34, 16  ;;  %v5480_v3 = vpop.permute.xlu0 %5479  ;;  %v8768_v34 = vld [vmem:[%s9520_s16 + $0x68] sm:$0x1] }
 0x224   : > { %v6208_v11 = vsel %vm9532_vm2, %v6203_v47, %v6207_v2  ;;  %v6009_v1 = vrot.slane %v6007_v62, 5  ;;  %v6015_v9 = vrot.slane %v6013_v56, 5  ;;  %v6019_v41 = vrot.slane %v6017_v17, 4  ;;  %5524 = vst.msk [vmem:[#allocation2 + $0x18] sm:$0xff] %vm1573_vm9, %v5480_v3  ;;  %v8948_v54 = vld [vmem:[%s9520_s16 + $0xac] sm:$0xf] }
 0x225   : > { %v6218_v52 = vsel %vm9532_vm2, %v6213_v5, %v6217_v22  ;;  %v6025_v46 = vrot.slane %v6023_v31, 5  ;;  %v5380_v53 = vrot.slane %v5378_v28, 4  ;;  %v5383_v13 = vrot.slane %v5381_v23, 5  ;;  %v8923_v47 = vld [vmem:[%s9520_s16 + $0x48] sm:$0xe]  ;;  %v11419_v62 = vld [vmem:[#allocation2] sm:$0xff] }
 0x226   : > { %4957 = vrot.lane.b32.xlu1 %v9411_v29, %s9479_s18  ;;  %v8900_v8 = vcombine.low %v6208_v11, %v6218_v52  ;;  %v6010_v60 = vor.u32 %v6009_v1, %v6006_v19  ;;  %v6020_v38 = vor.u32 %v6019_v41, %v6015_v9  ;;  %v5387_v6 = vshll.u32 %v8791_v40, 16  ;;  %v8925_v3 = vld [vmem:[%s9520_s16 + $0x50] sm:$0x1]  ;;  %v9027_v41 = vld [vmem:[%s9520_s16 + $0xb4] sm:$0xf] }
 0x227   : > { %4941 = vrot.lane.b32.xlu0 %v9412_v42, %s9479_s18  ;;  %v5384_v16 = vor.u32 %v5383_v13, %v5380_v53  ;;  %v5391_v21 = vshrl.u32 %v8791_v40, 16  ;;  %v5397_v50 = vshll.u32 %v8792_v24, 16  ;;  %v5186_v32 = vshrl.u32 %v8766_v18, 16  ;;  %v8949_v40 = vld [vmem:[%s9520_s16 + $0xb0] sm:$0x1] }
 0x228   : > { %6459 = vst.msk [vmem:[#allocation2 + $0x40] sm:$0xff] %vm299_vm6, %v8900_v8  ;;  %v6011_v0 = vrot.slane %v6010_v60, 4  ;;  %v6021_v30 = vrot.slane %v6020_v38, 4  ;;  %v5389_v33 = vrot.slane %v5387_v6, 5  ;;  %v5189_v10 = vshll.u32 %v8766_v18, 16 }
 0x229   : > { %6779 = vst.msk [vmem:[#allocation2 + $0x40] sm:$0xff] %vm847_vm7, %v11052_v15  ;;  %v5385_v2 = vrot.slane %v5384_v16, 4  ;;  %v5393_v14 = vrot.slane %v5391_v21, 4  ;;  %v5399_v12 = vrot.slane %v5397_v50, 5  ;;  %v5188_v4 = vrot.slane %v5186_v32, 4  ;;  %v11447_v50 = vpop.permute.xlu0 %6727 }
 0x22a   : > { %v6016_v37 = vsel %vm9532_vm2, %v6011_v0, %v6015_v9  ;;  %v6026_v59 = vsel %vm9532_vm2, %v6021_v30, %v6025_v46  ;;  %v5191_v29 = vrot.slane %v5189_v10, 5  ;;  %v5195_v48 = vshll.u32 %v8767_v43, 16  ;;  %7323 = vst.msk [vmem:[#allocation2 + $0x40] sm:$0xff] %vm1028_vm8, %v11079_v58  ;;  %v8947_v15 = vld [vmem:[%s9520_s16 + $0xa8] sm:$0xe] }
 0x22b   : > { %v8892_v42 = vcombine.low %v6016_v37, %v6026_v59  ;;  %v5390_v25 = vsel %vm9532_vm2, %v5385_v2, %v5389_v33  ;;  %v5394_v22 = vor.u32 %v5393_v14, %v5389_v33  ;;  %v5199_v19 = vshrl.u32 %v8767_v43, 16  ;;  %7643 = vst.msk [vmem:[#allocation2 + $0x40] sm:$0xff] %vm1573_vm9, %v11101_v55  ;;  %v8924_v18 = vld [vmem:[%s9520_s16 + $0x4c] sm:$0xf]  ;;  %v9028_v13 = vld [vmem:[%s9520_s16 + $0xb8] sm:$0xf] }
 0x22c   : > { %v5192_v56 = vor.u32 %v5191_v29, %v5188_v4  ;;  %v5197_v17 = vrot.slane %v5195_v48, 5  ;;  %v5205_v58 = vshll.u32 %v8768_v34, 16  ;;  %v3820_v24 = vsel %vm1662_vm10, %v11258_v35, 0  ;;  %v11431_v35 = vpop.permute.xlu1 %6743  ;;  %v9029_v6 = vld [vmem:[%s9520_s16 + $0xbc] sm:$0x1] }
 0x22d   : > { %6451 = vst.msk [vmem:[#allocation2] sm:$0xff] %vm299_vm6, %v8892_v42  ;;  %v5395_v5 = vrot.slane %v5394_v22, 4  ;;  %v5201_v31 = vrot.slane %v5199_v19, 4  ;;  %9210 = vmatpush3.bf16.xpose.msra.mxu1 %v3820_v24  ;;  %v8969_v28 = vrot.slane %v8947_v15, 9  ;;  %v6656_v23 = vrot.slane %v8948_v54, 5 }
 0x22e   : > { %6771 = vst.msk [vmem:[#allocation2] sm:$0xff] %vm847_vm7, %v11065_v57  ;;  %v5193_v55 = vrot.slane %v5192_v56, 4  ;;  %v5207_v11 = vrot.slane %v5205_v58, 5  ;;  %v6659_v1 = vrot.slane %v8949_v40, 5  ;;  %v8961_v9 = vrot.slane %v8923_v47, 9  ;;  %9309 = vmatprep.subr.msk.bf16.mxu1 %vm1662_vm10, %v11325_v45 }
 0x22f   : > { %v5400_v52 = vsel %vm9532_vm2, %v5395_v5, %v5399_v12  ;;  %v5202_v46 = vor.u32 %v5201_v31, %v5197_v17  ;;  %7315 = vst.msk [vmem:[#allocation2] sm:$0xff] %vm1028_vm8, %v11088_v39  ;;  %v6657_v57 = vsel %vm9822_vm5, %v8969_v28, %v6656_v23  ;;  %v6658_v53 = vrot.slane %v6656_v23, 4  ;;  %v9003_v33 = vld [vmem:[%s9520_s16 + $0x54] sm:$0xf]  ;;  %v9004_v34 = vld [vmem:[%s9520_s16 + $0x58] sm:$0xf] }
 0x230   : > { %v8810_v43 = vcombine.low %v5390_v25, %v5400_v52  ;;  %v5198_v8 = vsel %vm9532_vm2, %v5193_v55, %v5197_v17  ;;  %v6600_v45 = vrot.slane %v8924_v18, 5  ;;  %v6603_v60 = vrot.slane %v8925_v3, 5  ;;  %7635 = vst.msk [vmem:[#allocation2] sm:$0xff] %vm1573_vm9, %v11116_v63  ;;  %v9005_v48 = vld [vmem:[%s9520_s16 + $0x5c] sm:$0x1]  ;;  %v11460_v54 = vpop.permute.xlu1 %7287 }
 0x231   : > { %v5203_v38 = vrot.slane %v5202_v46, 4  ;;  %v6660_v39 = vsel %vm9822_vm5, %v6658_v53, %v6659_v1  ;;  %v7148_v16 = vshrl.u32 %v9027_v41, 16  ;;  %v7151_v21 = vshll.u32 %v9027_v41, 16  ;;  %v9091_v15 = vld [vmem:[%s9520_s16 + $0xb4] sm:$0xe]  ;;  %v11469_v1 = vpop.permute.xlu0 %7271 }
 0x232   : > { %5501 = vrot.lane.b32.xlu1 %v8810_v43, %s9480_s19  ;;  %v8985_v32 = vcombine.low %v6657_v57, %v6660_v39  ;;  %v6601_v0 = vsel %vm9822_vm5, %v8961_v9, %v6600_v45  ;;  %v6602_v30 = vrot.slane %v6600_v45, 4  ;;  %v7157_v63 = vshll.u32 %v9028_v13, 16  ;;  %v9092_v40 = vld [vmem:[%s9520_s16 + $0xb8] sm:$0xf]  ;;  %v9093_v47 = vld [vmem:[%s9520_s16 + $0xbc] sm:$0x1] }
 0x233   : > { %v5208_v10 = vsel %vm9532_vm2, %v5203_v38, %v5207_v11  ;;  %v7150_v2 = vrot.slane %v7148_v16, 4  ;;  %v7153_v14 = vrot.slane %v7151_v21, 5  ;;  %v7161_v12 = vshrl.u32 %v9028_v13, 16  ;;  %v9067_v18 = vld [vmem:[%s9520_s16 + $0x54] sm:$0xe]  ;;  %v3739_v11 = vld [vmem:[#allocation2 + $0x78] sm:$0xff] }
 0x234   : > { %v8802_v4 = vcombine.low %v5198_v8, %v5208_v10  ;;  %v6604_v37 = vsel %vm9822_vm5, %v6602_v30, %v6603_v60  ;;  %v7159_v59 = vrot.slane %v7157_v63, 5  ;;  %v7167_v29 = vshll.u32 %v9029_v6, 16  ;;  %v9068_v5 = vld [vmem:[%s9520_s16 + $0x58] sm:$0xf]  ;;  %v9069_v55 = vld [vmem:[%s9520_s16 + $0x5c] sm:$0x1] }
 0x235   : > { %v8977_v42 = vcombine.low %v6601_v0, %v6604_v37  ;;  %v7154_v25 = vor.u32 %v7153_v14, %v7150_v2  ;;  %v7163_v22 = vrot.slane %v7161_v12, 4  ;;  %v6956_v19 = vshrl.u32 %v9003_v33, 16  ;;  %v9433_v57 = vld [vmem:[%s9520_s16 + $0xc0] sm:$0xff]   ;;  %v11479_v16 = vpop.permute.xlu1 %7607 }
 0x236   : > { %5485 = vrot.lane.b32.xlu0 %v8802_v4, %s9480_s19  ;;  %6749 = vrot.lane.b32.xlu1 %v8985_v32, %s9478_s17  ;;  %v7169_v56 = vrot.slane %v7167_v29, 5  ;;  %v6959_v17 = vshll.u32 %v9003_v33, 16  ;;  %v6965_v58 = vshll.u32 %v9004_v34, 16  ;;  %v6969_v24 = vshrl.u32 %v9004_v34, 16  ;;  %v8681_v6 = vld [vmem:[%s9520_s16 + $0xc0] sm:$0xf] }
 0x237   : > { %v7155_v31 = vrot.slane %v7154_v25, 4  ;;  %v7164_v28 = vor.u32 %v7163_v22, %v7159_v59  ;;  %v6958_v23 = vrot.slane %v6956_v19, 4  ;;  %v6975_v3 = vshll.u32 %v9005_v48, 16  ;;  %4268 = vst.msk [vmem:[#allocation2 + $0x78] sm:$0xff] %vm299_vm6, %v9433_v57  ;;  %v8682_v30 = vld [vmem:[%s9520_s16 + $0xc4] sm:$0xf] }
 0x238   : > { %v6961_v9 = vrot.slane %v6959_v17, 5  ;;  %v6967_v41 = vrot.slane %v6965_v58, 5  ;;  %v6971_v52 = vrot.slane %v6969_v24, 4  ;;  %v3823_v46 = vsel %vm1662_vm10, %v11359_v27, 0  ;;  %v8683_v48 = vld [vmem:[%s9520_s16 + $0xc8] sm:$0x1] }
 0x239   : > { %v7160_v53 = vsel %vm9532_vm2, %v7155_v31, %v7159_v59  ;;  %v7165_v13 = vrot.slane %v7164_v28, 4  ;;  %v6977_v43 = vrot.slane %v6975_v3, 5  ;;  %9212 = vmatpush3.bf16.xpose.msra.mxu1 %v3823_v46  ;;  %v9113_v8 = vrot.slane %v9091_v15, 9  ;;  %v11489_v37 = vpop.permute.xlu0 %7591  ;;  %v8657_v25 = vld [vmem:[%s9520_s16 + $0x60] sm:$0xf]  ;;  %v3731_v28 = vld [vmem:[#allocation2 + $0x38] sm:$0xff] }
 0x23a   : > { %6733 = vrot.lane.b32.xlu0 %v8977_v42, %s9478_s17  ;;  %v6962_v45 = vor.u32 %v6961_v9, %v6958_v23  ;;  %v6972_v60 = vor.u32 %v6971_v52, %v6967_v41  ;;  %v7520_v38 = vrot.slane %v9092_v40, 5  ;;  %v7523_v39 = vrot.slane %v9093_v47, 5  ;;  %9310 = vmatprep.subr.msk.bf16.mxu1 %vm1662_vm10, %v3739_v11  ;;  %v8659_v17 = vld [vmem:[%s9520_s16 + $0x68] sm:$0x1]  ;;  %v9434_v58 = vld [vmem:[%s9520_s16 + $0x60] sm:$0xff]  }
 0x23b   : > { %v7170_v27 = vsel %vm9532_vm2, %v7165_v13, %v7169_v56  ;;  %v9105_v21 = vrot.slane %v9067_v18, 9  ;;  %v7464_v32 = vrot.slane %v9068_v5, 5  ;;  %v7467_v0 = vrot.slane %v9069_v55, 5  ;;  %v8658_v56 = vld [vmem:[%s9520_s16 + $0x64] sm:$0xf]  ;;  %4260 = vst.msk [vmem:[#allocation2 + $0x38] sm:$0xff] %vm299_vm6, %v9434_v58 }
 0x23c   : > { %v9049_v63 = vcombine.low %v7160_v53, %v7170_v27  ;;  %v6963_v33 = vrot.slane %v6962_v45, 4  ;;  %v6973_v10 = vrot.slane %v6972_v60, 4  ;;  %v7521_v2 = vsel %vm9822_vm5, %v9113_v8, %v7520_v38  ;;  %v8871_v53 = vld [vmem:[%s9520_s16 + $0x78] sm:$0xf]  ;;  %v8872_v60 = vld [vmem:[%s9520_s16 + $0x7c] sm:$0xf] }
 0x23d   : > { %v7522_v14 = vrot.slane %v7520_v38, 4  ;;  %v7465_v12 = vsel %vm9822_vm5, %v9105_v21, %v7464_v32  ;;  %v7466_v34 = vrot.slane %v7464_v32, 4  ;;  %v4678_v4 = vshrl.u32 %v8681_v6, 16 }
 0x23e   : > { %7293 = vrot.lane.b32.xlu1 %v9049_v63, %s9479_s18  ;;  %v6968_v59 = vsel %vm9532_vm2, %v6963_v33, %v6967_v41  ;;  %v6978_v29 = vsel %vm9532_vm2, %v6973_v10, %v6977_v43  ;;  %v4681_v15 = vshll.u32 %v8681_v6, 16  ;;  %v4687_v42 = vshll.u32 %v8682_v30, 16  ;;  %v8873_v10 = vld [vmem:[%s9520_s16 + $0x80] sm:$0x1] }
 0x23f   : > { %v9041_v22 = vcombine.low %v6968_v59, %v6978_v29  ;;  %v7524_v19 = vsel %vm9822_vm5, %v7522_v14, %v7523_v39  ;;  %v7468_v40 = vsel %vm9822_vm5, %v7466_v34, %v7467_v0  ;;  %v4680_v47 = vrot.slane %v4678_v4, 4  ;;  %v7676_v0 = vld [vmem:[#allocation2 + $0x40] sm:$0xff]  ;;  %v8847_v59 = vld [vmem:[%s9520_s16 + $0x18] sm:$0xf] }
 0x240   : > { %v9129_v24 = vcombine.low %v7521_v2, %v7524_v19  ;;  %v9121_v18 = vcombine.low %v7465_v12, %v7468_v40  ;;  %v4683_v5 = vrot.slane %v4681_v15, 5  ;;  %v4689_v31 = vrot.slane %v4687_v42, 5  ;;  %v4774_v23 = vpop.permute.xlu1 %4773 }
 0x241   : > { %7277 = vrot.lane.b32.xlu0 %v9041_v22, %s9479_s18  ;;  %v4691_v3 = vshrl.u32 %v8682_v30, 16  ;;  %v4697_v55 = vshll.u32 %v8683_v48, 16  ;;  %v4486_v11 = vshrl.u32 %v8657_v25, 16  ;;  %v4489_v9 = vshll.u32 %v8657_v25, 16  ;;  %4809 = vst.msk [vmem:[#allocation2 + $0x60] sm:$0xff] %vm847_vm7, %v4774_v23 }
 0x242   : > { %7613 = vrot.lane.b32.xlu1 %v9129_v24, %s9480_s19  ;;  %v4684_v41 = vor.u32 %v4683_v5, %v4680_v47  ;;  %v4495_v52 = vshll.u32 %v8658_v56, 16  ;;  %v4499_v46 = vshrl.u32 %v8658_v56, 16  ;;  %v4505_v57 = vshll.u32 %v8659_v17, 16  ;;  %v8848_v24 = vld [vmem:[%s9520_s16 + $0x1c] sm:$0xf] }
 0x243   : > { %v4693_v13 = vrot.slane %v4691_v3, 4  ;;  %v4699_v43 = vrot.slane %v4697_v55, 5  ;;  %v4488_v8 = vrot.slane %v4486_v11, 4  ;;  %v4491_v45 = vrot.slane %v4489_v9, 5  ;;  %v4758_v38 = vpop.permute.xlu0 %4757  ;;  %v8793_v55 = vld [vmem:[%s9520_s16 + $0xcc] sm:$0xf] }
 0x244   : > { %v4685_v39 = vrot.slane %v4684_v41, 4  ;;  %v4497_v6 = vrot.slane %v4495_v52, 5  ;;  %v4501_v27 = vrot.slane %v4499_v46, 4  ;;  %v4507_v21 = vrot.slane %v4505_v57, 5  ;;  %4801 = vst.msk [vmem:[#allocation2 + $0x20] sm:$0xff] %vm847_vm7, %v4758_v38  ;;  %v4954_v32 = vpop.permute.xlu1 %4953  ;;  %v11533_v11 = vld [vmem:[%s12639_s1 + $0x48] sm:$0xff]  }
 0x245   : > { %7597 = vrot.lane.b32.xlu0 %v9121_v18, %s9480_s19  ;;  %v4694_v30 = vor.u32 %v4693_v13, %v4689_v31  ;;  %v4492_v63 = vor.u32 %v4491_v45, %v4488_v8  ;;  %v3826_v33 = vsel %vm1662_vm10, %v3731_v28, 0  ;;  %v6220_v2 = vshrl.u32 %v8871_v53, 16  ;;  %4989 = vst.msk [vmem:[#allocation2 + $0x60] sm:$0xff] %vm1028_vm8, %v4954_v32  ;;  %v8849_v18 = vld [vmem:[%s9520_s16 + $0x20] sm:$0x1]  ;;  %v9415_v41 = vld [vmem:[%s9520_s16 + $0xcc] sm:$0xff]  }
 0x246   : > { %v4690_v14 = vsel %vm9532_vm2, %v4685_v39, %v4689_v31  ;;  %v4502_v12 = vor.u32 %v4501_v27, %v4497_v6  ;;  %9214 = vmatpush3.bf16.xpose.msra.mxu1 %v3826_v33  ;;  %v6223_v34 = vshll.u32 %v8871_v53, 16  ;;  %v6229_v4 = vshll.u32 %v8872_v60, 16  ;;  %v9416_v52 = vld [vmem:[%s9520_s16 + $0x6c] sm:$0xff]   ;;  %v9452_v32 = vld [vmem:[%s12639_s1 + $0x40] sm:$0xff]  }
 0x247   : > { %v4695_v29 = vrot.slane %v4694_v30, 4  ;;  %v4493_v48 = vrot.slane %v4492_v63, 4  ;;  %v6222_v15 = vrot.slane %v6220_v2, 4  ;;  %v6233_v42 = vshrl.u32 %v8872_v60, 16  ;;  %v4938_v25 = vpop.permute.xlu0 %4937  ;;  %9319 = vmatprep.subr.msk.bf16.mxu1 %vm1662_vm10, %v7676_v0  ;;  %v8794_v60 = vld [vmem:[%s9520_s16 + $0xd0] sm:$0xf] }
 0x248   : > { %v4503_v22 = vrot.slane %v4502_v12, 4  ;;  %v6225_v19 = vrot.slane %v6223_v34, 5  ;;  %v6231_v40 = vrot.slane %v6229_v4, 5  ;;  %v6239_v47 = vshll.u32 %v8873_v10, 16  ;;  %4981 = vst.msk [vmem:[#allocation2 + $0x20] sm:$0xff] %vm1028_vm8, %v4938_v25  ;;  %v11556_v25 = vld [vmem:[#allocation2 + $0x48] sm:$0xff] }
 0x249   : > { %v4700_v56 = vsel %vm9532_vm2, %v4695_v29, %v4699_v43  ;;  %v4498_v17 = vsel %vm9532_vm2, %v4493_v48, %v4497_v6  ;;  %v6235_v58 = vrot.slane %v6233_v42, 4  ;;  %v6028_v5 = vshrl.u32 %v8847_v59, 16  ;;  %v8795_v6 = vld [vmem:[%s9520_s16 + $0xd4] sm:$0x1]  ;;  %v8769_v10 = vld [vmem:[%s9520_s16 + $0x6c] sm:$0xf] }
 0x24a   : > { %v8699_v31 = vcombine.low %v4690_v14, %v4700_v56  ;;  %v4508_v28 = vsel %vm9532_vm2, %v4503_v22, %v4507_v21  ;;  %v6226_v23 = vor.u32 %v6225_v19, %v6222_v15  ;;  %v6241_v3 = vrot.slane %v6239_v47, 5  ;;  %v8770_v42 = vld [vmem:[%s9520_s16 + $0x70] sm:$0xf]  ;;  %v8771_v47 = vld [vmem:[%s9520_s16 + $0x74] sm:$0x1] }
 0x24b   : > { %v8691_v9 = vcombine.low %v4498_v17, %v4508_v28  ;;  %v6236_v46 = vor.u32 %v6235_v58, %v6231_v40  ;;  %v6030_v57 = vrot.slane %v6028_v5, 4  ;;  %v6031_v53 = vshll.u32 %v8847_v59, 16  ;;  %v11563_v5 = vld [vmem:[%s12639_s1 + $0x50] sm:$0xff]  }
 0x24c   : > { %4779 = vrot.lane.b32.xlu1 %v8699_v31, %s9478_s17  ;;  %v6227_v13 = vrot.slane %v6226_v23, 4  ;;  %v6037_v43 = vshll.u32 %v8848_v24, 16  ;;  %v6041_v8 = vshrl.u32 %v8848_v24, 16  ;;  %v6047_v45 = vshll.u32 %v8849_v18, 16 }
 0x24d   : > { %4763 = vrot.lane.b32.xlu0 %v8691_v9, %s9478_s17  ;;  %v6237_v38 = vrot.slane %v6236_v46, 4  ;;  %v6033_v39 = vrot.slane %v6031_v53, 5  ;;  %v5402_v27 = vshrl.u32 %v8793_v55, 16  ;;  %v5405_v21 = vshll.u32 %v8793_v55, 16  ;;  %9216 = vmatmul.mubr.msk.bf16.vlgmr.msra.gmra.mrb[0].mxu1 %vm1662_vm10, %v9452_v32  ;;  %v8874_v55 = vld [vmem:[%s9520_s16 + $0x84] sm:$0xf] }
 0x24e   : > { %v6232_v0 = vsel %vm9532_vm2, %v6227_v13, %v6231_v40  ;;  %v6039_v30 = vrot.slane %v6037_v43, 5  ;;  %v6043_v63 = vrot.slane %v6041_v8, 4  ;;  %v6049_v33 = vrot.slane %v6047_v45, 5  ;;  %9217 = vmatprep.mubr.msk.bf16.mxu1 %vm1662_vm10, %v11533_v11  ;;  %v11581_v45 = vld [vmem:[#allocation2 + $0x8] sm:$0xff]  ;;  %v8850_v32 = vld [vmem:[%s9520_s16 + $0x24] sm:$0xf] }
 0x24f   : > { %v6242_v2 = vsel %vm9532_vm2, %v6237_v38, %v6241_v3  ;;  %v6034_v14 = vor.u32 %v6033_v39, %v6030_v57  ;;  %v5404_v12 = vrot.slane %v5402_v27, 4  ;;  %v5407_v34 = vrot.slane %v5405_v21, 5  ;;  %v5498_v4 = vpop.permute.xlu1 %5497  ;;  %v8875_v57 = vld [vmem:[%s9520_s16 + $0x88] sm:$0xf]  ;;  %v8876_v39 = vld [vmem:[%s9520_s16 + $0x8c] sm:$0x1] }
 0x250   : > { %4959 = vrot.lane.b32.xlu1 %v9415_v41, %s9479_s18  ;;  %v8901_v59 = vcombine.low %v6232_v0, %v6242_v2  ;;  %v6044_v29 = vor.u32 %v6043_v63, %v6039_v30  ;;  %v5411_v48 = vshll.u32 %v8794_v60, 16  ;;  %v5415_v15 = vshrl.u32 %v8794_v60, 16  ;;  %5533 = vst.msk [vmem:[#allocation2 + $0x60] sm:$0xff] %vm1573_vm9, %v5498_v4  ;;  %v8851_v2 = vld [vmem:[%s9520_s16 + $0x28] sm:$0xf] }
 0x251   : > { %4943 = vrot.lane.b32.xlu0 %v9416_v52, %s9479_s18  ;;  %v6035_v22 = vrot.slane %v6034_v14, 4  ;;  %v5408_v19 = vor.u32 %v5407_v34, %v5404_v12  ;;  %v5421_v40 = vshll.u32 %v8795_v6, 16  ;;  %v5210_v56 = vshrl.u32 %v8769_v10, 16 }
 0x252   : > { %6460 = vst.msk [vmem:[#allocation2 + $0x48] sm:$0xff] %vm299_vm6, %v8901_v59  ;;  %v6045_v17 = vrot.slane %v6044_v29, 4  ;;  %v5413_v58 = vrot.slane %v5411_v48, 5  ;;  %v5417_v24 = vrot.slane %v5415_v15, 4  ;;  %v5213_v18 = vshll.u32 %v8769_v10, 16  ;;  %v11605_v15 = vld [vmem:[%s12639_s1 + $0x58] sm:$0xff]  }
 0x253   : > { %6780 = vst.msk [vmem:[#allocation2 + $0x48] sm:$0xff] %vm847_vm7, %v11242_v7  ;;  %v6040_v31 = vsel %vm9532_vm2, %v6035_v22, %v6039_v30  ;;  %v5409_v28 = vrot.slane %v5408_v19, 4  ;;  %v5423_v23 = vrot.slane %v5421_v40, 5  ;;  %v5212_v3 = vrot.slane %v5210_v56, 4  ;;  %v11589_v0 = vpop.permute.xlu1 %6745  ;;  %v8852_v19 = vld [vmem:[%s9520_s16 + $0x2c] sm:$0x1] }
 0x254   : > { %v6050_v9 = vsel %vm9532_vm2, %v6045_v17, %v6049_v33  ;;  %v5418_v41 = vor.u32 %v5417_v24, %v5413_v58  ;;  %v5215_v52 = vrot.slane %v5213_v18, 5  ;;  %v5219_v46 = vshll.u32 %v8770_v42, 16  ;;  %7324 = vst.msk [vmem:[#allocation2 + $0x48] sm:$0xff] %vm1028_vm8, %v11275_v36  ;;  %v8877_v24 = vld [vmem:[%s9520_s16 + $0x90] sm:$0xf]  ;;  %v9435_v18 = vld [vmem:[%s12639_s1 + $0x80] sm:$0xff]  }
 0x255   : > { %v8893_v53 = vcombine.low %v6040_v31, %v6050_v9  ;;  %v5414_v7 = vsel %vm9532_vm2, %v5409_v28, %v5413_v58  ;;  %v5223_v13 = vshrl.u32 %v8770_v42, 16  ;;  %v5229_v43 = vshll.u32 %v8771_v47, 16  ;;  %7644 = vst.msk [vmem:[#allocation2 + $0x48] sm:$0xff] %vm1573_vm9, %v11307_v51  ;;  %9218 = vmatmul.mubr.msk.bf16.gmra.mrb[4].mxu1 %vm1662_vm10, %v11533_v11  ;;  %v5482_v8 = vpop.permute.xlu0 %5481  ;;  %9247 = vmatprep.mubr.msk.bf16.mxu0 %vm1662_vm10, %v9435_v18 }
 0x256   : > { %v5419_v60 = vrot.slane %v5418_v41, 4  ;;  %v5216_v38 = vor.u32 %v5215_v52, %v5212_v3  ;;  %v5221_v36 = vrot.slane %v5219_v46, 5  ;;  %9219 = vmatprep.mubr.msk.bf16.mxu1 %vm1662_vm10, %v11563_v5  ;;  %v6244_v6 = vshrl.u32 %v8874_v55, 16  ;;  %5525 = vst.msk [vmem:[#allocation2 + $0x20] sm:$0xff] %vm1573_vm9, %v5482_v8 }
 0x257   : > { %6452 = vst.msk [vmem:[#allocation2 + $0x8] sm:$0xff] %vm299_vm6, %v8893_v53  ;;  %v5225_v51 = vrot.slane %v5223_v13, 4  ;;  %v5231_v27 = vrot.slane %v5229_v43, 5  ;;  %v6247_v21 = vshll.u32 %v8874_v55, 16  ;;  %v6253_v11 = vshll.u32 %v8875_v57, 16 }
 0x258   : > { %6772 = vst.msk [vmem:[#allocation2 + $0x8] sm:$0xff] %vm847_vm7, %v11260_v49  ;;  %v5424_v30 = vsel %vm9532_vm2, %v5419_v60, %v5423_v23  ;;  %v5217_v63 = vrot.slane %v5216_v38, 4  ;;  %v6246_v33 = vrot.slane %v6244_v6, 4  ;;  %v6257_v10 = vshrl.u32 %v8875_v57, 16  ;;  %v8878_v55 = vld [vmem:[%s9520_s16 + $0x94] sm:$0xf] }
 0x259   : > { %v8811_v14 = vcombine.low %v5414_v7, %v5424_v30  ;;  %v5226_v12 = vor.u32 %v5225_v51, %v5221_v36  ;;  %7316 = vst.msk [vmem:[#allocation2 + $0x8] sm:$0xff] %vm1028_vm8, %v11288_v20  ;;  %v6249_v34 = vrot.slane %v6247_v21, 5  ;;  %v6255_v4 = vrot.slane %v6253_v11, 5  ;;  %v11607_v42 = vpop.permute.xlu0 %6729  ;;  %v8879_v7 = vld [vmem:[%s9520_s16 + $0x98] sm:$0x1]  ;;  %v11635_v30 = vld [vmem:[#allocation2 + $0x50] sm:$0xff] }
 0x25a   : > { %v5222_v59 = vsel %vm9532_vm2, %v5217_v63, %v5221_v36  ;;  %7636 = vst.msk [vmem:[#allocation2 + $0x8] sm:$0xff] %vm1573_vm9, %v11315_v44  ;;  %v6259_v49 = vrot.slane %v6257_v10, 4  ;;  %v6263_v29 = vshll.u32 %v8876_v39, 16  ;;  %v6052_v48 = vshrl.u32 %v8850_v32, 16  ;;  %v8853_v39 = vld [vmem:[%s9520_s16 + $0x30] sm:$0xf] }
 0x25b   : > { %5503 = vrot.lane.b32.xlu1 %v8811_v14, %s9480_s19  ;;  %v5227_v20 = vrot.slane %v5226_v12, 4  ;;  %v6250_v22 = vor.u32 %v6249_v34, %v6246_v33  ;;  %v6055_v40 = vshll.u32 %v8850_v32, 16  ;;  %v6061_v47 = vshll.u32 %v8851_v2, 16  ;;  %v8854_v32 = vld [vmem:[%s9520_s16 + $0x34] sm:$0xf]  ;;  %v11640_v33 = vld [vmem:[%s12639_s1 + $0x60] sm:$0xff]  }
 0x25c   : > { %v6260_v44 = vor.u32 %v6259_v49, %v6255_v4  ;;  %v6265_v56 = vrot.slane %v6263_v29, 5  ;;  %v6054_v17 = vrot.slane %v6052_v48, 4  ;;  %v6065_v58 = vshrl.u32 %v8851_v2, 16 }
 0x25d   : > { %v5232_v31 = vsel %vm9532_vm2, %v5227_v20, %v5231_v27  ;;  %9220 = vmatmul.mubr.msk.bf16.gmra.mrb[8].mxu1 %vm1662_vm10, %v11563_v5  ;;  %v6251_v28 = vrot.slane %v6250_v22, 4  ;;  %v6057_v23 = vrot.slane %v6055_v40, 5  ;;  %v6063_v3 = vrot.slane %v6061_v47, 5  ;;  %v11620_v9 = vpop.permute.xlu1 %7289  ;;  %v8880_v40 = vld [vmem:[%s9520_s16 + $0x9c] sm:$0xf] }
 0x25e   : > { %v8803_v41 = vcombine.low %v5222_v59, %v5232_v31  ;;  %v6261_v52 = vrot.slane %v6260_v44, 4  ;;  %v6067_v46 = vrot.slane %v6065_v58, 4  ;;  %v6071_v57 = vshll.u32 %v8852_v19, 16  ;;  %9221 = vmatprep.mubr.msk.bf16.mxu1 %vm1662_vm10, %v11605_v15 }
 0x25f   : > { %v6256_v53 = vsel %vm9532_vm2, %v6251_v28, %v6255_v4  ;;  %v6058_v5 = vor.u32 %v6057_v23, %v6054_v17  ;;  %v6268_v13 = vshrl.u32 %v8877_v24, 16  ;;  %v6271_v43 = vshll.u32 %v8877_v24, 16  ;;  %v8855_v4 = vld [vmem:[%s9520_s16 + $0x38] sm:$0x1] }
 0x260   : > { %5487 = vrot.lane.b32.xlu0 %v8803_v41, %s9480_s19  ;;  %v6266_v8 = vsel %vm9532_vm2, %v6261_v52, %v6265_v56  ;;  %v6068_v60 = vor.u32 %v6067_v46, %v6063_v3  ;;  %v6073_v38 = vrot.slane %v6071_v57, 5  ;;  %v6277_v36 = vshll.u32 %v8878_v55, 16  ;;  %v11632_v6 = vpop.permute.xlu0 %7273 }
 0x261   : > { %v8902_v51 = vcombine.low %v6256_v53, %v6266_v8  ;;  %v6059_v27 = vrot.slane %v6058_v5, 4  ;;  %v6270_v21 = vrot.slane %v6268_v13, 4  ;;  %v6273_v11 = vrot.slane %v6271_v43, 5  ;;  %v11646_v29 = vpop.permute.xlu1 %7609  ;;  %v8856_v43 = vld [vmem:[%s9520_s16 + $0x3c] sm:$0xf] }
 0x262   : > { %v6069_v63 = vrot.slane %v6068_v60, 4  ;;  %v6279_v10 = vrot.slane %v6277_v36, 5  ;;  %v6281_v2 = vshrl.u32 %v8878_v55, 16  ;;  %v6287_v14 = vshll.u32 %v8879_v7, 16 }
 0x263   : > { %6461 = vst.msk [vmem:[#allocation2 + $0x50] sm:$0xff] %vm299_vm6, %v8902_v51  ;;  %v6064_v12 = vsel %vm9532_vm2, %v6059_v27, %v6063_v3  ;;  %v6274_v34 = vor.u32 %v6273_v11, %v6270_v21  ;;  %v6076_v59 = vshrl.u32 %v8853_v39, 16  ;;  %v6079_v49 = vshll.u32 %v8853_v39, 16  ;;  %v8882_v3 = vld [vmem:[%s9520_s16 + $0xa4] sm:$0x1]  ;;  %v11697_v21 = vld [vmem:[#allocation2 + $0x58] sm:$0xff] }
 0x264   : > { %6781 = vst.msk [vmem:[#allocation2 + $0x50] sm:$0xff] %vm847_vm7, %v11431_v35  ;;  %v6074_v48 = vsel %vm9532_vm2, %v6069_v63, %v6073_v38  ;;  %v6283_v20 = vrot.slane %v6281_v2, 4  ;;  %v6289_v22 = vrot.slane %v6287_v14, 5  ;;  %v6085_v19 = vshll.u32 %v8854_v32, 16  ;;  %v11657_v35 = vld [vmem:[#allocation2 + $0x10] sm:$0xff]  ;;  %v11665_v31 = vpop.permute.xlu0 %7593 }
 0x265   : > { %v8894_v47 = vcombine.low %v6064_v12, %v6074_v48  ;;  %7325 = vst.msk [vmem:[#allocation2 + $0x50] sm:$0xff] %vm1028_vm8, %v11460_v54  ;;  %9222 = vmatmul.mubr.msk.bf16.gmra.mrb[12].mxu1 %vm1662_vm10, %v11605_v15  ;;  %v6275_v44 = vrot.slane %v6274_v34, 4  ;;  %v6078_v56 = vrot.slane %v6076_v59, 4  ;;  %v6081_v17 = vrot.slane %v6079_v49, 5  ;;  %v8881_v15 = vld [vmem:[%s9520_s16 + $0xa0] sm:$0xf] }
 0x266   : > { %7645 = vst.msk [vmem:[#allocation2 + $0x50] sm:$0xff] %vm1573_vm9, %v11479_v16  ;;  %9223 = vmatprep.mubr.msk.bf16.mxu1 %vm1662_vm10, %v11640_v33  ;;  %v6284_v58 = vor.u32 %v6283_v20, %v6279_v10  ;;  %v11663_v24 = vrot.slane %v6085_v19, 5  ;;  %v6089_v18 = vshrl.u32 %v8854_v32, 16  ;;  %v6095_v54 = vshll.u32 %v8855_v4, 16  ;;  %v8857_v38 = vld [vmem:[%s9520_s16 + $0x40] sm:$0xf] }
 0x267   : > { %6453 = vst.msk [vmem:[#allocation2 + $0x10] sm:$0xff] %vm299_vm6, %v8894_v47  ;;  %v6280_v28 = vsel %vm9532_vm2, %v6275_v44, %v6279_v10  ;;  %v6082_v23 = vor.u32 %v6081_v17, %v6078_v56  ;;  %v5635_v16 = vsel %vm1662_vm10, %v11419_v62, 0  ;;  %v6292_v55 = vshrl.u32 %v8880_v40, 16  ;;  %v8858_v27 = vld [vmem:[%s9520_s16 + $0x44] sm:$0x1] }
 0x268   : > { %6773 = vst.msk [vmem:[#allocation2 + $0x10] sm:$0xff] %vm847_vm7, %v11447_v50  ;;  %v6285_v41 = vrot.slane %v6284_v58, 4  ;;  %v6091_v52 = vrot.slane %v6089_v18, 4  ;;  %v6097_v46 = vrot.slane %v6095_v54, 5  ;;  %9232 = vmatpush3.bf16.xpose.msra.mxu0 %v5635_v16  ;;  %v6295_v57 = vshll.u32 %v8880_v40, 16  ;;  %v11686_v50 = vld [vmem:[%s12639_s1 + $0x68] sm:$0xff]  }
 0x269   : > { %7317 = vst.msk [vmem:[#allocation2 + $0x10] sm:$0xff] %vm1028_vm8, %v11469_v1  ;;  %v6083_v53 = vrot.slane %v6082_v23, 4  ;;  %9312 = vmatprep.subr.msk.bf16.mxu0 %vm1662_vm10, %v11556_v25  ;;  %v4776_v62 = vpop.permute.xlu1 %4775  ;;  %v6294_v5 = vrot.slane %v6292_v55, 4  ;;  %v6301_v7 = vshll.u32 %v8881_v15, 16  ;;  %v6305_v13 = vshrl.u32 %v8881_v15, 16 }
 0x26a   : > { %7637 = vst.msk [vmem:[#allocation2 + $0x10] sm:$0xff] %vm1573_vm9, %v11489_v37  ;;  %v6290_v1 = vsel %vm9532_vm2, %v6285_v41, %v6289_v22  ;;  %v6092_v8 = vor.u32 %v6091_v52, %v11663_v24  ;;  %v6297_v25 = vrot.slane %v6295_v57, 5  ;;  %v6311_v60 = vshll.u32 %v8882_v3, 16  ;;  %v8926_v14 = vld [vmem:[%s9520_s16 + $0x54] sm:$0xe] }
 0x26b   : > { %4810 = vst.msk [vmem:[#allocation2 + $0x68] sm:$0xff] %vm847_vm7, %v4776_v62  ;;  %v8903_v36 = vcombine.low %v6280_v28, %v6290_v1  ;;  %v6088_v37 = vsel %vm9532_vm2, %v6083_v53, %v11663_v24  ;;  %v6303_v39 = vrot.slane %v6301_v7, 5  ;;  %v6307_v51 = vrot.slane %v6305_v13, 4  ;;  %v8927_v12 = vld [vmem:[%s9520_s16 + $0x58] sm:$0xf]  ;;  %v11747_v13 = vld [vmem:[#allocation2 + $0x60] sm:$0xff] }
 0x26c   : > { %v6093_v11 = vrot.slane %v6092_v8, 4  ;;  %v4760_v32 = vpop.permute.xlu0 %4759  ;;  %v6298_v63 = vor.u32 %v6297_v25, %v6294_v5  ;;  %v6313_v10 = vrot.slane %v6311_v60, 5  ;;  %v6100_v2 = vshrl.u32 %v8856_v43, 16  ;;  %v8928_v20 = vld [vmem:[%s9520_s16 + $0x5c] sm:$0x1] }
 0x26d   : > { %9224 = vmatmul.mubr.msk.bf16.gmra.mrb[16].mxu1 %vm1662_vm10, %v11640_v33  ;;  %6462 = vst.msk [vmem:[#allocation2 + $0x58] sm:$0xff] %vm299_vm6, %v8903_v36  ;;  %v4956_v34 = vpop.permute.xlu1 %4955  ;;  %v6308_v4 = vor.u32 %v6307_v51, %v6303_v39  ;;  %v6103_v59 = vshll.u32 %v8856_v43, 16  ;;  %v6109_v49 = vshll.u32 %v8857_v38, 16  ;;  %v6113_v48 = vshrl.u32 %v8857_v38, 16  ;;  %v8950_v47 = vld [vmem:[%s9520_s16 + $0xb4] sm:$0xe] }
 0x26e   : > { %4802 = vst.msk [vmem:[#allocation2 + $0x28] sm:$0xff] %vm847_vm7, %v4760_v32  ;;  %9225 = vmatprep.mubr.msk.bf16.mxu1 %vm1662_vm10, %v11686_v50  ;;  %6782 = vst.msk [vmem:[#allocation2 + $0x58] sm:$0xff] %vm847_vm7, %v11589_v0  ;;  %v6098_v33 = vsel %vm9532_vm2, %v6093_v11, %v6097_v46  ;;  %v6299_v22 = vrot.slane %v6298_v63, 4  ;;  %v6102_v19 = vrot.slane %v6100_v2, 4  ;;  %v6119_v40 = vshll.u32 %v8858_v27, 16  ;;  %v11717_v0 = vld [vmem:[#allocation2 + $0x18] sm:$0xff] }
 0x26f   : > { %4990 = vst.msk [vmem:[#allocation2 + $0x68] sm:$0xff] %vm1028_vm8, %v4956_v34  ;;  %v8895_v44 = vcombine.low %v6088_v37, %v6098_v33  ;;  %7326 = vst.msk [vmem:[#allocation2 + $0x58] sm:$0xff] %vm1028_vm8, %v11620_v9  ;;  %v6309_v56 = vrot.slane %v6308_v4, 4  ;;  %v6105_v17 = vrot.slane %v6103_v59, 5  ;;  %v6111_v58 = vrot.slane %v6109_v49, 5 }
 0x270   : > { %v8951_v24 = vld [vmem:[%s9520_s16 + $0xb8] sm:$0xf]  ;;  %7646 = vst.msk [vmem:[#allocation2 + $0x58] sm:$0xff] %vm1573_vm9, %v11646_v29  ;;  %v4940_v18 = vpop.permute.xlu0 %4939  ;;  %v6304_v54 = vsel %vm9532_vm2, %v6299_v22, %v6303_v39  ;;  %v6115_v15 = vrot.slane %v6113_v48, 4  ;;  %v6121_v28 = vrot.slane %v6119_v40, 5  ;;  %v5638_v23 = vsel %vm1662_vm10, %v11581_v45, 0 }
 0x271   : > { %v8952_v9 = vld [vmem:[%s9520_s16 + $0xbc] sm:$0x1]  ;;  %6454 = vst.msk [vmem:[#allocation2 + $0x18] sm:$0xff] %vm299_vm6, %v8895_v44  ;;  %v6314_v16 = vsel %vm9532_vm2, %v6309_v56, %v6313_v10  ;;  %v6106_v3 = vor.u32 %v6105_v17, %v6102_v19  ;;  %9234 = vmatpush3.bf16.xpose.msra.mxu0 %v5638_v23  ;;  %v8962_v29 = vrot.slane %v8926_v14, 9  ;;  %v6607_v55 = vrot.slane %v8927_v12, 5  ;;  %v11731_v52 = vpop.f32.mrb[0].mxu0 }
 0x272   : > { %4982 = vst.msk [vmem:[#allocation2 + $0x28] sm:$0xff] %vm1028_vm8, %v4940_v18  ;;  %v9006_v41 = vld [vmem:[%s9520_s16 + $0x60] sm:$0xf]  ;;  %v11738_v45 = vld [vmem:[%s12639_s1 + $0x70] sm:$0xff]   ;;  %v8904_v46 = vcombine.low %v6304_v54, %v6314_v16  ;;  %v6116_v57 = vor.u32 %v6115_v15, %v6111_v58  ;;  %v6610_v53 = vrot.slane %v8928_v20, 5  ;;  %9313 = vmatprep.subr.msk.bf16.mxu0 %vm1662_vm10, %v11635_v30  ;;  %v8970_v62 = vrot.slane %v8950_v47, 9 }
 0x273   : > { %6774 = vst.msk [vmem:[#allocation2 + $0x18] sm:$0xff] %vm847_vm7, %v11607_v42  ;;  %v9007_v5 = vld [vmem:[%s9520_s16 + $0x64] sm:$0xf]  ;;  %v11743_v7 = vpop.f32.mrb[1].mxu0  ;;  %v6107_v42 = vrot.slane %v6106_v3, 4  ;;  %v6608_v43 = vsel %vm9822_vm5, %v8962_v29, %v6607_v55  ;;  %v6609_v1 = vrot.slane %v6607_v55, 4 }
 0x274   : > { %7318 = vst.msk [vmem:[#allocation2 + $0x18] sm:$0xff] %vm1028_vm8, %v11632_v6  ;;  %v6663_v8 = vrot.slane %v8951_v24, 5  ;;  %v11751_v25 = vpop.f32.mrb[2].mxu0  ;;  %v6117_v30 = vrot.slane %v6116_v57, 4  ;;  %v6666_v60 = vrot.slane %v8952_v9, 5  ;;  %v6980_v6 = vshrl.u32 %v9006_v41, 16 }
 0x275   : > { %7638 = vst.msk [vmem:[#allocation2 + $0x18] sm:$0xff] %vm1573_vm9, %v11665_v31  ;;  %v6983_v38 = vshll.u32 %v9006_v41, 16  ;;  %v11756_v36 = vpop.f32.mrb[3].mxu0  ;;  %9226 = vmatmul.mubr.msk.bf16.gmra.mrb[20].mxu1 %vm1662_vm10, %v11686_v50  ;;  %v6112_v37 = vsel %vm9532_vm2, %v6107_v42, %v6111_v58  ;;  %v6611_v39 = vsel %vm9822_vm5, %v6609_v1, %v6610_v53  ;;  %v9008_v27 = vld [vmem:[%s9520_s16 + $0x68] sm:$0x1]  ;;  %v6989_v34 = vshll.u32 %v9007_v5, 16 }
 0x276   : > { %6463 = vst.msk [vmem:[#allocation2 + $0x60] sm:$0xff] %vm299_vm6, %v8904_v46  ;;  %v6664_v31 = vsel %vm9822_vm5, %v8970_v62, %v6663_v8  ;;  %v6665_v51 = vrot.slane %v6663_v8, 4  ;;  %v9030_v11 = vld [vmem:[%s9520_s16 + $0xc0] sm:$0xf]  ;;  %9227 = vmatprep.mubr.msk.bf16.mxu1 %vm1662_vm10, %v11738_v45  ;;  %v6122_v50 = vsel %vm9532_vm2, %v6117_v30, %v6121_v28  ;;  %v8978_v32 = vcombine.low %v6608_v43, %v6611_v39  ;;  %v9031_v2 = vld [vmem:[%s9520_s16 + $0xc4] sm:$0xf] }
 0x277   : > { %v6982_v63 = vrot.slane %v6980_v6, 4  ;;  %v6985_v10 = vrot.slane %v6983_v38, 5  ;;  %v8896_v14 = vcombine.low %v6112_v37, %v6122_v50  ;;  %v6993_v4 = vshrl.u32 %v9007_v5, 16  ;;  %v9032_v59 = vld [vmem:[%s9520_s16 + $0xc8] sm:$0x1]  ;;  %v11777_v48 = vld [vmem:[#allocation2 + $0x20] sm:$0xff] }
 0x278   : > { %v6667_v12 = vsel %vm9822_vm5, %v6665_v51, %v6666_v60  ;;  %v9070_v49 = vld [vmem:[%s9520_s16 + $0x60] sm:$0xe]  ;;  %6735 = vrot.lane.b32.xlu0 %v8978_v32, %s9478_s17  ;;  %v6999_v22 = vshll.u32 %v9008_v27, 16  ;;  %v7172_v19 = vshrl.u32 %v9030_v11, 16  ;;  %v9071_v40 = vld [vmem:[%s9520_s16 + $0x64] sm:$0xf] }
 0x279   : > { %v8986_v20 = vcombine.low %v6664_v31, %v6667_v12  ;;  %v6986_v33 = vor.u32 %v6985_v10, %v6982_v63  ;;  %6455 = vst.msk [vmem:[#allocation2 + $0x20] sm:$0xff] %vm299_vm6, %v8896_v14  ;;  %v6991_v47 = vrot.slane %v6989_v34, 5  ;;  %v6995_v44 = vrot.slane %v6993_v4, 4  ;;  %v9072_v58 = vld [vmem:[%s9520_s16 + $0x68] sm:$0x1]  ;;  %v11784_v18 = vpop.f32.mrb[4].mxu0 }
 0x27a   : > { %v7175_v56 = vshll.u32 %v9030_v11, 16  ;;  %v7181_v17 = vshll.u32 %v9031_v2, 16  ;;  %v9094_v24 = vld [vmem:[%s9520_s16 + $0xc0] sm:$0xe]  ;;  %v11789_v54 = vld [vmem:[%s12639_s1 + $0x78] sm:$0xff]   ;;  %v5500_v15 = vpop.permute.xlu1 %5499  ;;  %v7001_v23 = vrot.slane %v6999_v22, 5 }
 0x27b   : > { %6751 = vrot.lane.b32.xlu1 %v8986_v20, %s9478_s17  ;;  %v6987_v28 = vrot.slane %v6986_v33, 4  ;;  %v7174_v9 = vrot.slane %v7172_v19, 4  ;;  %v7185_v16 = vshrl.u32 %v9031_v2, 16  ;;  %v11792_v3 = vpop.f32.mrb[5].mxu0  ;;  %5534 = vst.msk [vmem:[#allocation2 + $0x68] sm:$0xff] %vm1573_vm9, %v5500_v15  ;;  %v6996_v29 = vor.u32 %v6995_v44, %v6991_v47  ;;  %v7668_v11 = vld [vmem:[#allocation2] sm:$0xff] }
 0x27c   : > { %v7177_v55 = vrot.slane %v7175_v56, 5  ;;  %v7183_v41 = vrot.slane %v7181_v17, 5  ;;  %v7191_v46 = vshll.u32 %v9032_v59, 16  ;;  %v9095_v57 = vld [vmem:[%s9520_s16 + $0xc4] sm:$0xf]  ;;  %v11796_v53 = vpop.f32.mrb[6].mxu0 }
 0x27d   : > { %v6992_v62 = vsel %vm9532_vm2, %v6987_v28, %v6991_v47  ;;  %v7187_v5 = vrot.slane %v7185_v16, 4  ;;  %v5641_v42 = vsel %vm1662_vm10, %v11657_v35, 0  ;;  %v9106_v43 = vrot.slane %v9070_v49, 9  ;;  %v11802_v1 = vpop.f32.mrb[7].mxu0  ;;  %9228 = vmatmul.mubr.msk.bf16.gmra.mrb[24].mxu1 %vm1662_vm10, %v11738_v45  ;;  %v9096_v38 = vld [vmem:[%s9520_s16 + $0xc8] sm:$0x1] }
 0x27e   : > { %v6997_v8 = vrot.slane %v6996_v29, 4  ;;  %v7178_v30 = vor.u32 %v7177_v55, %v7174_v9  ;;  %v7193_v60 = vrot.slane %v7191_v46, 5  ;;  %9236 = vmatpush3.bf16.xpose.msra.mxu0 %v5641_v42  ;;  %v7471_v6 = vrot.slane %v9071_v40, 5  ;;  %9229 = vmatprep.mubr.msk.bf16.mxu1 %vm1662_vm10, %v11789_v54  ;;  %v5484_v37 = vpop.permute.xlu0 %5483  ;;  %v6748_v35 = vpop.permute.xlu1 %6747  ;;  %v8929_v45 = vld [vmem:[%s9520_s16 + $0x60] sm:$0xe]  ;;  %v7677_v59 = vld [vmem:[#allocation2 + $0x48] sm:$0xff] }
 0x27f   : > { %v7188_v39 = vor.u32 %v7187_v5, %v7183_v41  ;;  %v7474_v31 = vrot.slane %v9072_v58, 5  ;;  %v9114_v51 = vrot.slane %v9094_v24, 9  ;;  %v7527_v27 = vrot.slane %v9095_v57, 5  ;;  %9314 = vmatprep.subr.msk.bf16.mxu0 %vm1662_vm10, %v11697_v21  ;;  %5526 = vst.msk [vmem:[#allocation2 + $0x28] sm:$0xff] %vm1573_vm9, %v5484_v37  ;;  %v8930_v2 = vld [vmem:[%s9520_s16 + $0x64] sm:$0xf] }
 0x280   : > { %6783 = vst.msk [vmem:[#allocation2 + $0x60] sm:$0xff] %vm847_vm7, %v6748_v35  ;;  %v7002_v50 = vsel %vm9532_vm2, %v6997_v8, %v7001_v23  ;;  %v7179_v32 = vrot.slane %v7178_v30, 4  ;;  %v7472_v63 = vsel %vm9822_vm5, %v9106_v43, %v7471_v6  ;;  %v7473_v10 = vrot.slane %v7471_v6, 4  ;;  %v8931_v14 = vld [vmem:[%s9520_s16 + $0x68] sm:$0x1] }
 0x281   : > { %v9042_v12 = vcombine.low %v6992_v62, %v7002_v50  ;;  %v7189_v34 = vrot.slane %v7188_v39, 4  ;;  %v7528_v21 = vsel %vm9822_vm5, %v9114_v51, %v7527_v27  ;;  %v7529_v4 = vrot.slane %v7527_v27, 4  ;;  %v8883_v49 = vld [vmem:[%s9520_s16 + $0xa8] sm:$0xf]  ;;  %v8884_v40 = vld [vmem:[%s9520_s16 + $0xac] sm:$0xf] }
 0x282   : > { %v7184_v20 = vsel %vm9532_vm2, %v7179_v32, %v7183_v41  ;;  %v7475_v33 = vsel %vm9822_vm5, %v7473_v10, %v7474_v31  ;;  %v7530_v22 = vrot.slane %v9096_v38, 5  ;;  %v7749_v19 = vsel %vm1662_vm10, %v7668_v11, 0  ;;  %v11829_v47 = vpop.f32.mrb[8].mxu0  ;;  %v6732_v44 = vpop.permute.xlu0 %6731  ;;  %v8885_v15 = vld [vmem:[%s9520_s16 + $0xb0] sm:$0x1] }
 0x283   : > { %7279 = vrot.lane.b32.xlu0 %v9042_v12, %s9479_s18  ;;  %v7194_v56 = vsel %vm9532_vm2, %v7189_v34, %v7193_v60  ;;  %v9122_v17 = vcombine.low %v7472_v63, %v7475_v33  ;;  %9264 = vmatpush3.bf16.xpose.msra.mxu1 %v7749_v19  ;;  %v8963_v58 = vrot.slane %v8929_v45, 9  ;;  %v6614_v24 = vrot.slane %v8930_v2, 5  ;;  %v11835_v28 = vpop.f32.mrb[9].mxu0  ;;  %6775 = vst.msk [vmem:[#allocation2 + $0x20] sm:$0xff] %vm847_vm7, %v6732_v44  ;;  %v8859_v55 = vld [vmem:[%s9520_s16 + $0x48] sm:$0xf] }
 0x284   : > { %v9050_v23 = vcombine.low %v7184_v20, %v7194_v56  ;;  %v7531_v9 = vsel %vm9822_vm5, %v7529_v4, %v7530_v22  ;;  %v6617_v16 = vrot.slane %v8931_v14, 5  ;;  %9320 = vmatprep.subr.msk.bf16.mxu1 %vm1662_vm10, %v7677_v59  ;;  %v5644_v29 = vsel %vm1662_vm10, %v11717_v0, 0  ;;  %v11844_v41 = vpop.f32.mrb[10].mxu0  ;;  %v8860_v60 = vld [vmem:[%s9520_s16 + $0x4c] sm:$0xf]  ;;  %v7678_v19 = vld [vmem:[#allocation2 + $0x50] sm:$0xff] }
 0x285   : > { %v9130_v46 = vcombine.low %v7528_v21, %v7531_v9  ;;  %v6615_v57 = vsel %vm9822_vm5, %v8963_v58, %v6614_v24  ;;  %v6616_v62 = vrot.slane %v6614_v24, 4  ;;  %v6316_v5 = vshrl.u32 %v8883_v49, 16  ;;  %v11848_v42 = vpop.f32.mrb[11].mxu0  ;;  %9230 = vmatmul.mubr.msk.bf16.gmra.mrb[28].mxu1 %vm1662_vm10, %v11789_v54  ;;  %v8861_v35 = vld [vmem:[%s9520_s16 + $0x50] sm:$0x1]  ;;  %v7669_v4 = vld [vmem:[#allocation2 + $0x8] sm:$0xff] }
 0x286   : > { %7295 = vrot.lane.b32.xlu1 %v9050_v23, %s9479_s18  ;;  %v6319_v43 = vshll.u32 %v8883_v49, 16  ;;  %v6325_v8 = vshll.u32 %v8884_v40, 16  ;;  %v6329_v0 = vshrl.u32 %v8884_v40, 16  ;;  %v6335_v30 = vshll.u32 %v8885_v15, 16  ;;  %v7292_v6 = vpop.permute.xlu1 %7291  ;;  %9238 = vmatpush3.bf16.xpose.msra.mxu0 %v5644_v29  ;;  %v5559_v45 = vld [vmem:[#allocation2 + $0x28] sm:$0xff]  ;;  %v7670_v24 = vld [vmem:[#allocation2 + $0x10] sm:$0xff] }
 0x287   : > { %7599 = vrot.lane.b32.xlu0 %v9122_v17, %s9480_s19  ;;  %v6618_v38 = vsel %vm9822_vm5, %v6616_v62, %v6617_v16  ;;  %v6318_v37 = vrot.slane %v6316_v5, 4  ;;  %v6124_v39 = vshrl.u32 %v8859_v55, 16  ;;  %v6127_v31 = vshll.u32 %v8859_v55, 16  ;;  %7327 = vst.msk [vmem:[#allocation2 + $0x60] sm:$0xff] %vm1028_vm8, %v7292_v6  ;;  %9315 = vmatprep.subr.msk.bf16.mxu0 %vm1662_vm10, %v11747_v13  ;;  %v5567_v23 = vld [vmem:[#allocation2 + $0x68] sm:$0xff] }
 0x288   : > { %v8979_v54 = vcombine.low %v6615_v57, %v6618_v38  ;;  %v6321_v51 = vrot.slane %v6319_v43, 5  ;;  %v6327_v27 = vrot.slane %v6325_v8, 5  ;;  %v6331_v11 = vrot.slane %v6329_v0, 4 }
 0x289   : > { %v6337_v50 = vrot.slane %v6335_v30, 5  ;;  %v6126_v32 = vrot.slane %v6124_v39, 4  ;;  %v6129_v63 = vrot.slane %v6127_v31, 5  ;;  %v6133_v10 = vshll.u32 %v8860_v60, 16  ;;  %v7276_v2 = vpop.permute.xlu0 %7275  ;;  %v11862_v59 = vpop.f32.mrb[12].mxu0 }
 0x28a   : > { %7615 = vrot.lane.b32.xlu1 %v9130_v46, %s9480_s19  ;;  %v6322_v14 = vor.u32 %v6321_v51, %v6318_v37  ;;  %v6332_v12 = vor.u32 %v6331_v11, %v6327_v27  ;;  %v6137_v34 = vshrl.u32 %v8860_v60, 16  ;;  %v6143_v21 = vshll.u32 %v8861_v35, 16  ;;  %7319 = vst.msk [vmem:[#allocation2 + $0x20] sm:$0xff] %vm1028_vm8, %v7276_v2  ;;  %v7612_v49 = vpop.permute.xlu1 %7611  ;;  %v1801_v40 = vpop.f32.mrb[13].mxu0 }
 0x28b   : > { %6737 = vrot.lane.b32.xlu0 %v8979_v54, %s9478_s17  ;;  %v6130_v13 = vor.u32 %v6129_v63, %v6126_v32  ;;  %v6135_v20 = vrot.slane %v6133_v10, 5  ;;  %v5647_v33 = vsel %vm1662_vm10, %v11777_v48, 0  ;;  %v11869_v22 = vsel %vm1662_vm10, %v5559_v45, 0  ;;  %7647 = vst.msk [vmem:[#allocation2 + $0x60] sm:$0xff] %vm1573_vm9, %v7612_v49  ;;  %v11872_v15 = vpop.f32.mrb[14].mxu0  ;;  %v7679_v10 = vld [vmem:[#allocation2 + $0x58] sm:$0xff] }
 0x28c   : > { %v6323_v44 = vrot.slane %v6322_v14, 4  ;;  %v6333_v56 = vrot.slane %v6332_v12, 4  ;;  %v6139_v17 = vrot.slane %v6137_v34, 4  ;;  %v6145_v58 = vrot.slane %v6143_v21, 5  ;;  %v1805_v55 = vpop.f32.mrb[15].mxu0 }
 0x28d   : > { %v6131_v9 = vrot.slane %v6130_v13, 4  ;;  %v7752_v16 = vsel %vm1662_vm10, %v7669_v4, 0  ;;  %v1912_v48 = vmul.f32 %v11731_v52, %v11731_v52  ;;  %v11879_v29 = vadd.f32 %v11743_v7, %v11731_v52  ;;  %v7596_v46 = vpop.permute.xlu0 %7595 }
 0x28e   : > { %v6328_v57 = vsel %vm9532_vm2, %v6323_v44, %v6327_v27  ;;  %v6338_v62 = vsel %vm9532_vm2, %v6333_v56, %v6337_v50  ;;  %v6140_v5 = vor.u32 %v6139_v17, %v6135_v20  ;;  %9266 = vmatpush3.bf16.xpose.msra.mxu1 %v7752_v16  ;;  %v1913_v43 = vmul.f32 %v11743_v7, %v11743_v7  ;;  %v8886_v17 = vld [vmem:[%s9520_s16 + $0xb4] sm:$0xf]  ;;  %v8887_v16 = vld [vmem:[%s9520_s16 + $0xb8] sm:$0xf] }
 0x28f   : > { %7639 = vst.msk [vmem:[#allocation2 + $0x20] sm:$0xff] %vm1573_vm9, %v7596_v46  ;;  %v8905_v8 = vcombine.low %v6328_v57, %v6338_v62  ;;  %v6136_v52 = vsel %vm9532_vm2, %v6131_v9, %v6135_v20  ;;  %9240 = vmatpush3.bf16.xpose.msra.mxu0 %v5647_v33  ;;  %9321 = vmatprep.subr.msk.bf16.mxu1 %vm1662_vm10, %v7678_v19  ;;  %v7755_v30 = vsel %vm1662_vm10, %v7670_v24, 0  ;;  %v7671_v19 = vld [vmem:[#allocation2 + $0x18] sm:$0xff] }
 0x290   : > { %v1914_v0 = vmul.f32 %v11751_v25, %v11751_v25  ;;  %v6141_v60 = vrot.slane %v6140_v5, 4  ;;  %9316 = vmatprep.subr.msk.bf16.mxu0 %vm1662_vm10, %v5567_v23  ;;  %v11895_v6 = vadd.f32 %v1913_v43, %v1912_v48  ;;  %v11899_v7 = vadd.f32 %v11756_v36, %v11751_v25 }
 0x291   : > { %v1915_v38 = vmul.f32 %v11756_v36, %v11756_v36  ;;  %6464 = vst.msk [vmem:[#allocation2 + $0x68] sm:$0xff] %vm299_vm6, %v8905_v8  ;;  %v1916_v37 = vmul.f32 %v11784_v18, %v11784_v18  ;;  %v11908_v35 = vadd.f32 %v11792_v3, %v11784_v18  ;;  %v1917_v39 = vmul.f32 %v11792_v3, %v11792_v3  ;;  %v1809_v18 = vpop.f32.mrb[16].mxu0 }
 0x292   : > { %v1918_v31 = vmul.f32 %v11796_v53, %v11796_v53  ;;  %v6146_v25 = vsel %vm9532_vm2, %v6141_v60, %v6145_v58  ;;  %v11920_v36 = vadd.f32 %v11802_v1, %v11796_v53  ;;  %v1919_v51 = vmul.f32 %v11802_v1, %v11802_v1  ;;  %v1811_v50 = vpop.f32.mrb[17].mxu0 }
 0x293   : > { %v11916_v54 = vadd.f32 %v1915_v38, %v1914_v0  ;;  %v8897_v27 = vcombine.low %v6136_v52, %v6146_v25  ;;  %v11924_v11 = vadd.f32 %v1917_v39, %v1916_v37  ;;  %v1920_v3 = vmul.f32 %v11829_v47, %v11829_v47  ;;  %v1813_v2 = vpop.f32.mrb[18].mxu0  ;;  %v7680_v52 = vld [vmem:[#allocation2 + $0x60] sm:$0xff]  ;;  %v8888_v0 = vld [vmem:[%s9520_s16 + $0xbc] sm:$0x1] }
 0x294   : > { %v11930_v45 = vadd.f32 %v11835_v28, %v11829_v47  ;;  %v11932_v32 = vadd.f32 %v1919_v51, %v1918_v31  ;;  %v1921_v53 = vmul.f32 %v11835_v28, %v11835_v28  ;;  %v1922_v1 = vmul.f32 %v11844_v41, %v11844_v41  ;;  %v4778_v14 = vpop.permute.xlu1 %4777  ;;  %v1815_v34 = vpop.f32.mrb[19].mxu0 }
 0x295   : > { %v11940_v63 = vadd.f32 %v11848_v42, %v11844_v41  ;;  %6456 = vst.msk [vmem:[#allocation2 + $0x28] sm:$0xff] %vm299_vm6, %v8897_v27  ;;  %v1923_v47 = vmul.f32 %v11848_v42, %v11848_v42  ;;  %v1924_v12 = vmul.f32 %v11862_v59, %v11862_v59  ;;  %v4762_v28 = vpop.permute.xlu0 %4761  ;;  %v11951_v41 = vadd.f32 %v1801_v40, %v11862_v59 }
 0x296   : > { %4811 = vst.msk [vmem:[#allocation2 + $0x70] sm:$0xff] %vm847_vm7, %v4778_v14  ;;  %v11948_v21 = vadd.f32 %v1921_v53, %v1920_v3  ;;  %9268 = vmatpush3.bf16.xpose.msra.mxu1 %v7755_v30  ;;  %v1925_v4 = vmul.f32 %v1801_v40, %v1801_v40  ;;  %4803 = vst.msk [vmem:[#allocation2 + $0x30] sm:$0xff] %vm847_vm7, %v4762_v28  ;;  %v1926_v49 = vmul.f32 %v11872_v15, %v11872_v15  ;;  %v7672_v3 = vld [vmem:[#allocation2 + $0x20] sm:$0xff] }
 0x297   : > { %9242 = vmatpush3.bf16.xpose.msra.mxu0 %v11869_v22  ;;  %v11955_v42 = vadd.f32 %v1923_v47, %v1922_v1  ;;  %9322 = vmatprep.subr.msk.bf16.mxu1 %vm1662_vm10, %v7679_v10  ;;  %v11963_v20 = vadd.f32 %v1805_v55, %v11872_v15  ;;  %v1927_v59 = vmul.f32 %v1805_v55, %v1805_v55  ;;  %v7758_v57 = vsel %vm1662_vm10, %v7671_v19, 0 }
 0x298   : > { %v11960_v13 = vadd.f32 %v1925_v4, %v1924_v12  ;;  %v1928_v33 = vmul.f32 %v1809_v18, %v1809_v18  ;;  %v4958_v40 = vpop.permute.xlu1 %4957  ;;  %v11965_v44 = vadd.f32 %v1811_v50, %v1809_v18  ;;  %v1929_v22 = vmul.f32 %v1811_v50, %v1811_v50 }
 0x299   : > { %v1930_v56 = vmul.f32 %v1813_v2, %v1813_v2  ;;  %4991 = vst.msk [vmem:[#allocation2 + $0x70] sm:$0xff] %vm1028_vm8, %v4958_v40  ;;  %v4942_v58 = vpop.permute.xlu0 %4941  ;;  %v11969_v24 = vadd.f32 %v1927_v59, %v1926_v49  ;;  %v11971_v23 = vadd.f32 %v1815_v34, %v1813_v2  ;;  %v1931_v9 = vmul.f32 %v1815_v34, %v1815_v34  ;;  %v1819_v15 = vpop.f32.mrb[20].mxu0 }
 0x29a   : > { %4983 = vst.msk [vmem:[#allocation2 + $0x30] sm:$0xff] %vm1028_vm8, %v4942_v58  ;;  %v11975_v48 = vadd.f32 %v1929_v22, %v1928_v33  ;;  %v1932_v55 = vmul.f32 %v1819_v15, %v1819_v15  ;;  %v1821_v46 = vpop.f32.mrb[21].mxu0  ;;  %v6340_v30 = vshrl.u32 %v8886_v17, 16  ;;  %v6343_v37 = vshll.u32 %v8886_v17, 16 }
 0x29b   : > { %v11978_v62 = vadd.f32 %v1931_v9, %v1930_v56  ;;  %v11980_v5 = vadd.f32 %v1821_v46, %v1819_v15  ;;  %v1933_v43 = vmul.f32 %v1821_v46, %v1821_v46  ;;  %v1823_v8 = vpop.f32.mrb[22].mxu0  ;;  %v6349_v39 = vshll.u32 %v8887_v16, 16  ;;  %v8862_v9 = vld [vmem:[%s9520_s16 + $0x54] sm:$0xf] }
 0x29c   : > { %v1934_v60 = vmul.f32 %v1823_v8, %v1823_v8  ;;  %v1825_v38 = vpop.f32.mrb[23].mxu0  ;;  %v6353_v31 = vshrl.u32 %v8887_v16, 16  ;;  %v6342_v27 = vrot.slane %v6340_v30, 4  ;;  %v6345_v50 = vrot.slane %v6343_v37, 5 }
 0x29d   : > { %v11983_v25 = vadd.f32 %v1933_v43, %v1932_v55  ;;  %v11985_v51 = vadd.f32 %v1825_v38, %v1823_v8  ;;  %v1935_v18 = vmul.f32 %v1825_v38, %v1825_v38  ;;  %v6351_v53 = vrot.slane %v6349_v39, 5  ;;  %v8863_v43 = vld [vmem:[%s9520_s16 + $0x58] sm:$0xf] }
 0x29e   : > { %9270 = vmatpush3.bf16.xpose.msra.mxu1 %v7758_v57  ;;  %v6355_v1 = vrot.slane %v6353_v31, 4  ;;  %v6359_v10 = vshll.u32 %v8888_v0, 16  ;;  %v6346_v14 = vor.u32 %v6345_v50, %v6342_v27  ;;  %v7761_v34 = vsel %vm1662_vm10, %v7672_v3, 0 }
 0x29f   : > { %9323 = vmatprep.subr.msk.bf16.mxu1 %vm1662_vm10, %v7680_v52  ;;  %v11988_v2 = vadd.f32 %v1935_v18, %v1934_v60  ;;  %v8864_v52 = vld [vmem:[%s9520_s16 + $0x5c] sm:$0x1]  ;;  %v6148_v0 = vshrl.u32 %v8862_v9, 16  ;;  %v6151_v30 = vshll.u32 %v8862_v9, 16  ;;  %v6157_v27 = vshll.u32 %v8863_v43, 16 }
 0x2a0   : > { %v6356_v47 = vor.u32 %v6355_v1, %v6351_v53  ;;  %v6347_v49 = vrot.slane %v6346_v14, 4  ;;  %v6361_v33 = vrot.slane %v6359_v10, 5  ;;  %v6167_v1 = vshll.u32 %v8864_v52, 16 }
 0x2a1   : > { %v1829_v12 = vpop.f32.mrb[24].mxu0  ;;  %v6150_v31 = vrot.slane %v6148_v0, 4  ;;  %v6153_v18 = vrot.slane %v6151_v30, 5 }
 0x2a2   : > { %v1936_v28 = vmul.f32 %v1829_v12, %v1829_v12  ;;  %v1831_v4 = vpop.f32.mrb[25].mxu0  ;;  %v6357_v59 = vrot.slane %v6356_v47, 4  ;;  %v6352_v46 = vsel %vm9532_vm2, %v6347_v49, %v6351_v53  ;;  %v6161_v53 = vshrl.u32 %v8863_v43, 16 }
 0x2a3   : > { %v11991_v19 = vadd.f32 %v1831_v4, %v1829_v12  ;;  %v1937_v40 = vmul.f32 %v1831_v4, %v1831_v4  ;;  %v1833_v22 = vpop.f32.mrb[26].mxu0  ;;  %v6154_v12 = vor.u32 %v6153_v18, %v6150_v31 }
 0x2a4   : > { %v5502_v56 = vpop.permute.xlu1 %5501  ;;  %v1938_v17 = vmul.f32 %v1833_v22, %v1833_v22  ;;  %v1835_v58 = vpop.f32.mrb[27].mxu0  ;;  %v6362_v57 = vsel %vm9532_vm2, %v6357_v59, %v6361_v33  ;;  %v6159_v59 = vrot.slane %v6157_v27, 5 }
 0x2a5   : > { %5535 = vst.msk [vmem:[#allocation2 + $0x70] sm:$0xff] %vm1573_vm9, %v5502_v56  ;;  %v11995_v15 = vadd.f32 %v1937_v40, %v1936_v28  ;;  %v11997_v16 = vadd.f32 %v1835_v58, %v1833_v22  ;;  %v1939_v55 = vmul.f32 %v1835_v58, %v1835_v58  ;;  %v8906_v39 = vcombine.low %v6352_v46, %v6362_v57  ;;  %v8954_v57 = vld [vmem:[%s9520_s16 + $0xc4] sm:$0xf] }
 0x2a6   : > { %9272 = vmatpush3.bf16.xpose.msra.mxu1 %v7761_v34  ;;  %v6155_v56 = vrot.slane %v6154_v12, 4  ;;  %v6169_v58 = vrot.slane %v6167_v1, 5  ;;  %v6670_v30 = vrot.slane %v8954_v57, 5  ;;  %v8866_v12 = vld [vmem:[%s9520_s16 + $0x64] sm:$0xf] }
 0x2a7   : > { %v12004_v8 = vadd.f32 %v1939_v55, %v1938_v17 }
 0x2a8   : > { %v5486_v60 = vpop.permute.xlu0 %5485  ;;  %v6750_v38 = vpop.permute.xlu1 %6749 }
 0x2a9   : > { %5527 = vst.msk [vmem:[#allocation2 + $0x30] sm:$0xff] %vm1573_vm9, %v5486_v60  ;;  %v1839_v37 = vpop.f32.mrb[28].mxu0 }
 0x2aa   : > { %6784 = vst.msk [vmem:[#allocation2 + $0x68] sm:$0xff] %vm847_vm7, %v6750_v38  ;;  %1849 = vadd.xlane.f32.xlu0 %v11879_v29  ;;  %v1940_v3 = vmul.f32 %v1839_v37, %v1839_v37  ;;  %v1841_v50 = vpop.f32.mrb[29].mxu0  ;;  %v6163_v29 = vrot.slane %v6161_v53, 4 }
 0x2ab   : > { %v12010_v10 = vadd.f32 %v1841_v50, %v1839_v37  ;;  %v1941_v14 = vmul.f32 %v1841_v50, %v1841_v50  ;;  %v1843_v47 = vpop.f32.mrb[30].mxu0  ;;  %v8953_v37 = vld [vmem:[%s9520_s16 + $0xc0] sm:$0xe] }
 0x2ac   : > { %v6734_v34 = vpop.permute.xlu0 %6733  ;;  %v5568_v28 = vld [vmem:[#allocation2 + $0x70] sm:$0xff]  ;;  %v1942_v4 = vmul.f32 %v1843_v47, %v1843_v47  ;;  %v1845_v49 = vpop.f32.mrb[31].mxu0  ;;  %v6164_v17 = vor.u32 %v6163_v29, %v6159_v59  ;;  %v8971_v31 = vrot.slane %v8953_v37, 9  ;;  %v8891_v37 = vld [vmem:[%s9520_s16 + $0xc8] sm:$0x1] }
 0x2ad   : > { %6776 = vst.msk [vmem:[#allocation2 + $0x28] sm:$0xff] %vm847_vm7, %v6734_v34  ;;  %9317 = vmatprep.subr.msk.bf16.mxu0 %vm1662_vm10, %v5568_v28  ;;  %v12015_v33 = vadd.f32 %v1941_v14, %v1940_v3  ;;  %v12017_v40 = vadd.f32 %v1845_v49, %v1843_v47  ;;  %v1943_v22 = vmul.f32 %v1845_v49, %v1845_v49  ;;  %v8865_v47 = vld [vmem:[%s9520_s16 + $0x60] sm:$0xf]  ;;  %v6181_v49 = vshll.u32 %v8866_v12, 16 }
 0x2ae   : > { %1852 = vadd.xlane.f32.xlu1 %v11899_v7  ;;  %6465 = vst.msk [vmem:[#allocation2 + $0x70] sm:$0xff] %vm299_vm6, %v8906_v39  ;;  %1948 = vadd.xlane.f32.xlu0 %v11916_v54  ;;  %v6160_v7 = vsel %vm9532_vm2, %v6155_v56, %v6159_v59  ;;  %v6165_v43 = vrot.slane %v6164_v17, 4  ;;  %v8955_v39 = vld [vmem:[%s9520_s16 + $0xc8] sm:$0x1]  ;;  %v6671_v27 = vsel %vm9822_vm5, %v8971_v31, %v6670_v30  ;;  %v6172_v28 = vshrl.u32 %v8865_v47, 16 }
 0x2af   : > { %v12021_v9 = vadd.f32 %v1943_v22, %v1942_v4  ;;  %v6673_v18 = vrot.slane %v8955_v39, 5  ;;  %v6175_v4 = vshll.u32 %v8865_v47, 16  ;;  %v6185_v59 = vshrl.u32 %v8866_v12, 16  ;;  %v9009_v47 = vld [vmem:[%s9520_s16 + $0x6c] sm:$0xf] }
 0x2b0   : > { %v7294_v55 = vpop.permute.xlu1 %7293  ;;  %v5560_v46 = vld [vmem:[#allocation2 + $0x30] sm:$0xff]  ;;  %v6170_v54 = vsel %vm9532_vm2, %v6165_v43, %v6169_v58  ;;  %v6174_v29 = vrot.slane %v6172_v28, 4  ;;  %v6183_v56 = vrot.slane %v6181_v49, 5  ;;  %v8867_v58 = vld [vmem:[%s9520_s16 + $0x68] sm:$0x1]  ;;  %v7007_v49 = vshll.u32 %v9009_v47, 16 }
 0x2b1   : > { %7328 = vst.msk [vmem:[#allocation2 + $0x68] sm:$0xff] %vm1028_vm8, %v7294_v55  ;;  %v5653_v52 = vsel %vm1662_vm10, %v5560_v46, 0  ;;  %v8898_v60 = vcombine.low %v6160_v7, %v6170_v54  ;;  %v6177_v22 = vrot.slane %v6175_v4, 5  ;;  %v6187_v17 = vrot.slane %v6185_v59, 4  ;;  %v9010_v12 = vld [vmem:[%s9520_s16 + $0x70] sm:$0xf] }
 0x2b2   : > { %1945 = vadd.xlane.f32.xlu1 %v11895_v6  ;;  %9244 = vmatpush3.bf16.xpose.msra.mxu0 %v5653_v52  ;;  %v6191_v46 = vshll.u32 %v8867_v58, 16  ;;  %v7004_v4 = vshrl.u32 %v9009_v47, 16  ;;  %v7013_v59 = vshll.u32 %v9010_v12, 16 }
 0x2b3   : > { %1855 = vadd.xlane.f32.xlu0 %v11908_v35  ;;  %v7278_v0 = vpop.permute.xlu0 %7277  ;;  %6457 = vst.msk [vmem:[#allocation2 + $0x30] sm:$0xff] %vm299_vm6, %v8898_v60  ;;  %v6672_v35 = vrot.slane %v6670_v30, 4  ;;  %v6178_v55 = vor.u32 %v6177_v22, %v6174_v29  ;;  %v8889_v60 = vld [vmem:[%s9520_s16 + $0xc0] sm:$0xf] }
 0x2b4   : > { %7320 = vst.msk [vmem:[#allocation2 + $0x28] sm:$0xff] %vm1028_vm8, %v7278_v0  ;;  %v7614_v38 = vpop.permute.xlu1 %7613  ;;  %v6193_v52 = vrot.slane %v6191_v46, 5  ;;  %v6364_v39 = vshrl.u32 %v8889_v60, 16  ;;  %v7006_v22 = vrot.slane %v7004_v4, 4  ;;  %v9097_v4 = vld [vmem:[%s9520_s16 + $0xcc] sm:$0xe] }
 0x2b5   : > { %7648 = vst.msk [vmem:[#allocation2 + $0x68] sm:$0xff] %vm1573_vm9, %v7614_v38  ;;  %v6674_v3 = vsel %vm9822_vm5, %v6672_v35, %v6673_v18  ;;  %v6179_v7 = vrot.slane %v6178_v55, 4  ;;  %v8890_v38 = vld [vmem:[%s9520_s16 + $0xc4] sm:$0xf]  ;;  %v6383_v18 = vshll.u32 %v8891_v37, 16 }
 0x2b6   : > { %v8987_v53 = vcombine.low %v6671_v27, %v6674_v3  ;;  %v6373_v31 = vshll.u32 %v8890_v38, 16  ;;  %v6377_v35 = vshrl.u32 %v8890_v38, 16 }
 0x2b7   : > { %1858 = vadd.xlane.f32.xlu0 %v11920_v36  ;;  %v7598_v6 = vpop.permute.xlu0 %7597 }
 0x2b8   : > { %7640 = vst.msk [vmem:[#allocation2 + $0x28] sm:$0xff] %vm1573_vm9, %v7598_v6  ;;  %v6367_v6 = vshll.u32 %v8889_v60, 16  ;;  %v6375_v3 = vrot.slane %v6373_v31, 5 }
 0x2ba   : > { %v6369_v27 = vrot.slane %v6367_v6, 5 }
 0x2bb   : > { %1954 = vadd.xlane.f32.xlu0 %v11932_v32 }
 0x2bc   : > { %v7681_v50 = vld [vmem:[#allocation2 + $0x68] sm:$0xff] }
 0x2bd   : > { %9324 = vmatprep.subr.msk.bf16.mxu1 %vm1662_vm10, %v7681_v50  ;;  %v6379_v50 = vrot.slane %v6377_v35, 4  ;;  %v9440_v35 = vld [vmem:[%s12639_s1 + $0xa8] sm:$0xff]  }
 0x2be   : > { %v4780_v36 = vpop.permute.xlu1 %4779 }
 0x2bf   : > { %1864 = vadd.xlane.f32.xlu0 %v11940_v63  ;;  %4812 = vst.msk [vmem:[#allocation2 + $0x78] sm:$0xff] %vm847_vm7, %v4780_v36  ;;  %v4764_v1 = vpop.permute.xlu0 %4763  ;;  %v7673_v14 = vld [vmem:[#allocation2 + $0x28] sm:$0xff] }
 0x2c0   : > { %4804 = vst.msk [vmem:[#allocation2 + $0x38] sm:$0xff] %vm847_vm7, %v4764_v1  ;;  %v7764_v32 = vsel %vm1662_vm10, %v7673_v14, 0  ;;  %v6385_v1 = vrot.slane %v6383_v18, 5 }
 0x2c1   : > { %9274 = vmatpush3.bf16.xpose.msra.mxu1 %v7764_v32 }
 0x2c2   : > { %v4960_v34 = vpop.permute.xlu1 %4959 }
 0x2c3   : > { %6753 = vrot.lane.b32.xlu1 %v8987_v53, %s9478_s17  ;;  %1960 = vadd.xlane.f32.xlu0 %v11955_v42  ;;  %4992 = vst.msk [vmem:[#allocation2 + $0x78] sm:$0xff] %vm1028_vm8, %v4960_v34  ;;  %v4944_v63 = vpop.permute.xlu0 %4943  ;;  %v6188_v42 = vor.u32 %v6187_v17, %v6183_v56  ;;  %v6380_v53 = vor.u32 %v6379_v50, %v6375_v3  ;;  %v7015_v17 = vrot.slane %v7013_v59, 5  ;;  %v9442_v50 = vld [vmem:[%s12639_s1 + $0xb8] sm:$0xff]   ;;  %v9099_v59 = vld [vmem:[%s9520_s16 + $0xd4] sm:$0x1] }
 0x2c4   : > { %4984 = vst.msk [vmem:[#allocation2 + $0x38] sm:$0xff] %vm1028_vm8, %v4944_v63  ;;  %v9437_v63 = vld [vmem:[%s12639_s1 + $0x90] sm:$0xff]  }
 0x2c5   : > { %v6189_v43 = vrot.slane %v6188_v42, 4  ;;  %v6381_v32 = vrot.slane %v6380_v53, 4 }
 0x2c7   : > { %1870 = vadd.xlane.f32.xlu0 %v11963_v20  ;;  %v6194_v54 = vsel %vm9532_vm2, %v6189_v43, %v6193_v52  ;;  %v6386_v34 = vsel %vm9532_vm2, %v6381_v32, %v6385_v1  ;;  %v9035_v32 = vld [vmem:[%s9520_s16 + $0xd4] sm:$0x1] }
 0x2cb   : > { %1966 = vadd.xlane.f32.xlu0 %v11969_v24  ;;  %v6184_v24 = vsel %vm9532_vm2, %v6179_v7, %v6183_v56  ;;  %v7009_v56 = vrot.slane %v7007_v49, 5 }
 0x2cd   : > { %v5504_v57 = vpop.permute.xlu1 %5503  ;;  %v7010_v55 = vor.u32 %v7009_v56, %v7006_v22  ;;  %v7537_v56 = vrot.slane %v9099_v59, 5 }
 0x2ce   : > { %5536 = vst.msk [vmem:[#allocation2 + $0x78] sm:$0xff] %vm1573_vm9, %v5504_v57  ;;  %v9074_v57 = vld [vmem:[%s9520_s16 + $0x70] sm:$0xf] }
 0x2cf   : > { %1876 = vadd.xlane.f32.xlu0 %v11971_v23  ;;  %v8899_v23 = vcombine.low %v6184_v24, %v6194_v54  ;;  %v7011_v43 = vrot.slane %v7010_v55, 4  ;;  %v9073_v54 = vld [vmem:[%s9520_s16 + $0x6c] sm:$0xe] }
 0x2d2   : > { %v5488_v20 = vpop.permute.xlu0 %5487 }
 0x2d3   : > { %1972 = vadd.xlane.f32.xlu0 %v11978_v62  ;;  %5528 = vst.msk [vmem:[#allocation2 + $0x38] sm:$0xff] %vm1573_vm9, %v5488_v20  ;;  %v7478_v20 = vrot.slane %v9074_v57, 5 }
 0x2d5   : > { %v5569_v0 = vld [vmem:[#allocation2 + $0x78] sm:$0xff]  ;;  %v7480_v60 = vrot.slane %v7478_v20, 4 }
 0x2d6   : > { %9318 = vmatprep.subr.msk.bf16.mxu0 %vm1662_vm10, %v5569_v0  ;;  %v9075_v0 = vld [vmem:[%s9520_s16 + $0x74] sm:$0x1] }
 0x2d7   : > { %1882 = vadd.xlane.f32.xlu0 %v11985_v51  ;;  %v9436_v51 = vld [vmem:[%s12639_s1 + $0x88] sm:$0xff]   ;;  %v7481_v38 = vrot.slane %v9075_v0, 5 }
 0x2da   : > { %v5561_v30 = vld [vmem:[#allocation2 + $0x38] sm:$0xff] }
 0x2db   : > { %1978 = vadd.xlane.f32.xlu0 %v11988_v2  ;;  %v5656_v62 = vsel %vm1662_vm10, %v5561_v30, 0  ;;  %6458 = vst.msk [vmem:[#allocation2 + $0x38] sm:$0xff] %vm299_vm6, %v8899_v23  ;;  %v6366_v2 = vrot.slane %v6364_v39, 4  ;;  %v7016_v30 = vsel %vm9532_vm2, %v7011_v43, %v7015_v17 }
 0x2dc   : > { %9246 = vmatpush3.bf16.xpose.msra.mxu0 %v5656_v62 }
 0x2dd   : > { %v6370_v36 = vor.u32 %v6369_v27, %v6366_v2  ;;  %v9441_v27 = vld [vmem:[%s12639_s1 + $0xb0] sm:$0xff]  }
 0x2df   : > { %1888 = vadd.xlane.f32.xlu0 %v11997_v16  ;;  %v9453_v16 = vld [vmem:[%s12639_s1 + $0x80] sm:$0xff]   ;;  %v6371_v14 = vrot.slane %v6370_v36, 4 }
 0x2e3   : > { %1984 = vadd.xlane.f32.xlu0 %v12004_v8  ;;  %9248 = vmatmul.mubr.msk.bf16.vlgmr.msra.gmra.mrb[32].mxu0 %vm1662_vm10, %v9453_v16  ;;  %v6376_v8 = vsel %vm9532_vm2, %v6371_v14, %v6375_v3  ;;  %v9034_v3 = vld [vmem:[%s9520_s16 + $0xd0] sm:$0xf] }
 0x2e4   : > { %9249 = vmatprep.mubr.msk.bf16.mxu0 %vm1662_vm10, %v9436_v51  ;;  %v8907_v28 = vcombine.low %v6376_v8, %v6386_v34  ;;  %v7205_v36 = vshll.u32 %v9034_v3, 16  ;;  %v7209_v53 = vshrl.u32 %v9034_v3, 16  ;;  %v7215_v8 = vshll.u32 %v9035_v32, 16  ;;  %v9098_v34 = vld [vmem:[%s9520_s16 + $0xd0] sm:$0xf] }
 0x2e5   : > { %v7534_v49 = vrot.slane %v9098_v34, 5 }
 0x2e6   : > { %6466 = vst.msk [vmem:[#allocation2 + $0x78] sm:$0xff] %vm299_vm6, %v8907_v28  ;;  %v7211_v14 = vrot.slane %v7209_v53, 4  ;;  %v7217_v28 = vrot.slane %v7215_v8, 5 }
 0x2e7   : > { %1951 = vadd.xlane.f32.xlu1 %v11924_v11  ;;  %1894 = vadd.xlane.f32.xlu0 %v12017_v40  ;;  %v7017_v11 = vshrl.u32 %v9010_v12, 16  ;;  %v7536_v22 = vrot.slane %v7534_v49, 4 }
 0x2e9   : > { %v7019_v58 = vrot.slane %v7017_v11, 4  ;;  %v9115_v11 = vrot.slane %v9097_v4, 9  ;;  %v7538_v26 = vsel %vm9822_vm5, %v7536_v22, %v7537_v56 }
 0x2ea   : > { %v6736_v40 = vpop.permute.xlu0 %6735 }
 0x2eb   : > { %1861 = vadd.xlane.f32.xlu1 %v11930_v45  ;;  %1990 = vadd.xlane.f32.xlu0 %v12021_v9  ;;  %6777 = vst.msk [vmem:[#allocation2 + $0x30] sm:$0xff] %vm847_vm7, %v6736_v40  ;;  %v9011_v45 = vld [vmem:[%s9520_s16 + $0x74] sm:$0x1]  ;;  %v9438_v9 = vld [vmem:[%s12639_s1 + $0x98] sm:$0xff]   ;;  %v7020_v42 = vor.u32 %v7019_v58, %v7015_v17 }
 0x2ec   : > { %9250 = vmatmul.mubr.msk.bf16.gmra.mrb[36].mxu0 %vm1662_vm10, %v9436_v51  ;;  %v7023_v46 = vshll.u32 %v9011_v45, 16 }
 0x2ed   : > { %9251 = vmatprep.mubr.msk.bf16.mxu0 %vm1662_vm10, %v9437_v63  ;;  %v6752_v29 = vpop.permute.xlu1 %6751 }
 0x2ee   : > { %6785 = vst.msk [vmem:[#allocation2 + $0x70] sm:$0xff] %vm847_vm7, %v6752_v29  ;;  %v7025_v52 = vrot.slane %v7023_v46, 5 }
 0x2ef   : > { %1957 = vadd.xlane.f32.xlu1 %v11948_v21  ;;  %v7021_v21 = vrot.slane %v7020_v42, 4 }
 0x2f1   : > { %v7026_v62 = vsel %vm9532_vm2, %v7021_v21, %v7025_v52 }
 0x2f2   : > { %v9043_v39 = vcombine.low %v7016_v30, %v7026_v62 }
 0x2f3   : > { %1867 = vadd.xlane.f32.xlu1 %v11951_v41  ;;  %v9439_v41 = vld [vmem:[%s12639_s1 + $0xa0] sm:$0xff]  }
 0x2f4   : > { %9252 = vmatmul.mubr.msk.bf16.gmra.mrb[40].mxu0 %vm1662_vm10, %v9437_v63 }
 0x2f5   : > { %9253 = vmatprep.mubr.msk.bf16.mxu0 %vm1662_vm10, %v9438_v9  ;;  %v7280_v7 = vpop.permute.xlu0 %7279 }
 0x2f6   : > { %7321 = vst.msk [vmem:[#allocation2 + $0x30] sm:$0xff] %vm1028_vm8, %v7280_v7  ;;  %v7535_v7 = vsel %vm9822_vm5, %v9115_v11, %v7534_v49 }
 0x2f7   : > { %1963 = vadd.xlane.f32.xlu1 %v11960_v13  ;;  %v9107_v13 = vrot.slane %v9073_v54, 9 }
 0x2f8   : > { %v7296_v24 = vpop.permute.xlu1 %7295 }
 0x2f9   : > { %7329 = vst.msk [vmem:[#allocation2 + $0x70] sm:$0xff] %vm1028_vm8, %v7296_v24  ;;  %v7600_v23 = vpop.permute.xlu0 %7599  ;;  %v7479_v31 = vsel %vm9822_vm5, %v9107_v13, %v7478_v20  ;;  %v9131_v24 = vcombine.low %v7535_v7, %v7538_v26 }
 0x2fa   : > { %7641 = vst.msk [vmem:[#allocation2 + $0x30] sm:$0xff] %vm1573_vm9, %v7600_v23 }
 0x2fb   : > { %1873 = vadd.xlane.f32.xlu1 %v11965_v44  ;;  %v7482_v44 = vsel %vm9822_vm5, %v7480_v60, %v7481_v38 }
 0x2fc   : > { %9254 = vmatmul.mubr.msk.bf16.gmra.mrb[44].mxu0 %vm1662_vm10, %v9438_v9  ;;  %v7616_v37 = vpop.permute.xlu1 %7615  ;;  %v9123_v18 = vcombine.low %v7479_v31, %v7482_v44 }
 0x2fd   : > { %9255 = vmatprep.mubr.msk.bf16.mxu0 %vm1662_vm10, %v9439_v41  ;;  %7649 = vst.msk [vmem:[#allocation2 + $0x70] sm:$0xff] %vm1573_vm9, %v7616_v37  ;;  %v6738_v6 = vpop.permute.xlu0 %6737 }
 0x2fe   : > { %6778 = vst.msk [vmem:[#allocation2 + $0x38] sm:$0xff] %vm847_vm7, %v6738_v6 }
 0x2ff   : > { %1969 = vadd.xlane.f32.xlu1 %v11975_v48 }
 0x301   : > { %7281 = vrot.lane.b32.xlu0 %v9043_v39, %s9479_s18  ;;  %v7674_v51 = vld [vmem:[#allocation2 + $0x30] sm:$0xff] }
 0x302   : > { %v7767_v48 = vsel %vm1662_vm10, %v7674_v51, 0 }
 0x303   : > { %1879 = vadd.xlane.f32.xlu1 %v11980_v5  ;;  %v9033_v5 = vld [vmem:[%s9520_s16 + $0xcc] sm:$0xf] }
 0x304   : > { %9256 = vmatmul.mubr.msk.bf16.gmra.mrb[48].mxu0 %vm1662_vm10, %v9439_v41  ;;  %v7682_v2 = vld [vmem:[#allocation2 + $0x70] sm:$0xff]  ;;  %v7199_v16 = vshll.u32 %v9033_v5, 16 }
 0x305   : > { %9257 = vmatprep.mubr.msk.bf16.mxu0 %vm1662_vm10, %v9440_v35  ;;  %9325 = vmatprep.subr.msk.bf16.mxu1 %vm1662_vm10, %v7682_v2 }
 0x306   : > { %7601 = vrot.lane.b32.xlu0 %v9123_v18, %s9480_s19  ;;  %9276 = vmatpush3.bf16.xpose.msra.mxu1 %v7767_v48  ;;  %v7201_v1 = vrot.slane %v7199_v16, 5 }
 0x307   : > { %1975 = vadd.xlane.f32.xlu1 %v11983_v25  ;;  %v7196_v25 = vshrl.u32 %v9033_v5, 16 }
 0x30b   : > { %1885 = vadd.xlane.f32.xlu1 %v11991_v19  ;;  %v7198_v19 = vrot.slane %v7196_v25, 4 }
 0x30c   : > { %9258 = vmatmul.mubr.msk.bf16.gmra.mrb[52].mxu0 %vm1662_vm10, %v9440_v35 }
 0x30d   : > { %9259 = vmatprep.mubr.msk.bf16.mxu0 %vm1662_vm10, %v9441_v27  ;;  %v7202_v47 = vor.u32 %v7201_v1, %v7198_v19 }
 0x30f   : > { %1981 = vadd.xlane.f32.xlu1 %v11995_v15  ;;  %v7207_v15 = vrot.slane %v7205_v36, 5 }
 0x311   : > { %v7212_v12 = vor.u32 %v7211_v14, %v7207_v15 }
 0x313   : > { %1891 = vadd.xlane.f32.xlu1 %v12010_v10  ;;  %v7203_v10 = vrot.slane %v7202_v47, 4  ;;  %v7213_v63 = vrot.slane %v7212_v12, 4 }
 0x314   : > { %9260 = vmatmul.mubr.msk.bf16.gmra.mrb[56].mxu0 %vm1662_vm10, %v9441_v27 }
 0x315   : > { %9261 = vmatprep.mubr.msk.bf16.mxu0 %vm1662_vm10, %v9442_v50  ;;  %v7208_v29 = vsel %vm9532_vm2, %v7203_v10, %v7207_v15 }
 0x317   : > { %1987 = vadd.xlane.f32.xlu1 %v12015_v33  ;;  %v7218_v33 = vsel %vm9532_vm2, %v7213_v63, %v7217_v28 }
 0x318   : > { %v9051_v57 = vcombine.low %v7208_v29, %v7218_v33 }
 0x31c   : > { %9262 = vmatmul.mubr.msk.bf16.gmra.mrb[60].mxu0 %vm1662_vm10, %v9442_v50 }
 0x320   : > { %v3886_v40 = vpop.f32.mrb[0].mxu1 }
 0x321   : > { %v4029_v17 = vmul.f32 %v3886_v40, %v3886_v40  ;;  %v3888_v58 = vpop.f32.mrb[1].mxu1 }
 0x322   : > { %v3965_v45 = vadd.f32 %v3888_v58, %v3886_v40  ;;  %v4030_v9 = vmul.f32 %v3888_v58, %v3888_v58  ;;  %v3890_v55 = vpop.f32.mrb[2].mxu1 }
 0x323   : > { %v4031_v42 = vmul.f32 %v3890_v55, %v3890_v55  ;;  %v3892_v46 = vpop.f32.mrb[3].mxu1 }
 0x324   : > { %v12172_v43 = vadd.f32 %v4030_v9, %v4029_v17  ;;  %v12174_v21 = vadd.f32 %v3892_v46, %v3890_v55  ;;  %v4032_v52 = vmul.f32 %v3892_v46, %v3892_v46 }
 0x325   : > { %3966 = vadd.xlane.f32.xlu0 %v3965_v45 }
 0x326   : > { %v12178_v20 = vadd.f32 %v4032_v52, %v4031_v42 }
 0x328   : > { %7297 = vrot.lane.b32.xlu1 %v9051_v57, %s9479_s18  ;;  %v3896_v54 = vpop.f32.mrb[4].mxu1 }
 0x329   : > { %v4033_v0 = vmul.f32 %v3896_v54, %v3896_v54  ;;  %v3898_v41 = vpop.f32.mrb[5].mxu1 }
 0x32a   : > { %v3971_v23 = vadd.f32 %v3898_v41, %v3896_v54  ;;  %v4034_v30 = vmul.f32 %v3898_v41, %v3898_v41  ;;  %v3900_v62 = vpop.f32.mrb[6].mxu1 }
 0x32b   : > { %v4035_v13 = vmul.f32 %v3900_v62, %v3900_v62  ;;  %v3902_v60 = vpop.f32.mrb[7].mxu1 }
 0x32c   : > { %7617 = vrot.lane.b32.xlu1 %v9131_v24, %s9480_s19  ;;  %v12182_v38 = vadd.f32 %v4034_v30, %v4033_v0  ;;  %3972 = vadd.xlane.f32.xlu0 %v3971_v23  ;;  %v3974_v61 = vadd.f32 %v3902_v60, %v3900_v62  ;;  %v4036_v37 = vmul.f32 %v3902_v60, %v3902_v60 }
 0x32e   : > { %v12184_v39 = vadd.f32 %v4036_v37, %v4035_v13 }
 0x330   : > { %v3906_v6 = vpop.f32.mrb[8].mxu1  ;;  %3975 = vadd.xlane.f32.xlu0 %v3974_v61 }
 0x331   : > { %v4037_v31 = vmul.f32 %v3906_v6, %v3906_v6  ;;  %v3908_v44 = vpop.f32.mrb[9].mxu1 }
 0x332   : > { %v12186_v35 = vadd.f32 %v3908_v44, %v3906_v6  ;;  %v4038_v51 = vmul.f32 %v3908_v44, %v3908_v44  ;;  %v3910_v18 = vpop.f32.mrb[10].mxu1 }
 0x333   : > { %v4039_v48 = vmul.f32 %v3910_v18, %v3910_v18  ;;  %v3912_v2 = vpop.f32.mrb[11].mxu1 }
 0x334   : > { %v12188_v27 = vadd.f32 %v4038_v51, %v4037_v31  ;;  %v3980_v5 = vadd.f32 %v3912_v2, %v3910_v18  ;;  %v4040_v3 = vmul.f32 %v3912_v2, %v3912_v2 }
 0x336   : > { %v12190_v50 = vadd.f32 %v4040_v3, %v4039_v48  ;;  %3981 = vadd.xlane.f32.xlu0 %v3980_v5 }
 0x337   : > { %v12192_v25 = vpop.xlane.xlu0 %1849 }
 0x338   : > { %12645 = vst [vmem:[#allocation3_spill] sm:$0xff] %v12192_v25  ;;  %v3916_v16 = vpop.f32.mrb[12].mxu1 }
 0x339   : > { %v4041_v36 = vmul.f32 %v3916_v16, %v3916_v16  ;;  %v3918_v53 = vpop.f32.mrb[13].mxu1 }
 0x33a   : > { %v3983_v19 = vadd.f32 %v3918_v53, %v3916_v16  ;;  %v4042_v1 = vmul.f32 %v3918_v53, %v3918_v53  ;;  %v3920_v15 = vpop.f32.mrb[14].mxu1 }
 0x33b   : > { %v12194_v14 = vpop.xlane.xlu1 %1852  ;;  %v4043_v32 = vmul.f32 %v3920_v15, %v3920_v15  ;;  %v3922_v47 = vpop.f32.mrb[15].mxu1 }
 0x33c   : > { %12646 = vst [vmem:[#allocation4_spill] sm:$0xff] %v12194_v14  ;;  %v12196_v12 = vpop.xlane.xlu0 %1948  ;;  %v12198_v8 = vadd.f32 %v4042_v1, %v4041_v36  ;;  %v3986_v34 = vadd.f32 %v3922_v47, %v3920_v15  ;;  %v4044_v10 = vmul.f32 %v3922_v47, %v3922_v47 }
 0x33e   : > { %v12200_v63 = vadd.f32 %v4044_v10, %v4043_v32  ;;  %3987 = vadd.xlane.f32.xlu0 %v3986_v34 }
 0x33f   : > { %v12202_v28 = vpop.xlane.xlu1 %1945 }
 0x340   : > { %v12204_v4 = vpop.xlane.xlu0 %1855  ;;  %v3926_v49 = vpop.f32.mrb[16].mxu1 }
 0x341   : > { %v4045_v59 = vmul.f32 %v3926_v49, %v3926_v49  ;;  %v3928_v11 = vpop.f32.mrb[17].mxu1 }
 0x342   : > { %v3989_v40 = vadd.f32 %v3928_v11, %v3926_v49  ;;  %v4046_v29 = vmul.f32 %v3928_v11, %v3928_v11  ;;  %v3930_v33 = vpop.f32.mrb[18].mxu1 }
 0x343   : > { %v6754_v22 = vpop.permute.xlu1 %6753  ;;  %v4047_v56 = vmul.f32 %v3930_v33, %v3930_v33  ;;  %v3932_v17 = vpop.f32.mrb[19].mxu1 }
 0x344   : > { %6786 = vst.msk [vmem:[#allocation2 + $0x78] sm:$0xff] %vm847_vm7, %v6754_v22  ;;  %v12207_v58 = vpop.xlane.xlu0 %1858  ;;  %v12209_v45 = vadd.f32 %v4046_v29, %v4045_v59  ;;  %v3992_v9 = vadd.f32 %v3932_v17, %v3930_v33  ;;  %v4048_v55 = vmul.f32 %v3932_v17, %v3932_v17 }
 0x346   : > { %v12211_v42 = vadd.f32 %v4048_v55, %v4047_v56  ;;  %3993 = vadd.xlane.f32.xlu0 %v3992_v9 }
 0x348   : > { %v12213_v46 = vpop.xlane.xlu0 %1954  ;;  %v3936_v57 = vpop.f32.mrb[20].mxu1 }
 0x349   : > { %v4049_v7 = vmul.f32 %v3936_v57, %v3936_v57  ;;  %v3938_v52 = vpop.f32.mrb[21].mxu1 }
 0x34a   : > { %v3995_v26 = vadd.f32 %v3938_v52, %v3936_v57  ;;  %v4050_v24 = vmul.f32 %v3938_v52, %v3938_v52  ;;  %v3940_v54 = vpop.f32.mrb[22].mxu1 }
 0x34b   : > { %v4051_v0 = vmul.f32 %v3940_v54, %v3940_v54  ;;  %v3942_v41 = vpop.f32.mrb[23].mxu1 }
 0x34c   : > { %v12215_v23 = vpop.xlane.xlu0 %1864  ;;  %v12217_v30 = vadd.f32 %v4050_v24, %v4049_v7  ;;  %v3998_v62 = vadd.f32 %v3942_v41, %v3940_v54  ;;  %v4052_v13 = vmul.f32 %v3942_v41, %v3942_v41 }
 0x34e   : > { %v4094_v60 = vadd.f32 %v4052_v13, %v4051_v0  ;;  %3999 = vadd.xlane.f32.xlu0 %v3998_v62 }
 0x350   : > { %3969 = vadd.xlane.f32.xlu1 %v12174_v21  ;;  %v12220_v61 = vpop.xlane.xlu0 %1960  ;;  %v3946_v37 = vpop.f32.mrb[24].mxu1 }
 0x351   : > { %v4053_v6 = vmul.f32 %v3946_v37, %v3946_v37  ;;  %v3948_v31 = vpop.f32.mrb[25].mxu1 }
 0x352   : > { %v4001_v44 = vadd.f32 %v3948_v31, %v3946_v37  ;;  %v4054_v51 = vmul.f32 %v3948_v31, %v3948_v31  ;;  %v3950_v18 = vpop.f32.mrb[26].mxu1 }
 0x353   : > { %v4055_v48 = vmul.f32 %v3950_v18, %v3950_v18  ;;  %v3952_v2 = vpop.f32.mrb[27].mxu1 }
 0x354   : > { %3978 = vadd.xlane.f32.xlu1 %v12186_v35  ;;  %v12223_v5 = vpop.xlane.xlu0 %1870  ;;  %v4097_v3 = vadd.f32 %v4054_v51, %v4053_v6  ;;  %v4004_v16 = vadd.f32 %v3952_v2, %v3950_v18  ;;  %v4056_v36 = vmul.f32 %v3952_v2, %v3952_v2 }
 0x356   : > { %v4100_v53 = vadd.f32 %v4056_v36, %v4055_v48  ;;  %4005 = vadd.xlane.f32.xlu0 %v4004_v16 }
 0x358   : > { %3984 = vadd.xlane.f32.xlu1 %v3983_v19  ;;  %v12225_v21 = vpop.xlane.xlu0 %1966  ;;  %v3956_v1 = vpop.f32.mrb[28].mxu1 }
 0x359   : > { %v4057_v15 = vmul.f32 %v3956_v1, %v3956_v1  ;;  %v3958_v32 = vpop.f32.mrb[29].mxu1 }
 0x35a   : > { %v4007_v47 = vadd.f32 %v3958_v32, %v3956_v1  ;;  %v4058_v34 = vmul.f32 %v3958_v32, %v3958_v32  ;;  %v3960_v10 = vpop.f32.mrb[30].mxu1 }
 0x35b   : > { %v4059_v49 = vmul.f32 %v3960_v10, %v3960_v10  ;;  %v3962_v59 = vpop.f32.mrb[31].mxu1 }
 0x35c   : > { %3990 = vadd.xlane.f32.xlu1 %v3989_v40  ;;  %v12227_v35 = vpop.xlane.xlu0 %1876  ;;  %v4103_v11 = vadd.f32 %v4058_v34, %v4057_v15  ;;  %v4010_v29 = vadd.f32 %v3962_v59, %v3960_v10  ;;  %v4060_v33 = vmul.f32 %v3962_v59, %v3962_v59  ;;  %v9443_v40 = vld [vmem:[%s12639_s1 + $0xc0] sm:$0xff]  }
 0x35d   : > { %9279 = vmatprep.mubr.msk.bf16.mxu1 %vm1662_vm10, %v9443_v40 }
 0x35e   : > { %v4106_v22 = vadd.f32 %v4060_v33, %v4059_v49  ;;  %4011 = vadd.xlane.f32.xlu0 %v4010_v29  ;;  %v9445_v29 = vld [vmem:[%s12639_s1 + $0xd0] sm:$0xff]  }
 0x360   : > { %3996 = vadd.xlane.f32.xlu1 %v3995_v26  ;;  %v12229_v19 = vpop.xlane.xlu0 %1972 }
 0x362   : > { %4065 = vadd.xlane.f32.xlu0 %v12178_v20 }
 0x364   : > { %4002 = vadd.xlane.f32.xlu1 %v4001_v44  ;;  %v12232_v56 = vpop.xlane.xlu0 %1882 }
 0x366   : > { %4071 = vadd.xlane.f32.xlu0 %v12184_v39 }
 0x368   : > { %4008 = vadd.xlane.f32.xlu1 %v4007_v47  ;;  %v12235_v17 = vpop.xlane.xlu0 %1978 }
 0x36a   : > { %4077 = vadd.xlane.f32.xlu0 %v12190_v50 }
 0x36c   : > { %4062 = vadd.xlane.f32.xlu1 %v12172_v43  ;;  %v12243_v9 = vpop.xlane.xlu0 %1888 }
 0x36e   : > { %4083 = vadd.xlane.f32.xlu0 %v12200_v63 }
 0x370   : > { %4068 = vadd.xlane.f32.xlu1 %v12182_v38  ;;  %v12247_v20 = vpop.xlane.xlu0 %1984 }
 0x371   : > { %12647 = vst [vmem:[#allocation5_spill] sm:$0xff] %v12247_v20 }
 0x372   : > { %4089 = vadd.xlane.f32.xlu0 %v12211_v42 }
 0x374   : > { %v12250_v39 = vpop.xlane.xlu1 %1951  ;;  %4074 = vadd.xlane.f32.xlu1 %v12188_v27  ;;  %v12253_v55 = vpop.xlane.xlu0 %1894 }
 0x376   : > { %4095 = vadd.xlane.f32.xlu0 %v4094_v60 }
 0x378   : > { %v12255_v50 = vpop.xlane.xlu1 %1861  ;;  %4080 = vadd.xlane.f32.xlu1 %v12198_v8  ;;  %v12258_v43 = vpop.xlane.xlu0 %1990 }
 0x379   : > { %12648 = vst [vmem:[#allocation6_spill] sm:$0xff] %v12258_v43 }
 0x37a   : > { %4101 = vadd.xlane.f32.xlu0 %v4100_v53 }
 0x37c   : > { %v12260_v63 = vpop.xlane.xlu1 %1957  ;;  %4086 = vadd.xlane.f32.xlu1 %v12209_v45  ;;  %v7282_v38 = vpop.permute.xlu0 %7281 }
 0x37d   : > { %7322 = vst.msk [vmem:[#allocation2 + $0x38] sm:$0xff] %vm1028_vm8, %v7282_v38 }
 0x37e   : > { %4107 = vadd.xlane.f32.xlu0 %v4106_v22 }
 0x380   : > { %v12264_v42 = vpop.xlane.xlu1 %1867  ;;  %4092 = vadd.xlane.f32.xlu1 %v12217_v30  ;;  %v7602_v27 = vpop.permute.xlu0 %7601 }
 0x381   : > { %7642 = vst.msk [vmem:[#allocation2 + $0x38] sm:$0xff] %vm1573_vm9, %v7602_v27 }
 0x384   : > { %v12268_v57 = vpop.xlane.xlu1 %1963  ;;  %4098 = vadd.xlane.f32.xlu1 %v4097_v3  ;;  %v9444_v3 = vld [vmem:[%s12639_s1 + $0xc8] sm:$0xff]  }
 0x388   : > { %v12270_v8 = vpop.xlane.xlu1 %1873  ;;  %4104 = vadd.xlane.f32.xlu1 %v4103_v11  ;;  %v7675_v62 = vld [vmem:[#allocation2 + $0x38] sm:$0xff] }
 0x389   : > { %v7770_v13 = vsel %vm1662_vm10, %v7675_v62, 0 }
 0x38c   : > { %v12272_v7 = vpop.xlane.xlu1 %1969 }
 0x390   : > { %v12274_v45 = vpop.xlane.xlu1 %1879 }
 0x394   : > { %v12276_v52 = vpop.xlane.xlu1 %1975 }
 0x398   : > { %v12278_v26 = vpop.xlane.xlu1 %1885 }
 0x39c   : > { %v12280_v24 = vpop.xlane.xlu1 %1981 }
 0x39d   : > { %12649 = vst [vmem:[#allocation7_spill] sm:$0xff] %v12280_v24 }
 0x3a0   : > { %v12282_v54 = vpop.xlane.xlu1 %1891 }
 0x3a4   : > { %v12284_v0 = vpop.xlane.xlu1 %1987 }
 0x3a5   : > { %12650 = vst [vmem:[#allocation8_spill] sm:$0xff] %v12284_v0 }
 0x3a8   : > { %v7298_v41 = vpop.permute.xlu1 %7297 }
 0x3a9   : > { %7330 = vst.msk [vmem:[#allocation2 + $0x78] sm:$0xff] %vm1028_vm8, %v7298_v41 }
 0x3ac   : > { %v7618_v30 = vpop.permute.xlu1 %7617 }
 0x3ad   : > { %7650 = vst.msk [vmem:[#allocation2 + $0x78] sm:$0xff] %vm1573_vm9, %v7618_v30 }
 0x3b4   : > { %v7683_v60 = vld [vmem:[#allocation2 + $0x78] sm:$0xff] }
 0x3b5   : > { %9326 = vmatprep.subr.msk.bf16.mxu1 %vm1662_vm10, %v7683_v60 }
 0x3b6   : > { %9278 = vmatpush3.bf16.xpose.msra.mxu1 %v7770_v13  ;;  %v5716_v37 = vpop.f32.mrb[32].mxu0 }
 0x3b7   : > { %v5859_v6 = vmul.f32 %v5716_v37, %v5716_v37  ;;  %v5718_v31 = vpop.f32.mrb[33].mxu0 }
 0x3b8   : > { %v5795_v44 = vadd.f32 %v5718_v31, %v5716_v37  ;;  %v5860_v51 = vmul.f32 %v5718_v31, %v5718_v31  ;;  %v5720_v18 = vpop.f32.mrb[34].mxu0  ;;  %v9446_v31 = vld [vmem:[%s12639_s1 + $0xd8] sm:$0xff]  }
 0x3b9   : > { %v5861_v48 = vmul.f32 %v5720_v18, %v5720_v18  ;;  %v5722_v2 = vpop.f32.mrb[35].mxu0 }
 0x3ba   : > { %v12293_v16 = vadd.f32 %v5860_v51, %v5859_v6  ;;  %v5798_v36 = vadd.f32 %v5722_v2, %v5720_v18  ;;  %v5862_v53 = vmul.f32 %v5722_v2, %v5722_v2  ;;  %5796 = vadd.xlane.f32.xlu1 %v5795_v44 }
 0x3bc   : > { %v12295_v1 = vadd.f32 %v5862_v53, %v5861_v48  ;;  %5799 = vadd.xlane.f32.xlu0 %v5798_v36 }
 0x3bd   : > { %9280 = vmatmul.mubr.msk.bf16.vlgmr.msra.gmra.mrb[32].mxu1 %vm1662_vm10, %v9443_v40 }
 0x3be   : > { %9281 = vmatprep.mubr.msk.bf16.mxu1 %vm1662_vm10, %v9444_v3 }
 0x3bf   : > { %v5726_v15 = vpop.f32.mrb[36].mxu0 }
 0x3c0   : > { %v5863_v32 = vmul.f32 %v5726_v15, %v5726_v15  ;;  %v5728_v47 = vpop.f32.mrb[37].mxu0 }
 0x3c1   : > { %v5801_v34 = vadd.f32 %v5728_v47, %v5726_v15  ;;  %v5864_v10 = vmul.f32 %v5728_v47, %v5728_v47  ;;  %v5730_v49 = vpop.f32.mrb[38].mxu0 }
 0x3c2   : > { %v5865_v59 = vmul.f32 %v5730_v49, %v5730_v49  ;;  %v5732_v11 = vpop.f32.mrb[39].mxu0 }
 0x3c3   : > { %v12302_v33 = vadd.f32 %v5864_v10, %v5863_v32  ;;  %v5804_v22 = vadd.f32 %v5732_v11, %v5730_v49  ;;  %v5866_v38 = vmul.f32 %v5732_v11, %v5732_v11  ;;  %5802 = vadd.xlane.f32.xlu1 %v5801_v34  ;;  %v9447_v10 = vld [vmem:[%s12639_s1 + $0xe0] sm:$0xff]  }
 0x3c5   : > { %v12304_v40 = vadd.f32 %v5866_v38, %v5865_v59  ;;  %5805 = vadd.xlane.f32.xlu0 %v5804_v22  ;;  %9282 = vmatmul.mubr.msk.bf16.gmra.mrb[36].mxu1 %vm1662_vm10, %v9444_v3 }
 0x3c6   : > { %9283 = vmatprep.mubr.msk.bf16.mxu1 %vm1662_vm10, %v9445_v29 }
 0x3c7   : > { %v5736_v27 = vpop.f32.mrb[40].mxu0 }
 0x3c8   : > { %v5867_v41 = vmul.f32 %v5736_v27, %v5736_v27  ;;  %v5738_v30 = vpop.f32.mrb[41].mxu0 }
 0x3c9   : > { %v5807_v62 = vadd.f32 %v5738_v30, %v5736_v27  ;;  %v5868_v13 = vmul.f32 %v5738_v30, %v5738_v30  ;;  %v5740_v60 = vpop.f32.mrb[42].mxu0 }
 0x3ca   : > { %v5869_v37 = vmul.f32 %v5740_v60, %v5740_v60  ;;  %v5742_v6 = vpop.f32.mrb[43].mxu0 }
 0x3cb   : > { %v12311_v44 = vadd.f32 %v5868_v13, %v5867_v41  ;;  %v5810_v51 = vadd.f32 %v5742_v6, %v5740_v60  ;;  %v5870_v18 = vmul.f32 %v5742_v6, %v5742_v6  ;;  %5808 = vadd.xlane.f32.xlu1 %v5807_v62 }
 0x3cd   : > { %v12313_v48 = vadd.f32 %v5870_v18, %v5869_v37  ;;  %5811 = vadd.xlane.f32.xlu0 %v5810_v51  ;;  %9284 = vmatmul.mubr.msk.bf16.gmra.mrb[40].mxu1 %vm1662_vm10, %v9445_v29  ;;  %v9448_v37 = vld [vmem:[%s12639_s1 + $0xe8] sm:$0xff]  }
 0x3ce   : > { %9285 = vmatprep.mubr.msk.bf16.mxu1 %vm1662_vm10, %v9446_v31 }
 0x3cf   : > { %v5746_v2 = vpop.f32.mrb[44].mxu0 }
 0x3d0   : > { %v5871_v3 = vmul.f32 %v5746_v2, %v5746_v2  ;;  %v5748_v36 = vpop.f32.mrb[45].mxu0 }
 0x3d1   : > { %v5813_v53 = vadd.f32 %v5748_v36, %v5746_v2  ;;  %v5872_v15 = vmul.f32 %v5748_v36, %v5748_v36  ;;  %v5750_v32 = vpop.f32.mrb[46].mxu0 }
 0x3d2   : > { %v5873_v47 = vmul.f32 %v5750_v32, %v5750_v32  ;;  %v5752_v34 = vpop.f32.mrb[47].mxu0 }
 0x3d3   : > { %v12320_v49 = vadd.f32 %v5872_v15, %v5871_v3  ;;  %v5816_v59 = vadd.f32 %v5752_v34, %v5750_v32  ;;  %v5874_v11 = vmul.f32 %v5752_v34, %v5752_v34  ;;  %5814 = vadd.xlane.f32.xlu1 %v5813_v53 }
 0x3d5   : > { %v12322_v29 = vadd.f32 %v5874_v11, %v5873_v47  ;;  %5817 = vadd.xlane.f32.xlu0 %v5816_v59  ;;  %9286 = vmatmul.mubr.msk.bf16.gmra.mrb[44].mxu1 %vm1662_vm10, %v9446_v31  ;;  %v9449_v59 = vld [vmem:[%s12639_s1 + $0xf0] sm:$0xff]  }
 0x3d6   : > { %9287 = vmatprep.mubr.msk.bf16.mxu1 %vm1662_vm10, %v9447_v10 }
 0x3d7   : > { %v5756_v22 = vpop.f32.mrb[48].mxu0 }
 0x3d8   : > { %v5875_v38 = vmul.f32 %v5756_v22, %v5756_v22  ;;  %v5758_v27 = vpop.f32.mrb[49].mxu0 }
 0x3d9   : > { %v5819_v41 = vadd.f32 %v5758_v27, %v5756_v22  ;;  %v5876_v30 = vmul.f32 %v5758_v27, %v5758_v27  ;;  %v5760_v62 = vpop.f32.mrb[50].mxu0 }
 0x3da   : > { %v5877_v13 = vmul.f32 %v5760_v62, %v5760_v62  ;;  %v5762_v60 = vpop.f32.mrb[51].mxu0 }
 0x3db   : > { %v12329_v6 = vadd.f32 %v5876_v30, %v5875_v38  ;;  %v5822_v51 = vadd.f32 %v5762_v60, %v5760_v62  ;;  %v5878_v18 = vmul.f32 %v5762_v60, %v5762_v60  ;;  %5820 = vadd.xlane.f32.xlu1 %v5819_v41 }
 0x3dd   : > { %v12331_v31 = vadd.f32 %v5878_v18, %v5877_v13  ;;  %5823 = vadd.xlane.f32.xlu0 %v5822_v51  ;;  %9288 = vmatmul.mubr.msk.bf16.gmra.mrb[48].mxu1 %vm1662_vm10, %v9447_v10  ;;  %v12340_v51 = vpop.xlane.xlu0 %3966 }
 0x3de   : > { %9289 = vmatprep.mubr.msk.bf16.mxu1 %vm1662_vm10, %v9448_v37  ;;  %12651 = vst [vmem:[#allocation9_spill] sm:$0xff] %v12340_v51 }
 0x3df   : > { %v5766_v2 = vpop.f32.mrb[52].mxu0 }
 0x3e0   : > { %v5879_v3 = vmul.f32 %v5766_v2, %v5766_v2  ;;  %v5768_v36 = vpop.f32.mrb[53].mxu0 }
 0x3e1   : > { %v5825_v53 = vadd.f32 %v5768_v36, %v5766_v2  ;;  %v5880_v15 = vmul.f32 %v5768_v36, %v5768_v36  ;;  %v5770_v32 = vpop.f32.mrb[54].mxu0 }
 0x3e2   : > { %v5881_v47 = vmul.f32 %v5770_v32, %v5770_v32  ;;  %v5772_v34 = vpop.f32.mrb[55].mxu0 }
 0x3e3   : > { %v5921_v11 = vadd.f32 %v5880_v15, %v5879_v3  ;;  %v5828_v22 = vadd.f32 %v5772_v34, %v5770_v32  ;;  %v5882_v38 = vmul.f32 %v5772_v34, %v5772_v34  ;;  %5826 = vadd.xlane.f32.xlu1 %v5825_v53  ;;  %v9450_v3 = vld [vmem:[%s12639_s1 + $0xf8] sm:$0xff]  }
 0x3e5   : > { %v5924_v27 = vadd.f32 %v5882_v38, %v5881_v47  ;;  %5829 = vadd.xlane.f32.xlu0 %v5828_v22  ;;  %9290 = vmatmul.mubr.msk.bf16.gmra.mrb[52].mxu1 %vm1662_vm10, %v9448_v37  ;;  %v12347_v47 = vpop.xlane.xlu0 %3972 }
 0x3e6   : > { %9291 = vmatprep.mubr.msk.bf16.mxu1 %vm1662_vm10, %v9449_v59 }
 0x3e7   : > { %v5776_v10 = vpop.f32.mrb[56].mxu0 }
 0x3e8   : > { %v5883_v41 = vmul.f32 %v5776_v10, %v5776_v10  ;;  %v5778_v30 = vpop.f32.mrb[57].mxu0 }
 0x3e9   : > { %v5831_v62 = vadd.f32 %v5778_v30, %v5776_v10  ;;  %v5884_v13 = vmul.f32 %v5778_v30, %v5778_v30  ;;  %v5780_v60 = vpop.f32.mrb[58].mxu0 }
 0x3ea   : > { %v5885_v18 = vmul.f32 %v5780_v60, %v5780_v60  ;;  %v5782_v2 = vpop.f32.mrb[59].mxu0 }
 0x3eb   : > { %v5927_v36 = vadd.f32 %v5884_v13, %v5883_v41  ;;  %v5834_v53 = vadd.f32 %v5782_v2, %v5780_v60  ;;  %v5886_v15 = vmul.f32 %v5782_v2, %v5782_v2  ;;  %5832 = vadd.xlane.f32.xlu1 %v5831_v62  ;;  %v12349_v41 = vpop.xlane.xlu1 %3969 }
 0x3ec   : > { %12652 = vst [vmem:[#allocation10_spill] sm:$0xff] %v12349_v41  ;;  %v4015_v41 = vadd.f32 %v12347_v47, %v12204_v4 }
 0x3ed   : > { %v5930_v37 = vadd.f32 %v5886_v15, %v5885_v18  ;;  %5835 = vadd.xlane.f32.xlu0 %v5834_v53  ;;  %9292 = vmatmul.mubr.msk.bf16.gmra.mrb[56].mxu1 %vm1662_vm10, %v9449_v59  ;;  %v3976_v59 = vpop.xlane.xlu0 %3975 }
 0x3ee   : > { %9293 = vmatprep.mubr.msk.bf16.mxu1 %vm1662_vm10, %v9450_v3  ;;  %v4016_v51 = vadd.f32 %v3976_v59, %v12207_v58 }
 0x3ef   : > { %v5786_v32 = vpop.f32.mrb[60].mxu0  ;;  %v3979_v2 = vpop.xlane.xlu1 %3978 }
 0x3f0   : > { %v5887_v34 = vmul.f32 %v5786_v32, %v5786_v32  ;;  %v5788_v22 = vpop.f32.mrb[61].mxu0 }
 0x3f1   : > { %v5837_v38 = vadd.f32 %v5788_v22, %v5786_v32  ;;  %v5888_v10 = vmul.f32 %v5788_v22, %v5788_v22  ;;  %v5790_v30 = vpop.f32.mrb[62].mxu0  ;;  %v3982_v53 = vpop.xlane.xlu0 %3981 }
 0x3f2   : > { %v5889_v43 = vmul.f32 %v5790_v30, %v5790_v30  ;;  %v5792_v0 = vpop.f32.mrb[63].mxu0 }
 0x3f3   : > { %v5933_v13 = vadd.f32 %v5888_v10, %v5887_v34  ;;  %v5840_v62 = vadd.f32 %v5792_v0, %v5790_v30  ;;  %v5890_v60 = vmul.f32 %v5792_v0, %v5792_v0  ;;  %5838 = vadd.xlane.f32.xlu1 %v5837_v38  ;;  %v3985_v15 = vpop.xlane.xlu1 %3984 }
 0x3f4   : > { %v4019_v4 = vadd.f32 %v3985_v15, %v12264_v42 }
 0x3f5   : > { %v5936_v18 = vadd.f32 %v5890_v60, %v5889_v43  ;;  %5841 = vadd.xlane.f32.xlu0 %v5840_v62  ;;  %9294 = vmatmul.mubr.msk.bf16.gmra.mrb[60].mxu1 %vm1662_vm10, %v9450_v3  ;;  %v3988_v43 = vpop.xlane.xlu0 %3987 }
 0x3f6   : > { %v4020_v58 = vadd.f32 %v3988_v43, %v12223_v5 }
 0x3f7   : > { %5892 = vadd.xlane.f32.xlu1 %v12293_v16  ;;  %v3991_v0 = vpop.xlane.xlu1 %3990 }
 0x3f9   : > { %5895 = vadd.xlane.f32.xlu0 %v12295_v1  ;;  %v3994_v16 = vpop.xlane.xlu0 %3993 }
 0x3fb   : > { %5898 = vadd.xlane.f32.xlu1 %v12302_v33  ;;  %v3997_v1 = vpop.xlane.xlu1 %3996 }
 0x3fc   : > { %v4023_v42 = vadd.f32 %v3997_v1, %v12274_v45 }
 0x3fd   : > { %5901 = vadd.xlane.f32.xlu0 %v12304_v40  ;;  %v4000_v33 = vpop.xlane.xlu0 %3999 }
 0x3fe   : > { %v4024_v5 = vadd.f32 %v4000_v33, %v12232_v56 }
 0x3ff   : > { %5904 = vadd.xlane.f32.xlu1 %v12311_v44  ;;  %v4003_v40 = vpop.xlane.xlu1 %4002 }
 0x401   : > { %5907 = vadd.xlane.f32.xlu0 %v12313_v48  ;;  %v4006_v44 = vpop.xlane.xlu0 %4005 }
 0x403   : > { %5910 = vadd.xlane.f32.xlu1 %v12320_v49  ;;  %v4009_v48 = vpop.xlane.xlu1 %4008 }
 0x404   : > { %v4027_v45 = vadd.f32 %v4009_v48, %v12282_v54 }
 0x405   : > { %5913 = vadd.xlane.f32.xlu0 %v12322_v29  ;;  %v4012_v49 = vpop.xlane.xlu0 %4011 }
 0x406   : > { %v4028_v56 = vadd.f32 %v4012_v49, %v12253_v55 }
 0x407   : > { %5916 = vadd.xlane.f32.xlu1 %v12329_v6  ;;  %v4063_v3 = vpop.xlane.xlu1 %4062 }
 0x409   : > { %5919 = vadd.xlane.f32.xlu0 %v12331_v31  ;;  %v4066_v32 = vpop.xlane.xlu0 %4065 }
 0x40b   : > { %5922 = vadd.xlane.f32.xlu1 %v5921_v11  ;;  %v12362_v29 = vpop.xlane.xlu1 %4068 }
 0x40d   : > { %5925 = vadd.xlane.f32.xlu0 %v5924_v27  ;;  %v12364_v6 = vpop.xlane.xlu0 %4071 }
 0x40e   : > { %v4112_v55 = vadd.f32 %v12364_v6, %v12213_v46 }
 0x40f   : > { %5928 = vadd.xlane.f32.xlu1 %v5927_v36  ;;  %v12366_v34 = vpop.xlane.xlu1 %4074 }
 0x411   : > { %5931 = vadd.xlane.f32.xlu0 %v5930_v37  ;;  %v12368_v31 = vpop.xlane.xlu0 %4077 }
 0x413   : > { %5934 = vadd.xlane.f32.xlu1 %v5933_v13  ;;  %v12370_v11 = vpop.xlane.xlu1 %4080 }
 0x415   : > { %5937 = vadd.xlane.f32.xlu0 %v5936_v18  ;;  %v12372_v27 = vpop.xlane.xlu0 %4083 }
 0x417   : > { %v12374_v36 = vpop.xlane.xlu1 %4086 }
 0x419   : > { %v12376_v37 = vpop.xlane.xlu0 %4089 }
 0x41b   : > { %v12378_v22 = vpop.xlane.xlu1 %4092 }
 0x41d   : > { %v12380_v38 = vpop.xlane.xlu0 %4095 }
 0x41f   : > { %v12382_v10 = vpop.xlane.xlu1 %4098 }
 0x420   : > { %12653 = vst [vmem:[#allocation11_spill] sm:$0xff] %v12382_v10 }
 0x421   : > { %v12384_v30 = vpop.xlane.xlu0 %4101 }
 0x422   : > { %12654 = vst [vmem:[#allocation12_spill] sm:$0xff] %v12384_v30  ;;  %v4017_v30 = vadd.f32 %v3979_v2, %v12255_v50  ;;  %v4021_v50 = vadd.f32 %v3991_v0, %v12270_v8  ;;  %v4025_v8 = vadd.f32 %v4003_v40, %v12278_v26 }
 0x423   : > { %v12386_v13 = vpop.xlane.xlu1 %4104 }
 0x424   : > { %12655 = vst [vmem:[#allocation13_spill] sm:$0xff] %v12386_v13 }
 0x425   : > { %v12388_v62 = vpop.xlane.xlu0 %4107 }
 0x426   : > { %12656 = vst [vmem:[#allocation14_spill] sm:$0xff] %v12388_v62  ;;  %v4018_v62 = vadd.f32 %v3982_v53, %v12215_v23  ;;  %v4022_v23 = vadd.f32 %v3994_v16, %v12227_v35  ;;  %v4026_v35 = vadd.f32 %v4006_v44, %v12243_v9  ;;  %v4110_v9 = vadd.f32 %v4066_v32, %v12196_v12 }
 0x427   : > { %v4114_v32 = vadd.f32 %v12368_v31, %v12220_v61 }
 0x447   : > { %v12390_v60 = vpop.xlane.xlu1 %5796 }
 0x448   : > { %12657 = vst [vmem:[#allocation15_spill] sm:$0xff] %v12390_v60 }
 0x449   : > { %v12392_v18 = vpop.xlane.xlu0 %5799 }
 0x44a   : > { %12658 = vst [vmem:[#allocation16_spill] sm:$0xff] %v12392_v18 }
 0x450   : > { %v5803_v14 = vpop.xlane.xlu1 %5802 }
 0x451   : > { %v12397_v25 = vadd.f32 %v5803_v14, %v4015_v41 }
 0x452   : > { %v5806_v20 = vpop.xlane.xlu0 %5805 }
 0x453   : > { %v12399_v10 = vadd.f32 %v5806_v20, %v4016_v51 }
 0x458   : > { %v5809_v13 = vpop.xlane.xlu1 %5808 }
 0x459   : > { %v12403_v24 = vadd.f32 %v5809_v13, %v4017_v30 }
 0x45a   : > { %v5812_v60 = vpop.xlane.xlu0 %5811 }
 0x45b   : > { %v12405_v18 = vadd.f32 %v5812_v60, %v4018_v62 }
 0x460   : > { %v5815_v47 = vpop.xlane.xlu1 %5814 }
 0x461   : > { %v12409_v14 = vadd.f32 %v5815_v47, %v4019_v4  ;;  %v4109_v47 = vadd.f32 %v4063_v3, %v12202_v28  ;;  %v4113_v3 = vadd.f32 %v12366_v34, %v12260_v63 }
 0x462   : > { %v5818_v41 = vpop.xlane.xlu0 %5817 }
 0x463   : > { %v12411_v20 = vadd.f32 %v5818_v41, %v4020_v58  ;;  %v4111_v41 = vadd.f32 %v12362_v29, %v12250_v39  ;;  %v4115_v29 = vadd.f32 %v12370_v11, %v12268_v57 }
 0x468   : > { %v5821_v51 = vpop.xlane.xlu1 %5820 }
 0x469   : > { %v12415_v59 = vadd.f32 %v5821_v51, %v4021_v50 }
 0x46a   : > { %v5824_v2 = vpop.xlane.xlu0 %5823 }
 0x46b   : > { %v12417_v53 = vadd.f32 %v5824_v2, %v4022_v23  ;;  %v4116_v2 = vadd.f32 %v12372_v27, %v12225_v21  ;;  %v4118_v27 = vadd.f32 %v12376_v37, %v12229_v19 }
 0x470   : > { %v5827_v15 = vpop.xlane.xlu1 %5826 }
 0x471   : > { %v12421_v43 = vadd.f32 %v5827_v15, %v4023_v42 }
 0x472   : > { %v5830_v30 = vpop.xlane.xlu0 %5829 }
 0x473   : > { %v12423_v13 = vadd.f32 %v5830_v30, %v4024_v5  ;;  %v4117_v30 = vadd.f32 %v12374_v36, %v12272_v7  ;;  %v4119_v7 = vadd.f32 %v12378_v22, %v12276_v52 }
 0x478   : > { %v5833_v0 = vpop.xlane.xlu1 %5832 }
 0x479   : > { %v12427_v16 = vadd.f32 %v5833_v0, %v4025_v8 }
 0x47a   : > { %v5836_v62 = vpop.xlane.xlu0 %5835 }
 0x47b   : > { %v12429_v60 = vadd.f32 %v5836_v62, %v4026_v35 }
 0x480   : > { %v5839_v1 = vpop.xlane.xlu1 %5838 }
 0x481   : > { %v12433_v33 = vadd.f32 %v5839_v1, %v4027_v45 }
 0x482   : > { %v5842_v4 = vpop.xlane.xlu0 %5841 }
 0x483   : > { %v12436_v58 = vadd.f32 %v5842_v4, %v4028_v56 }
 0x484   : > { %v5893_v26 = vpop.xlane.xlu1 %5892 }
 0x485   : > { %v12439_v40 = vadd.f32 %v5893_v26, %v4109_v47  ;;  %v4120_v26 = vadd.f32 %v12380_v38, %v12235_v17  ;;  %v12661_v38 = vld [vmem:[#allocation5_spill] sm:$0xff] }
 0x486   : > { %v5896_v44 = vpop.xlane.xlu0 %5895 }
 0x487   : > { %v12443_v54 = vadd.f32 %v5896_v44, %v4110_v9 }
 0x488   : > { %v5899_v48 = vpop.xlane.xlu1 %5898 }
 0x489   : > { %v12447_v49 = vadd.f32 %v5899_v48, %v4111_v41 }
 0x48a   : > { %v5902_v28 = vpop.xlane.xlu0 %5901 }
 0x48b   : > { %v12451_v50 = vadd.f32 %v5902_v28, %v4112_v55  ;;  %v12659_v28 = vld [vmem:[#allocation7_spill] sm:$0xff] }
 0x48c   : > { %v5905_v12 = vpop.xlane.xlu1 %5904 }
 0x48d   : > { %v12455_v51 = vadd.f32 %v5905_v12, %v4113_v3  ;;  %v12660_v3 = vld [vmem:[#allocation11_spill] sm:$0xff] }
 0x48e   : > { %v5908_v39 = vpop.xlane.xlu0 %5907  ;;  %v4121_v12 = vadd.f32 %v12660_v3, %v12659_v28 }
 0x48f   : > { %v12459_v23 = vadd.f32 %v5908_v39, %v4114_v32 }
 0x490   : > { %v5911_v46 = vpop.xlane.xlu1 %5910  ;;  %v7830_v6 = vpop.f32.mrb[32].mxu1 }
 0x491   : > { %v12463_v63 = vadd.f32 %v5911_v46, %v4115_v29  ;;  %v7973_v34 = vmul.f32 %v7830_v6, %v7830_v6  ;;  %v7832_v42 = vpop.f32.mrb[33].mxu1 }
 0x492   : > { %v5914_v15 = vpop.xlane.xlu0 %5913  ;;  %v7909_v5 = vadd.f32 %v7832_v42, %v7830_v6  ;;  %v7974_v61 = vmul.f32 %v7832_v42, %v7832_v42  ;;  %v7834_v31 = vpop.f32.mrb[34].mxu1  ;;  %v12662_v6 = vld [vmem:[#allocation12_spill] sm:$0xff] }
 0x493   : > { %v12467_v8 = vadd.f32 %v5914_v15, %v4116_v2  ;;  %v7975_v57 = vmul.f32 %v7834_v31, %v7834_v31  ;;  %v7836_v11 = vpop.f32.mrb[35].mxu1  ;;  %v4122_v2 = vadd.f32 %v12662_v6, %v12661_v38 }
 0x494   : > { %v5917_v0 = vpop.xlane.xlu1 %5916  ;;  %v12469_v35 = vadd.f32 %v7974_v61, %v7973_v34  ;;  %v7912_v62 = vadd.f32 %v7836_v11, %v7834_v31  ;;  %v7976_v21 = vmul.f32 %v7836_v11, %v7836_v11  ;;  %7910 = vadd.xlane.f32.xlu1 %v7909_v5 }
 0x495   : > { %v12473_v45 = vadd.f32 %v5917_v0, %v4117_v30 }
 0x496   : > { %v5920_v1 = vpop.xlane.xlu0 %5919  ;;  %v12475_v56 = vadd.f32 %v7976_v21, %v7975_v57  ;;  %7913 = vadd.xlane.f32.xlu0 %v7912_v62 }
 0x497   : > { %v12479_v36 = vadd.f32 %v5920_v1, %v4118_v27 }
 0x498   : > { %v5923_v4 = vpop.xlane.xlu1 %5922  ;;  %v7840_v47 = vpop.f32.mrb[36].mxu1 }
 0x499   : > { %v12483_v9 = vadd.f32 %v5923_v4, %v4119_v7  ;;  %v7977_v44 = vmul.f32 %v7840_v47, %v7840_v47  ;;  %v7842_v19 = vpop.f32.mrb[37].mxu1 }
 0x49a   : > { %v5926_v37 = vpop.xlane.xlu0 %5925  ;;  %v7915_v41 = vadd.f32 %v7842_v19, %v7840_v47  ;;  %v7978_v48 = vmul.f32 %v7842_v19, %v7842_v19  ;;  %v7844_v55 = vpop.f32.mrb[38].mxu1 }
 0x49b   : > { %v12487_v32 = vadd.f32 %v5926_v37, %v4120_v26  ;;  %v7979_v52 = vmul.f32 %v7844_v55, %v7844_v55  ;;  %v7846_v22 = vpop.f32.mrb[39].mxu1 }
 0x49c   : > { %v5929_v39 = vpop.xlane.xlu1 %5928  ;;  %v12489_v29 = vadd.f32 %v7978_v48, %v7977_v44  ;;  %v7918_v46 = vadd.f32 %v7846_v22, %v7844_v55  ;;  %v7980_v17 = vmul.f32 %v7846_v22, %v7846_v22  ;;  %7916 = vadd.xlane.f32.xlu1 %v7915_v41 }
 0x49d   : > { %v12493_v34 = vadd.f32 %v5929_v39, %v4121_v12 }
 0x49e   : > { %v5932_v42 = vpop.xlane.xlu0 %5931  ;;  %v12495_v15 = vadd.f32 %v7980_v17, %v7979_v52  ;;  %7919 = vadd.xlane.f32.xlu0 %v7918_v46 }
 0x49f   : > { %v12497_v5 = vadd.f32 %v5932_v42, %v4122_v2 }
 0x4a0   : > { %v7850_v61 = vpop.f32.mrb[40].mxu1 }
 0x4a1   : > { %v7981_v31 = vmul.f32 %v7850_v61, %v7850_v61  ;;  %v7852_v30 = vpop.f32.mrb[41].mxu1 }
 0x4a2   : > { %v7921_v57 = vadd.f32 %v7852_v30, %v7850_v61  ;;  %v7982_v11 = vmul.f32 %v7852_v30, %v7852_v30  ;;  %v7854_v0 = vpop.f32.mrb[42].mxu1 }
 0x4a3   : > { %v7983_v62 = vmul.f32 %v7854_v0, %v7854_v0  ;;  %v7856_v21 = vpop.f32.mrb[43].mxu1 }
 0x4a4   : > { %v12499_v27 = vadd.f32 %v7982_v11, %v7981_v31  ;;  %v7924_v1 = vadd.f32 %v7856_v21, %v7854_v0  ;;  %v7984_v7 = vmul.f32 %v7856_v21, %v7856_v21  ;;  %7922 = vadd.xlane.f32.xlu1 %v7921_v57 }
 0x4a6   : > { %v12501_v4 = vadd.f32 %v7984_v7, %v7983_v62  ;;  %7925 = vadd.xlane.f32.xlu0 %v7924_v1 }
 0x4a8   : > { %v7860_v47 = vpop.f32.mrb[44].mxu1 }
 0x4a9   : > { %v7985_v26 = vmul.f32 %v7860_v47, %v7860_v47  ;;  %v7862_v44 = vpop.f32.mrb[45].mxu1 }
 0x4aa   : > { %v7927_v19 = vadd.f32 %v7862_v44, %v7860_v47  ;;  %v7986_v37 = vmul.f32 %v7862_v44, %v7862_v44  ;;  %v7864_v41 = vpop.f32.mrb[46].mxu1 }
 0x4ab   : > { %v7987_v48 = vmul.f32 %v7864_v41, %v7864_v41  ;;  %v7866_v55 = vpop.f32.mrb[47].mxu1 }
 0x4ac   : > { %v12503_v28 = vadd.f32 %v7986_v37, %v7985_v26  ;;  %v7930_v3 = vadd.f32 %v7866_v55, %v7864_v41  ;;  %v7988_v12 = vmul.f32 %v7866_v55, %v7866_v55  ;;  %7928 = vadd.xlane.f32.xlu1 %v7927_v19 }
 0x4ae   : > { %v12505_v52 = vadd.f32 %v7988_v12, %v7987_v48  ;;  %7931 = vadd.xlane.f32.xlu0 %v7930_v3 }
 0x4b0   : > { %v7870_v22 = vpop.f32.mrb[48].mxu1 }
 0x4b1   : > { %v7989_v39 = vmul.f32 %v7870_v22, %v7870_v22  ;;  %v7872_v46 = vpop.f32.mrb[49].mxu1 }
 0x4b2   : > { %v7933_v17 = vadd.f32 %v7872_v46, %v7870_v22  ;;  %v7990_v38 = vmul.f32 %v7872_v46, %v7872_v46  ;;  %v7874_v6 = vpop.f32.mrb[50].mxu1 }
 0x4b3   : > { %v7991_v2 = vmul.f32 %v7874_v6, %v7874_v6  ;;  %v7876_v42 = vpop.f32.mrb[51].mxu1 }
 0x4b4   : > { %v8029_v61 = vadd.f32 %v7990_v38, %v7989_v39  ;;  %v7936_v31 = vadd.f32 %v7876_v42, %v7874_v6  ;;  %v7992_v30 = vmul.f32 %v7876_v42, %v7876_v42  ;;  %7934 = vadd.xlane.f32.xlu1 %v7933_v17 }
 0x4b6   : > { %v8032_v57 = vadd.f32 %v7992_v30, %v7991_v2  ;;  %7937 = vadd.xlane.f32.xlu0 %v7936_v31 }
 0x4b8   : > { %v7880_v11 = vpop.f32.mrb[52].mxu1 }
 0x4b9   : > { %v7993_v0 = vmul.f32 %v7880_v11, %v7880_v11  ;;  %v7882_v62 = vpop.f32.mrb[53].mxu1 }
 0x4ba   : > { %v7939_v21 = vadd.f32 %v7882_v62, %v7880_v11  ;;  %v7994_v1 = vmul.f32 %v7882_v62, %v7882_v62  ;;  %v7884_v7 = vpop.f32.mrb[54].mxu1 }
 0x4bb   : > { %v7995_v47 = vmul.f32 %v7884_v7, %v7884_v7  ;;  %v7886_v26 = vpop.f32.mrb[55].mxu1 }
 0x4bc   : > { %v8035_v44 = vadd.f32 %v7994_v1, %v7993_v0  ;;  %v7942_v19 = vadd.f32 %v7886_v26, %v7884_v7  ;;  %v7996_v37 = vmul.f32 %v7886_v26, %v7886_v26  ;;  %7940 = vadd.xlane.f32.xlu1 %v7939_v21 }
 0x4be   : > { %v8038_v41 = vadd.f32 %v7996_v37, %v7995_v47  ;;  %7943 = vadd.xlane.f32.xlu0 %v7942_v19 }
 0x4c0   : > { %v7890_v48 = vpop.f32.mrb[56].mxu1 }
 0x4c1   : > { %v7997_v55 = vmul.f32 %v7890_v48, %v7890_v48  ;;  %v7892_v3 = vpop.f32.mrb[57].mxu1 }
 0x4c2   : > { %v7945_v12 = vadd.f32 %v7892_v3, %v7890_v48  ;;  %v7998_v22 = vmul.f32 %v7892_v3, %v7892_v3  ;;  %v7894_v39 = vpop.f32.mrb[58].mxu1 }
 0x4c3   : > { %v7999_v46 = vmul.f32 %v7894_v39, %v7894_v39  ;;  %v7896_v17 = vpop.f32.mrb[59].mxu1 }
 0x4c4   : > { %v8041_v38 = vadd.f32 %v7998_v22, %v7997_v55  ;;  %v7948_v6 = vadd.f32 %v7896_v17, %v7894_v39  ;;  %v8000_v2 = vmul.f32 %v7896_v17, %v7896_v17  ;;  %7946 = vadd.xlane.f32.xlu1 %v7945_v12 }
 0x4c6   : > { %v8044_v42 = vadd.f32 %v8000_v2, %v7999_v46  ;;  %7949 = vadd.xlane.f32.xlu0 %v7948_v6 }
 0x4c8   : > { %v7900_v31 = vpop.f32.mrb[60].mxu1 }
 0x4c9   : > { %v8001_v30 = vmul.f32 %v7900_v31, %v7900_v31  ;;  %v7902_v11 = vpop.f32.mrb[61].mxu1 }
 0x4ca   : > { %v7951_v0 = vadd.f32 %v7902_v11, %v7900_v31  ;;  %v8002_v62 = vmul.f32 %v7902_v11, %v7902_v11  ;;  %v7904_v21 = vpop.f32.mrb[62].mxu1 }
 0x4cb   : > { %v8003_v1 = vmul.f32 %v7904_v21, %v7904_v21  ;;  %v7906_v7 = vpop.f32.mrb[63].mxu1 }
 0x4cc   : > { %v8047_v47 = vadd.f32 %v8002_v62, %v8001_v30  ;;  %v7954_v26 = vadd.f32 %v7906_v7, %v7904_v21  ;;  %v8004_v19 = vmul.f32 %v7906_v7, %v7906_v7  ;;  %7952 = vadd.xlane.f32.xlu1 %v7951_v0 }
 0x4ce   : > { %v8050_v37 = vadd.f32 %v8004_v19, %v8003_v1  ;;  %7955 = vadd.xlane.f32.xlu0 %v7954_v26 }
 0x4d0   : > { %8006 = vadd.xlane.f32.xlu1 %v12469_v35  ;;  %v12515_v35 = vpop.xlane.xlu1 %5934 }
 0x4d2   : > { %8009 = vadd.xlane.f32.xlu0 %v12475_v56  ;;  %v12663_v56 = vld [vmem:[#allocation3_spill] sm:$0xff] }
 0x4d4   : > { %8012 = vadd.xlane.f32.xlu1 %v12489_v29  ;;  %v12664_v29 = vld [vmem:[#allocation9_spill] sm:$0xff] }
 0x4d6   : > { %8015 = vadd.xlane.f32.xlu0 %v12495_v15  ;;  %v4013_v15 = vadd.f32 %v12664_v29, %v12663_v56 }
 0x4d8   : > { %8018 = vadd.xlane.f32.xlu1 %v12499_v27  ;;  %v12520_v27 = vpop.xlane.xlu0 %5937 }
 0x4da   : > { %8021 = vadd.xlane.f32.xlu0 %v12501_v4  ;;  %v12665_v4 = vld [vmem:[#allocation4_spill] sm:$0xff] }
 0x4dc   : > { %8024 = vadd.xlane.f32.xlu1 %v12503_v28  ;;  %v12666_v28 = vld [vmem:[#allocation10_spill] sm:$0xff] }
 0x4dd   : > { %v4014_v48 = vadd.f32 %v12666_v28, %v12665_v4 }
 0x4de   : > { %8027 = vadd.xlane.f32.xlu0 %v12505_v52  ;;  %v12667_v52 = vld [vmem:[#allocation15_spill] sm:$0xff] }
 0x4e0   : > { %8030 = vadd.xlane.f32.xlu1 %v8029_v61  ;;  %v5843_v61 = vadd.f32 %v12667_v52, %v4013_v15 }
 0x4e2   : > { %8033 = vadd.xlane.f32.xlu0 %v8032_v57 }
 0x4e4   : > { %8036 = vadd.xlane.f32.xlu1 %v8035_v44  ;;  %v12668_v44 = vld [vmem:[#allocation16_spill] sm:$0xff] }
 0x4e6   : > { %8039 = vadd.xlane.f32.xlu0 %v8038_v41  ;;  %v5844_v41 = vadd.f32 %v12668_v44, %v4014_v48 }
 0x4e8   : > { %8042 = vadd.xlane.f32.xlu1 %v8041_v38 }
 0x4ea   : > { %8045 = vadd.xlane.f32.xlu0 %v8044_v42 }
 0x4ec   : > { %8048 = vadd.xlane.f32.xlu1 %v8047_v47 }
 0x4ee   : > { %8051 = vadd.xlane.f32.xlu0 %v8050_v37 }
 0x521   : > { %v7911_v57 = vpop.xlane.xlu1 %7910 }
 0x522   : > { %v7957_v55 = vadd.f32 %v7911_v57, %v5843_v61 }
 0x523   : > { %v7914_v3 = vpop.xlane.xlu0 %7913 }
 0x524   : > { %8070 = vst.msk [vmem:[%s12528_s28] sm:$0xff] %vm8069_vm11, %v7957_v55  ;;  %v7958_v12 = vadd.f32 %v7914_v3, %v5844_v41  ;;  %v12670_v55 = vld [vmem:[#allocation13_spill] sm:$0xff] }
 0x526   : > { %8071 = vst.msk [vmem:[%s12528_s28 + $0x8] sm:$0xff] %vm8069_vm11, %v7958_v12 }
 0x529   : > { %v7917_v22 = vpop.xlane.xlu1 %7916 }
 0x52a   : > { %v7959_v39 = vadd.f32 %v7917_v22, %v12397_v25  ;;  %v12671_v22 = vld [vmem:[#allocation6_spill] sm:$0xff] }
 0x52b   : > { %v7920_v46 = vpop.xlane.xlu0 %7919 }
 0x52c   : > { %8072 = vst.msk [vmem:[%s12528_s28 + $0x10] sm:$0xff] %vm8069_vm11, %v7959_v39  ;;  %v7960_v17 = vadd.f32 %v7920_v46, %v12399_v10  ;;  %v12672_v39 = vld [vmem:[#allocation14_spill] sm:$0xff] }
 0x52d   : > { %v4124_v46 = vadd.f32 %v12672_v39, %v12671_v22 }
 0x52e   : > { %8073 = vst.msk [vmem:[%s12528_s28 + $0x18] sm:$0xff] %vm8069_vm11, %v7960_v17 }
 0x531   : > { %v7923_v38 = vpop.xlane.xlu1 %7922 }
 0x532   : > { %v7961_v6 = vadd.f32 %v7923_v38, %v12403_v24  ;;  %v5954_v38 = vadd.f32 %v12520_v27, %v4124_v46 }
 0x533   : > { %v7926_v2 = vpop.xlane.xlu0 %7925 }
 0x534   : > { %8074 = vst.msk [vmem:[%s12528_s28 + $0x20] sm:$0xff] %vm8069_vm11, %v7961_v6  ;;  %v7962_v42 = vadd.f32 %v7926_v2, %v12405_v18 }
 0x536   : > { %8075 = vst.msk [vmem:[%s12528_s28 + $0x28] sm:$0xff] %vm8069_vm11, %v7962_v42 }
 0x539   : > { %v7929_v25 = vpop.xlane.xlu1 %7928 }
 0x53a   : > { %v7963_v31 = vadd.f32 %v7929_v25, %v12409_v14 }
 0x53b   : > { %v7932_v10 = vpop.xlane.xlu0 %7931 }
 0x53c   : > { %8076 = vst.msk [vmem:[%s12528_s28 + $0x30] sm:$0xff] %vm8069_vm11, %v7963_v31  ;;  %v7964_v30 = vadd.f32 %v7932_v10, %v12411_v20 }
 0x53e   : > { %8077 = vst.msk [vmem:[%s12528_s28 + $0x38] sm:$0xff] %vm8069_vm11, %v7964_v30 }
 0x541   : > { %v7935_v24 = vpop.xlane.xlu1 %7934 }
 0x542   : > { %v7965_v11 = vadd.f32 %v7935_v24, %v12415_v59 }
 0x543   : > { %v7938_v18 = vpop.xlane.xlu0 %7937 }
 0x544   : > { %8078 = vst.msk [vmem:[%s12528_s28 + $0x40] sm:$0xff] %vm8069_vm11, %v7965_v11  ;;  %v7966_v0 = vadd.f32 %v7938_v18, %v12417_v53 }
 0x546   : > { %8079 = vst.msk [vmem:[%s12528_s28 + $0x48] sm:$0xff] %vm8069_vm11, %v7966_v0 }
 0x549   : > { %v7941_v14 = vpop.xlane.xlu1 %7940 }
 0x54a   : > { %v7967_v62 = vadd.f32 %v7941_v14, %v12421_v43 }
 0x54b   : > { %v7944_v21 = vpop.xlane.xlu0 %7943 }
 0x54c   : > { %8080 = vst.msk [vmem:[%s12528_s28 + $0x50] sm:$0xff] %vm8069_vm11, %v7967_v62  ;;  %v7968_v20 = vadd.f32 %v7944_v21, %v12423_v13 }
 0x54e   : > { %8081 = vst.msk [vmem:[%s12528_s28 + $0x58] sm:$0xff] %vm8069_vm11, %v7968_v20 }
 0x551   : > { %v7947_v59 = vpop.xlane.xlu1 %7946 }
 0x552   : > { %v7969_v1 = vadd.f32 %v7947_v59, %v12427_v16 }
 0x553   : > { %v7950_v7 = vpop.xlane.xlu0 %7949 }
 0x554   : > { %8082 = vst.msk [vmem:[%s12528_s28 + $0x60] sm:$0xff] %vm8069_vm11, %v7969_v1  ;;  %v7970_v53 = vadd.f32 %v7950_v7, %v12429_v60 }
 0x556   : > { %8083 = vst.msk [vmem:[%s12528_s28 + $0x68] sm:$0xff] %vm8069_vm11, %v7970_v53 }
 0x559   : > { %v7953_v43 = vpop.xlane.xlu1 %7952 }
 0x55a   : > { %v7971_v47 = vadd.f32 %v7953_v43, %v12433_v33 }
 0x55b   : > { %v7956_v26 = vpop.xlane.xlu0 %7955 }
 0x55c   : > { %8084 = vst.msk [vmem:[%s12528_s28 + $0x70] sm:$0xff] %vm8069_vm11, %v7971_v47  ;;  %v7972_v13 = vadd.f32 %v7956_v26, %v12436_v58 }
 0x55d   : > { %v8007_v16 = vpop.xlane.xlu1 %8006 }
 0x55e   : > { %8085 = vst.msk [vmem:[%s12528_s28 + $0x78] sm:$0xff] %vm8069_vm11, %v7972_v13  ;;  %v8053_v19 = vadd.f32 %v8007_v16, %v12439_v40 }
 0x55f   : > { %v8010_v60 = vpop.xlane.xlu0 %8009 }
 0x560   : > { %8087 = vst.msk [vmem:[%s12528_s28] sm:$0xff] %vm8086_vm12, %v8053_v19  ;;  %v8054_v37 = vadd.f32 %v8010_v60, %v12443_v54 }
 0x561   : > { %v8013_v33 = vpop.xlane.xlu1 %8012 }
 0x562   : > { %8088 = vst.msk [vmem:[%s12528_s28 + $0x8] sm:$0xff] %vm8086_vm12, %v8054_v37  ;;  %v8055_v56 = vadd.f32 %v8013_v33, %v12447_v49 }
 0x563   : > { %v8016_v58 = vpop.xlane.xlu0 %8015 }
 0x564   : > { %8089 = vst.msk [vmem:[%s12528_s28 + $0x10] sm:$0xff] %vm8086_vm12, %v8055_v56  ;;  %v8056_v29 = vadd.f32 %v8016_v58, %v12451_v50 }
 0x565   : > { %v8019_v15 = vpop.xlane.xlu1 %8018 }
 0x566   : > { %8090 = vst.msk [vmem:[%s12528_s28 + $0x18] sm:$0xff] %vm8086_vm12, %v8056_v29  ;;  %v8057_v40 = vadd.f32 %v8019_v15, %v12455_v51 }
 0x567   : > { %v8022_v4 = vpop.xlane.xlu0 %8021 }
 0x568   : > { %8091 = vst.msk [vmem:[%s12528_s28 + $0x20] sm:$0xff] %vm8086_vm12, %v8057_v40  ;;  %v8058_v54 = vadd.f32 %v8022_v4, %v12459_v23 }
 0x569   : > { %v8025_v28 = vpop.xlane.xlu1 %8024 }
 0x56a   : > { %8092 = vst.msk [vmem:[%s12528_s28 + $0x28] sm:$0xff] %vm8086_vm12, %v8058_v54  ;;  %v8059_v49 = vadd.f32 %v8025_v28, %v12463_v63 }
 0x56b   : > { %v8028_v48 = vpop.xlane.xlu0 %8027 }
 0x56c   : > { %8093 = vst.msk [vmem:[%s12528_s28 + $0x30] sm:$0xff] %vm8086_vm12, %v8059_v49  ;;  %v8060_v50 = vadd.f32 %v8028_v48, %v12467_v8 }
 0x56d   : > { %v8031_v52 = vpop.xlane.xlu1 %8030 }
 0x56e   : > { %8094 = vst.msk [vmem:[%s12528_s28 + $0x38] sm:$0xff] %vm8086_vm12, %v8060_v50  ;;  %v8061_v51 = vadd.f32 %v8031_v52, %v12473_v45  ;;  %v12669_v45 = vld [vmem:[#allocation8_spill] sm:$0xff] }
 0x56f   : > { %v8034_v61 = vpop.xlane.xlu0 %8033  ;;  %v4123_v3 = vadd.f32 %v12670_v55, %v12669_v45 }
 0x570   : > { %8095 = vst.msk [vmem:[%s12528_s28 + $0x40] sm:$0xff] %vm8086_vm12, %v8061_v51  ;;  %v8062_v23 = vadd.f32 %v8034_v61, %v12479_v36 }
 0x571   : > { %v8037_v57 = vpop.xlane.xlu1 %8036 }
 0x572   : > { %8096 = vst.msk [vmem:[%s12528_s28 + $0x48] sm:$0xff] %vm8086_vm12, %v8062_v23  ;;  %v8063_v63 = vadd.f32 %v8037_v57, %v12483_v9  ;;  %v5953_v9 = vadd.f32 %v12515_v35, %v4123_v3 }
 0x573   : > { %v8040_v44 = vpop.xlane.xlu0 %8039 }
 0x574   : > { %8097 = vst.msk [vmem:[%s12528_s28 + $0x50] sm:$0xff] %vm8086_vm12, %v8063_v63  ;;  %v8064_v8 = vadd.f32 %v8040_v44, %v12487_v32 }
 0x575   : > { %v8043_v41 = vpop.xlane.xlu1 %8042 }
 0x576   : > { %8098 = vst.msk [vmem:[%s12528_s28 + $0x58] sm:$0xff] %vm8086_vm12, %v8064_v8  ;;  %v8065_v36 = vadd.f32 %v8043_v41, %v12493_v34 }
 0x577   : > { %v8046_v12 = vpop.xlane.xlu0 %8045 }
 0x578   : > { %8099 = vst.msk [vmem:[%s12528_s28 + $0x60] sm:$0xff] %vm8086_vm12, %v8065_v36  ;;  %v8066_v17 = vadd.f32 %v8046_v12, %v12497_v5 }
 0x579   : > { %v8049_v32 = vpop.xlane.xlu1 %8048 }
 0x57a   : > { %8100 = vst.msk [vmem:[%s12528_s28 + $0x68] sm:$0xff] %vm8086_vm12, %v8066_v17  ;;  %v8067_v6 = vadd.f32 %v8049_v32, %v5953_v9 }
 0x57b   : > { %v8052_v2 = vpop.xlane.xlu0 %8051 }
 0x57c   : > { %8101 = vst.msk [vmem:[%s12528_s28 + $0x70] sm:$0xff] %vm8086_vm12, %v8067_v6  ;;  %v8068_v34 = vadd.f32 %v8052_v2, %v5954_v38 }
 0x57e   : > { %8102 = vst.msk [vmem:[%s12528_s28 + $0x78] sm:$0xff] %vm8086_vm12, %v8068_v34 }
 0x57f PF: > { %s12_s11 = sadd.s32 1, %s9476_s11   ;;  %s12673_s9 = smov %s9472_s10 }
 0x580   : > { %p9_p5 = scmp.ge.s32.totalorder %s12_s11, 4   ;;  %s12674_s10 = smov %s12676_s12 }
 0x582   :  { %11 = sbr.rel (!%p9_p5) target bundleno = 2 (0x2), region = 64 }

</bundles_post_ra>
